<compile_context>
chip_gen: v5e
topology: v5e:2x2
jax: 0.10.0
libtpu: 0.0.40
codegen_flags: <defaults>
</compile_context>

<pallas_src>
import functools

import jax
import jax.numpy as jnp
from jax.experimental import pallas as pl
from jax.experimental.pallas import tpu as pltpu

KERNEL_SIZE = 3
PAD = (KERNEL_SIZE - 1) // 2

_ROW_TILE = 1024                    # decoder row-tile target (multiple of 8)
_VMEM_LIMIT = 32 * 1024 * 1024      # well under v7x's 64 MiB physical VMEM


def _round_up(x, m):
    return ((x + m - 1) // m) * m


def _pick_row_tile(r, target):
    """Row tile: multiple of 8, and (when possible) >=2 grid steps for v7x."""
    r8 = _round_up(r, 8)
    tr = min(target, r8)
    if r8 >= 16:
        tr = min(tr, _round_up(r8 // 2, 8))
    return max(tr, 8)


def _compiler_params(semantics):
    return pltpu.CompilerParams(dimension_semantics=semantics,
                                vmem_limit_bytes=_VMEM_LIMIT)


# --------------------------- activations (in-kernel) -------------------------

def _apply_act(y, act):
    """Element-wise activation on an f32 value inside a kernel."""
    if act == "relu":
        return jnp.maximum(y, 0.0)
    if act == "sigmoid":
        # numerically stable, exact sigmoid (matches torch.sigmoid closely)
        z = jnp.exp(-jnp.abs(y))
        s = 1.0 / (1.0 + z)
        return jnp.where(y >= 0.0, s, 1.0 - s)
    if act == "tanh":
        return jnp.tanh(y)
    raise ValueError(act)


# --------------------------- Pallas kernels ----------------------------------

def _conv_pool_kernel(xq_ref, w_ref, b_ref, o_ref, *, hh, wh, cin, cout,
                      pool_kind):
    """3x3 conv (pad=1) + bias + ReLU + fused 2x2 pool for one batch element.

    xq_ref : (4*(hh+1), wh+1, cin) bf16 - zero-padded input split into the four
             (row, col) parity slabs stacked along dim 0.  In-kernel im2col:
             for pool position (dy,dx) and tap (ky,kx) the needed pixels are a
             CONTIGUOUS window of slab ((dy+ky)%2, (dx+kx)%2) at offset
             ((dy+ky)//2, (dx+kx)//2), so no strided access is ever needed.
    w_ref  : (9, cin, cout) bf16 taps (ky, kx major), b_ref: (1, cout) f32.
    o_ref  : (hh, wh, cout) bf16 pooled output.
    """
    # Hoist tap broadcasts out of the loops (JAX does not CSE broadcast_in_dim).
    taps = [jnp.broadcast_to(w_ref[t], (hh, cin, cout)) for t in range(9)]
    bias = b_ref[...]                                     # (1, cout) f32

    views = {}
    for s in range(4):                       # s = dy + ky
        py, oy = s % 2, s // 2
        for t in range(4):                   # t = dx + kx
            px, ox = t % 2, t // 2
            base = (2 * py + px) * (hh + 1)
            views[(s, t)] = xq_ref[base + oy:base + oy + hh, ox:ox + wh, :]

    pos = []
    for dy in range(2):
        for dx in range(2):
            acc = jnp.zeros((hh, wh, cout), jnp.float32)
            for ky in range(3):
                for kx in range(3):
                    acc = acc + jnp.einsum(
                        "hwc,hcd->hwd",
                        views[(dy + ky, dx + kx)], taps[3 * ky + kx],
                        preferred_element_type=jnp.float32)
            pos.append(jnp.maximum(acc + bias, 0.0))      # bias + ReLU, f32

    y00, y01, y10, y11 = pos
    if pool_kind == "avg":          # nn.AvgPool2d((2, 2))
        o = (y00 + y01 + y10 + y11) * 0.25
    elif pool_kind == "lp2":        # nn.LPPool2d(2, (2, 2)) -> sqrt(sum x^2)
        o = jnp.sqrt(y00 * y00 + y01 * y01 + y10 * y10 + y11 * y11)
    else:                           # nn.MaxPool2d((2, 2))
        o = jnp.maximum(jnp.maximum(y00, y01), jnp.maximum(y10, y11))
    o_ref[...] = o.astype(o_ref.dtype)


def _fc_fused_kernel(x_ref, w1_ref, b1_ref, w2_ref, b2_ref, o_ref):
    """fc1 -> ReLU -> fc2 -> ReLU with VMEM-resident pre-transposed weights."""
    h = jnp.dot(x_ref[...], w1_ref[...], preferred_element_type=jnp.float32)
    h = jnp.maximum(h + b1_ref[...], 0.0).astype(jnp.bfloat16)
    y = jnp.dot(h, w2_ref[...], preferred_element_type=jnp.float32)
    o_ref[...] = jnp.maximum(y + b2_ref[...], 0.0).astype(o_ref.dtype)


def _decoder_kernel(x_ref, w1_ref, b1_ref, w2_ref, b2_ref, w3_ref, b3_ref,
                    o_ref, *, act1, act2, act3):
    """Fused unconv1 -> act1 -> unconv2 -> act2 -> unconv3 -> act3.

    ConvTranspose2d(k=2, s=2, p=0) never overlaps, so its taps are packed along
    lanes ((dy, dx, cout) order) and the later stages use block-diagonal packed
    weights: the whole decoder is three resident-weight matmuls per row tile
    and the upsampled intermediates never leave VMEM.  Output columns are the
    64 (dy1,dx1,dy2,dx2,dy3,dx3) sub-pixels of each coarse 8x8 block
    (lane-dense store; the wrapper unscrambles them).
    """
    y = jnp.dot(x_ref[...], w1_ref[...], preferred_element_type=jnp.float32)
    y = _apply_act(y + b1_ref[...], act1).astype(jnp.bfloat16)
    y = jnp.dot(y, w2_ref[...], preferred_element_type=jnp.float32)
    y = _apply_act(y + b2_ref[...], act2).astype(jnp.bfloat16)
    y = jnp.dot(y, w3_ref[...], preferred_element_type=jnp.float32)
    o_ref[...] = _apply_act(y + b3_ref[...], act3).astype(o_ref.dtype)


# ------------------------ pallas_call wrappers --------------------------------

def conv_relu_pool_stage(x_nhwc, w9, b_row, pool_kind):
    """(N, H, W, Cin) bf16 -> (N, H/2, W/2, Cout) bf16.  In-kernel im2col."""
    # TODO(synk): at the full (1920,1080) size each program should process a
    # halo-tiled row band instead of the whole image; fine at these test sizes.
    N, H, W, cin = x_nhwc.shape
    cout = w9.shape[-1]
    hh, wh = H // 2, W // 2
    xp = jnp.pad(x_nhwc, ((0, 0), (PAD, PAD), (PAD, PAD), (0, 0)))
    slabs = [xp[:, py::2, px::2, :] for py in (0, 1) for px in (0, 1)]
    xq = jnp.concatenate(slabs, axis=1)           # (N, 4*(hh+1), wh+1, cin)

    kern = functools.partial(_conv_pool_kernel, hh=hh, wh=wh, cin=cin,
                             cout=cout, pool_kind=pool_kind)
    return pl.pallas_call(
        kern,
        out_shape=jax.ShapeDtypeStruct((N, hh, wh, cout), jnp.bfloat16),
        grid=(N,),
        in_specs=[
            pl.BlockSpec((None, 4 * (hh + 1), wh + 1, cin),
                         lambda n: (n, 0, 0, 0)),
            pl.BlockSpec((9, cin, cout), lambda n: (0, 0, 0)),   # resident taps
            pl.BlockSpec((1, cout), lambda n: (0, 0)),           # resident bias
        ],
        out_specs=pl.BlockSpec((None, hh, wh, cout), lambda n: (n, 0, 0, 0)),
        compiler_params=_compiler_params(("parallel",)),
    )(xq, w9, b_row)


def fc_fused(x, w1, b1, w2, b2):
    """x: (M, K) bf16; w1/w2 pre-transposed bf16; b1/b2: (1, N) f32."""
    # TODO(synk): at the real (1920,1080) scale the FC weights are huge and
    # need K/N-tiled grids with an f32 accumulator; resident weights are only
    # valid at these small synthetic shapes.
    M = x.shape[0]
    n_out = w2.shape[1]
    return pl.pallas_call(
        _fc_fused_kernel,
        out_shape=jax.ShapeDtypeStruct((M, n_out), jnp.bfloat16),
        grid=(1,),
        in_specs=[
            pl.BlockSpec(x.shape, lambda i: (0, 0)),
            pl.BlockSpec(w1.shape, lambda i: (0, 0)),
            pl.BlockSpec(b1.shape, lambda i: (0, 0)),
            pl.BlockSpec(w2.shape, lambda i: (0, 0)),
            pl.BlockSpec(b2.shape, lambda i: (0, 0)),
        ],
        out_specs=pl.BlockSpec((M, n_out), lambda i: (0, 0)),
        compiler_params=_compiler_params(("arbitrary",)),
    )(x, w1, b1, w2, b2)


def decoder_fused(x_rows, w1, b1, w2, b2, w3, b3, act1, act2, act3,
                  *, row_tile=_ROW_TILE):
    """x_rows: (R, 36) bf16 (one row per coarse pixel) -> (R, 64) f32."""
    R, cin = x_rows.shape
    n_out = w3.shape[1]
    tr = _pick_row_tile(R, row_tile)
    Rp = _round_up(R, tr)
    if Rp != R:
        x_rows = jnp.pad(x_rows, ((0, Rp - R), (0, 0)))
    kern = functools.partial(_decoder_kernel, act1=act1, act2=act2, act3=act3)
    out = pl.pallas_call(
        kern,
        out_shape=jax.ShapeDtypeStruct((Rp, n_out), jnp.float32),
        grid=(Rp // tr,),
        in_specs=[
            pl.BlockSpec((tr, cin), lambda i: (i, 0)),
            pl.BlockSpec(w1.shape, lambda i: (0, 0)),
            pl.BlockSpec(b1.shape, lambda i: (0, 0)),
            pl.BlockSpec(w2.shape, lambda i: (0, 0)),
            pl.BlockSpec(b2.shape, lambda i: (0, 0)),
            pl.BlockSpec(w3.shape, lambda i: (0, 0)),
            pl.BlockSpec(b3.shape, lambda i: (0, 0)),
        ],
        out_specs=pl.BlockSpec((tr, n_out), lambda i: (i, 0)),
        compiler_params=_compiler_params(("parallel",)),
    )(x_rows, w1, b1, w2, b2, w3, b3)
    return out[:R]


# -------------------------- parameters / layout prep ---------------------------

def init_params(key, k, dim_input):
    H, W, _ = dim_input
    flat = (H * W) // 64  # flatten_neurons

    def lin(kk, shape, fan_in):
        return (jax.random.uniform(kk, shape, jnp.float32, -1.0, 1.0)
                / jnp.sqrt(float(fan_in)))

    keys = jax.random.split(key, 16)
    p = {}
    p["conv1_w"] = lin(keys[0], (12, 3, k, k), 3 * k * k)
    p["conv1_b"] = lin(keys[1], (12,), 3 * k * k)
    p["conv2_w"] = lin(keys[2], (24, 12, k, k), 12 * k * k)
    p["conv2_b"] = lin(keys[3], (24,), 12 * k * k)
    p["conv3_w"] = lin(keys[4], (36, 24, k, k), 24 * k * k)
    p["conv3_b"] = lin(keys[5], (36,), 24 * k * k)
    p["fc1_w"] = lin(keys[6], (10 * flat, 36 * flat), 36 * flat)
    p["fc1_b"] = lin(keys[7], (10 * flat,), 36 * flat)
    p["fc2_w"] = lin(keys[8], (36 * flat, 10 * flat), 10 * flat)
    p["fc2_b"] = lin(keys[9], (36 * flat,), 10 * flat)
    p["unconv1_w"] = lin(keys[10], (36, 24, 2, 2), 36 * 4)
    p["unconv1_b"] = lin(keys[11], (24,), 36 * 4)
    p["unconv2_w"] = lin(keys[12], (24, 12, 2, 2), 24 * 4)
    p["unconv2_b"] = lin(keys[13], (12,), 24 * 4)
    p["unconv3_w"] = lin(keys[14], (12, 1, 2, 2), 12 * 4)
    p["unconv3_b"] = lin(keys[15], (1,), 12 * 4)
    return p


def _convT_packed(w_iohw):
    """(Cin, Cout, 2, 2) -> (Cin, 4*Cout), columns ordered (dy, dx, cout)."""
    cin, cout = w_iohw.shape[0], w_iohw.shape[1]
    return jnp.transpose(w_iohw, (0, 2, 3, 1)).reshape(cin, 4 * cout)


def prepare_params(p, k, dim_input):
    """One-time layout prep: bf16 matmul weights, (9, Cin, Cout) conv taps for
    in-kernel im2col, NCHW-flatten permutation folded into the FC weights,
    packed / block-diagonal ConvTranspose taps for the fused decoder."""
    H, W, _ = dim_input
    h8, w8 = H // 8, W // 8
    prep = {}

    for i in (1, 2, 3):
        w = p[f"conv{i}_w"]                       # (Cout, Cin, k, k)
        cout, cin = w.shape[0], w.shape[1]
        w9 = jnp.transpose(w, (2, 3, 1, 0)).reshape(k * k, cin, cout)
        prep[f"conv{i}_w9"] = w9.astype(jnp.bfloat16)
        prep[f"conv{i}_b"] = p[f"conv{i}_b"].reshape(1, -1).astype(jnp.float32)

    # PyTorch flattens NCHW (c, h, w); our conv output is NHWC, so permute fc1
    # rows / fc2 columns once instead of transposing activations at run time.
    perm = jnp.transpose(jnp.arange(36 * h8 * w8).reshape(36, h8, w8),
                         (1, 2, 0)).reshape(-1)
    prep["fc1_wT"] = p["fc1_w"].T[perm, :].astype(jnp.bfloat16)
    prep["fc1_b"] = p["fc1_b"].reshape(1, -1).astype(jnp.float32)
    prep["fc2_wT"] = p["fc2_w"].T[:, perm].astype(jnp.bfloat16)
    prep["fc2_b"] = p["fc2_b"][perm].reshape(1, -1).astype(jnp.float32)

    # Fused decoder: packed 2x2 taps; later stages block-diagonalised so they
    # act directly on the (coarse-pixel row, packed sub-pixel lane) layout.
    w1p = _convT_packed(p["unconv1_w"])                 # (36, 96)
    w2p = _convT_packed(p["unconv2_w"])                 # (24, 48)
    w3p = _convT_packed(p["unconv3_w"])                 # (12, 4)
    prep["dec_w1"] = w1p.astype(jnp.bfloat16)
    prep["dec_w2"] = jnp.kron(jnp.eye(4, dtype=w2p.dtype), w2p).astype(jnp.bfloat16)
    prep["dec_w3"] = jnp.kron(jnp.eye(16, dtype=w3p.dtype), w3p).astype(jnp.bfloat16)
    prep["dec_b1"] = jnp.tile(p["unconv1_b"], 4).reshape(1, -1).astype(jnp.float32)
    prep["dec_b2"] = jnp.tile(p["unconv2_b"], 16).reshape(1, -1).astype(jnp.float32)
    prep["dec_b3"] = jnp.tile(p["unconv3_b"], 64).reshape(1, -1).astype(jnp.float32)
    return prep


# ------------------------------- forward ---------------------------------------

def transposed_net_forward(prep, x_nchw, act1="relu", act2="relu",
                           act3="sigmoid"):
    N, _, H, W = x_nchw.shape
    h8, w8 = H // 8, W // 8
    x = jnp.transpose(x_nchw, (0, 2, 3, 1)).astype(jnp.bfloat16)      # NHWC bf16

    # conv1->ReLU->AvgPool, conv2->ReLU->LPPool(2), conv3->ReLU->MaxPool
    x = conv_relu_pool_stage(x, prep["conv1_w9"], prep["conv1_b"], "avg")
    x = conv_relu_pool_stage(x, prep["conv2_w9"], prep["conv2_b"], "lp2")
    x = conv_relu_pool_stage(x, prep["conv3_w9"], prep["conv3_b"], "max")

    # fc1 -> ReLU -> fc2 -> ReLU (flatten permutations folded into the weights)
    flat = x.reshape(N, h8 * w8 * 36)
    g = fc_fused(flat, prep["fc1_wT"], prep["fc1_b"],
                 prep["fc2_wT"], prep["fc2_b"])

    # fused decoder: one row per coarse (h8, w8) pixel, 36 input channels
    rows = g.reshape(N * h8 * w8, 36)
    y = decoder_fused(rows, prep["dec_w1"], prep["dec_b1"],
                      prep["dec_w2"], prep["dec_b2"],
                      prep["dec_w3"], prep["dec_b3"], act1, act2, act3)

    # unscramble the (dy1,dx1,dy2,dx2,dy3,dx3) sub-pixel lanes -> (N, 1, H, W)
    # TODO(synk): torch.threshold / nn.Hardtanh special-case branches of
    # activation_function3 are not exercised with the chosen sigmoid.
    y = y.reshape(N, h8, w8, 2, 2, 2, 2, 2, 2)
    y = jnp.transpose(y, (0, 1, 3, 5, 7, 2, 4, 6, 8))
    return y.reshape(N, 1, H, W)


if __name__ == "__main__":
    key = jax.random.PRNGKey(0)
    kp, kx = jax.random.split(key)
    dim_input = (16, 16, 3)                 # small stand-in for (1920, 1080, 3)
    raw_params = init_params(kp, KERNEL_SIZE, dim_input)
    prep = prepare_params(raw_params, KERNEL_SIZE, dim_input)
    x = jax.random.normal(kx, (2, 3, dim_input[0], dim_input[1]), jnp.float32)

    fwd = jax.jit(functools.partial(transposed_net_forward, prep))
    out = fwd(x)
    jax.block_until_ready(out)
    assert out.shape == (2, 1, dim_input[0], dim_input[1]), out.shape
    assert bool(jnp.all(jnp.isfinite(out)))
    print("KERNEL_OK")
</pallas_src>

<mosaic_0001>
module attributes {stable_mosaic.version = 11 : i64} {
  func.func @_conv_pool_kernel(%arg0: i32, %arg1: memref<1x36x9x3xbf16, #tpu.memory_space<vmem>>, %arg2: memref<9x3x12xbf16, #tpu.memory_space<vmem>>, %arg3: memref<1x12xf32, #tpu.memory_space<vmem>>, %arg4: memref<1x8x8x12xbf16, #tpu.memory_space<vmem>>) attributes {dimension_semantics = [#tpu.dimension_semantics<parallel>], iteration_bounds = array<i64: 2>, scalar_prefetch = 0 : i64, scratch_operands = 0 : i64, tpu.core_type = #tpu.core_type<tc>, window_params = [{transform_indices = @transform_0, window_bounds = array<i64: 1, 36, 9, 3>}, {pipeline_mode = #tpu.pipeline_mode<synchronous>, transform_indices = @transform_1, window_bounds = array<i64: 9, 3, 12>}, {pipeline_mode = #tpu.pipeline_mode<synchronous>, transform_indices = @transform_2, window_bounds = array<i64: 1, 12>}, {transform_indices = @transform_3, window_bounds = array<i64: 1, 8, 8, 12>}]} {
    %c0 = arith.constant 0 : index
    %c0_0 = arith.constant 0 : index
    %c0_1 = arith.constant 0 : index
    %0 = vector.load %arg2[%c0, %c0_0, %c0_1] : memref<9x3x12xbf16, #tpu.memory_space<vmem>>, vector<1x3x12xbf16>
    %1 = vector.shape_cast %0 : vector<1x3x12xbf16> to vector<3x12xbf16>
    %2 = vector.shape_cast %1 : vector<3x12xbf16> to vector<1x3x12xbf16>
    %3 = vector.broadcast %2 : vector<1x3x12xbf16> to vector<8x3x12xbf16>
    %c1 = arith.constant 1 : index
    %c0_2 = arith.constant 0 : index
    %c0_3 = arith.constant 0 : index
    %4 = vector.load %arg2[%c1, %c0_2, %c0_3] : memref<9x3x12xbf16, #tpu.memory_space<vmem>>, vector<1x3x12xbf16>
    %5 = vector.shape_cast %4 : vector<1x3x12xbf16> to vector<3x12xbf16>
    %6 = vector.shape_cast %5 : vector<3x12xbf16> to vector<1x3x12xbf16>
    %7 = vector.broadcast %6 : vector<1x3x12xbf16> to vector<8x3x12xbf16>
    %c2 = arith.constant 2 : index
    %c0_4 = arith.constant 0 : index
    %c0_5 = arith.constant 0 : index
    %8 = vector.load %arg2[%c2, %c0_4, %c0_5] : memref<9x3x12xbf16, #tpu.memory_space<vmem>>, vector<1x3x12xbf16>
    %9 = vector.shape_cast %8 : vector<1x3x12xbf16> to vector<3x12xbf16>
    %10 = vector.shape_cast %9 : vector<3x12xbf16> to vector<1x3x12xbf16>
    %11 = vector.broadcast %10 : vector<1x3x12xbf16> to vector<8x3x12xbf16>
    %c3 = arith.constant 3 : index
    %c0_6 = arith.constant 0 : index
    %c0_7 = arith.constant 0 : index
    %12 = vector.load %arg2[%c3, %c0_6, %c0_7] : memref<9x3x12xbf16, #tpu.memory_space<vmem>>, vector<1x3x12xbf16>
    %13 = vector.shape_cast %12 : vector<1x3x12xbf16> to vector<3x12xbf16>
    %14 = vector.shape_cast %13 : vector<3x12xbf16> to vector<1x3x12xbf16>
    %15 = vector.broadcast %14 : vector<1x3x12xbf16> to vector<8x3x12xbf16>
    %c4 = arith.constant 4 : index
    %c0_8 = arith.constant 0 : index
    %c0_9 = arith.constant 0 : index
    %16 = vector.load %arg2[%c4, %c0_8, %c0_9] : memref<9x3x12xbf16, #tpu.memory_space<vmem>>, vector<1x3x12xbf16>
    %17 = vector.shape_cast %16 : vector<1x3x12xbf16> to vector<3x12xbf16>
    %18 = vector.shape_cast %17 : vector<3x12xbf16> to vector<1x3x12xbf16>
    %19 = vector.broadcast %18 : vector<1x3x12xbf16> to vector<8x3x12xbf16>
    %c5 = arith.constant 5 : index
    %c0_10 = arith.constant 0 : index
    %c0_11 = arith.constant 0 : index
    %20 = vector.load %arg2[%c5, %c0_10, %c0_11] : memref<9x3x12xbf16, #tpu.memory_space<vmem>>, vector<1x3x12xbf16>
    %21 = vector.shape_cast %20 : vector<1x3x12xbf16> to vector<3x12xbf16>
    %22 = vector.shape_cast %21 : vector<3x12xbf16> to vector<1x3x12xbf16>
    %23 = vector.broadcast %22 : vector<1x3x12xbf16> to vector<8x3x12xbf16>
    %c6 = arith.constant 6 : index
    %c0_12 = arith.constant 0 : index
    %c0_13 = arith.constant 0 : index
    %24 = vector.load %arg2[%c6, %c0_12, %c0_13] : memref<9x3x12xbf16, #tpu.memory_space<vmem>>, vector<1x3x12xbf16>
    %25 = vector.shape_cast %24 : vector<1x3x12xbf16> to vector<3x12xbf16>
    %26 = vector.shape_cast %25 : vector<3x12xbf16> to vector<1x3x12xbf16>
    %27 = vector.broadcast %26 : vector<1x3x12xbf16> to vector<8x3x12xbf16>
    %c7 = arith.constant 7 : index
    %c0_14 = arith.constant 0 : index
    %c0_15 = arith.constant 0 : index
    %28 = vector.load %arg2[%c7, %c0_14, %c0_15] : memref<9x3x12xbf16, #tpu.memory_space<vmem>>, vector<1x3x12xbf16>
    %29 = vector.shape_cast %28 : vector<1x3x12xbf16> to vector<3x12xbf16>
    %30 = vector.shape_cast %29 : vector<3x12xbf16> to vector<1x3x12xbf16>
    %31 = vector.broadcast %30 : vector<1x3x12xbf16> to vector<8x3x12xbf16>
    %c8 = arith.constant 8 : index
    %c0_16 = arith.constant 0 : index
    %c0_17 = arith.constant 0 : index
    %32 = vector.load %arg2[%c8, %c0_16, %c0_17] : memref<9x3x12xbf16, #tpu.memory_space<vmem>>, vector<1x3x12xbf16>
    %33 = vector.shape_cast %32 : vector<1x3x12xbf16> to vector<3x12xbf16>
    %34 = vector.shape_cast %33 : vector<3x12xbf16> to vector<1x3x12xbf16>
    %35 = vector.broadcast %34 : vector<1x3x12xbf16> to vector<8x3x12xbf16>
    %c0_18 = arith.constant 0 : index
    %c0_19 = arith.constant 0 : index
    %36 = vector.load %arg3[%c0_18, %c0_19] : memref<1x12xf32, #tpu.memory_space<vmem>>, vector<1x12xf32>
    %c0_20 = arith.constant 0 : index
    %c0_21 = arith.constant 0 : index
    %c0_22 = arith.constant 0 : index
    %c0_23 = arith.constant 0 : index
    %37 = vector.load %arg1[%c0_20, %c0_21, %c0_22, %c0_23] : memref<1x36x9x3xbf16, #tpu.memory_space<vmem>>, vector<1x8x8x3xbf16>
    %38 = vector.shape_cast %37 : vector<1x8x8x3xbf16> to vector<8x8x3xbf16>
    %c0_24 = arith.constant 0 : index
    %c9 = arith.constant 9 : index
    %c0_25 = arith.constant 0 : index
    %c0_26 = arith.constant 0 : index
    %39 = vector.load %arg1[%c0_24, %c9, %c0_25, %c0_26] : memref<1x36x9x3xbf16, #tpu.memory_space<vmem>>, vector<1x8x8x3xbf16>
    %40 = vector.shape_cast %39 : vector<1x8x8x3xbf16> to vector<8x8x3xbf16>
    %c0_27 = arith.constant 0 : index
    %c0_28 = arith.constant 0 : index
    %c1_29 = arith.constant 1 : index
    %c0_30 = arith.constant 0 : index
    %41 = vector.load %arg1[%c0_27, %c0_28, %c1_29, %c0_30] : memref<1x36x9x3xbf16, #tpu.memory_space<vmem>>, vector<1x8x8x3xbf16>
    %42 = vector.shape_cast %41 : vector<1x8x8x3xbf16> to vector<8x8x3xbf16>
    %c0_31 = arith.constant 0 : index
    %c9_32 = arith.constant 9 : index
    %c1_33 = arith.constant 1 : index
    %c0_34 = arith.constant 0 : index
    %43 = vector.load %arg1[%c0_31, %c9_32, %c1_33, %c0_34] : memref<1x36x9x3xbf16, #tpu.memory_space<vmem>>, vector<1x8x8x3xbf16>
    %44 = vector.shape_cast %43 : vector<1x8x8x3xbf16> to vector<8x8x3xbf16>
    %c0_35 = arith.constant 0 : index
    %c18 = arith.constant 18 : index
    %c0_36 = arith.constant 0 : index
    %c0_37 = arith.constant 0 : index
    %45 = vector.load %arg1[%c0_35, %c18, %c0_36, %c0_37] : memref<1x36x9x3xbf16, #tpu.memory_space<vmem>>, vector<1x8x8x3xbf16>
    %46 = vector.shape_cast %45 : vector<1x8x8x3xbf16> to vector<8x8x3xbf16>
    %c0_38 = arith.constant 0 : index
    %c27 = arith.constant 27 : index
    %c0_39 = arith.constant 0 : index
    %c0_40 = arith.constant 0 : index
    %47 = vector.load %arg1[%c0_38, %c27, %c0_39, %c0_40] : memref<1x36x9x3xbf16, #tpu.memory_space<vmem>>, vector<1x8x8x3xbf16>
    %48 = vector.shape_cast %47 : vector<1x8x8x3xbf16> to vector<8x8x3xbf16>
    %c0_41 = arith.constant 0 : index
    %c18_42 = arith.constant 18 : index
    %c1_43 = arith.constant 1 : index
    %c0_44 = arith.constant 0 : index
    %49 = vector.load %arg1[%c0_41, %c18_42, %c1_43, %c0_44] : memref<1x36x9x3xbf16, #tpu.memory_space<vmem>>, vector<1x8x8x3xbf16>
    %50 = vector.shape_cast %49 : vector<1x8x8x3xbf16> to vector<8x8x3xbf16>
    %c0_45 = arith.constant 0 : index
    %c27_46 = arith.constant 27 : index
    %c1_47 = arith.constant 1 : index
    %c0_48 = arith.constant 0 : index
    %51 = vector.load %arg1[%c0_45, %c27_46, %c1_47, %c0_48] : memref<1x36x9x3xbf16, #tpu.memory_space<vmem>>, vector<1x8x8x3xbf16>
    %52 = vector.shape_cast %51 : vector<1x8x8x3xbf16> to vector<8x8x3xbf16>
    %c0_49 = arith.constant 0 : index
    %c1_50 = arith.constant 1 : index
    %c0_51 = arith.constant 0 : index
    %c0_52 = arith.constant 0 : index
    %53 = vector.load %arg1[%c0_49, %c1_50, %c0_51, %c0_52] : memref<1x36x9x3xbf16, #tpu.memory_space<vmem>>, vector<1x8x8x3xbf16>
    %54 = vector.shape_cast %53 : vector<1x8x8x3xbf16> to vector<8x8x3xbf16>
    %c0_53 = arith.constant 0 : index
    %c10 = arith.constant 10 : index
    %c0_54 = arith.constant 0 : index
    %c0_55 = arith.constant 0 : index
    %55 = vector.load %arg1[%c0_53, %c10, %c0_54, %c0_55] : memref<1x36x9x3xbf16, #tpu.memory_space<vmem>>, vector<1x8x8x3xbf16>
    %56 = vector.shape_cast %55 : vector<1x8x8x3xbf16> to vector<8x8x3xbf16>
    %c0_56 = arith.constant 0 : index
    %c1_57 = arith.constant 1 : index
    %c1_58 = arith.constant 1 : index
    %c0_59 = arith.constant 0 : index
    %57 = vector.load %arg1[%c0_56, %c1_57, %c1_58, %c0_59] : memref<1x36x9x3xbf16, #tpu.memory_space<vmem>>, vector<1x8x8x3xbf16>
    %58 = vector.shape_cast %57 : vector<1x8x8x3xbf16> to vector<8x8x3xbf16>
    %c0_60 = arith.constant 0 : index
    %c10_61 = arith.constant 10 : index
    %c1_62 = arith.constant 1 : index
    %c0_63 = arith.constant 0 : index
    %59 = vector.load %arg1[%c0_60, %c10_61, %c1_62, %c0_63] : memref<1x36x9x3xbf16, #tpu.memory_space<vmem>>, vector<1x8x8x3xbf16>
    %60 = vector.shape_cast %59 : vector<1x8x8x3xbf16> to vector<8x8x3xbf16>
    %c0_64 = arith.constant 0 : index
    %c19 = arith.constant 19 : index
    %c0_65 = arith.constant 0 : index
    %c0_66 = arith.constant 0 : index
    %61 = vector.load %arg1[%c0_64, %c19, %c0_65, %c0_66] : memref<1x36x9x3xbf16, #tpu.memory_space<vmem>>, vector<1x8x8x3xbf16>
    %62 = vector.shape_cast %61 : vector<1x8x8x3xbf16> to vector<8x8x3xbf16>
    %c0_67 = arith.constant 0 : index
    %c28 = arith.constant 28 : index
    %c0_68 = arith.constant 0 : index
    %c0_69 = arith.constant 0 : index
    %63 = vector.load %arg1[%c0_67, %c28, %c0_68, %c0_69] : memref<1x36x9x3xbf16, #tpu.memory_space<vmem>>, vector<1x8x8x3xbf16>
    %64 = vector.shape_cast %63 : vector<1x8x8x3xbf16> to vector<8x8x3xbf16>
    %c0_70 = arith.constant 0 : index
    %c19_71 = arith.constant 19 : index
    %c1_72 = arith.constant 1 : index
    %c0_73 = arith.constant 0 : index
    %65 = vector.load %arg1[%c0_70, %c19_71, %c1_72, %c0_73] : memref<1x36x9x3xbf16, #tpu.memory_space<vmem>>, vector<1x8x8x3xbf16>
    %66 = vector.shape_cast %65 : vector<1x8x8x3xbf16> to vector<8x8x3xbf16>
    %c0_74 = arith.constant 0 : index
    %c28_75 = arith.constant 28 : index
    %c1_76 = arith.constant 1 : index
    %c0_77 = arith.constant 0 : index
    %67 = vector.load %arg1[%c0_74, %c28_75, %c1_76, %c0_77] : memref<1x36x9x3xbf16, #tpu.memory_space<vmem>>, vector<1x8x8x3xbf16>
    %68 = vector.shape_cast %67 : vector<1x8x8x3xbf16> to vector<8x8x3xbf16>
    %cst = arith.constant 0.000000e+00 : f32
    %69 = vector.broadcast %cst : f32 to vector<8x8x12xf32>
    "tpu.trace_start"() <{level = 10 : i32, message = "hwc,hcd->hwd"}> : () -> ()
    %cst_78 = arith.constant dense<0.000000e+00> : vector<8x8x12xf32>
    %70 = tpu.matmul %38, %3, %cst_78 {dimension_numbers = #tpu.dot_dimension_numbers<[2], [1], [1], [2], [0, 0, 0, 1, 1, 2], [0], [0]>} : vector<8x8x3xbf16>, vector<8x3x12xbf16>, vector<8x8x12xf32> -> vector<8x8x12xf32>
    "tpu.trace_stop"() : () -> ()
    %71 = arith.addf %69, %70 : vector<8x8x12xf32>
    "tpu.trace_start"() <{level = 10 : i32, message = "hwc,hcd->hwd"}> : () -> ()
    %cst_79 = arith.constant dense<0.000000e+00> : vector<8x8x12xf32>
    %72 = tpu.matmul %40, %7, %cst_79 {dimension_numbers = #tpu.dot_dimension_numbers<[2], [1], [1], [2], [0, 0, 0, 1, 1, 2], [0], [0]>} : vector<8x8x3xbf16>, vector<8x3x12xbf16>, vector<8x8x12xf32> -> vector<8x8x12xf32>
    "tpu.trace_stop"() : () -> ()
    %73 = arith.addf %71, %72 : vector<8x8x12xf32>
    "tpu.trace_start"() <{level = 10 : i32, message = "hwc,hcd->hwd"}> : () -> ()
    %cst_80 = arith.constant dense<0.000000e+00> : vector<8x8x12xf32>
    %74 = tpu.matmul %42, %11, %cst_80 {dimension_numbers = #tpu.dot_dimension_numbers<[2], [1], [1], [2], [0, 0, 0, 1, 1, 2], [0], [0]>} : vector<8x8x3xbf16>, vector<8x3x12xbf16>, vector<8x8x12xf32> -> vector<8x8x12xf32>
    "tpu.trace_stop"() : () -> ()
    %75 = arith.addf %73, %74 : vector<8x8x12xf32>
    "tpu.trace_start"() <{level = 10 : i32, message = "hwc,hcd->hwd"}> : () -> ()
    %cst_81 = arith.constant dense<0.000000e+00> : vector<8x8x12xf32>
    %76 = tpu.matmul %46, %15, %cst_81 {dimension_numbers = #tpu.dot_dimension_numbers<[2], [1], [1], [2], [0, 0, 0, 1, 1, 2], [0], [0]>} : vector<8x8x3xbf16>, vector<8x3x12xbf16>, vector<8x8x12xf32> -> vector<8x8x12xf32>
    "tpu.trace_stop"() : () -> ()
    %77 = arith.addf %75, %76 : vector<8x8x12xf32>
    "tpu.trace_start"() <{level = 10 : i32, message = "hwc,hcd->hwd"}> : () -> ()
    %cst_82 = arith.constant dense<0.000000e+00> : vector<8x8x12xf32>
    %78 = tpu.matmul %48, %19, %cst_82 {dimension_numbers = #tpu.dot_dimension_numbers<[2], [1], [1], [2], [0, 0, 0, 1, 1, 2], [0], [0]>} : vector<8x8x3xbf16>, vector<8x3x12xbf16>, vector<8x8x12xf32> -> vector<8x8x12xf32>
    "tpu.trace_stop"() : () -> ()
    %79 = arith.addf %77, %78 : vector<8x8x12xf32>
    "tpu.trace_start"() <{level = 10 : i32, message = "hwc,hcd->hwd"}> : () -> ()
    %cst_83 = arith.constant dense<0.000000e+00> : vector<8x8x12xf32>
    %80 = tpu.matmul %50, %23, %cst_83 {dimension_numbers = #tpu.dot_dimension_numbers<[2], [1], [1], [2], [0, 0, 0, 1, 1, 2], [0], [0]>} : vector<8x8x3xbf16>, vector<8x3x12xbf16>, vector<8x8x12xf32> -> vector<8x8x12xf32>
    "tpu.trace_stop"() : () -> ()
    %81 = arith.addf %79, %80 : vector<8x8x12xf32>
    "tpu.trace_start"() <{level = 10 : i32, message = "hwc,hcd->hwd"}> : () -> ()
    %cst_84 = arith.constant dense<0.000000e+00> : vector<8x8x12xf32>
    %82 = tpu.matmul %54, %27, %cst_84 {dimension_numbers = #tpu.dot_dimension_numbers<[2], [1], [1], [2], [0, 0, 0, 1, 1, 2], [0], [0]>} : vector<8x8x3xbf16>, vector<8x3x12xbf16>, vector<8x8x12xf32> -> vector<8x8x12xf32>
    "tpu.trace_stop"() : () -> ()
    %83 = arith.addf %81, %82 : vector<8x8x12xf32>
    "tpu.trace_start"() <{level = 10 : i32, message = "hwc,hcd->hwd"}> : () -> ()
    %cst_85 = arith.constant dense<0.000000e+00> : vector<8x8x12xf32>
    %84 = tpu.matmul %56, %31, %cst_85 {dimension_numbers = #tpu.dot_dimension_numbers<[2], [1], [1], [2], [0, 0, 0, 1, 1, 2], [0], [0]>} : vector<8x8x3xbf16>, vector<8x3x12xbf16>, vector<8x8x12xf32> -> vector<8x8x12xf32>
    "tpu.trace_stop"() : () -> ()
    %85 = arith.addf %83, %84 : vector<8x8x12xf32>
    "tpu.trace_start"() <{level = 10 : i32, message = "hwc,hcd->hwd"}> : () -> ()
    %cst_86 = arith.constant dense<0.000000e+00> : vector<8x8x12xf32>
    %86 = tpu.matmul %58, %35, %cst_86 {dimension_numbers = #tpu.dot_dimension_numbers<[2], [1], [1], [2], [0, 0, 0, 1, 1, 2], [0], [0]>} : vector<8x8x3xbf16>, vector<8x3x12xbf16>, vector<8x8x12xf32> -> vector<8x8x12xf32>
    "tpu.trace_stop"() : () -> ()
    %87 = arith.addf %85, %86 : vector<8x8x12xf32>
    %88 = vector.shape_cast %36 : vector<1x12xf32> to vector<1x1x12xf32>
    %89 = vector.broadcast %88 : vector<1x1x12xf32> to vector<8x8x12xf32>
    %90 = arith.addf %87, %89 : vector<8x8x12xf32>
    %cst_87 = arith.constant 0.000000e+00 : f32
    %91 = vector.broadcast %cst_87 : f32 to vector<8x8x12xf32>
    %92 = arith.maximumf %90, %91 : vector<8x8x12xf32>
    %cst_88 = arith.constant 0.000000e+00 : f32
    %93 = vector.broadcast %cst_88 : f32 to vector<8x8x12xf32>
    "tpu.trace_start"() <{level = 10 : i32, message = "hwc,hcd->hwd"}> : () -> ()
    %cst_89 = arith.constant dense<0.000000e+00> : vector<8x8x12xf32>
    %94 = tpu.matmul %40, %3, %cst_89 {dimension_numbers = #tpu.dot_dimension_numbers<[2], [1], [1], [2], [0, 0, 0, 1, 1, 2], [0], [0]>} : vector<8x8x3xbf16>, vector<8x3x12xbf16>, vector<8x8x12xf32> -> vector<8x8x12xf32>
    "tpu.trace_stop"() : () -> ()
    %95 = arith.addf %93, %94 : vector<8x8x12xf32>
    "tpu.trace_start"() <{level = 10 : i32, message = "hwc,hcd->hwd"}> : () -> ()
    %cst_90 = arith.constant dense<0.000000e+00> : vector<8x8x12xf32>
    %96 = tpu.matmul %42, %7, %cst_90 {dimension_numbers = #tpu.dot_dimension_numbers<[2], [1], [1], [2], [0, 0, 0, 1, 1, 2], [0], [0]>} : vector<8x8x3xbf16>, vector<8x3x12xbf16>, vector<8x8x12xf32> -> vector<8x8x12xf32>
    "tpu.trace_stop"() : () -> ()
    %97 = arith.addf %95, %96 : vector<8x8x12xf32>
    "tpu.trace_start"() <{level = 10 : i32, message = "hwc,hcd->hwd"}> : () -> ()
    %cst_91 = arith.constant dense<0.000000e+00> : vector<8x8x12xf32>
    %98 = tpu.matmul %44, %11, %cst_91 {dimension_numbers = #tpu.dot_dimension_numbers<[2], [1], [1], [2], [0, 0, 0, 1, 1, 2], [0], [0]>} : vector<8x8x3xbf16>, vector<8x3x12xbf16>, vector<8x8x12xf32> -> vector<8x8x12xf32>
    "tpu.trace_stop"() : () -> ()
    %99 = arith.addf %97, %98 : vector<8x8x12xf32>
    "tpu.trace_start"() <{level = 10 : i32, message = "hwc,hcd->hwd"}> : () -> ()
    %cst_92 = arith.constant dense<0.000000e+00> : vector<8x8x12xf32>
    %100 = tpu.matmul %48, %15, %cst_92 {dimension_numbers = #tpu.dot_dimension_numbers<[2], [1], [1], [2], [0, 0, 0, 1, 1, 2], [0], [0]>} : vector<8x8x3xbf16>, vector<8x3x12xbf16>, vector<8x8x12xf32> -> vector<8x8x12xf32>
    "tpu.trace_stop"() : () -> ()
    %101 = arith.addf %99, %100 : vector<8x8x12xf32>
    "tpu.trace_start"() <{level = 10 : i32, message = "hwc,hcd->hwd"}> : () -> ()
    %cst_93 = arith.constant dense<0.000000e+00> : vector<8x8x12xf32>
    %102 = tpu.matmul %50, %19, %cst_93 {dimension_numbers = #tpu.dot_dimension_numbers<[2], [1], [1], [2], [0, 0, 0, 1, 1, 2], [0], [0]>} : vector<8x8x3xbf16>, vector<8x3x12xbf16>, vector<8x8x12xf32> -> vector<8x8x12xf32>
    "tpu.trace_stop"() : () -> ()
    %103 = arith.addf %101, %102 : vector<8x8x12xf32>
    "tpu.trace_start"() <{level = 10 : i32, message = "hwc,hcd->hwd"}> : () -> ()
    %cst_94 = arith.constant dense<0.000000e+00> : vector<8x8x12xf32>
    %104 = tpu.matmul %52, %23, %cst_94 {dimension_numbers = #tpu.dot_dimension_numbers<[2], [1], [1], [2], [0, 0, 0, 1, 1, 2], [0], [0]>} : vector<8x8x3xbf16>, vector<8x3x12xbf16>, vector<8x8x12xf32> -> vector<8x8x12xf32>
    "tpu.trace_stop"() : () -> ()
    %105 = arith.addf %103, %104 : vector<8x8x12xf32>
    "tpu.trace_start"() <{level = 10 : i32, message = "hwc,hcd->hwd"}> : () -> ()
    %cst_95 = arith.constant dense<0.000000e+00> : vector<8x8x12xf32>
    %106 = tpu.matmul %56, %27, %cst_95 {dimension_numbers = #tpu.dot_dimension_numbers<[2], [1], [1], [2], [0, 0, 0, 1, 1, 2], [0], [0]>} : vector<8x8x3xbf16>, vector<8x3x12xbf16>, vector<8x8x12xf32> -> vector<8x8x12xf32>
    "tpu.trace_stop"() : () -> ()
    %107 = arith.addf %105, %106 : vector<8x8x12xf32>
    "tpu.trace_start"() <{level = 10 : i32, message = "hwc,hcd->hwd"}> : () -> ()
    %cst_96 = arith.constant dense<0.000000e+00> : vector<8x8x12xf32>
    %108 = tpu.matmul %58, %31, %cst_96 {dimension_numbers = #tpu.dot_dimension_numbers<[2], [1], [1], [2], [0, 0, 0, 1, 1, 2], [0], [0]>} : vector<8x8x3xbf16>, vector<8x3x12xbf16>, vector<8x8x12xf32> -> vector<8x8x12xf32>
    "tpu.trace_stop"() : () -> ()
    %109 = arith.addf %107, %108 : vector<8x8x12xf32>
    "tpu.trace_start"() <{level = 10 : i32, message = "hwc,hcd->hwd"}> : () -> ()
    %cst_97 = arith.constant dense<0.000000e+00> : vector<8x8x12xf32>
    %110 = tpu.matmul %60, %35, %cst_97 {dimension_numbers = #tpu.dot_dimension_numbers<[2], [1], [1], [2], [0, 0, 0, 1, 1, 2], [0], [0]>} : vector<8x8x3xbf16>, vector<8x3x12xbf16>, vector<8x8x12xf32> -> vector<8x8x12xf32>
    "tpu.trace_stop"() : () -> ()
    %111 = arith.addf %109, %110 : vector<8x8x12xf32>
    %112 = vector.shape_cast %36 : vector<1x12xf32> to vector<1x1x12xf32>
    %113 = vector.broadcast %112 : vector<1x1x12xf32> to vector<8x8x12xf32>
    %114 = arith.addf %111, %113 : vector<8x8x12xf32>
    %cst_98 = arith.constant 0.000000e+00 : f32
    %115 = vector.broadcast %cst_98 : f32 to vector<8x8x12xf32>
    %116 = arith.maximumf %114, %115 : vector<8x8x12xf32>
    %cst_99 = arith.constant 0.000000e+00 : f32
    %117 = vector.broadcast %cst_99 : f32 to vector<8x8x12xf32>
    "tpu.trace_start"() <{level = 10 : i32, message = "hwc,hcd->hwd"}> : () -> ()
    %cst_100 = arith.constant dense<0.000000e+00> : vector<8x8x12xf32>
    %118 = tpu.matmul %46, %3, %cst_100 {dimension_numbers = #tpu.dot_dimension_numbers<[2], [1], [1], [2], [0, 0, 0, 1, 1, 2], [0], [0]>} : vector<8x8x3xbf16>, vector<8x3x12xbf16>, vector<8x8x12xf32> -> vector<8x8x12xf32>
    "tpu.trace_stop"() : () -> ()
    %119 = arith.addf %117, %118 : vector<8x8x12xf32>
    "tpu.trace_start"() <{level = 10 : i32, message = "hwc,hcd->hwd"}> : () -> ()
    %cst_101 = arith.constant dense<0.000000e+00> : vector<8x8x12xf32>
    %120 = tpu.matmul %48, %7, %cst_101 {dimension_numbers = #tpu.dot_dimension_numbers<[2], [1], [1], [2], [0, 0, 0, 1, 1, 2], [0], [0]>} : vector<8x8x3xbf16>, vector<8x3x12xbf16>, vector<8x8x12xf32> -> vector<8x8x12xf32>
    "tpu.trace_stop"() : () -> ()
    %121 = arith.addf %119, %120 : vector<8x8x12xf32>
    "tpu.trace_start"() <{level = 10 : i32, message = "hwc,hcd->hwd"}> : () -> ()
    %cst_102 = arith.constant dense<0.000000e+00> : vector<8x8x12xf32>
    %122 = tpu.matmul %50, %11, %cst_102 {dimension_numbers = #tpu.dot_dimension_numbers<[2], [1], [1], [2], [0, 0, 0, 1, 1, 2], [0], [0]>} : vector<8x8x3xbf16>, vector<8x3x12xbf16>, vector<8x8x12xf32> -> vector<8x8x12xf32>
    "tpu.trace_stop"() : () -> ()
    %123 = arith.addf %121, %122 : vector<8x8x12xf32>
    "tpu.trace_start"() <{level = 10 : i32, message = "hwc,hcd->hwd"}> : () -> ()
    %cst_103 = arith.constant dense<0.000000e+00> : vector<8x8x12xf32>
    %124 = tpu.matmul %54, %15, %cst_103 {dimension_numbers = #tpu.dot_dimension_numbers<[2], [1], [1], [2], [0, 0, 0, 1, 1, 2], [0], [0]>} : vector<8x8x3xbf16>, vector<8x3x12xbf16>, vector<8x8x12xf32> -> vector<8x8x12xf32>
    "tpu.trace_stop"() : () -> ()
    %125 = arith.addf %123, %124 : vector<8x8x12xf32>
    "tpu.trace_start"() <{level = 10 : i32, message = "hwc,hcd->hwd"}> : () -> ()
    %cst_104 = arith.constant dense<0.000000e+00> : vector<8x8x12xf32>
    %126 = tpu.matmul %56, %19, %cst_104 {dimension_numbers = #tpu.dot_dimension_numbers<[2], [1], [1], [2], [0, 0, 0, 1, 1, 2], [0], [0]>} : vector<8x8x3xbf16>, vector<8x3x12xbf16>, vector<8x8x12xf32> -> vector<8x8x12xf32>
    "tpu.trace_stop"() : () -> ()
    %127 = arith.addf %125, %126 : vector<8x8x12xf32>
    "tpu.trace_start"() <{level = 10 : i32, message = "hwc,hcd->hwd"}> : () -> ()
    %cst_105 = arith.constant dense<0.000000e+00> : vector<8x8x12xf32>
    %128 = tpu.matmul %58, %23, %cst_105 {dimension_numbers = #tpu.dot_dimension_numbers<[2], [1], [1], [2], [0, 0, 0, 1, 1, 2], [0], [0]>} : vector<8x8x3xbf16>, vector<8x3x12xbf16>, vector<8x8x12xf32> -> vector<8x8x12xf32>
    "tpu.trace_stop"() : () -> ()
    %129 = arith.addf %127, %128 : vector<8x8x12xf32>
    "tpu.trace_start"() <{level = 10 : i32, message = "hwc,hcd->hwd"}> : () -> ()
    %cst_106 = arith.constant dense<0.000000e+00> : vector<8x8x12xf32>
    %130 = tpu.matmul %62, %27, %cst_106 {dimension_numbers = #tpu.dot_dimension_numbers<[2], [1], [1], [2], [0, 0, 0, 1, 1, 2], [0], [0]>} : vector<8x8x3xbf16>, vector<8x3x12xbf16>, vector<8x8x12xf32> -> vector<8x8x12xf32>
    "tpu.trace_stop"() : () -> ()
    %131 = arith.addf %129, %130 : vector<8x8x12xf32>
    "tpu.trace_start"() <{level = 10 : i32, message = "hwc,hcd->hwd"}> : () -> ()
    %cst_107 = arith.constant dense<0.000000e+00> : vector<8x8x12xf32>
    %132 = tpu.matmul %64, %31, %cst_107 {dimension_numbers = #tpu.dot_dimension_numbers<[2], [1], [1], [2], [0, 0, 0, 1, 1, 2], [0], [0]>} : vector<8x8x3xbf16>, vector<8x3x12xbf16>, vector<8x8x12xf32> -> vector<8x8x12xf32>
    "tpu.trace_stop"() : () -> ()
    %133 = arith.addf %131, %132 : vector<8x8x12xf32>
    "tpu.trace_start"() <{level = 10 : i32, message = "hwc,hcd->hwd"}> : () -> ()
    %cst_108 = arith.constant dense<0.000000e+00> : vector<8x8x12xf32>
    %134 = tpu.matmul %66, %35, %cst_108 {dimension_numbers = #tpu.dot_dimension_numbers<[2], [1], [1], [2], [0, 0, 0, 1, 1, 2], [0], [0]>} : vector<8x8x3xbf16>, vector<8x3x12xbf16>, vector<8x8x12xf32> -> vector<8x8x12xf32>
    "tpu.trace_stop"() : () -> ()
    %135 = arith.addf %133, %134 : vector<8x8x12xf32>
    %136 = vector.shape_cast %36 : vector<1x12xf32> to vector<1x1x12xf32>
    %137 = vector.broadcast %136 : vector<1x1x12xf32> to vector<8x8x12xf32>
    %138 = arith.addf %135, %137 : vector<8x8x12xf32>
    %cst_109 = arith.constant 0.000000e+00 : f32
    %139 = vector.broadcast %cst_109 : f32 to vector<8x8x12xf32>
    %140 = arith.maximumf %138, %139 : vector<8x8x12xf32>
    %cst_110 = arith.constant 0.000000e+00 : f32
    %141 = vector.broadcast %cst_110 : f32 to vector<8x8x12xf32>
    "tpu.trace_start"() <{level = 10 : i32, message = "hwc,hcd->hwd"}> : () -> ()
    %cst_111 = arith.constant dense<0.000000e+00> : vector<8x8x12xf32>
    %142 = tpu.matmul %48, %3, %cst_111 {dimension_numbers = #tpu.dot_dimension_numbers<[2], [1], [1], [2], [0, 0, 0, 1, 1, 2], [0], [0]>} : vector<8x8x3xbf16>, vector<8x3x12xbf16>, vector<8x8x12xf32> -> vector<8x8x12xf32>
    "tpu.trace_stop"() : () -> ()
    %143 = arith.addf %141, %142 : vector<8x8x12xf32>
    "tpu.trace_start"() <{level = 10 : i32, message = "hwc,hcd->hwd"}> : () -> ()
    %cst_112 = arith.constant dense<0.000000e+00> : vector<8x8x12xf32>
    %144 = tpu.matmul %50, %7, %cst_112 {dimension_numbers = #tpu.dot_dimension_numbers<[2], [1], [1], [2], [0, 0, 0, 1, 1, 2], [0], [0]>} : vector<8x8x3xbf16>, vector<8x3x12xbf16>, vector<8x8x12xf32> -> vector<8x8x12xf32>
    "tpu.trace_stop"() : () -> ()
    %145 = arith.addf %143, %144 : vector<8x8x12xf32>
    "tpu.trace_start"() <{level = 10 : i32, message = "hwc,hcd->hwd"}> : () -> ()
    %cst_113 = arith.constant dense<0.000000e+00> : vector<8x8x12xf32>
    %146 = tpu.matmul %52, %11, %cst_113 {dimension_numbers = #tpu.dot_dimension_numbers<[2], [1], [1], [2], [0, 0, 0, 1, 1, 2], [0], [0]>} : vector<8x8x3xbf16>, vector<8x3x12xbf16>, vector<8x8x12xf32> -> vector<8x8x12xf32>
    "tpu.trace_stop"() : () -> ()
    %147 = arith.addf %145, %146 : vector<8x8x12xf32>
    "tpu.trace_start"() <{level = 10 : i32, message = "hwc,hcd->hwd"}> : () -> ()
    %cst_114 = arith.constant dense<0.000000e+00> : vector<8x8x12xf32>
    %148 = tpu.matmul %56, %15, %cst_114 {dimension_numbers = #tpu.dot_dimension_numbers<[2], [1], [1], [2], [0, 0, 0, 1, 1, 2], [0], [0]>} : vector<8x8x3xbf16>, vector<8x3x12xbf16>, vector<8x8x12xf32> -> vector<8x8x12xf32>
    "tpu.trace_stop"() : () -> ()
    %149 = arith.addf %147, %148 : vector<8x8x12xf32>
    "tpu.trace_start"() <{level = 10 : i32, message = "hwc,hcd->hwd"}> : () -> ()
    %cst_115 = arith.constant dense<0.000000e+00> : vector<8x8x12xf32>
    %150 = tpu.matmul %58, %19, %cst_115 {dimension_numbers = #tpu.dot_dimension_numbers<[2], [1], [1], [2], [0, 0, 0, 1, 1, 2], [0], [0]>} : vector<8x8x3xbf16>, vector<8x3x12xbf16>, vector<8x8x12xf32> -> vector<8x8x12xf32>
    "tpu.trace_stop"() : () -> ()
    %151 = arith.addf %149, %150 : vector<8x8x12xf32>
    "tpu.trace_start"() <{level = 10 : i32, message = "hwc,hcd->hwd"}> : () -> ()
    %cst_116 = arith.constant dense<0.000000e+00> : vector<8x8x12xf32>
    %152 = tpu.matmul %60, %23, %cst_116 {dimension_numbers = #tpu.dot_dimension_numbers<[2], [1], [1], [2], [0, 0, 0, 1, 1, 2], [0], [0]>} : vector<8x8x3xbf16>, vector<8x3x12xbf16>, vector<8x8x12xf32> -> vector<8x8x12xf32>
    "tpu.trace_stop"() : () -> ()
    %153 = arith.addf %151, %152 : vector<8x8x12xf32>
    "tpu.trace_start"() <{level = 10 : i32, message = "hwc,hcd->hwd"}> : () -> ()
    %cst_117 = arith.constant dense<0.000000e+00> : vector<8x8x12xf32>
    %154 = tpu.matmul %64, %27, %cst_117 {dimension_numbers = #tpu.dot_dimension_numbers<[2], [1], [1], [2], [0, 0, 0, 1, 1, 2], [0], [0]>} : vector<8x8x3xbf16>, vector<8x3x12xbf16>, vector<8x8x12xf32> -> vector<8x8x12xf32>
    "tpu.trace_stop"() : () -> ()
    %155 = arith.addf %153, %154 : vector<8x8x12xf32>
    "tpu.trace_start"() <{level = 10 : i32, message = "hwc,hcd->hwd"}> : () -> ()
    %cst_118 = arith.constant dense<0.000000e+00> : vector<8x8x12xf32>
    %156 = tpu.matmul %66, %31, %cst_118 {dimension_numbers = #tpu.dot_dimension_numbers<[2], [1], [1], [2], [0, 0, 0, 1, 1, 2], [0], [0]>} : vector<8x8x3xbf16>, vector<8x3x12xbf16>, vector<8x8x12xf32> -> vector<8x8x12xf32>
    "tpu.trace_stop"() : () -> ()
    %157 = arith.addf %155, %156 : vector<8x8x12xf32>
    "tpu.trace_start"() <{level = 10 : i32, message = "hwc,hcd->hwd"}> : () -> ()
    %cst_119 = arith.constant dense<0.000000e+00> : vector<8x8x12xf32>
    %158 = tpu.matmul %68, %35, %cst_119 {dimension_numbers = #tpu.dot_dimension_numbers<[2], [1], [1], [2], [0, 0, 0, 1, 1, 2], [0], [0]>} : vector<8x8x3xbf16>, vector<8x3x12xbf16>, vector<8x8x12xf32> -> vector<8x8x12xf32>
    "tpu.trace_stop"() : () -> ()
    %159 = arith.addf %157, %158 : vector<8x8x12xf32>
    %160 = vector.shape_cast %36 : vector<1x12xf32> to vector<1x1x12xf32>
    %161 = vector.broadcast %160 : vector<1x1x12xf32> to vector<8x8x12xf32>
    %162 = arith.addf %159, %161 : vector<8x8x12xf32>
    %cst_120 = arith.constant 0.000000e+00 : f32
    %163 = vector.broadcast %cst_120 : f32 to vector<8x8x12xf32>
    %164 = arith.maximumf %162, %163 : vector<8x8x12xf32>
    %165 = arith.addf %92, %116 : vector<8x8x12xf32>
    %166 = arith.addf %165, %140 : vector<8x8x12xf32>
    %167 = arith.addf %166, %164 : vector<8x8x12xf32>
    %cst_121 = arith.constant 2.500000e-01 : f32
    %168 = vector.broadcast %cst_121 : f32 to vector<8x8x12xf32>
    %169 = arith.mulf %167, %168 : vector<8x8x12xf32>
    %170 = arith.truncf %169 : vector<8x8x12xf32> to vector<8x8x12xbf16>
    %c0_122 = arith.constant 0 : index
    %c0_123 = arith.constant 0 : index
    %c0_124 = arith.constant 0 : index
    %c0_125 = arith.constant 0 : index
    %171 = vector.load %arg4[%c0_122, %c0_123, %c0_124, %c0_125] : memref<1x8x8x12xbf16, #tpu.memory_space<vmem>>, vector<1x8x8x12xbf16>
    %172 = vector.shape_cast %171 : vector<1x8x8x12xbf16> to vector<8x8x12xbf16>
    %173 = vector.shape_cast %170 : vector<8x8x12xbf16> to vector<1x8x8x12xbf16>
    tpu.vector_store %arg4[%c0_122, %c0_123, %c0_124, %c0_125], %173 {strides = array<i32>} : memref<1x8x8x12xbf16, #tpu.memory_space<vmem>>, vector<1x8x8x12xbf16>,
    return
  }
  func.func @transform_0(%arg0: i32) -> (i32, i32, i32, i32) {
    %c0_i32 = arith.constant 0 : i32
    %c0_i32_0 = arith.constant 0 : i32
    %c0_i32_1 = arith.constant 0 : i32
    %c0_i32_2 = arith.constant 0 : i32
    return %arg0, %c0_i32, %c0_i32_0, %c0_i32_1 : i32, i32, i32, i32
  }
  func.func @transform_1(%arg0: i32) -> (i32, i32, i32) {
    %c0_i32 = arith.constant 0 : i32
    %c0_i32_0 = arith.constant 0 : i32
    %c0_i32_1 = arith.constant 0 : i32
    %c0_i32_2 = arith.constant 0 : i32
    return %c0_i32, %c0_i32_0, %c0_i32_1 : i32, i32, i32
  }
  func.func @transform_2(%arg0: i32) -> (i32, i32) {
    %c0_i32 = arith.constant 0 : i32
    %c0_i32_0 = arith.constant 0 : i32
    %c0_i32_1 = arith.constant 0 : i32
    return %c0_i32, %c0_i32_0 : i32, i32
  }
  func.func @transform_3(%arg0: i32) -> (i32, i32, i32, i32) {
    %c0_i32 = arith.constant 0 : i32
    %c0_i32_0 = arith.constant 0 : i32
    %c0_i32_1 = arith.constant 0 : i32
    %c0_i32_2 = arith.constant 0 : i32
    return %arg0, %c0_i32, %c0_i32_0, %c0_i32_1 : i32, i32, i32, i32
  }
}

module attributes {stable_mosaic.version = 11 : i64} {
  func.func @_conv_pool_kernel(%arg0: i32, %arg1: memref<1x20x5x12xbf16, #tpu.memory_space<vmem>>, %arg2: memref<9x12x24xbf16, #tpu.memory_space<vmem>>, %arg3: memref<1x24xf32, #tpu.memory_space<vmem>>, %arg4: memref<1x4x4x24xbf16, #tpu.memory_space<vmem>>) attributes {dimension_semantics = [#tpu.dimension_semantics<parallel>], iteration_bounds = array<i64: 2>, scalar_prefetch = 0 : i64, scratch_operands = 0 : i64, tpu.core_type = #tpu.core_type<tc>, window_params = [{transform_indices = @transform_0, window_bounds = array<i64: 1, 20, 5, 12>}, {pipeline_mode = #tpu.pipeline_mode<synchronous>, transform_indices = @transform_1, window_bounds = array<i64: 9, 12, 24>}, {pipeline_mode = #tpu.pipeline_mode<synchronous>, transform_indices = @transform_2, window_bounds = array<i64: 1, 24>}, {transform_indices = @transform_3, window_bounds = array<i64: 1, 4, 4, 24>}]} {
    %c0 = arith.constant 0 : index
    %c0_0 = arith.constant 0 : index
    %c0_1 = arith.constant 0 : index
    %0 = vector.load %arg2[%c0, %c0_0, %c0_1] : memref<9x12x24xbf16, #tpu.memory_space<vmem>>, vector<1x12x24xbf16>
    %1 = vector.shape_cast %0 : vector<1x12x24xbf16> to vector<12x24xbf16>
    %2 = vector.shape_cast %1 : vector<12x24xbf16> to vector<1x12x24xbf16>
    %3 = vector.broadcast %2 : vector<1x12x24xbf16> to vector<4x12x24xbf16>
    %c1 = arith.constant 1 : index
    %c0_2 = arith.constant 0 : index
    %c0_3 = arith.constant 0 : index
    %4 = vector.load %arg2[%c1, %c0_2, %c0_3] : memref<9x12x24xbf16, #tpu.memory_space<vmem>>, vector<1x12x24xbf16>
    %5 = vector.shape_cast %4 : vector<1x12x24xbf16> to vector<12x24xbf16>
    %6 = vector.shape_cast %5 : vector<12x24xbf16> to vector<1x12x24xbf16>
    %7 = vector.broadcast %6 : vector<1x12x24xbf16> to vector<4x12x24xbf16>
    %c2 = arith.constant 2 : index
    %c0_4 = arith.constant 0 : index
    %c0_5 = arith.constant 0 : index
    %8 = vector.load %arg2[%c2, %c0_4, %c0_5] : memref<9x12x24xbf16, #tpu.memory_space<vmem>>, vector<1x12x24xbf16>
    %9 = vector.shape_cast %8 : vector<1x12x24xbf16> to vector<12x24xbf16>
    %10 = vector.shape_cast %9 : vector<12x24xbf16> to vector<1x12x24xbf16>
    %11 = vector.broadcast %10 : vector<1x12x24xbf16> to vector<4x12x24xbf16>
    %c3 = arith.constant 3 : index
    %c0_6 = arith.constant 0 : index
    %c0_7 = arith.constant 0 : index
    %12 = vector.load %arg2[%c3, %c0_6, %c0_7] : memref<9x12x24xbf16, #tpu.memory_space<vmem>>, vector<1x12x24xbf16>
    %13 = vector.shape_cast %12 : vector<1x12x24xbf16> to vector<12x24xbf16>
    %14 = vector.shape_cast %13 : vector<12x24xbf16> to vector<1x12x24xbf16>
    %15 = vector.broadcast %14 : vector<1x12x24xbf16> to vector<4x12x24xbf16>
    %c4 = arith.constant 4 : index
    %c0_8 = arith.constant 0 : index
    %c0_9 = arith.constant 0 : index
    %16 = vector.load %arg2[%c4, %c0_8, %c0_9] : memref<9x12x24xbf16, #tpu.memory_space<vmem>>, vector<1x12x24xbf16>
    %17 = vector.shape_cast %16 : vector<1x12x24xbf16> to vector<12x24xbf16>
    %18 = vector.shape_cast %17 : vector<12x24xbf16> to vector<1x12x24xbf16>
    %19 = vector.broadcast %18 : vector<1x12x24xbf16> to vector<4x12x24xbf16>
    %c5 = arith.constant 5 : index
    %c0_10 = arith.constant 0 : index
    %c0_11 = arith.constant 0 : index
    %20 = vector.load %arg2[%c5, %c0_10, %c0_11] : memref<9x12x24xbf16, #tpu.memory_space<vmem>>, vector<1x12x24xbf16>
    %21 = vector.shape_cast %20 : vector<1x12x24xbf16> to vector<12x24xbf16>
    %22 = vector.shape_cast %21 : vector<12x24xbf16> to vector<1x12x24xbf16>
    %23 = vector.broadcast %22 : vector<1x12x24xbf16> to vector<4x12x24xbf16>
    %c6 = arith.constant 6 : index
    %c0_12 = arith.constant 0 : index
    %c0_13 = arith.constant 0 : index
    %24 = vector.load %arg2[%c6, %c0_12, %c0_13] : memref<9x12x24xbf16, #tpu.memory_space<vmem>>, vector<1x12x24xbf16>
    %25 = vector.shape_cast %24 : vector<1x12x24xbf16> to vector<12x24xbf16>
    %26 = vector.shape_cast %25 : vector<12x24xbf16> to vector<1x12x24xbf16>
    %27 = vector.broadcast %26 : vector<1x12x24xbf16> to vector<4x12x24xbf16>
    %c7 = arith.constant 7 : index
    %c0_14 = arith.constant 0 : index
    %c0_15 = arith.constant 0 : index
    %28 = vector.load %arg2[%c7, %c0_14, %c0_15] : memref<9x12x24xbf16, #tpu.memory_space<vmem>>, vector<1x12x24xbf16>
    %29 = vector.shape_cast %28 : vector<1x12x24xbf16> to vector<12x24xbf16>
    %30 = vector.shape_cast %29 : vector<12x24xbf16> to vector<1x12x24xbf16>
    %31 = vector.broadcast %30 : vector<1x12x24xbf16> to vector<4x12x24xbf16>
    %c8 = arith.constant 8 : index
    %c0_16 = arith.constant 0 : index
    %c0_17 = arith.constant 0 : index
    %32 = vector.load %arg2[%c8, %c0_16, %c0_17] : memref<9x12x24xbf16, #tpu.memory_space<vmem>>, vector<1x12x24xbf16>
    %33 = vector.shape_cast %32 : vector<1x12x24xbf16> to vector<12x24xbf16>
    %34 = vector.shape_cast %33 : vector<12x24xbf16> to vector<1x12x24xbf16>
    %35 = vector.broadcast %34 : vector<1x12x24xbf16> to vector<4x12x24xbf16>
    %c0_18 = arith.constant 0 : index
    %c0_19 = arith.constant 0 : index
    %36 = vector.load %arg3[%c0_18, %c0_19] : memref<1x24xf32, #tpu.memory_space<vmem>>, vector<1x24xf32>
    %c0_20 = arith.constant 0 : index
    %c0_21 = arith.constant 0 : index
    %c0_22 = arith.constant 0 : index
    %c0_23 = arith.constant 0 : index
    %37 = vector.load %arg1[%c0_20, %c0_21, %c0_22, %c0_23] : memref<1x20x5x12xbf16, #tpu.memory_space<vmem>>, vector<1x4x4x12xbf16>
    %38 = vector.shape_cast %37 : vector<1x4x4x12xbf16> to vector<4x4x12xbf16>
    %c0_24 = arith.constant 0 : index
    %c5_25 = arith.constant 5 : index
    %c0_26 = arith.constant 0 : index
    %c0_27 = arith.constant 0 : index
    %39 = vector.load %arg1[%c0_24, %c5_25, %c0_26, %c0_27] : memref<1x20x5x12xbf16, #tpu.memory_space<vmem>>, vector<1x4x4x12xbf16>
    %40 = vector.shape_cast %39 : vector<1x4x4x12xbf16> to vector<4x4x12xbf16>
    %c0_28 = arith.constant 0 : index
    %c0_29 = arith.constant 0 : index
    %c1_30 = arith.constant 1 : index
    %c0_31 = arith.constant 0 : index
    %41 = vector.load %arg1[%c0_28, %c0_29, %c1_30, %c0_31] : memref<1x20x5x12xbf16, #tpu.memory_space<vmem>>, vector<1x4x4x12xbf16>
    %42 = vector.shape_cast %41 : vector<1x4x4x12xbf16> to vector<4x4x12xbf16>
    %c0_32 = arith.constant 0 : index
    %c5_33 = arith.constant 5 : index
    %c1_34 = arith.constant 1 : index
    %c0_35 = arith.constant 0 : index
    %43 = vector.load %arg1[%c0_32, %c5_33, %c1_34, %c0_35] : memref<1x20x5x12xbf16, #tpu.memory_space<vmem>>, vector<1x4x4x12xbf16>
    %44 = vector.shape_cast %43 : vector<1x4x4x12xbf16> to vector<4x4x12xbf16>
    %c0_36 = arith.constant 0 : index
    %c10 = arith.constant 10 : index
    %c0_37 = arith.constant 0 : index
    %c0_38 = arith.constant 0 : index
    %45 = vector.load %arg1[%c0_36, %c10, %c0_37, %c0_38] : memref<1x20x5x12xbf16, #tpu.memory_space<vmem>>, vector<1x4x4x12xbf16>
    %46 = vector.shape_cast %45 : vector<1x4x4x12xbf16> to vector<4x4x12xbf16>
    %c0_39 = arith.constant 0 : index
    %c15 = arith.constant 15 : index
    %c0_40 = arith.constant 0 : index
    %c0_41 = arith.constant 0 : index
    %47 = vector.load %arg1[%c0_39, %c15, %c0_40, %c0_41] : memref<1x20x5x12xbf16, #tpu.memory_space<vmem>>, vector<1x4x4x12xbf16>
    %48 = vector.shape_cast %47 : vector<1x4x4x12xbf16> to vector<4x4x12xbf16>
    %c0_42 = arith.constant 0 : index
    %c10_43 = arith.constant 10 : index
    %c1_44 = arith.constant 1 : index
    %c0_45 = arith.constant 0 : index
    %49 = vector.load %arg1[%c0_42, %c10_43, %c1_44, %c0_45] : memref<1x20x5x12xbf16, #tpu.memory_space<vmem>>, vector<1x4x4x12xbf16>
    %50 = vector.shape_cast %49 : vector<1x4x4x12xbf16> to vector<4x4x12xbf16>
    %c0_46 = arith.constant 0 : index
    %c15_47 = arith.constant 15 : index
    %c1_48 = arith.constant 1 : index
    %c0_49 = arith.constant 0 : index
    %51 = vector.load %arg1[%c0_46, %c15_47, %c1_48, %c0_49] : memref<1x20x5x12xbf16, #tpu.memory_space<vmem>>, vector<1x4x4x12xbf16>
    %52 = vector.shape_cast %51 : vector<1x4x4x12xbf16> to vector<4x4x12xbf16>
    %c0_50 = arith.constant 0 : index
    %c1_51 = arith.constant 1 : index
    %c0_52 = arith.constant 0 : index
    %c0_53 = arith.constant 0 : index
    %53 = vector.load %arg1[%c0_50, %c1_51, %c0_52, %c0_53] : memref<1x20x5x12xbf16, #tpu.memory_space<vmem>>, vector<1x4x4x12xbf16>
    %54 = vector.shape_cast %53 : vector<1x4x4x12xbf16> to vector<4x4x12xbf16>
    %c0_54 = arith.constant 0 : index
    %c6_55 = arith.constant 6 : index
    %c0_56 = arith.constant 0 : index
    %c0_57 = arith.constant 0 : index
    %55 = vector.load %arg1[%c0_54, %c6_55, %c0_56, %c0_57] : memref<1x20x5x12xbf16, #tpu.memory_space<vmem>>, vector<1x4x4x12xbf16>
    %56 = vector.shape_cast %55 : vector<1x4x4x12xbf16> to vector<4x4x12xbf16>
    %c0_58 = arith.constant 0 : index
    %c1_59 = arith.constant 1 : index
    %c1_60 = arith.constant 1 : index
    %c0_61 = arith.constant 0 : index
    %57 = vector.load %arg1[%c0_58, %c1_59, %c1_60, %c0_61] : memref<1x20x5x12xbf16, #tpu.memory_space<vmem>>, vector<1x4x4x12xbf16>
    %58 = vector.shape_cast %57 : vector<1x4x4x12xbf16> to vector<4x4x12xbf16>
    %c0_62 = arith.constant 0 : index
    %c6_63 = arith.constant 6 : index
    %c1_64 = arith.constant 1 : index
    %c0_65 = arith.constant 0 : index
    %59 = vector.load %arg1[%c0_62, %c6_63, %c1_64, %c0_65] : memref<1x20x5x12xbf16, #tpu.memory_space<vmem>>, vector<1x4x4x12xbf16>
    %60 = vector.shape_cast %59 : vector<1x4x4x12xbf16> to vector<4x4x12xbf16>
    %c0_66 = arith.constant 0 : index
    %c11 = arith.constant 11 : index
    %c0_67 = arith.constant 0 : index
    %c0_68 = arith.constant 0 : index
    %61 = vector.load %arg1[%c0_66, %c11, %c0_67, %c0_68] : memref<1x20x5x12xbf16, #tpu.memory_space<vmem>>, vector<1x4x4x12xbf16>
    %62 = vector.shape_cast %61 : vector<1x4x4x12xbf16> to vector<4x4x12xbf16>
    %c0_69 = arith.constant 0 : index
    %c16 = arith.constant 16 : index
    %c0_70 = arith.constant 0 : index
    %c0_71 = arith.constant 0 : index
    %63 = vector.load %arg1[%c0_69, %c16, %c0_70, %c0_71] : memref<1x20x5x12xbf16, #tpu.memory_space<vmem>>, vector<1x4x4x12xbf16>
    %64 = vector.shape_cast %63 : vector<1x4x4x12xbf16> to vector<4x4x12xbf16>
    %c0_72 = arith.constant 0 : index
    %c11_73 = arith.constant 11 : index
    %c1_74 = arith.constant 1 : index
    %c0_75 = arith.constant 0 : index
    %65 = vector.load %arg1[%c0_72, %c11_73, %c1_74, %c0_75] : memref<1x20x5x12xbf16, #tpu.memory_space<vmem>>, vector<1x4x4x12xbf16>
    %66 = vector.shape_cast %65 : vector<1x4x4x12xbf16> to vector<4x4x12xbf16>
    %c0_76 = arith.constant 0 : index
    %c16_77 = arith.constant 16 : index
    %c1_78 = arith.constant 1 : index
    %c0_79 = arith.constant 0 : index
    %67 = vector.load %arg1[%c0_76, %c16_77, %c1_78, %c0_79] : memref<1x20x5x12xbf16, #tpu.memory_space<vmem>>, vector<1x4x4x12xbf16>
    %68 = vector.shape_cast %67 : vector<1x4x4x12xbf16> to vector<4x4x12xbf16>
    %cst = arith.constant 0.000000e+00 : f32
    %69 = vector.broadcast %cst : f32 to vector<4x4x24xf32>
    "tpu.trace_start"() <{level = 10 : i32, message = "hwc,hcd->hwd"}> : () -> ()
    %cst_80 = arith.constant dense<0.000000e+00> : vector<4x4x24xf32>
    %70 = tpu.matmul %38, %3, %cst_80 {dimension_numbers = #tpu.dot_dimension_numbers<[2], [1], [1], [2], [0, 0, 0, 1, 1, 2], [0], [0]>} : vector<4x4x12xbf16>, vector<4x12x24xbf16>, vector<4x4x24xf32> -> vector<4x4x24xf32>
    "tpu.trace_stop"() : () -> ()
    %71 = arith.addf %69, %70 : vector<4x4x24xf32>
    "tpu.trace_start"() <{level = 10 : i32, message = "hwc,hcd->hwd"}> : () -> ()
    %cst_81 = arith.constant dense<0.000000e+00> : vector<4x4x24xf32>
    %72 = tpu.matmul %40, %7, %cst_81 {dimension_numbers = #tpu.dot_dimension_numbers<[2], [1], [1], [2], [0, 0, 0, 1, 1, 2], [0], [0]>} : vector<4x4x12xbf16>, vector<4x12x24xbf16>, vector<4x4x24xf32> -> vector<4x4x24xf32>
    "tpu.trace_stop"() : () -> ()
    %73 = arith.addf %71, %72 : vector<4x4x24xf32>
    "tpu.trace_start"() <{level = 10 : i32, message = "hwc,hcd->hwd"}> : () -> ()
    %cst_82 = arith.constant dense<0.000000e+00> : vector<4x4x24xf32>
    %74 = tpu.matmul %42, %11, %cst_82 {dimension_numbers = #tpu.dot_dimension_numbers<[2], [1], [1], [2], [0, 0, 0, 1, 1, 2], [0], [0]>} : vector<4x4x12xbf16>, vector<4x12x24xbf16>, vector<4x4x24xf32> -> vector<4x4x24xf32>
    "tpu.trace_stop"() : () -> ()
    %75 = arith.addf %73, %74 : vector<4x4x24xf32>
    "tpu.trace_start"() <{level = 10 : i32, message = "hwc,hcd->hwd"}> : () -> ()
    %cst_83 = arith.constant dense<0.000000e+00> : vector<4x4x24xf32>
    %76 = tpu.matmul %46, %15, %cst_83 {dimension_numbers = #tpu.dot_dimension_numbers<[2], [1], [1], [2], [0, 0, 0, 1, 1, 2], [0], [0]>} : vector<4x4x12xbf16>, vector<4x12x24xbf16>, vector<4x4x24xf32> -> vector<4x4x24xf32>
    "tpu.trace_stop"() : () -> ()
    %77 = arith.addf %75, %76 : vector<4x4x24xf32>
    "tpu.trace_start"() <{level = 10 : i32, message = "hwc,hcd->hwd"}> : () -> ()
    %cst_84 = arith.constant dense<0.000000e+00> : vector<4x4x24xf32>
    %78 = tpu.matmul %48, %19, %cst_84 {dimension_numbers = #tpu.dot_dimension_numbers<[2], [1], [1], [2], [0, 0, 0, 1, 1, 2], [0], [0]>} : vector<4x4x12xbf16>, vector<4x12x24xbf16>, vector<4x4x24xf32> -> vector<4x4x24xf32>
    "tpu.trace_stop"() : () -> ()
    %79 = arith.addf %77, %78 : vector<4x4x24xf32>
    "tpu.trace_start"() <{level = 10 : i32, message = "hwc,hcd->hwd"}> : () -> ()
    %cst_85 = arith.constant dense<0.000000e+00> : vector<4x4x24xf32>
    %80 = tpu.matmul %50, %23, %cst_85 {dimension_numbers = #tpu.dot_dimension_numbers<[2], [1], [1], [2], [0, 0, 0, 1, 1, 2], [0], [0]>} : vector<4x4x12xbf16>, vector<4x12x24xbf16>, vector<4x4x24xf32> -> vector<4x4x24xf32>
    "tpu.trace_stop"() : () -> ()
    %81 = arith.addf %79, %80 : vector<4x4x24xf32>
    "tpu.trace_start"() <{level = 10 : i32, message = "hwc,hcd->hwd"}> : () -> ()
    %cst_86 = arith.constant dense<0.000000e+00> : vector<4x4x24xf32>
    %82 = tpu.matmul %54, %27, %cst_86 {dimension_numbers = #tpu.dot_dimension_numbers<[2], [1], [1], [2], [0, 0, 0, 1, 1, 2], [0], [0]>} : vector<4x4x12xbf16>, vector<4x12x24xbf16>, vector<4x4x24xf32> -> vector<4x4x24xf32>
    "tpu.trace_stop"() : () -> ()
    %83 = arith.addf %81, %82 : vector<4x4x24xf32>
    "tpu.trace_start"() <{level = 10 : i32, message = "hwc,hcd->hwd"}> : () -> ()
    %cst_87 = arith.constant dense<0.000000e+00> : vector<4x4x24xf32>
    %84 = tpu.matmul %56, %31, %cst_87 {dimension_numbers = #tpu.dot_dimension_numbers<[2], [1], [1], [2], [0, 0, 0, 1, 1, 2], [0], [0]>} : vector<4x4x12xbf16>, vector<4x12x24xbf16>, vector<4x4x24xf32> -> vector<4x4x24xf32>
    "tpu.trace_stop"() : () -> ()
    %85 = arith.addf %83, %84 : vector<4x4x24xf32>
    "tpu.trace_start"() <{level = 10 : i32, message = "hwc,hcd->hwd"}> : () -> ()
    %cst_88 = arith.constant dense<0.000000e+00> : vector<4x4x24xf32>
    %86 = tpu.matmul %58, %35, %cst_88 {dimension_numbers = #tpu.dot_dimension_numbers<[2], [1], [1], [2], [0, 0, 0, 1, 1, 2], [0], [0]>} : vector<4x4x12xbf16>, vector<4x12x24xbf16>, vector<4x4x24xf32> -> vector<4x4x24xf32>
    "tpu.trace_stop"() : () -> ()
    %87 = arith.addf %85, %86 : vector<4x4x24xf32>
    %88 = vector.shape_cast %36 : vector<1x24xf32> to vector<1x1x24xf32>
    %89 = vector.broadcast %88 : vector<1x1x24xf32> to vector<4x4x24xf32>
    %90 = arith.addf %87, %89 : vector<4x4x24xf32>
    %cst_89 = arith.constant 0.000000e+00 : f32
    %91 = vector.broadcast %cst_89 : f32 to vector<4x4x24xf32>
    %92 = arith.maximumf %90, %91 : vector<4x4x24xf32>
    %cst_90 = arith.constant 0.000000e+00 : f32
    %93 = vector.broadcast %cst_90 : f32 to vector<4x4x24xf32>
    "tpu.trace_start"() <{level = 10 : i32, message = "hwc,hcd->hwd"}> : () -> ()
    %cst_91 = arith.constant dense<0.000000e+00> : vector<4x4x24xf32>
    %94 = tpu.matmul %40, %3, %cst_91 {dimension_numbers = #tpu.dot_dimension_numbers<[2], [1], [1], [2], [0, 0, 0, 1, 1, 2], [0], [0]>} : vector<4x4x12xbf16>, vector<4x12x24xbf16>, vector<4x4x24xf32> -> vector<4x4x24xf32>
    "tpu.trace_stop"() : () -> ()
    %95 = arith.addf %93, %94 : vector<4x4x24xf32>
    "tpu.trace_start"() <{level = 10 : i32, message = "hwc,hcd->hwd"}> : () -> ()
    %cst_92 = arith.constant dense<0.000000e+00> : vector<4x4x24xf32>
    %96 = tpu.matmul %42, %7, %cst_92 {dimension_numbers = #tpu.dot_dimension_numbers<[2], [1], [1], [2], [0, 0, 0, 1, 1, 2], [0], [0]>} : vector<4x4x12xbf16>, vector<4x12x24xbf16>, vector<4x4x24xf32> -> vector<4x4x24xf32>
    "tpu.trace_stop"() : () -> ()
    %97 = arith.addf %95, %96 : vector<4x4x24xf32>
    "tpu.trace_start"() <{level = 10 : i32, message = "hwc,hcd->hwd"}> : () -> ()
    %cst_93 = arith.constant dense<0.000000e+00> : vector<4x4x24xf32>
    %98 = tpu.matmul %44, %11, %cst_93 {dimension_numbers = #tpu.dot_dimension_numbers<[2], [1], [1], [2], [0, 0, 0, 1, 1, 2], [0], [0]>} : vector<4x4x12xbf16>, vector<4x12x24xbf16>, vector<4x4x24xf32> -> vector<4x4x24xf32>
    "tpu.trace_stop"() : () -> ()
    %99 = arith.addf %97, %98 : vector<4x4x24xf32>
    "tpu.trace_start"() <{level = 10 : i32, message = "hwc,hcd->hwd"}> : () -> ()
    %cst_94 = arith.constant dense<0.000000e+00> : vector<4x4x24xf32>
    %100 = tpu.matmul %48, %15, %cst_94 {dimension_numbers = #tpu.dot_dimension_numbers<[2], [1], [1], [2], [0, 0, 0, 1, 1, 2], [0], [0]>} : vector<4x4x12xbf16>, vector<4x12x24xbf16>, vector<4x4x24xf32> -> vector<4x4x24xf32>
    "tpu.trace_stop"() : () -> ()
    %101 = arith.addf %99, %100 : vector<4x4x24xf32>
    "tpu.trace_start"() <{level = 10 : i32, message = "hwc,hcd->hwd"}> : () -> ()
    %cst_95 = arith.constant dense<0.000000e+00> : vector<4x4x24xf32>
    %102 = tpu.matmul %50, %19, %cst_95 {dimension_numbers = #tpu.dot_dimension_numbers<[2], [1], [1], [2], [0, 0, 0, 1, 1, 2], [0], [0]>} : vector<4x4x12xbf16>, vector<4x12x24xbf16>, vector<4x4x24xf32> -> vector<4x4x24xf32>
    "tpu.trace_stop"() : () -> ()
    %103 = arith.addf %101, %102 : vector<4x4x24xf32>
    "tpu.trace_start"() <{level = 10 : i32, message = "hwc,hcd->hwd"}> : () -> ()
    %cst_96 = arith.constant dense<0.000000e+00> : vector<4x4x24xf32>
    %104 = tpu.matmul %52, %23, %cst_96 {dimension_numbers = #tpu.dot_dimension_numbers<[2], [1], [1], [2], [0, 0, 0, 1, 1, 2], [0], [0]>} : vector<4x4x12xbf16>, vector<4x12x24xbf16>, vector<4x4x24xf32> -> vector<4x4x24xf32>
    "tpu.trace_stop"() : () -> ()
    %105 = arith.addf %103, %104 : vector<4x4x24xf32>
    "tpu.trace_start"() <{level = 10 : i32, message = "hwc,hcd->hwd"}> : () -> ()
    %cst_97 = arith.constant dense<0.000000e+00> : vector<4x4x24xf32>
    %106 = tpu.matmul %56, %27, %cst_97 {dimension_numbers = #tpu.dot_dimension_numbers<[2], [1], [1], [2], [0, 0, 0, 1, 1, 2], [0], [0]>} : vector<4x4x12xbf16>, vector<4x12x24xbf16>, vector<4x4x24xf32> -> vector<4x4x24xf32>
    "tpu.trace_stop"() : () -> ()
    %107 = arith.addf %105, %106 : vector<4x4x24xf32>
    "tpu.trace_start"() <{level = 10 : i32, message = "hwc,hcd->hwd"}> : () -> ()
    %cst_98 = arith.constant dense<0.000000e+00> : vector<4x4x24xf32>
    %108 = tpu.matmul %58, %31, %cst_98 {dimension_numbers = #tpu.dot_dimension_numbers<[2], [1], [1], [2], [0, 0, 0, 1, 1, 2], [0], [0]>} : vector<4x4x12xbf16>, vector<4x12x24xbf16>, vector<4x4x24xf32> -> vector<4x4x24xf32>
    "tpu.trace_stop"() : () -> ()
    %109 = arith.addf %107, %108 : vector<4x4x24xf32>
    "tpu.trace_start"() <{level = 10 : i32, message = "hwc,hcd->hwd"}> : () -> ()
    %cst_99 = arith.constant dense<0.000000e+00> : vector<4x4x24xf32>
    %110 = tpu.matmul %60, %35, %cst_99 {dimension_numbers = #tpu.dot_dimension_numbers<[2], [1], [1], [2], [0, 0, 0, 1, 1, 2], [0], [0]>} : vector<4x4x12xbf16>, vector<4x12x24xbf16>, vector<4x4x24xf32> -> vector<4x4x24xf32>
    "tpu.trace_stop"() : () -> ()
    %111 = arith.addf %109, %110 : vector<4x4x24xf32>
    %112 = vector.shape_cast %36 : vector<1x24xf32> to vector<1x1x24xf32>
    %113 = vector.broadcast %112 : vector<1x1x24xf32> to vector<4x4x24xf32>
    %114 = arith.addf %111, %113 : vector<4x4x24xf32>
    %cst_100 = arith.constant 0.000000e+00 : f32
    %115 = vector.broadcast %cst_100 : f32 to vector<4x4x24xf32>
    %116 = arith.maximumf %114, %115 : vector<4x4x24xf32>
    %cst_101 = arith.constant 0.000000e+00 : f32
    %117 = vector.broadcast %cst_101 : f32 to vector<4x4x24xf32>
    "tpu.trace_start"() <{level = 10 : i32, message = "hwc,hcd->hwd"}> : () -> ()
    %cst_102 = arith.constant dense<0.000000e+00> : vector<4x4x24xf32>
    %118 = tpu.matmul %46, %3, %cst_102 {dimension_numbers = #tpu.dot_dimension_numbers<[2], [1], [1], [2], [0, 0, 0, 1, 1, 2], [0], [0]>} : vector<4x4x12xbf16>, vector<4x12x24xbf16>, vector<4x4x24xf32> -> vector<4x4x24xf32>
    "tpu.trace_stop"() : () -> ()
    %119 = arith.addf %117, %118 : vector<4x4x24xf32>
    "tpu.trace_start"() <{level = 10 : i32, message = "hwc,hcd->hwd"}> : () -> ()
    %cst_103 = arith.constant dense<0.000000e+00> : vector<4x4x24xf32>
    %120 = tpu.matmul %48, %7, %cst_103 {dimension_numbers = #tpu.dot_dimension_numbers<[2], [1], [1], [2], [0, 0, 0, 1, 1, 2], [0], [0]>} : vector<4x4x12xbf16>, vector<4x12x24xbf16>, vector<4x4x24xf32> -> vector<4x4x24xf32>
    "tpu.trace_stop"() : () -> ()
    %121 = arith.addf %119, %120 : vector<4x4x24xf32>
    "tpu.trace_start"() <{level = 10 : i32, message = "hwc,hcd->hwd"}> : () -> ()
    %cst_104 = arith.constant dense<0.000000e+00> : vector<4x4x24xf32>
    %122 = tpu.matmul %50, %11, %cst_104 {dimension_numbers = #tpu.dot_dimension_numbers<[2], [1], [1], [2], [0, 0, 0, 1, 1, 2], [0], [0]>} : vector<4x4x12xbf16>, vector<4x12x24xbf16>, vector<4x4x24xf32> -> vector<4x4x24xf32>
    "tpu.trace_stop"() : () -> ()
    %123 = arith.addf %121, %122 : vector<4x4x24xf32>
    "tpu.trace_start"() <{level = 10 : i32, message = "hwc,hcd->hwd"}> : () -> ()
    %cst_105 = arith.constant dense<0.000000e+00> : vector<4x4x24xf32>
    %124 = tpu.matmul %54, %15, %cst_105 {dimension_numbers = #tpu.dot_dimension_numbers<[2], [1], [1], [2], [0, 0, 0, 1, 1, 2], [0], [0]>} : vector<4x4x12xbf16>, vector<4x12x24xbf16>, vector<4x4x24xf32> -> vector<4x4x24xf32>
    "tpu.trace_stop"() : () -> ()
    %125 = arith.addf %123, %124 : vector<4x4x24xf32>
    "tpu.trace_start"() <{level = 10 : i32, message = "hwc,hcd->hwd"}> : () -> ()
    %cst_106 = arith.constant dense<0.000000e+00> : vector<4x4x24xf32>
    %126 = tpu.matmul %56, %19, %cst_106 {dimension_numbers = #tpu.dot_dimension_numbers<[2], [1], [1], [2], [0, 0, 0, 1, 1, 2], [0], [0]>} : vector<4x4x12xbf16>, vector<4x12x24xbf16>, vector<4x4x24xf32> -> vector<4x4x24xf32>
    "tpu.trace_stop"() : () -> ()
    %127 = arith.addf %125, %126 : vector<4x4x24xf32>
    "tpu.trace_start"() <{level = 10 : i32, message = "hwc,hcd->hwd"}> : () -> ()
    %cst_107 = arith.constant dense<0.000000e+00> : vector<4x4x24xf32>
    %128 = tpu.matmul %58, %23, %cst_107 {dimension_numbers = #tpu.dot_dimension_numbers<[2], [1], [1], [2], [0, 0, 0, 1, 1, 2], [0], [0]>} : vector<4x4x12xbf16>, vector<4x12x24xbf16>, vector<4x4x24xf32> -> vector<4x4x24xf32>
    "tpu.trace_stop"() : () -> ()
    %129 = arith.addf %127, %128 : vector<4x4x24xf32>
    "tpu.trace_start"() <{level = 10 : i32, message = "hwc,hcd->hwd"}> : () -> ()
    %cst_108 = arith.constant dense<0.000000e+00> : vector<4x4x24xf32>
    %130 = tpu.matmul %62, %27, %cst_108 {dimension_numbers = #tpu.dot_dimension_numbers<[2], [1], [1], [2], [0, 0, 0, 1, 1, 2], [0], [0]>} : vector<4x4x12xbf16>, vector<4x12x24xbf16>, vector<4x4x24xf32> -> vector<4x4x24xf32>
    "tpu.trace_stop"() : () -> ()
    %131 = arith.addf %129, %130 : vector<4x4x24xf32>
    "tpu.trace_start"() <{level = 10 : i32, message = "hwc,hcd->hwd"}> : () -> ()
    %cst_109 = arith.constant dense<0.000000e+00> : vector<4x4x24xf32>
    %132 = tpu.matmul %64, %31, %cst_109 {dimension_numbers = #tpu.dot_dimension_numbers<[2], [1], [1], [2], [0, 0, 0, 1, 1, 2], [0], [0]>} : vector<4x4x12xbf16>, vector<4x12x24xbf16>, vector<4x4x24xf32> -> vector<4x4x24xf32>
    "tpu.trace_stop"() : () -> ()
    %133 = arith.addf %131, %132 : vector<4x4x24xf32>
    "tpu.trace_start"() <{level = 10 : i32, message = "hwc,hcd->hwd"}> : () -> ()
    %cst_110 = arith.constant dense<0.000000e+00> : vector<4x4x24xf32>
    %134 = tpu.matmul %66, %35, %cst_110 {dimension_numbers = #tpu.dot_dimension_numbers<[2], [1], [1], [2], [0, 0, 0, 1, 1, 2], [0], [0]>} : vector<4x4x12xbf16>, vector<4x12x24xbf16>, vector<4x4x24xf32> -> vector<4x4x24xf32>
    "tpu.trace_stop"() : () -> ()
    %135 = arith.addf %133, %134 : vector<4x4x24xf32>
    %136 = vector.shape_cast %36 : vector<1x24xf32> to vector<1x1x24xf32>
    %137 = vector.broadcast %136 : vector<1x1x24xf32> to vector<4x4x24xf32>
    %138 = arith.addf %135, %137 : vector<4x4x24xf32>
    %cst_111 = arith.constant 0.000000e+00 : f32
    %139 = vector.broadcast %cst_111 : f32 to vector<4x4x24xf32>
    %140 = arith.maximumf %138, %139 : vector<4x4x24xf32>
    %cst_112 = arith.constant 0.000000e+00 : f32
    %141 = vector.broadcast %cst_112 : f32 to vector<4x4x24xf32>
    "tpu.trace_start"() <{level = 10 : i32, message = "hwc,hcd->hwd"}> : () -> ()
    %cst_113 = arith.constant dense<0.000000e+00> : vector<4x4x24xf32>
    %142 = tpu.matmul %48, %3, %cst_113 {dimension_numbers = #tpu.dot_dimension_numbers<[2], [1], [1], [2], [0, 0, 0, 1, 1, 2], [0], [0]>} : vector<4x4x12xbf16>, vector<4x12x24xbf16>, vector<4x4x24xf32> -> vector<4x4x24xf32>
    "tpu.trace_stop"() : () -> ()
    %143 = arith.addf %141, %142 : vector<4x4x24xf32>
    "tpu.trace_start"() <{level = 10 : i32, message = "hwc,hcd->hwd"}> : () -> ()
    %cst_114 = arith.constant dense<0.000000e+00> : vector<4x4x24xf32>
    %144 = tpu.matmul %50, %7, %cst_114 {dimension_numbers = #tpu.dot_dimension_numbers<[2], [1], [1], [2], [0, 0, 0, 1, 1, 2], [0], [0]>} : vector<4x4x12xbf16>, vector<4x12x24xbf16>, vector<4x4x24xf32> -> vector<4x4x24xf32>
    "tpu.trace_stop"() : () -> ()
    %145 = arith.addf %143, %144 : vector<4x4x24xf32>
    "tpu.trace_start"() <{level = 10 : i32, message = "hwc,hcd->hwd"}> : () -> ()
    %cst_115 = arith.constant dense<0.000000e+00> : vector<4x4x24xf32>
    %146 = tpu.matmul %52, %11, %cst_115 {dimension_numbers = #tpu.dot_dimension_numbers<[2], [1], [1], [2], [0, 0, 0, 1, 1, 2], [0], [0]>} : vector<4x4x12xbf16>, vector<4x12x24xbf16>, vector<4x4x24xf32> -> vector<4x4x24xf32>
    "tpu.trace_stop"() : () -> ()
    %147 = arith.addf %145, %146 : vector<4x4x24xf32>
    "tpu.trace_start"() <{level = 10 : i32, message = "hwc,hcd->hwd"}> : () -> ()
    %cst_116 = arith.constant dense<0.000000e+00> : vector<4x4x24xf32>
    %148 = tpu.matmul %56, %15, %cst_116 {dimension_numbers = #tpu.dot_dimension_numbers<[2], [1], [1], [2], [0, 0, 0, 1, 1, 2], [0], [0]>} : vector<4x4x12xbf16>, vector<4x12x24xbf16>, vector<4x4x24xf32> -> vector<4x4x24xf32>
    "tpu.trace_stop"() : () -> ()
    %149 = arith.addf %147, %148 : vector<4x4x24xf32>
    "tpu.trace_start"() <{level = 10 : i32, message = "hwc,hcd->hwd"}> : () -> ()
    %cst_117 = arith.constant dense<0.000000e+00> : vector<4x4x24xf32>
    %150 = tpu.matmul %58, %19, %cst_117 {dimension_numbers = #tpu.dot_dimension_numbers<[2], [1], [1], [2], [0, 0, 0, 1, 1, 2], [0], [0]>} : vector<4x4x12xbf16>, vector<4x12x24xbf16>, vector<4x4x24xf32> -> vector<4x4x24xf32>
    "tpu.trace_stop"() : () -> ()
    %151 = arith.addf %149, %150 : vector<4x4x24xf32>
    "tpu.trace_start"() <{level = 10 : i32, message = "hwc,hcd->hwd"}> : () -> ()
    %cst_118 = arith.constant dense<0.000000e+00> : vector<4x4x24xf32>
    %152 = tpu.matmul %60, %23, %cst_118 {dimension_numbers = #tpu.dot_dimension_numbers<[2], [1], [1], [2], [0, 0, 0, 1, 1, 2], [0], [0]>} : vector<4x4x12xbf16>, vector<4x12x24xbf16>, vector<4x4x24xf32> -> vector<4x4x24xf32>
    "tpu.trace_stop"() : () -> ()
    %153 = arith.addf %151, %152 : vector<4x4x24xf32>
    "tpu.trace_start"() <{level = 10 : i32, message = "hwc,hcd->hwd"}> : () -> ()
    %cst_119 = arith.constant dense<0.000000e+00> : vector<4x4x24xf32>
    %154 = tpu.matmul %64, %27, %cst_119 {dimension_numbers = #tpu.dot_dimension_numbers<[2], [1], [1], [2], [0, 0, 0, 1, 1, 2], [0], [0]>} : vector<4x4x12xbf16>, vector<4x12x24xbf16>, vector<4x4x24xf32> -> vector<4x4x24xf32>
    "tpu.trace_stop"() : () -> ()
    %155 = arith.addf %153, %154 : vector<4x4x24xf32>
    "tpu.trace_start"() <{level = 10 : i32, message = "hwc,hcd->hwd"}> : () -> ()
    %cst_120 = arith.constant dense<0.000000e+00> : vector<4x4x24xf32>
    %156 = tpu.matmul %66, %31, %cst_120 {dimension_numbers = #tpu.dot_dimension_numbers<[2], [1], [1], [2], [0, 0, 0, 1, 1, 2], [0], [0]>} : vector<4x4x12xbf16>, vector<4x12x24xbf16>, vector<4x4x24xf32> -> vector<4x4x24xf32>
    "tpu.trace_stop"() : () -> ()
    %157 = arith.addf %155, %156 : vector<4x4x24xf32>
    "tpu.trace_start"() <{level = 10 : i32, message = "hwc,hcd->hwd"}> : () -> ()
    %cst_121 = arith.constant dense<0.000000e+00> : vector<4x4x24xf32>
    %158 = tpu.matmul %68, %35, %cst_121 {dimension_numbers = #tpu.dot_dimension_numbers<[2], [1], [1], [2], [0, 0, 0, 1, 1, 2], [0], [0]>} : vector<4x4x12xbf16>, vector<4x12x24xbf16>, vector<4x4x24xf32> -> vector<4x4x24xf32>
    "tpu.trace_stop"() : () -> ()
    %159 = arith.addf %157, %158 : vector<4x4x24xf32>
    %160 = vector.shape_cast %36 : vector<1x24xf32> to vector<1x1x24xf32>
    %161 = vector.broadcast %160 : vector<1x1x24xf32> to vector<4x4x24xf32>
    %162 = arith.addf %159, %161 : vector<4x4x24xf32>
    %cst_122 = arith.constant 0.000000e+00 : f32
    %163 = vector.broadcast %cst_122 : f32 to vector<4x4x24xf32>
    %164 = arith.maximumf %162, %163 : vector<4x4x24xf32>
    %165 = arith.mulf %92, %92 : vector<4x4x24xf32>
    %166 = arith.mulf %116, %116 : vector<4x4x24xf32>
    %167 = arith.addf %165, %166 : vector<4x4x24xf32>
    %168 = arith.mulf %140, %140 : vector<4x4x24xf32>
    %169 = arith.addf %167, %168 : vector<4x4x24xf32>
    %170 = arith.mulf %164, %164 : vector<4x4x24xf32>
    %171 = arith.addf %169, %170 : vector<4x4x24xf32>
    %172 = math.sqrt %171 : vector<4x4x24xf32>
    %173 = arith.truncf %172 : vector<4x4x24xf32> to vector<4x4x24xbf16>
    %c0_123 = arith.constant 0 : index
    %c0_124 = arith.constant 0 : index
    %c0_125 = arith.constant 0 : index
    %c0_126 = arith.constant 0 : index
    %174 = vector.load %arg4[%c0_123, %c0_124, %c0_125, %c0_126] : memref<1x4x4x24xbf16, #tpu.memory_space<vmem>>, vector<1x4x4x24xbf16>
    %175 = vector.shape_cast %174 : vector<1x4x4x24xbf16> to vector<4x4x24xbf16>
    %176 = vector.shape_cast %173 : vector<4x4x24xbf16> to vector<1x4x4x24xbf16>
    tpu.vector_store %arg4[%c0_123, %c0_124, %c0_125, %c0_126], %176 {strides = array<i32>} : memref<1x4x4x24xbf16, #tpu.memory_space<vmem>>, vector<1x4x4x24xbf16>,
    return
  }
  func.func @transform_0(%arg0: i32) -> (i32, i32, i32, i32) {
    %c0_i32 = arith.constant 0 : i32
    %c0_i32_0 = arith.constant 0 : i32
    %c0_i32_1 = arith.constant 0 : i32
    %c0_i32_2 = arith.constant 0 : i32
    return %arg0, %c0_i32, %c0_i32_0, %c0_i32_1 : i32, i32, i32, i32
  }
  func.func @transform_1(%arg0: i32) -> (i32, i32, i32) {
    %c0_i32 = arith.constant 0 : i32
    %c0_i32_0 = arith.constant 0 : i32
    %c0_i32_1 = arith.constant 0 : i32
    %c0_i32_2 = arith.constant 0 : i32
    return %c0_i32, %c0_i32_0, %c0_i32_1 : i32, i32, i32
  }
  func.func @transform_2(%arg0: i32) -> (i32, i32) {
    %c0_i32 = arith.constant 0 : i32
    %c0_i32_0 = arith.constant 0 : i32
    %c0_i32_1 = arith.constant 0 : i32
    return %c0_i32, %c0_i32_0 : i32, i32
  }
  func.func @transform_3(%arg0: i32) -> (i32, i32, i32, i32) {
    %c0_i32 = arith.constant 0 : i32
    %c0_i32_0 = arith.constant 0 : i32
    %c0_i32_1 = arith.constant 0 : i32
    %c0_i32_2 = arith.constant 0 : i32
    return %arg0, %c0_i32, %c0_i32_0, %c0_i32_1 : i32, i32, i32, i32
  }
}

module attributes {stable_mosaic.version = 11 : i64} {
  func.func @_conv_pool_kernel(%arg0: i32, %arg1: memref<1x12x3x24xbf16, #tpu.memory_space<vmem>>, %arg2: memref<9x24x36xbf16, #tpu.memory_space<vmem>>, %arg3: memref<1x36xf32, #tpu.memory_space<vmem>>, %arg4: memref<1x2x2x36xbf16, #tpu.memory_space<vmem>>) attributes {dimension_semantics = [#tpu.dimension_semantics<parallel>], iteration_bounds = array<i64: 2>, scalar_prefetch = 0 : i64, scratch_operands = 0 : i64, tpu.core_type = #tpu.core_type<tc>, window_params = [{transform_indices = @transform_0, window_bounds = array<i64: 1, 12, 3, 24>}, {pipeline_mode = #tpu.pipeline_mode<synchronous>, transform_indices = @transform_1, window_bounds = array<i64: 9, 24, 36>}, {pipeline_mode = #tpu.pipeline_mode<synchronous>, transform_indices = @transform_2, window_bounds = array<i64: 1, 36>}, {transform_indices = @transform_3, window_bounds = array<i64: 1, 2, 2, 36>}]} {
    %c0 = arith.constant 0 : index
    %c0_0 = arith.constant 0 : index
    %c0_1 = arith.constant 0 : index
    %0 = vector.load %arg2[%c0, %c0_0, %c0_1] : memref<9x24x36xbf16, #tpu.memory_space<vmem>>, vector<1x24x36xbf16>
    %1 = vector.shape_cast %0 : vector<1x24x36xbf16> to vector<24x36xbf16>
    %2 = vector.shape_cast %1 : vector<24x36xbf16> to vector<1x24x36xbf16>
    %3 = vector.broadcast %2 : vector<1x24x36xbf16> to vector<2x24x36xbf16>
    %c1 = arith.constant 1 : index
    %c0_2 = arith.constant 0 : index
    %c0_3 = arith.constant 0 : index
    %4 = vector.load %arg2[%c1, %c0_2, %c0_3] : memref<9x24x36xbf16, #tpu.memory_space<vmem>>, vector<1x24x36xbf16>
    %5 = vector.shape_cast %4 : vector<1x24x36xbf16> to vector<24x36xbf16>
    %6 = vector.shape_cast %5 : vector<24x36xbf16> to vector<1x24x36xbf16>
    %7 = vector.broadcast %6 : vector<1x24x36xbf16> to vector<2x24x36xbf16>
    %c2 = arith.constant 2 : index
    %c0_4 = arith.constant 0 : index
    %c0_5 = arith.constant 0 : index
    %8 = vector.load %arg2[%c2, %c0_4, %c0_5] : memref<9x24x36xbf16, #tpu.memory_space<vmem>>, vector<1x24x36xbf16>
    %9 = vector.shape_cast %8 : vector<1x24x36xbf16> to vector<24x36xbf16>
    %10 = vector.shape_cast %9 : vector<24x36xbf16> to vector<1x24x36xbf16>
    %11 = vector.broadcast %10 : vector<1x24x36xbf16> to vector<2x24x36xbf16>
    %c3 = arith.constant 3 : index
    %c0_6 = arith.constant 0 : index
    %c0_7 = arith.constant 0 : index
    %12 = vector.load %arg2[%c3, %c0_6, %c0_7] : memref<9x24x36xbf16, #tpu.memory_space<vmem>>, vector<1x24x36xbf16>
    %13 = vector.shape_cast %12 : vector<1x24x36xbf16> to vector<24x36xbf16>
    %14 = vector.shape_cast %13 : vector<24x36xbf16> to vector<1x24x36xbf16>
    %15 = vector.broadcast %14 : vector<1x24x36xbf16> to vector<2x24x36xbf16>
    %c4 = arith.constant 4 : index
    %c0_8 = arith.constant 0 : index
    %c0_9 = arith.constant 0 : index
    %16 = vector.load %arg2[%c4, %c0_8, %c0_9] : memref<9x24x36xbf16, #tpu.memory_space<vmem>>, vector<1x24x36xbf16>
    %17 = vector.shape_cast %16 : vector<1x24x36xbf16> to vector<24x36xbf16>
    %18 = vector.shape_cast %17 : vector<24x36xbf16> to vector<1x24x36xbf16>
    %19 = vector.broadcast %18 : vector<1x24x36xbf16> to vector<2x24x36xbf16>
    %c5 = arith.constant 5 : index
    %c0_10 = arith.constant 0 : index
    %c0_11 = arith.constant 0 : index
    %20 = vector.load %arg2[%c5, %c0_10, %c0_11] : memref<9x24x36xbf16, #tpu.memory_space<vmem>>, vector<1x24x36xbf16>
    %21 = vector.shape_cast %20 : vector<1x24x36xbf16> to vector<24x36xbf16>
    %22 = vector.shape_cast %21 : vector<24x36xbf16> to vector<1x24x36xbf16>
    %23 = vector.broadcast %22 : vector<1x24x36xbf16> to vector<2x24x36xbf16>
    %c6 = arith.constant 6 : index
    %c0_12 = arith.constant 0 : index
    %c0_13 = arith.constant 0 : index
    %24 = vector.load %arg2[%c6, %c0_12, %c0_13] : memref<9x24x36xbf16, #tpu.memory_space<vmem>>, vector<1x24x36xbf16>
    %25 = vector.shape_cast %24 : vector<1x24x36xbf16> to vector<24x36xbf16>
    %26 = vector.shape_cast %25 : vector<24x36xbf16> to vector<1x24x36xbf16>
    %27 = vector.broadcast %26 : vector<1x24x36xbf16> to vector<2x24x36xbf16>
    %c7 = arith.constant 7 : index
    %c0_14 = arith.constant 0 : index
    %c0_15 = arith.constant 0 : index
    %28 = vector.load %arg2[%c7, %c0_14, %c0_15] : memref<9x24x36xbf16, #tpu.memory_space<vmem>>, vector<1x24x36xbf16>
    %29 = vector.shape_cast %28 : vector<1x24x36xbf16> to vector<24x36xbf16>
    %30 = vector.shape_cast %29 : vector<24x36xbf16> to vector<1x24x36xbf16>
    %31 = vector.broadcast %30 : vector<1x24x36xbf16> to vector<2x24x36xbf16>
    %c8 = arith.constant 8 : index
    %c0_16 = arith.constant 0 : index
    %c0_17 = arith.constant 0 : index
    %32 = vector.load %arg2[%c8, %c0_16, %c0_17] : memref<9x24x36xbf16, #tpu.memory_space<vmem>>, vector<1x24x36xbf16>
    %33 = vector.shape_cast %32 : vector<1x24x36xbf16> to vector<24x36xbf16>
    %34 = vector.shape_cast %33 : vector<24x36xbf16> to vector<1x24x36xbf16>
    %35 = vector.broadcast %34 : vector<1x24x36xbf16> to vector<2x24x36xbf16>
    %c0_18 = arith.constant 0 : index
    %c0_19 = arith.constant 0 : index
    %36 = vector.load %arg3[%c0_18, %c0_19] : memref<1x36xf32, #tpu.memory_space<vmem>>, vector<1x36xf32>
    %c0_20 = arith.constant 0 : index
    %c0_21 = arith.constant 0 : index
    %c0_22 = arith.constant 0 : index
    %c0_23 = arith.constant 0 : index
    %37 = vector.load %arg1[%c0_20, %c0_21, %c0_22, %c0_23] : memref<1x12x3x24xbf16, #tpu.memory_space<vmem>>, vector<1x2x2x24xbf16>
    %38 = vector.shape_cast %37 : vector<1x2x2x24xbf16> to vector<2x2x24xbf16>
    %c0_24 = arith.constant 0 : index
    %c3_25 = arith.constant 3 : index
    %c0_26 = arith.constant 0 : index
    %c0_27 = arith.constant 0 : index
    %39 = vector.load %arg1[%c0_24, %c3_25, %c0_26, %c0_27] : memref<1x12x3x24xbf16, #tpu.memory_space<vmem>>, vector<1x2x2x24xbf16>
    %40 = vector.shape_cast %39 : vector<1x2x2x24xbf16> to vector<2x2x24xbf16>
    %c0_28 = arith.constant 0 : index
    %c0_29 = arith.constant 0 : index
    %c1_30 = arith.constant 1 : index
    %c0_31 = arith.constant 0 : index
    %41 = vector.load %arg1[%c0_28, %c0_29, %c1_30, %c0_31] : memref<1x12x3x24xbf16, #tpu.memory_space<vmem>>, vector<1x2x2x24xbf16>
    %42 = vector.shape_cast %41 : vector<1x2x2x24xbf16> to vector<2x2x24xbf16>
    %c0_32 = arith.constant 0 : index
    %c3_33 = arith.constant 3 : index
    %c1_34 = arith.constant 1 : index
    %c0_35 = arith.constant 0 : index
    %43 = vector.load %arg1[%c0_32, %c3_33, %c1_34, %c0_35] : memref<1x12x3x24xbf16, #tpu.memory_space<vmem>>, vector<1x2x2x24xbf16>
    %44 = vector.shape_cast %43 : vector<1x2x2x24xbf16> to vector<2x2x24xbf16>
    %c0_36 = arith.constant 0 : index
    %c6_37 = arith.constant 6 : index
    %c0_38 = arith.constant 0 : index
    %c0_39 = arith.constant 0 : index
    %45 = vector.load %arg1[%c0_36, %c6_37, %c0_38, %c0_39] : memref<1x12x3x24xbf16, #tpu.memory_space<vmem>>, vector<1x2x2x24xbf16>
    %46 = vector.shape_cast %45 : vector<1x2x2x24xbf16> to vector<2x2x24xbf16>
    %c0_40 = arith.constant 0 : index
    %c9 = arith.constant 9 : index
    %c0_41 = arith.constant 0 : index
    %c0_42 = arith.constant 0 : index
    %47 = vector.load %arg1[%c0_40, %c9, %c0_41, %c0_42] : memref<1x12x3x24xbf16, #tpu.memory_space<vmem>>, vector<1x2x2x24xbf16>
    %48 = vector.shape_cast %47 : vector<1x2x2x24xbf16> to vector<2x2x24xbf16>
    %c0_43 = arith.constant 0 : index
    %c6_44 = arith.constant 6 : index
    %c1_45 = arith.constant 1 : index
    %c0_46 = arith.constant 0 : index
    %49 = vector.load %arg1[%c0_43, %c6_44, %c1_45, %c0_46] : memref<1x12x3x24xbf16, #tpu.memory_space<vmem>>, vector<1x2x2x24xbf16>
    %50 = vector.shape_cast %49 : vector<1x2x2x24xbf16> to vector<2x2x24xbf16>
    %c0_47 = arith.constant 0 : index
    %c9_48 = arith.constant 9 : index
    %c1_49 = arith.constant 1 : index
    %c0_50 = arith.constant 0 : index
    %51 = vector.load %arg1[%c0_47, %c9_48, %c1_49, %c0_50] : memref<1x12x3x24xbf16, #tpu.memory_space<vmem>>, vector<1x2x2x24xbf16>
    %52 = vector.shape_cast %51 : vector<1x2x2x24xbf16> to vector<2x2x24xbf16>
    %c0_51 = arith.constant 0 : index
    %c1_52 = arith.constant 1 : index
    %c0_53 = arith.constant 0 : index
    %c0_54 = arith.constant 0 : index
    %53 = vector.load %arg1[%c0_51, %c1_52, %c0_53, %c0_54] : memref<1x12x3x24xbf16, #tpu.memory_space<vmem>>, vector<1x2x2x24xbf16>
    %54 = vector.shape_cast %53 : vector<1x2x2x24xbf16> to vector<2x2x24xbf16>
    %c0_55 = arith.constant 0 : index
    %c4_56 = arith.constant 4 : index
    %c0_57 = arith.constant 0 : index
    %c0_58 = arith.constant 0 : index
    %55 = vector.load %arg1[%c0_55, %c4_56, %c0_57, %c0_58] : memref<1x12x3x24xbf16, #tpu.memory_space<vmem>>, vector<1x2x2x24xbf16>
    %56 = vector.shape_cast %55 : vector<1x2x2x24xbf16> to vector<2x2x24xbf16>
    %c0_59 = arith.constant 0 : index
    %c1_60 = arith.constant 1 : index
    %c1_61 = arith.constant 1 : index
    %c0_62 = arith.constant 0 : index
    %57 = vector.load %arg1[%c0_59, %c1_60, %c1_61, %c0_62] : memref<1x12x3x24xbf16, #tpu.memory_space<vmem>>, vector<1x2x2x24xbf16>
    %58 = vector.shape_cast %57 : vector<1x2x2x24xbf16> to vector<2x2x24xbf16>
    %c0_63 = arith.constant 0 : index
    %c4_64 = arith.constant 4 : index
    %c1_65 = arith.constant 1 : index
    %c0_66 = arith.constant 0 : index
    %59 = vector.load %arg1[%c0_63, %c4_64, %c1_65, %c0_66] : memref<1x12x3x24xbf16, #tpu.memory_space<vmem>>, vector<1x2x2x24xbf16>
    %60 = vector.shape_cast %59 : vector<1x2x2x24xbf16> to vector<2x2x24xbf16>
    %c0_67 = arith.constant 0 : index
    %c7_68 = arith.constant 7 : index
    %c0_69 = arith.constant 0 : index
    %c0_70 = arith.constant 0 : index
    %61 = vector.load %arg1[%c0_67, %c7_68, %c0_69, %c0_70] : memref<1x12x3x24xbf16, #tpu.memory_space<vmem>>, vector<1x2x2x24xbf16>
    %62 = vector.shape_cast %61 : vector<1x2x2x24xbf16> to vector<2x2x24xbf16>
    %c0_71 = arith.constant 0 : index
    %c10 = arith.constant 10 : index
    %c0_72 = arith.constant 0 : index
    %c0_73 = arith.constant 0 : index
    %63 = vector.load %arg1[%c0_71, %c10, %c0_72, %c0_73] : memref<1x12x3x24xbf16, #tpu.memory_space<vmem>>, vector<1x2x2x24xbf16>
    %64 = vector.shape_cast %63 : vector<1x2x2x24xbf16> to vector<2x2x24xbf16>
    %c0_74 = arith.constant 0 : index
    %c7_75 = arith.constant 7 : index
    %c1_76 = arith.constant 1 : index
    %c0_77 = arith.constant 0 : index
    %65 = vector.load %arg1[%c0_74, %c7_75, %c1_76, %c0_77] : memref<1x12x3x24xbf16, #tpu.memory_space<vmem>>, vector<1x2x2x24xbf16>
    %66 = vector.shape_cast %65 : vector<1x2x2x24xbf16> to vector<2x2x24xbf16>
    %c0_78 = arith.constant 0 : index
    %c10_79 = arith.constant 10 : index
    %c1_80 = arith.constant 1 : index
    %c0_81 = arith.constant 0 : index
    %67 = vector.load %arg1[%c0_78, %c10_79, %c1_80, %c0_81] : memref<1x12x3x24xbf16, #tpu.memory_space<vmem>>, vector<1x2x2x24xbf16>
    %68 = vector.shape_cast %67 : vector<1x2x2x24xbf16> to vector<2x2x24xbf16>
    %cst = arith.constant 0.000000e+00 : f32
    %69 = vector.broadcast %cst : f32 to vector<2x2x36xf32>
    "tpu.trace_start"() <{level = 10 : i32, message = "hwc,hcd->hwd"}> : () -> ()
    %cst_82 = arith.constant dense<0.000000e+00> : vector<2x2x36xf32>
    %70 = tpu.matmul %38, %3, %cst_82 {dimension_numbers = #tpu.dot_dimension_numbers<[2], [1], [1], [2], [0, 0, 0, 1, 1, 2], [0], [0]>} : vector<2x2x24xbf16>, vector<2x24x36xbf16>, vector<2x2x36xf32> -> vector<2x2x36xf32>
    "tpu.trace_stop"() : () -> ()
    %71 = arith.addf %69, %70 : vector<2x2x36xf32>
    "tpu.trace_start"() <{level = 10 : i32, message = "hwc,hcd->hwd"}> : () -> ()
    %cst_83 = arith.constant dense<0.000000e+00> : vector<2x2x36xf32>
    %72 = tpu.matmul %40, %7, %cst_83 {dimension_numbers = #tpu.dot_dimension_numbers<[2], [1], [1], [2], [0, 0, 0, 1, 1, 2], [0], [0]>} : vector<2x2x24xbf16>, vector<2x24x36xbf16>, vector<2x2x36xf32> -> vector<2x2x36xf32>
    "tpu.trace_stop"() : () -> ()
    %73 = arith.addf %71, %72 : vector<2x2x36xf32>
    "tpu.trace_start"() <{level = 10 : i32, message = "hwc,hcd->hwd"}> : () -> ()
    %cst_84 = arith.constant dense<0.000000e+00> : vector<2x2x36xf32>
    %74 = tpu.matmul %42, %11, %cst_84 {dimension_numbers = #tpu.dot_dimension_numbers<[2], [1], [1], [2], [0, 0, 0, 1, 1, 2], [0], [0]>} : vector<2x2x24xbf16>, vector<2x24x36xbf16>, vector<2x2x36xf32> -> vector<2x2x36xf32>
    "tpu.trace_stop"() : () -> ()
    %75 = arith.addf %73, %74 : vector<2x2x36xf32>
    "tpu.trace_start"() <{level = 10 : i32, message = "hwc,hcd->hwd"}> : () -> ()
    %cst_85 = arith.constant dense<0.000000e+00> : vector<2x2x36xf32>
    %76 = tpu.matmul %46, %15, %cst_85 {dimension_numbers = #tpu.dot_dimension_numbers<[2], [1], [1], [2], [0, 0, 0, 1, 1, 2], [0], [0]>} : vector<2x2x24xbf16>, vector<2x24x36xbf16>, vector<2x2x36xf32> -> vector<2x2x36xf32>
    "tpu.trace_stop"() : () -> ()
    %77 = arith.addf %75, %76 : vector<2x2x36xf32>
    "tpu.trace_start"() <{level = 10 : i32, message = "hwc,hcd->hwd"}> : () -> ()
    %cst_86 = arith.constant dense<0.000000e+00> : vector<2x2x36xf32>
    %78 = tpu.matmul %48, %19, %cst_86 {dimension_numbers = #tpu.dot_dimension_numbers<[2], [1], [1], [2], [0, 0, 0, 1, 1, 2], [0], [0]>} : vector<2x2x24xbf16>, vector<2x24x36xbf16>, vector<2x2x36xf32> -> vector<2x2x36xf32>
    "tpu.trace_stop"() : () -> ()
    %79 = arith.addf %77, %78 : vector<2x2x36xf32>
    "tpu.trace_start"() <{level = 10 : i32, message = "hwc,hcd->hwd"}> : () -> ()
    %cst_87 = arith.constant dense<0.000000e+00> : vector<2x2x36xf32>
    %80 = tpu.matmul %50, %23, %cst_87 {dimension_numbers = #tpu.dot_dimension_numbers<[2], [1], [1], [2], [0, 0, 0, 1, 1, 2], [0], [0]>} : vector<2x2x24xbf16>, vector<2x24x36xbf16>, vector<2x2x36xf32> -> vector<2x2x36xf32>
    "tpu.trace_stop"() : () -> ()
    %81 = arith.addf %79, %80 : vector<2x2x36xf32>
    "tpu.trace_start"() <{level = 10 : i32, message = "hwc,hcd->hwd"}> : () -> ()
    %cst_88 = arith.constant dense<0.000000e+00> : vector<2x2x36xf32>
    %82 = tpu.matmul %54, %27, %cst_88 {dimension_numbers = #tpu.dot_dimension_numbers<[2], [1], [1], [2], [0, 0, 0, 1, 1, 2], [0], [0]>} : vector<2x2x24xbf16>, vector<2x24x36xbf16>, vector<2x2x36xf32> -> vector<2x2x36xf32>
    "tpu.trace_stop"() : () -> ()
    %83 = arith.addf %81, %82 : vector<2x2x36xf32>
    "tpu.trace_start"() <{level = 10 : i32, message = "hwc,hcd->hwd"}> : () -> ()
    %cst_89 = arith.constant dense<0.000000e+00> : vector<2x2x36xf32>
    %84 = tpu.matmul %56, %31, %cst_89 {dimension_numbers = #tpu.dot_dimension_numbers<[2], [1], [1], [2], [0, 0, 0, 1, 1, 2], [0], [0]>} : vector<2x2x24xbf16>, vector<2x24x36xbf16>, vector<2x2x36xf32> -> vector<2x2x36xf32>
    "tpu.trace_stop"() : () -> ()
    %85 = arith.addf %83, %84 : vector<2x2x36xf32>
    "tpu.trace_start"() <{level = 10 : i32, message = "hwc,hcd->hwd"}> : () -> ()
    %cst_90 = arith.constant dense<0.000000e+00> : vector<2x2x36xf32>
    %86 = tpu.matmul %58, %35, %cst_90 {dimension_numbers = #tpu.dot_dimension_numbers<[2], [1], [1], [2], [0, 0, 0, 1, 1, 2], [0], [0]>} : vector<2x2x24xbf16>, vector<2x24x36xbf16>, vector<2x2x36xf32> -> vector<2x2x36xf32>
    "tpu.trace_stop"() : () -> ()
    %87 = arith.addf %85, %86 : vector<2x2x36xf32>
    %88 = vector.shape_cast %36 : vector<1x36xf32> to vector<1x1x36xf32>
    %89 = vector.broadcast %88 : vector<1x1x36xf32> to vector<2x2x36xf32>
    %90 = arith.addf %87, %89 : vector<2x2x36xf32>
    %cst_91 = arith.constant 0.000000e+00 : f32
    %91 = vector.broadcast %cst_91 : f32 to vector<2x2x36xf32>
    %92 = arith.maximumf %90, %91 : vector<2x2x36xf32>
    %cst_92 = arith.constant 0.000000e+00 : f32
    %93 = vector.broadcast %cst_92 : f32 to vector<2x2x36xf32>
    "tpu.trace_start"() <{level = 10 : i32, message = "hwc,hcd->hwd"}> : () -> ()
    %cst_93 = arith.constant dense<0.000000e+00> : vector<2x2x36xf32>
    %94 = tpu.matmul %40, %3, %cst_93 {dimension_numbers = #tpu.dot_dimension_numbers<[2], [1], [1], [2], [0, 0, 0, 1, 1, 2], [0], [0]>} : vector<2x2x24xbf16>, vector<2x24x36xbf16>, vector<2x2x36xf32> -> vector<2x2x36xf32>
    "tpu.trace_stop"() : () -> ()
    %95 = arith.addf %93, %94 : vector<2x2x36xf32>
    "tpu.trace_start"() <{level = 10 : i32, message = "hwc,hcd->hwd"}> : () -> ()
    %cst_94 = arith.constant dense<0.000000e+00> : vector<2x2x36xf32>
    %96 = tpu.matmul %42, %7, %cst_94 {dimension_numbers = #tpu.dot_dimension_numbers<[2], [1], [1], [2], [0, 0, 0, 1, 1, 2], [0], [0]>} : vector<2x2x24xbf16>, vector<2x24x36xbf16>, vector<2x2x36xf32> -> vector<2x2x36xf32>
    "tpu.trace_stop"() : () -> ()
    %97 = arith.addf %95, %96 : vector<2x2x36xf32>
    "tpu.trace_start"() <{level = 10 : i32, message = "hwc,hcd->hwd"}> : () -> ()
    %cst_95 = arith.constant dense<0.000000e+00> : vector<2x2x36xf32>
    %98 = tpu.matmul %44, %11, %cst_95 {dimension_numbers = #tpu.dot_dimension_numbers<[2], [1], [1], [2], [0, 0, 0, 1, 1, 2], [0], [0]>} : vector<2x2x24xbf16>, vector<2x24x36xbf16>, vector<2x2x36xf32> -> vector<2x2x36xf32>
    "tpu.trace_stop"() : () -> ()
    %99 = arith.addf %97, %98 : vector<2x2x36xf32>
    "tpu.trace_start"() <{level = 10 : i32, message = "hwc,hcd->hwd"}> : () -> ()
    %cst_96 = arith.constant dense<0.000000e+00> : vector<2x2x36xf32>
    %100 = tpu.matmul %48, %15, %cst_96 {dimension_numbers = #tpu.dot_dimension_numbers<[2], [1], [1], [2], [0, 0, 0, 1, 1, 2], [0], [0]>} : vector<2x2x24xbf16>, vector<2x24x36xbf16>, vector<2x2x36xf32> -> vector<2x2x36xf32>
    "tpu.trace_stop"() : () -> ()
    %101 = arith.addf %99, %100 : vector<2x2x36xf32>
    "tpu.trace_start"() <{level = 10 : i32, message = "hwc,hcd->hwd"}> : () -> ()
    %cst_97 = arith.constant dense<0.000000e+00> : vector<2x2x36xf32>
    %102 = tpu.matmul %50, %19, %cst_97 {dimension_numbers = #tpu.dot_dimension_numbers<[2], [1], [1], [2], [0, 0, 0, 1, 1, 2], [0], [0]>} : vector<2x2x24xbf16>, vector<2x24x36xbf16>, vector<2x2x36xf32> -> vector<2x2x36xf32>
    "tpu.trace_stop"() : () -> ()
    %103 = arith.addf %101, %102 : vector<2x2x36xf32>
    "tpu.trace_start"() <{level = 10 : i32, message = "hwc,hcd->hwd"}> : () -> ()
    %cst_98 = arith.constant dense<0.000000e+00> : vector<2x2x36xf32>
    %104 = tpu.matmul %52, %23, %cst_98 {dimension_numbers = #tpu.dot_dimension_numbers<[2], [1], [1], [2], [0, 0, 0, 1, 1, 2], [0], [0]>} : vector<2x2x24xbf16>, vector<2x24x36xbf16>, vector<2x2x36xf32> -> vector<2x2x36xf32>
    "tpu.trace_stop"() : () -> ()
    %105 = arith.addf %103, %104 : vector<2x2x36xf32>
    "tpu.trace_start"() <{level = 10 : i32, message = "hwc,hcd->hwd"}> : () -> ()
    %cst_99 = arith.constant dense<0.000000e+00> : vector<2x2x36xf32>
    %106 = tpu.matmul %56, %27, %cst_99 {dimension_numbers = #tpu.dot_dimension_numbers<[2], [1], [1], [2], [0, 0, 0, 1, 1, 2], [0], [0]>} : vector<2x2x24xbf16>, vector<2x24x36xbf16>, vector<2x2x36xf32> -> vector<2x2x36xf32>
    "tpu.trace_stop"() : () -> ()
    %107 = arith.addf %105, %106 : vector<2x2x36xf32>
    "tpu.trace_start"() <{level = 10 : i32, message = "hwc,hcd->hwd"}> : () -> ()
    %cst_100 = arith.constant dense<0.000000e+00> : vector<2x2x36xf32>
    %108 = tpu.matmul %58, %31, %cst_100 {dimension_numbers = #tpu.dot_dimension_numbers<[2], [1], [1], [2], [0, 0, 0, 1, 1, 2], [0], [0]>} : vector<2x2x24xbf16>, vector<2x24x36xbf16>, vector<2x2x36xf32> -> vector<2x2x36xf32>
    "tpu.trace_stop"() : () -> ()
    %109 = arith.addf %107, %108 : vector<2x2x36xf32>
    "tpu.trace_start"() <{level = 10 : i32, message = "hwc,hcd->hwd"}> : () -> ()
    %cst_101 = arith.constant dense<0.000000e+00> : vector<2x2x36xf32>
    %110 = tpu.matmul %60, %35, %cst_101 {dimension_numbers = #tpu.dot_dimension_numbers<[2], [1], [1], [2], [0, 0, 0, 1, 1, 2], [0], [0]>} : vector<2x2x24xbf16>, vector<2x24x36xbf16>, vector<2x2x36xf32> -> vector<2x2x36xf32>
    "tpu.trace_stop"() : () -> ()
    %111 = arith.addf %109, %110 : vector<2x2x36xf32>
    %112 = vector.shape_cast %36 : vector<1x36xf32> to vector<1x1x36xf32>
    %113 = vector.broadcast %112 : vector<1x1x36xf32> to vector<2x2x36xf32>
    %114 = arith.addf %111, %113 : vector<2x2x36xf32>
    %cst_102 = arith.constant 0.000000e+00 : f32
    %115 = vector.broadcast %cst_102 : f32 to vector<2x2x36xf32>
    %116 = arith.maximumf %114, %115 : vector<2x2x36xf32>
    %cst_103 = arith.constant 0.000000e+00 : f32
    %117 = vector.broadcast %cst_103 : f32 to vector<2x2x36xf32>
    "tpu.trace_start"() <{level = 10 : i32, message = "hwc,hcd->hwd"}> : () -> ()
    %cst_104 = arith.constant dense<0.000000e+00> : vector<2x2x36xf32>
    %118 = tpu.matmul %46, %3, %cst_104 {dimension_numbers = #tpu.dot_dimension_numbers<[2], [1], [1], [2], [0, 0, 0, 1, 1, 2], [0], [0]>} : vector<2x2x24xbf16>, vector<2x24x36xbf16>, vector<2x2x36xf32> -> vector<2x2x36xf32>
    "tpu.trace_stop"() : () -> ()
    %119 = arith.addf %117, %118 : vector<2x2x36xf32>
    "tpu.trace_start"() <{level = 10 : i32, message = "hwc,hcd->hwd"}> : () -> ()
    %cst_105 = arith.constant dense<0.000000e+00> : vector<2x2x36xf32>
    %120 = tpu.matmul %48, %7, %cst_105 {dimension_numbers = #tpu.dot_dimension_numbers<[2], [1], [1], [2], [0, 0, 0, 1, 1, 2], [0], [0]>} : vector<2x2x24xbf16>, vector<2x24x36xbf16>, vector<2x2x36xf32> -> vector<2x2x36xf32>
    "tpu.trace_stop"() : () -> ()
    %121 = arith.addf %119, %120 : vector<2x2x36xf32>
    "tpu.trace_start"() <{level = 10 : i32, message = "hwc,hcd->hwd"}> : () -> ()
    %cst_106 = arith.constant dense<0.000000e+00> : vector<2x2x36xf32>
    %122 = tpu.matmul %50, %11, %cst_106 {dimension_numbers = #tpu.dot_dimension_numbers<[2], [1], [1], [2], [0, 0, 0, 1, 1, 2], [0], [0]>} : vector<2x2x24xbf16>, vector<2x24x36xbf16>, vector<2x2x36xf32> -> vector<2x2x36xf32>
    "tpu.trace_stop"() : () -> ()
    %123 = arith.addf %121, %122 : vector<2x2x36xf32>
    "tpu.trace_start"() <{level = 10 : i32, message = "hwc,hcd->hwd"}> : () -> ()
    %cst_107 = arith.constant dense<0.000000e+00> : vector<2x2x36xf32>
    %124 = tpu.matmul %54, %15, %cst_107 {dimension_numbers = #tpu.dot_dimension_numbers<[2], [1], [1], [2], [0, 0, 0, 1, 1, 2], [0], [0]>} : vector<2x2x24xbf16>, vector<2x24x36xbf16>, vector<2x2x36xf32> -> vector<2x2x36xf32>
    "tpu.trace_stop"() : () -> ()
    %125 = arith.addf %123, %124 : vector<2x2x36xf32>
    "tpu.trace_start"() <{level = 10 : i32, message = "hwc,hcd->hwd"}> : () -> ()
    %cst_108 = arith.constant dense<0.000000e+00> : vector<2x2x36xf32>
    %126 = tpu.matmul %56, %19, %cst_108 {dimension_numbers = #tpu.dot_dimension_numbers<[2], [1], [1], [2], [0, 0, 0, 1, 1, 2], [0], [0]>} : vector<2x2x24xbf16>, vector<2x24x36xbf16>, vector<2x2x36xf32> -> vector<2x2x36xf32>
    "tpu.trace_stop"() : () -> ()
    %127 = arith.addf %125, %126 : vector<2x2x36xf32>
    "tpu.trace_start"() <{level = 10 : i32, message = "hwc,hcd->hwd"}> : () -> ()
    %cst_109 = arith.constant dense<0.000000e+00> : vector<2x2x36xf32>
    %128 = tpu.matmul %58, %23, %cst_109 {dimension_numbers = #tpu.dot_dimension_numbers<[2], [1], [1], [2], [0, 0, 0, 1, 1, 2], [0], [0]>} : vector<2x2x24xbf16>, vector<2x24x36xbf16>, vector<2x2x36xf32> -> vector<2x2x36xf32>
    "tpu.trace_stop"() : () -> ()
    %129 = arith.addf %127, %128 : vector<2x2x36xf32>
    "tpu.trace_start"() <{level = 10 : i32, message = "hwc,hcd->hwd"}> : () -> ()
    %cst_110 = arith.constant dense<0.000000e+00> : vector<2x2x36xf32>
    %130 = tpu.matmul %62, %27, %cst_110 {dimension_numbers = #tpu.dot_dimension_numbers<[2], [1], [1], [2], [0, 0, 0, 1, 1, 2], [0], [0]>} : vector<2x2x24xbf16>, vector<2x24x36xbf16>, vector<2x2x36xf32> -> vector<2x2x36xf32>
    "tpu.trace_stop"() : () -> ()
    %131 = arith.addf %129, %130 : vector<2x2x36xf32>
    "tpu.trace_start"() <{level = 10 : i32, message = "hwc,hcd->hwd"}> : () -> ()
    %cst_111 = arith.constant dense<0.000000e+00> : vector<2x2x36xf32>
    %132 = tpu.matmul %64, %31, %cst_111 {dimension_numbers = #tpu.dot_dimension_numbers<[2], [1], [1], [2], [0, 0, 0, 1, 1, 2], [0], [0]>} : vector<2x2x24xbf16>, vector<2x24x36xbf16>, vector<2x2x36xf32> -> vector<2x2x36xf32>
    "tpu.trace_stop"() : () -> ()
    %133 = arith.addf %131, %132 : vector<2x2x36xf32>
    "tpu.trace_start"() <{level = 10 : i32, message = "hwc,hcd->hwd"}> : () -> ()
    %cst_112 = arith.constant dense<0.000000e+00> : vector<2x2x36xf32>
    %134 = tpu.matmul %66, %35, %cst_112 {dimension_numbers = #tpu.dot_dimension_numbers<[2], [1], [1], [2], [0, 0, 0, 1, 1, 2], [0], [0]>} : vector<2x2x24xbf16>, vector<2x24x36xbf16>, vector<2x2x36xf32> -> vector<2x2x36xf32>
    "tpu.trace_stop"() : () -> ()
    %135 = arith.addf %133, %134 : vector<2x2x36xf32>
    %136 = vector.shape_cast %36 : vector<1x36xf32> to vector<1x1x36xf32>
    %137 = vector.broadcast %136 : vector<1x1x36xf32> to vector<2x2x36xf32>
    %138 = arith.addf %135, %137 : vector<2x2x36xf32>
    %cst_113 = arith.constant 0.000000e+00 : f32
    %139 = vector.broadcast %cst_113 : f32 to vector<2x2x36xf32>
    %140 = arith.maximumf %138, %139 : vector<2x2x36xf32>
    %cst_114 = arith.constant 0.000000e+00 : f32
    %141 = vector.broadcast %cst_114 : f32 to vector<2x2x36xf32>
    "tpu.trace_start"() <{level = 10 : i32, message = "hwc,hcd->hwd"}> : () -> ()
    %cst_115 = arith.constant dense<0.000000e+00> : vector<2x2x36xf32>
    %142 = tpu.matmul %48, %3, %cst_115 {dimension_numbers = #tpu.dot_dimension_numbers<[2], [1], [1], [2], [0, 0, 0, 1, 1, 2], [0], [0]>} : vector<2x2x24xbf16>, vector<2x24x36xbf16>, vector<2x2x36xf32> -> vector<2x2x36xf32>
    "tpu.trace_stop"() : () -> ()
    %143 = arith.addf %141, %142 : vector<2x2x36xf32>
    "tpu.trace_start"() <{level = 10 : i32, message = "hwc,hcd->hwd"}> : () -> ()
    %cst_116 = arith.constant dense<0.000000e+00> : vector<2x2x36xf32>
    %144 = tpu.matmul %50, %7, %cst_116 {dimension_numbers = #tpu.dot_dimension_numbers<[2], [1], [1], [2], [0, 0, 0, 1, 1, 2], [0], [0]>} : vector<2x2x24xbf16>, vector<2x24x36xbf16>, vector<2x2x36xf32> -> vector<2x2x36xf32>
    "tpu.trace_stop"() : () -> ()
    %145 = arith.addf %143, %144 : vector<2x2x36xf32>
    "tpu.trace_start"() <{level = 10 : i32, message = "hwc,hcd->hwd"}> : () -> ()
    %cst_117 = arith.constant dense<0.000000e+00> : vector<2x2x36xf32>
    %146 = tpu.matmul %52, %11, %cst_117 {dimension_numbers = #tpu.dot_dimension_numbers<[2], [1], [1], [2], [0, 0, 0, 1, 1, 2], [0], [0]>} : vector<2x2x24xbf16>, vector<2x24x36xbf16>, vector<2x2x36xf32> -> vector<2x2x36xf32>
    "tpu.trace_stop"() : () -> ()
    %147 = arith.addf %145, %146 : vector<2x2x36xf32>
    "tpu.trace_start"() <{level = 10 : i32, message = "hwc,hcd->hwd"}> : () -> ()
    %cst_118 = arith.constant dense<0.000000e+00> : vector<2x2x36xf32>
    %148 = tpu.matmul %56, %15, %cst_118 {dimension_numbers = #tpu.dot_dimension_numbers<[2], [1], [1], [2], [0, 0, 0, 1, 1, 2], [0], [0]>} : vector<2x2x24xbf16>, vector<2x24x36xbf16>, vector<2x2x36xf32> -> vector<2x2x36xf32>
    "tpu.trace_stop"() : () -> ()
    %149 = arith.addf %147, %148 : vector<2x2x36xf32>
    "tpu.trace_start"() <{level = 10 : i32, message = "hwc,hcd->hwd"}> : () -> ()
    %cst_119 = arith.constant dense<0.000000e+00> : vector<2x2x36xf32>
    %150 = tpu.matmul %58, %19, %cst_119 {dimension_numbers = #tpu.dot_dimension_numbers<[2], [1], [1], [2], [0, 0, 0, 1, 1, 2], [0], [0]>} : vector<2x2x24xbf16>, vector<2x24x36xbf16>, vector<2x2x36xf32> -> vector<2x2x36xf32>
    "tpu.trace_stop"() : () -> ()
    %151 = arith.addf %149, %150 : vector<2x2x36xf32>
    "tpu.trace_start"() <{level = 10 : i32, message = "hwc,hcd->hwd"}> : () -> ()
    %cst_120 = arith.constant dense<0.000000e+00> : vector<2x2x36xf32>
    %152 = tpu.matmul %60, %23, %cst_120 {dimension_numbers = #tpu.dot_dimension_numbers<[2], [1], [1], [2], [0, 0, 0, 1, 1, 2], [0], [0]>} : vector<2x2x24xbf16>, vector<2x24x36xbf16>, vector<2x2x36xf32> -> vector<2x2x36xf32>
    "tpu.trace_stop"() : () -> ()
    %153 = arith.addf %151, %152 : vector<2x2x36xf32>
    "tpu.trace_start"() <{level = 10 : i32, message = "hwc,hcd->hwd"}> : () -> ()
    %cst_121 = arith.constant dense<0.000000e+00> : vector<2x2x36xf32>
    %154 = tpu.matmul %64, %27, %cst_121 {dimension_numbers = #tpu.dot_dimension_numbers<[2], [1], [1], [2], [0, 0, 0, 1, 1, 2], [0], [0]>} : vector<2x2x24xbf16>, vector<2x24x36xbf16>, vector<2x2x36xf32> -> vector<2x2x36xf32>
    "tpu.trace_stop"() : () -> ()
    %155 = arith.addf %153, %154 : vector<2x2x36xf32>
    "tpu.trace_start"() <{level = 10 : i32, message = "hwc,hcd->hwd"}> : () -> ()
    %cst_122 = arith.constant dense<0.000000e+00> : vector<2x2x36xf32>
    %156 = tpu.matmul %66, %31, %cst_122 {dimension_numbers = #tpu.dot_dimension_numbers<[2], [1], [1], [2], [0, 0, 0, 1, 1, 2], [0], [0]>} : vector<2x2x24xbf16>, vector<2x24x36xbf16>, vector<2x2x36xf32> -> vector<2x2x36xf32>
    "tpu.trace_stop"() : () -> ()
    %157 = arith.addf %155, %156 : vector<2x2x36xf32>
    "tpu.trace_start"() <{level = 10 : i32, message = "hwc,hcd->hwd"}> : () -> ()
    %cst_123 = arith.constant dense<0.000000e+00> : vector<2x2x36xf32>
    %158 = tpu.matmul %68, %35, %cst_123 {dimension_numbers = #tpu.dot_dimension_numbers<[2], [1], [1], [2], [0, 0, 0, 1, 1, 2], [0], [0]>} : vector<2x2x24xbf16>, vector<2x24x36xbf16>, vector<2x2x36xf32> -> vector<2x2x36xf32>
    "tpu.trace_stop"() : () -> ()
    %159 = arith.addf %157, %158 : vector<2x2x36xf32>
    %160 = vector.shape_cast %36 : vector<1x36xf32> to vector<1x1x36xf32>
    %161 = vector.broadcast %160 : vector<1x1x36xf32> to vector<2x2x36xf32>
    %162 = arith.addf %159, %161 : vector<2x2x36xf32>
    %cst_124 = arith.constant 0.000000e+00 : f32
    %163 = vector.broadcast %cst_124 : f32 to vector<2x2x36xf32>
    %164 = arith.maximumf %162, %163 : vector<2x2x36xf32>
    %165 = arith.maximumf %92, %116 : vector<2x2x36xf32>
    %166 = arith.maximumf %140, %164 : vector<2x2x36xf32>
    %167 = arith.maximumf %165, %166 : vector<2x2x36xf32>
    %168 = arith.truncf %167 : vector<2x2x36xf32> to vector<2x2x36xbf16>
    %c0_125 = arith.constant 0 : index
    %c0_126 = arith.constant 0 : index
    %c0_127 = arith.constant 0 : index
    %c0_128 = arith.constant 0 : index
    %169 = vector.load %arg4[%c0_125, %c0_126, %c0_127, %c0_128] : memref<1x2x2x36xbf16, #tpu.memory_space<vmem>>, vector<1x2x2x36xbf16>
    %170 = vector.shape_cast %169 : vector<1x2x2x36xbf16> to vector<2x2x36xbf16>
    %171 = vector.shape_cast %168 : vector<2x2x36xbf16> to vector<1x2x2x36xbf16>
    tpu.vector_store %arg4[%c0_125, %c0_126, %c0_127, %c0_128], %171 {strides = array<i32>} : memref<1x2x2x36xbf16, #tpu.memory_space<vmem>>, vector<1x2x2x36xbf16>,
    return
  }
  func.func @transform_0(%arg0: i32) -> (i32, i32, i32, i32) {
    %c0_i32 = arith.constant 0 : i32
    %c0_i32_0 = arith.constant 0 : i32
    %c0_i32_1 = arith.constant 0 : i32
    %c0_i32_2 = arith.constant 0 : i32
    return %arg0, %c0_i32, %c0_i32_0, %c0_i32_1 : i32, i32, i32, i32
  }
  func.func @transform_1(%arg0: i32) -> (i32, i32, i32) {
    %c0_i32 = arith.constant 0 : i32
    %c0_i32_0 = arith.constant 0 : i32
    %c0_i32_1 = arith.constant 0 : i32
    %c0_i32_2 = arith.constant 0 : i32
    return %c0_i32, %c0_i32_0, %c0_i32_1 : i32, i32, i32
  }
  func.func @transform_2(%arg0: i32) -> (i32, i32) {
    %c0_i32 = arith.constant 0 : i32
    %c0_i32_0 = arith.constant 0 : i32
    %c0_i32_1 = arith.constant 0 : i32
    return %c0_i32, %c0_i32_0 : i32, i32
  }
  func.func @transform_3(%arg0: i32) -> (i32, i32, i32, i32) {
    %c0_i32 = arith.constant 0 : i32
    %c0_i32_0 = arith.constant 0 : i32
    %c0_i32_1 = arith.constant 0 : i32
    %c0_i32_2 = arith.constant 0 : i32
    return %arg0, %c0_i32, %c0_i32_0, %c0_i32_1 : i32, i32, i32, i32
  }
}

module attributes {stable_mosaic.version = 11 : i64} {
  func.func @_fc_fused_kernel(%arg0: i32, %arg1: memref<2x144xbf16, #tpu.memory_space<vmem>>, %arg2: memref<144x40xbf16, #tpu.memory_space<vmem>>, %arg3: memref<1x40xf32, #tpu.memory_space<vmem>>, %arg4: memref<40x144xbf16, #tpu.memory_space<vmem>>, %arg5: memref<1x144xf32, #tpu.memory_space<vmem>>, %arg6: memref<2x144xbf16, #tpu.memory_space<vmem>>) attributes {dimension_semantics = [#tpu.dimension_semantics<arbitrary>], iteration_bounds = array<i64: 1>, scalar_prefetch = 0 : i64, scratch_operands = 0 : i64, tpu.core_type = #tpu.core_type<tc>, window_params = [{pipeline_mode = #tpu.pipeline_mode<synchronous>, transform_indices = @transform_0, window_bounds = array<i64: 2, 144>}, {pipeline_mode = #tpu.pipeline_mode<synchronous>, transform_indices = @transform_1, window_bounds = array<i64: 144, 40>}, {pipeline_mode = #tpu.pipeline_mode<synchronous>, transform_indices = @transform_2, window_bounds = array<i64: 1, 40>}, {pipeline_mode = #tpu.pipeline_mode<synchronous>, transform_indices = @transform_3, window_bounds = array<i64: 40, 144>}, {pipeline_mode = #tpu.pipeline_mode<synchronous>, transform_indices = @transform_4, window_bounds = array<i64: 1, 144>}, {pipeline_mode = #tpu.pipeline_mode<synchronous>, transform_indices = @transform_5, window_bounds = array<i64: 2, 144>}]} {
    %c0 = arith.constant 0 : index
    %c0_0 = arith.constant 0 : index
    %0 = vector.load %arg1[%c0, %c0_0] : memref<2x144xbf16, #tpu.memory_space<vmem>>, vector<2x144xbf16>
    %c0_1 = arith.constant 0 : index
    %c0_2 = arith.constant 0 : index
    %1 = vector.load %arg2[%c0_1, %c0_2] : memref<144x40xbf16, #tpu.memory_space<vmem>>, vector<144x40xbf16>
    %cst = arith.constant dense<0.000000e+00> : vector<2x40xf32>
    %2 = tpu.matmul %0, %1, %cst {dimension_numbers = #tpu.dot_dimension_numbers<[1], [0], [0], [1], [0, 0, 1, 1], [], []>} : vector<2x144xbf16>, vector<144x40xbf16>, vector<2x40xf32> -> vector<2x40xf32>
    %c0_3 = arith.constant 0 : index
    %c0_4 = arith.constant 0 : index
    %3 = vector.load %arg3[%c0_3, %c0_4] : memref<1x40xf32, #tpu.memory_space<vmem>>, vector<1x40xf32>
    %4 = vector.broadcast %3 : vector<1x40xf32> to vector<2x40xf32>
    %5 = arith.addf %2, %4 : vector<2x40xf32>
    %cst_5 = arith.constant 0.000000e+00 : f32
    %6 = vector.broadcast %cst_5 : f32 to vector<2x40xf32>
    %7 = arith.maximumf %5, %6 : vector<2x40xf32>
    %8 = arith.truncf %7 : vector<2x40xf32> to vector<2x40xbf16>
    %c0_6 = arith.constant 0 : index
    %c0_7 = arith.constant 0 : index
    %9 = vector.load %arg4[%c0_6, %c0_7] : memref<40x144xbf16, #tpu.memory_space<vmem>>, vector<40x144xbf16>
    %cst_8 = arith.constant dense<0.000000e+00> : vector<2x144xf32>
    %10 = tpu.matmul %8, %9, %cst_8 {dimension_numbers = #tpu.dot_dimension_numbers<[1], [0], [0], [1], [0, 0, 1, 1], [], []>} : vector<2x40xbf16>, vector<40x144xbf16>, vector<2x144xf32> -> vector<2x144xf32>
    %c0_9 = arith.constant 0 : index
    %c0_10 = arith.constant 0 : index
    %11 = vector.load %arg5[%c0_9, %c0_10] : memref<1x144xf32, #tpu.memory_space<vmem>>, vector<1x144xf32>
    %12 = vector.broadcast %11 : vector<1x144xf32> to vector<2x144xf32>
    %13 = arith.addf %10, %12 : vector<2x144xf32>
    %cst_11 = arith.constant 0.000000e+00 : f32
    %14 = vector.broadcast %cst_11 : f32 to vector<2x144xf32>
    %15 = arith.maximumf %13, %14 : vector<2x144xf32>
    %16 = arith.truncf %15 : vector<2x144xf32> to vector<2x144xbf16>
    %c0_12 = arith.constant 0 : index
    %c0_13 = arith.constant 0 : index
    %17 = vector.load %arg6[%c0_12, %c0_13] : memref<2x144xbf16, #tpu.memory_space<vmem>>, vector<2x144xbf16>
    tpu.vector_store %arg6[%c0_12, %c0_13], %16 {strides = array<i32>} : memref<2x144xbf16, #tpu.memory_space<vmem>>, vector<2x144xbf16>,
    return
  }
  func.func @transform_0(%arg0: i32) -> (i32, i32) {
    %c0_i32 = arith.constant 0 : i32
    %c0_i32_0 = arith.constant 0 : i32
    %c0_i32_1 = arith.constant 0 : i32
    return %c0_i32, %c0_i32_0 : i32, i32
  }
  func.func @transform_1(%arg0: i32) -> (i32, i32) {
    %c0_i32 = arith.constant 0 : i32
    %c0_i32_0 = arith.constant 0 : i32
    %c0_i32_1 = arith.constant 0 : i32
    return %c0_i32, %c0_i32_0 : i32, i32
  }
  func.func @transform_2(%arg0: i32) -> (i32, i32) {
    %c0_i32 = arith.constant 0 : i32
    %c0_i32_0 = arith.constant 0 : i32
    %c0_i32_1 = arith.constant 0 : i32
    return %c0_i32, %c0_i32_0 : i32, i32
  }
  func.func @transform_3(%arg0: i32) -> (i32, i32) {
    %c0_i32 = arith.constant 0 : i32
    %c0_i32_0 = arith.constant 0 : i32
    %c0_i32_1 = arith.constant 0 : i32
    return %c0_i32, %c0_i32_0 : i32, i32
  }
  func.func @transform_4(%arg0: i32) -> (i32, i32) {
    %c0_i32 = arith.constant 0 : i32
    %c0_i32_0 = arith.constant 0 : i32
    %c0_i32_1 = arith.constant 0 : i32
    return %c0_i32, %c0_i32_0 : i32, i32
  }
  func.func @transform_5(%arg0: i32) -> (i32, i32) {
    %c0_i32 = arith.constant 0 : i32
    %c0_i32_0 = arith.constant 0 : i32
    %c0_i32_1 = arith.constant 0 : i32
    return %c0_i32, %c0_i32_0 : i32, i32
  }
}

module attributes {stable_mosaic.version = 11 : i64} {
  func.func @_decoder_kernel(%arg0: i32, %arg1: memref<8x36xbf16, #tpu.memory_space<vmem>>, %arg2: memref<36x96xbf16, #tpu.memory_space<vmem>>, %arg3: memref<1x96xf32, #tpu.memory_space<vmem>>, %arg4: memref<96x192xbf16, #tpu.memory_space<vmem>>, %arg5: memref<1x192xf32, #tpu.memory_space<vmem>>, %arg6: memref<192x64xbf16, #tpu.memory_space<vmem>>, %arg7: memref<1x64xf32, #tpu.memory_space<vmem>>, %arg8: memref<8x64xf32, #tpu.memory_space<vmem>>) attributes {dimension_semantics = [#tpu.dimension_semantics<parallel>], iteration_bounds = array<i64: 1>, scalar_prefetch = 0 : i64, scratch_operands = 0 : i64, tpu.core_type = #tpu.core_type<tc>, window_params = [{transform_indices = @transform_0, window_bounds = array<i64: 8, 36>}, {pipeline_mode = #tpu.pipeline_mode<synchronous>, transform_indices = @transform_1, window_bounds = array<i64: 36, 96>}, {pipeline_mode = #tpu.pipeline_mode<synchronous>, transform_indices = @transform_2, window_bounds = array<i64: 1, 96>}, {pipeline_mode = #tpu.pipeline_mode<synchronous>, transform_indices = @transform_3, window_bounds = array<i64: 96, 192>}, {pipeline_mode = #tpu.pipeline_mode<synchronous>, transform_indices = @transform_4, window_bounds = array<i64: 1, 192>}, {pipeline_mode = #tpu.pipeline_mode<synchronous>, transform_indices = @transform_5, window_bounds = array<i64: 192, 64>}, {pipeline_mode = #tpu.pipeline_mode<synchronous>, transform_indices = @transform_6, window_bounds = array<i64: 1, 64>}, {transform_indices = @transform_7, window_bounds = array<i64: 8, 64>}]} {
    %c0 = arith.constant 0 : index
    %c0_0 = arith.constant 0 : index
    %0 = vector.load %arg1[%c0, %c0_0] : memref<8x36xbf16, #tpu.memory_space<vmem>>, vector<8x36xbf16>
    %c0_1 = arith.constant 0 : index
    %c0_2 = arith.constant 0 : index
    %1 = vector.load %arg2[%c0_1, %c0_2] : memref<36x96xbf16, #tpu.memory_space<vmem>>, vector<36x96xbf16>
    %cst = arith.constant dense<0.000000e+00> : vector<8x96xf32>
    %2 = tpu.matmul %0, %1, %cst {dimension_numbers = #tpu.dot_dimension_numbers<[1], [0], [0], [1], [0, 0, 1, 1], [], []>} : vector<8x36xbf16>, vector<36x96xbf16>, vector<8x96xf32> -> vector<8x96xf32>
    %c0_3 = arith.constant 0 : index
    %c0_4 = arith.constant 0 : index
    %3 = vector.load %arg3[%c0_3, %c0_4] : memref<1x96xf32, #tpu.memory_space<vmem>>, vector<1x96xf32>
    %4 = vector.broadcast %3 : vector<1x96xf32> to vector<8x96xf32>
    %5 = arith.addf %2, %4 : vector<8x96xf32>
    %cst_5 = arith.constant 0.000000e+00 : f32
    %6 = vector.broadcast %cst_5 : f32 to vector<8x96xf32>
    %7 = arith.maximumf %5, %6 : vector<8x96xf32>
    %8 = arith.truncf %7 : vector<8x96xf32> to vector<8x96xbf16>
    %c0_6 = arith.constant 0 : index
    %c0_7 = arith.constant 0 : index
    %9 = vector.load %arg4[%c0_6, %c0_7] : memref<96x192xbf16, #tpu.memory_space<vmem>>, vector<96x192xbf16>
    %cst_8 = arith.constant dense<0.000000e+00> : vector<8x192xf32>
    %10 = tpu.matmul %8, %9, %cst_8 {dimension_numbers = #tpu.dot_dimension_numbers<[1], [0], [0], [1], [0, 0, 1, 1], [], []>} : vector<8x96xbf16>, vector<96x192xbf16>, vector<8x192xf32> -> vector<8x192xf32>
    %c0_9 = arith.constant 0 : index
    %c0_10 = arith.constant 0 : index
    %11 = vector.load %arg5[%c0_9, %c0_10] : memref<1x192xf32, #tpu.memory_space<vmem>>, vector<1x192xf32>
    %12 = vector.broadcast %11 : vector<1x192xf32> to vector<8x192xf32>
    %13 = arith.addf %10, %12 : vector<8x192xf32>
    %cst_11 = arith.constant 0.000000e+00 : f32
    %14 = vector.broadcast %cst_11 : f32 to vector<8x192xf32>
    %15 = arith.maximumf %13, %14 : vector<8x192xf32>
    %16 = arith.truncf %15 : vector<8x192xf32> to vector<8x192xbf16>
    %c0_12 = arith.constant 0 : index
    %c0_13 = arith.constant 0 : index
    %17 = vector.load %arg6[%c0_12, %c0_13] : memref<192x64xbf16, #tpu.memory_space<vmem>>, vector<192x64xbf16>
    %cst_14 = arith.constant dense<0.000000e+00> : vector<8x64xf32>
    %18 = tpu.matmul %16, %17, %cst_14 {dimension_numbers = #tpu.dot_dimension_numbers<[1], [0], [0], [1], [0, 0, 1, 1], [], []>} : vector<8x192xbf16>, vector<192x64xbf16>, vector<8x64xf32> -> vector<8x64xf32>
    %c0_15 = arith.constant 0 : index
    %c0_16 = arith.constant 0 : index
    %19 = vector.load %arg7[%c0_15, %c0_16] : memref<1x64xf32, #tpu.memory_space<vmem>>, vector<1x64xf32>
    %20 = vector.broadcast %19 : vector<1x64xf32> to vector<8x64xf32>
    %21 = arith.addf %18, %20 : vector<8x64xf32>
    %22 = math.absf %21 : vector<8x64xf32>
    %cst_17 = arith.constant 0.000000e+00 : f32
    %23 = vector.broadcast %cst_17 : f32 to vector<8x64xf32>
    %24 = arith.subf %23, %22 : vector<8x64xf32>
    %25 = math.exp %24 : vector<8x64xf32>
    %cst_18 = arith.constant 1.000000e+00 : f32
    %26 = vector.broadcast %cst_18 : f32 to vector<8x64xf32>
    %27 = arith.addf %26, %25 : vector<8x64xf32>
    %cst_19 = arith.constant 1.000000e+00 : f32
    %28 = vector.broadcast %cst_19 : f32 to vector<8x64xf32>
    %29 = arith.divf %28, %27 : vector<8x64xf32>
    %cst_20 = arith.constant 0.000000e+00 : f32
    %30 = vector.broadcast %cst_20 : f32 to vector<8x64xf32>
    %31 = arith.cmpf oge, %21, %30 : vector<8x64xf32>
    %cst_21 = arith.constant 1.000000e+00 : f32
    %32 = vector.broadcast %cst_21 : f32 to vector<8x64xf32>
    %33 = arith.subf %32, %29 : vector<8x64xf32>
    %34 = arith.select %31, %29, %33 : vector<8x64xi1>, vector<8x64xf32>
    %c0_22 = arith.constant 0 : index
    %c0_23 = arith.constant 0 : index
    %35 = vector.load %arg8[%c0_22, %c0_23] : memref<8x64xf32, #tpu.memory_space<vmem>>, vector<8x64xf32>
    tpu.vector_store %arg8[%c0_22, %c0_23], %34 {strides = array<i32>} : memref<8x64xf32, #tpu.memory_space<vmem>>, vector<8x64xf32>,
    return
  }
  func.func @transform_0(%arg0: i32) -> (i32, i32) {
    %c0_i32 = arith.constant 0 : i32
    %c0_i32_0 = arith.constant 0 : i32
    return %arg0, %c0_i32 : i32, i32
  }
  func.func @transform_1(%arg0: i32) -> (i32, i32) {
    %c0_i32 = arith.constant 0 : i32
    %c0_i32_0 = arith.constant 0 : i32
    %c0_i32_1 = arith.constant 0 : i32
    return %c0_i32, %c0_i32_0 : i32, i32
  }
  func.func @transform_2(%arg0: i32) -> (i32, i32) {
    %c0_i32 = arith.constant 0 : i32
    %c0_i32_0 = arith.constant 0 : i32
    %c0_i32_1 = arith.constant 0 : i32
    return %c0_i32, %c0_i32_0 : i32, i32
  }
  func.func @transform_3(%arg0: i32) -> (i32, i32) {
    %c0_i32 = arith.constant 0 : i32
    %c0_i32_0 = arith.constant 0 : i32
    %c0_i32_1 = arith.constant 0 : i32
    return %c0_i32, %c0_i32_0 : i32, i32
  }
  func.func @transform_4(%arg0: i32) -> (i32, i32) {
    %c0_i32 = arith.constant 0 : i32
    %c0_i32_0 = arith.constant 0 : i32
    %c0_i32_1 = arith.constant 0 : i32
    return %c0_i32, %c0_i32_0 : i32, i32
  }
  func.func @transform_5(%arg0: i32) -> (i32, i32) {
    %c0_i32 = arith.constant 0 : i32
    %c0_i32_0 = arith.constant 0 : i32
    %c0_i32_1 = arith.constant 0 : i32
    return %c0_i32, %c0_i32_0 : i32, i32
  }
  func.func @transform_6(%arg0: i32) -> (i32, i32) {
    %c0_i32 = arith.constant 0 : i32
    %c0_i32_0 = arith.constant 0 : i32
    %c0_i32_1 = arith.constant 0 : i32
    return %c0_i32, %c0_i32_0 : i32, i32
  }
  func.func @transform_7(%arg0: i32) -> (i32, i32) {
    %c0_i32 = arith.constant 0 : i32
    %c0_i32_0 = arith.constant 0 : i32
    return %arg0, %c0_i32 : i32, i32
  }
}

</mosaic_0001>

<bundles_post_ra>
// kernel: transposed_net_forward.8
= control target key start
LH: loop header
LB: loop body
LE: loop exit
PB: predicated region body
PF: predicated region fallthrough
CT: control target
= control target key end

     0   :  { %vm103_vm0 = vcmask 130048   ;;  %vm174_vm1 = vcmask 1043456   ;;  %vm170_vm2 = vcmask 326656   ;;  %vm212_vm3 = vcmask 1040384   ;;  %s389_s1 = inlined_call_operand.vmem [shape: bf16[144,40], index: 1, kind: input, shape index: {}]   ;;  %s390_s0 = inlined_call_operand.vmem [shape: bf16[2,144], index: 0, kind: input, shape index: {}]   ;;  %s391_s2 = inlined_call_operand.vmem [shape: f32[1,40], index: 2, kind: input, shape index: {}]   ;;  %s392_s3 = inlined_call_operand.vmem [shape: bf16[40,144], index: 3, kind: input, shape index: {}]   ;;  %s393_s4 = inlined_call_operand.vmem [shape: f32[1,144], index: 4, kind: input, shape index: {}]   ;;  %s394_s5 = inlined_call_operand.vmem [shape: bf16[2,144], index: 5, kind: output, shape index: {}]  }
   0x1   :  { %v286_v0 = vld [vmem:[%s389_s1 + $0x38] sm:$0xff]  ;;  %v285_v1 = vld [vmem:[%s389_s1 + $0x30] sm:$0xff]  ;;  %v287_v2 = vld [vmem:[%s389_s1 + $0x40] sm:$0xff]  ;;  %vm217_vm4 = vcmask 123905  }
   0x2   :  { %106 = vmatpush.bf16.msra.mxu0 %v286_v0  ;;  %v21_v3 = vld [vmem:[%s390_s0] sm:$0x3]  ;;  %126 = vmatpush.bf16.msra.mxu1 %v287_v2  ;;  %v284_v4 = vld [vmem:[%s389_s1 + $0x28] sm:$0xff]  ;;  %v282_v7 = vld [vmem:[%s389_s1 + $0x18] sm:$0xff] }
   0x3   :  { %45 = vst [vmem:[#allocation1] ss:$9 sm:$0xff] %v21_v3  ;;  %v283_v5 = vld [vmem:[%s389_s1 + $0x20] sm:$0xff]  ;;  %v281_v8 = vld [vmem:[%s389_s1 + $0x10] sm:$0xff]  ;;  %v280_v9 = vld [vmem:[%s389_s1 + $0x8] sm:$0xff] }
   0x4   :  { %v279_v10 = vld [vmem:[%s389_s1] sm:$0xff]  ;;  %v271_v19 = vld [vmem:[%s392_s3 + $0x10] sm:$0xf]  ;;  %v291_v20 = vld [vmem:[%s392_s3 + $0x14] sm:$0xf0] }
   0x5   :  { %v138_v12 = vld [vmem:[%s392_s3 + $0x20] sm:$0xff]  ;;  %v290_v21 = vld [vmem:[%s392_s3 + $0x14] sm:$0xf]  ;;  %v272_v22 = vor.u32 %v291_v20, %v271_v19  ;;  %v273_v23 = vld [vmem:[%s392_s3 + $0x18] sm:$0xf0] }
   0x6   :  { %107 = vmatpush.bf16.msra.mxu0 %v285_v1  ;;  %v158_v13 = vunpack.c.l.b16 %v138_v12  ;;  %v159_v14 = vunpack.c.h.b16 %v138_v12  ;;  %v276_v24 = vor.u32 %v290_v21, %v273_v23  ;;  %v263_v25 = vld [vmem:[%s392_s3] sm:$0xf]  ;;  %v289_v26 = vld [vmem:[%s392_s3 + $0x4] sm:$0xf0]  ;;  %v288_v27 = vld [vmem:[%s392_s3 + $0x4] sm:$0xf] }
   0x7   :  { %v264_v28 = vor.u32 %v289_v26, %v263_v25  ;;  %v265_v29 = vld [vmem:[%s392_s3 + $0x8] sm:$0xf0]  ;;  %v292_v33 = vld [vmem:[%s391_s2] ss:$0 sm:$0xff]  ;;  %vm218_vm5 = vmor %vm217_vm4, %vm212_vm3 }
   0x8   :  { %v164_v15 = vpack.c.b16 %v158_v13, %v158_v13  ;;  %v165_v16 = vpack.c.b16 %v159_v14, %v159_v14  ;;  %v268_v30 = vor.u32 %v288_v27, %v265_v29  ;;  %v139_v40 = vld [vmem:[%s393_s4] sm:$0x3] }
   0x9   :  { %v141_v41 = vperm.slane %v139_v40, 0  ;;  %v142_v42 = vperm.slane %v139_v40, 1 }
   0xa   :  { %108 = vmatpush.bf16.msra.mxu0 %v284_v4  ;;  %v47_v6 = vld [vmem:[#allocation1 + $0x9] sm:$0xff]  ;;  %v46_v11 = vld [vmem:[#allocation1] sm:$0xff]  ;;  %v176_v17 = vsel %vm174_vm1, %v164_v15, 0  ;;  %v179_v18 = vsel %vm174_vm1, %v165_v16, 0 }
   0xb   :  { %260 = vmatmul.msk.bf16.vlgmr.msra.gmra.mxu1 %vm103_vm0, %v47_v6  ;;  %186 = vmatpush.bf16.msra.mxu2 %v176_v17 }
   0xc   :  { %199 = vmatpush.bf16.msra.mxu3 %v179_v18 }
   0xe   :  { %109 = vmatpush.bf16.msra.mxu0 %v283_v5 }
   0xf   :  { %187 = vmatpush.bf16.msra.mxu2 %v272_v22 }
  0x10   :  { %200 = vmatpush.bf16.msra.mxu3 %v276_v24 }
  0x12   :  { %110 = vmatpush.bf16.msra.mxu0 %v282_v7 }
  0x13   :  { %188 = vmatpush.bf16.msra.mxu2 %v264_v28 }
  0x14   :  { %201 = vmatpush.bf16.msra.mxu3 %v268_v30 }
  0x16   :  { %111 = vmatpush.bf16.msra.mxu0 %v281_v8 }
  0x1a   :  { %112 = vmatpush.bf16.msra.mxu0 %v280_v9 }
  0x1e   :  { %113 = vmatpush.bf16.msra.mxu0 %v279_v10 }
  0x21   :  { %114 = vmatmul.bf16.vlgmr.msra.gmra.mxu0 %v46_v11 }
  0x88   :  { %v128_v31 = vpop.f32.mrf.mxu1 }
  0x90   :  { %v130_v32 = vpop.f32.mrf.mxu1 }
  0x9e   :  { %v115_v34 = vpop.f32.mrf.mxu0 }
  0x9f   :  { %v116_v35 = vadd.f32 %v292_v33, %v115_v34 }
  0xa1   :  { %v129_v36 = vadd.f32 %v128_v31, %v116_v35 }
  0xa3   :  { %v132_v37 = vmax.f32 %v129_v36, 0.0 }
  0xa5   :  { %v133_v38 = vpack.c.bf16 %v132_v37, %v132_v37 }
  0xa6   :  { %v117_v39 = vpop.f32.mrf.mxu0 }
  0xa7   :  { %277 = vmatmul.msk.bf16.vlgmr.msra.gmra.mxu2 %vm170_vm2, %v133_v38  ;;  %278 = vmatmul.msk.bf16.vlgmr.msra.gmra.mxu3 %vm170_vm2, %v133_v38 }
 0x12a   :  { %v190_v43 = vpop.f32.mrf.mxu2  ;;  %v203_v44 = vpop.f32.mrf.mxu3 }
 0x12b   :  { %v191_v45 = vadd.f32 %v190_v43, %v141_v41  ;;  %v204_v46 = vadd.f32 %v203_v44, %v142_v42 }
 0x12d   :  { %v207_v47 = vmax.f32 %v191_v45, 0.0  ;;  %v208_v48 = vmax.f32 %v204_v46, 0.0 }
 0x12f   :  { %v209_v49 = vpack.c.bf16 %v208_v48, %v207_v47 }
 0x131   :  { %v211_v50 = vrot.slane %v209_v49, 3 }
 0x132   :  { %v192_v51 = vpop.f32.mrf.mxu2  ;;  %v205_v52 = vpop.f32.mrf.mxu3 }
 0x133   :  { %v215_v53 = vsel %vm212_vm3, %v209_v49, %v211_v50 }
 0x134   :  { %219 = vst.msk [vmem:[%s394_s5] sm:$0x3] %vm218_vm5, %v215_v53 }

// kernel: transposed_net_forward.7
= control target key start
LH: loop header
LB: loop body
LE: loop exit
PB: predicated region body
PF: predicated region fallthrough
CT: control target
= control target key end

     0   :  { %s2106_s12 = smov 0   ;;  %s2613_s0 = inlined_call_operand.vmem [shape: bf16[2,12,3,24], index: 0, kind: input, shape index: {}]   ;;  %s2614_s1 = inlined_call_operand.vmem [shape: bf16[9,24,36], index: 1, kind: input, shape index: {}]   ;;  %s2615_s2 = inlined_call_operand.vmem [shape: f32[1,36], index: 2, kind: input, shape index: {}]   ;;  %s2616_s3 = inlined_call_operand.vmem [shape: bf16[2,2,2,36], index: 3, kind: output, shape index: {}]  }
   0x1 LB: > { %s1890_s13 = sadd.s32 4294967295, %s2084_s12   ;;  %p1894_p0 = scmp.ge.s32.totalorder %s2084_s12, 1  ;;  %s2084_s12 = sphi %s2106_s12, %s13_s12  }
   0x2   : > { %p137_p1 = scmp.lt.s32.totalorder %s2084_s12, 3 }
   0x4   : > { %p138_p2 = pnand %p1894_p0, %p137_p1 }
   0x5   : > { %p160_p3 = scmp.lt.s32.totalorder (!%p138_p2), %s1890_s13, 1 }
   0x6   : > { %141 = sbr.rel (%p138_p2) target bundleno = 457 (0x1c9), region = 32 }
   0xb   : > { %v1899_v0 = vld [vmem:[%s2614_s1 + $0x14] sm:$0xf]  ;;  %v172_v1 = vld [vmem:[%s2614_s1 + $0x8] sm:$0xf]  ;;  %v1902_v4 = vld [vmem:[%s2614_s1 + $0x20] sm:$0xf] }
   0xc   : > { %v250_v2 = vunpack.c.l.b16 %v1899_v0  ;;  %v296_v3 = vunpack.c.l.b16 %v172_v1  ;;  %vm258_vm0 = vcmask 1043456   ;;  %v349_v5 = vunpack.c.l.b16 %v1902_v4  ;;  %v1905_v6 = vld [vmem:[%s2614_s1 + $0x2c] sm:$0xf]  ;;  %s2618_s13 = smov (!%p160_p3, %s1890_s13), 1  ;;  %v1908_v10 = vld [vmem:[%s2614_s1 + $0x38] sm:$0xf] }
   0xd   : > { %v404_v9 = vunpack.c.l.b16 %v1905_v6  ;;  %v1911_v11 = vld [vmem:[%s2614_s1 + $0x44] sm:$0xf]  ;;  %s2068_s26 = smul.u32 24, %s2618_s13  ;;  %v2146_v16 = vld [vmem:[%s2614_s1 + $0xc] sm:$0xff]  ;;  %v450_v18 = vunpack.c.l.b16 %v1908_v10  ;;  %vm254_vm1 = vcmask 195584   ;;  %v2187_v29 = vld [vmem:[%s2614_s1 + $0x18] sm:$0xff] }
   0xe   : > { %v252_v7 = vpack.c.b16 %v250_v2, %v250_v2  ;;  %v298_v8 = vpack.c.b16 %v296_v3, %v296_v3  ;;  %v351_v14 = vpack.c.b16 %v349_v5, %v349_v5  ;;  %v2151_v17 = vld [vmem:[%s2614_s1] sm:$0xff]  ;;  %v505_v19 = vunpack.c.l.b16 %v1911_v11  ;;  %v2216_v34 = vld [vmem:[%s2614_s1 + $0x30] sm:$0xff]  ;;  %v1917_v38 = vld [vmem:[%s2614_s1 + $0x5c] sm:$0xf]  ;;  %s1896_s4 = sshll.u32 %s2618_s13, 1 }
   0xf   : > { %v406_v15 = vpack.c.b16 %v404_v9, %v404_v9  ;;  %s2158_s6 = scalar_lea.vmem %s2613_s0, %s2068_s26  ;;  %v452_v25 = vpack.c.b16 %v450_v18, %v450_v18  ;;  %v2192_v30 = vld [vmem:[%s2614_s1 + $0x24] sm:$0xff]  ;;  %v1914_v35 = vld [vmem:[%s2614_s1 + $0x50] sm:$0xf]  ;;  %v2226_v37 = vld [vmem:[%s2614_s1 + $0x3c] sm:$0xff]  ;;  %v606_v41 = vunpack.c.l.b16 %v1917_v38  ;;  %s168_s7 = scalar_lea.vmem %s2616_s3, %s1896_s4  ;;  %vm1834_vm2 = vcmask 286720  }
  0x10   : > { %v2135_v12 = vsel %vm258_vm0, %v252_v7, 0  ;;  %v2138_v13 = vsel %vm258_vm0, %v298_v8, 0  ;;  %v2161_v20 = vsel %vm258_vm0, %v351_v14, 0  ;;  %v2167_v22 = vld [vmem:[%s2158_s6] sm:$0x3]  ;;  %v507_v26 = vpack.c.b16 %v505_v19, %v505_v19  ;;  %v2265_v57 = vld [vmem:[%s2614_s1 + $0x48] sm:$0xff] }
  0x11   : > { %268 = vmatpush.bf16.msra.mxu0 %v2135_v12  ;;  %312 = vmatpush.bf16.msra.mxu2 %v2138_v13  ;;  %v2164_v21 = vsel %vm258_vm0, %v406_v15, 0  ;;  %v2172_v23 = vld [vmem:[%s2158_s6 + $0x6] sm:$0x1]  ;;  %v206_v24 = vld [vmem:[%s2158_s6] sm:$0x1]  ;;  %v2201_v31 = vsel %vm258_vm0, %v452_v25, 0  ;;  %v560_v40 = vunpack.c.l.b16 %v1914_v35  ;;  %v608_v46 = vpack.c.b16 %v606_v41, %v606_v41 }
  0x12   : > { %284 = vmatpush.bf16.msra.mxu1 %v2135_v12  ;;  %328 = vmatpush.bf16.msra.mxu3 %v2138_v13  ;;  %336 = vst [vmem:[#allocation1] ss:$4 sm:$0xff] %v2167_v22  ;;  %v2179_v27 = vld [vmem:[%s2158_s6 + $0x8] sm:$0x1]  ;;  %v207_v28 = vld [vmem:[%s2158_s6 + $0x2] sm:$0x1] }
  0x13   : > { %v2204_v32 = vsel %vm258_vm0, %v507_v26, 0  ;;  %v2209_v33 = vld [vmem:[%s2158_s6 + $0x2] sm:$0x3]  ;;  %v2239_v44 = vld [vmem:[%s2158_s6 + $0xc] sm:$0x3]  ;;  %v562_v45 = vpack.c.b16 %v560_v40, %v560_v40  ;;  %v2254_v55 = vsel %vm258_vm0, %v608_v46, 0 }
  0x14   : > { %v2244_v49 = vld [vmem:[%s2158_s6 + $0xc] sm:$0x1]  ;;  %v2248_v52 = vld [vmem:[%s2158_s6 + $0xe] sm:$0x1]  ;;  %v2275_v59 = vld [vmem:[%s2614_s1 + $0x54] sm:$0xff] }
  0x15   : > { %269 = vmatpush.bf16.msra.mxu0 %v2146_v16  ;;  %313 = vmatpush.bf16.msra.mxu2 %v2151_v17  ;;  %v2251_v53 = vsel %vm258_vm0, %v562_v45, 0  ;;  %v2268_v58 = vld [vmem:[%s2158_s6 + $0xe] sm:$0x3]  ;;  %v1920_v60 = vld [vmem:[%s2614_s1 + $0x68] sm:$0xf]  ;;  %v2308_v15 = vld [vmem:[%s2614_s1 + $0x60] sm:$0xff] }
  0x16   : > { %285 = vmatpush.bf16.msra.mxu1 %v2146_v16  ;;  %329 = vmatpush.bf16.msra.mxu3 %v2151_v17  ;;  %v661_v63 = vunpack.c.l.b16 %v1920_v60  ;;  %v2288_v3 = vld [vmem:[%s2158_s6 + $0x2] sm:$0x3]  ;;  %v2291_v6 = vld [vmem:[%s2158_s6 + $0x12] sm:$0x1]  ;;  %v2301_v11 = vld [vmem:[%s2158_s6 + $0x14] sm:$0x1] }
  0x17   : > { %v2311_v18 = vld [vmem:[%s2158_s6 + $0x4] sm:$0x3]  ;;  %v2324_v25 = vld [vmem:[%s2158_s6 + $0x2] sm:$0x1]  ;;  %v2327_v26 = vld [vmem:[%s2158_s6 + $0x8] sm:$0x1] }
  0x18   : > { %1953 = vmatmul.msk.bf16.vlgmr.msra.gmra.mxu0 %vm254_vm1, %v2172_v23  ;;  %1959 = vmatmul.msk.bf16.vlgmr.msra.gmra.mxu2 %vm254_vm1, %v206_v24  ;;  %v663_v2 = vpack.c.b16 %v661_v63, %v661_v63  ;;  %v2338_v35 = vld [vmem:[%s2158_s6 + $0xa] sm:$0x1]  ;;  %v1923_v45 = vld [vmem:[%s2158_s6 + $0x6] sm:$0x3] }
  0x19   : > { %365 = vmatpush.bf16.msrb.mxu0 %v2161_v20  ;;  %420 = vmatpush.bf16.msrb.mxu2 %v2164_v21  ;;  %v337_v36 = vld.sshfl [vmem:[#allocation1] sm:$0xff pattern:$0x73625140] }
  0x1a   : > { %1954 = vmatmul.msk.bf16.vlgmr.msra.gmra.mxu1 %vm254_vm1, %v2179_v27  ;;  %1960 = vmatmul.msk.bf16.vlgmr.msra.gmra.mxu3 %vm254_vm1, %v207_v28  ;;  %v340_v39 = vshll.u32 %v337_v36, 16  ;;  %373 = vst [vmem:[#allocation1] ss:$4 sm:$0xff] %v2209_v33  ;;  %v338_v42 = vshrl.u32 %v337_v36, 16  ;;  %v2295_v9 = vsel %vm258_vm0, %v663_v2, 0 }
  0x1b   : > { %390 = vmatpush.bf16.msrb.mxu1 %v2161_v20  ;;  %436 = vmatpush.bf16.msrb.mxu3 %v2164_v21  ;;  %v2335_v28 = vld [vmem:[%s2158_s6 + $0x4] sm:$0x1] }
  0x1c   : > { %v342_v43 = vrot.slane %v340_v39, 1 }
  0x1d   : > { %366 = vmatpush.bf16.msrb.mxu0 %v2187_v29  ;;  %421 = vmatpush.bf16.msrb.mxu2 %v2192_v30 }
  0x1e   : > { %v343_v47 = vor.u32 %v342_v43, %v338_v42 }
  0x1f   : > { %391 = vmatpush.bf16.msrb.mxu1 %v2187_v29  ;;  %437 = vmatpush.bf16.msrb.mxu3 %v2192_v30 }
  0x21   : > { %466 = vmatpush.bf16.msra.mxu0 %v2201_v31  ;;  %521 = vmatpush.bf16.msra.mxu2 %v2204_v32  ;;  %v374_v48 = vld.sshfl [vmem:[#allocation1] sm:$0xff pattern:$0x73625140] }
  0x22   : > { %v375_v50 = vshrl.u32 %v374_v48, 16  ;;  %v377_v51 = vshll.u32 %v374_v48, 16  ;;  %492 = vst [vmem:[#allocation1] ss:$4 sm:$0xff] %v2239_v44 }
  0x23   : > { %482 = vmatpush.bf16.msra.mxu1 %v2201_v31  ;;  %546 = vmatpush.bf16.msra.mxu3 %v2204_v32 }
  0x24   : > { %v379_v54 = vrot.slane %v377_v51, 1 }
  0x25   : > { %467 = vmatpush.bf16.msra.mxu0 %v2216_v34  ;;  %522 = vmatpush.bf16.msra.mxu2 %v2226_v37 }
  0x26   : > { %v380_v56 = vor.u32 %v379_v54, %v375_v50 }
  0x27   : > { %483 = vmatpush.bf16.msra.mxu1 %v2216_v34  ;;  %547 = vmatpush.bf16.msra.mxu3 %v2226_v37 }
  0x28   : > { %1965 = vmatmul.msk.bf16.vlgmr.msrb.gmra.mxu0 %vm254_vm1, %v343_v47  ;;  %1971 = vmatmul.msk.bf16.vlgmr.msrb.gmra.mxu2 %vm254_vm1, %v2244_v49 }
  0x29   : > { %576 = vmatpush.bf16.msrb.mxu0 %v2251_v53  ;;  %622 = vmatpush.bf16.msrb.mxu2 %v2254_v55  ;;  %v493_v61 = vld.sshfl [vmem:[#allocation1] sm:$0xff pattern:$0x73625140] }
  0x2a   : > { %1972 = vmatmul.msk.bf16.vlgmr.msrb.gmra.mxu3 %vm254_vm1, %v2248_v52  ;;  %1966 = vmatmul.msk.bf16.vlgmr.msrb.gmra.mxu1 %vm254_vm1, %v380_v56  ;;  %v496_v62 = vshll.u32 %v493_v61, 16  ;;  %529 = vst [vmem:[#allocation1] ss:$4 sm:$0xff] %v2268_v58  ;;  %v494_v0 = vshrl.u32 %v493_v61, 16 }
  0x2b   : > { %638 = vmatpush.bf16.msrb.mxu3 %v2254_v55  ;;  %592 = vmatpush.bf16.msrb.mxu1 %v2251_v53 }
  0x2c   : > { %v498_v1 = vrot.slane %v496_v62, 1  ;;  %v1924_v62 = vld [vmem:[%s2158_s6 + $0x8] sm:$0x3] }
  0x2d   : > { %577 = vmatpush.bf16.msrb.mxu0 %v2265_v57  ;;  %623 = vmatpush.bf16.msrb.mxu2 %v2275_v59 }
  0x2e   : > { %v499_v4 = vor.u32 %v498_v1, %v494_v0 }
  0x2f   : > { %639 = vmatpush.bf16.msrb.mxu3 %v2275_v59  ;;  %593 = vmatpush.bf16.msrb.mxu1 %v2265_v57 }
  0x31   : > { %v530_v5 = vld.sshfl [vmem:[#allocation1] sm:$0xff pattern:$0x73625140] }
  0x32   : > { %v531_v7 = vshrl.u32 %v530_v5, 16  ;;  %v533_v8 = vshll.u32 %v530_v5, 16  ;;  %648 = vst [vmem:[#allocation1] ss:$4 sm:$0xff] %v2288_v3 }
  0x34   : > { %v535_v10 = vrot.slane %v533_v8, 1 }
  0x36   : > { %v536_v14 = vor.u32 %v535_v10, %v531_v7 }
  0x38   : > { %1977 = vmatmul.msk.bf16.vlgmr.msra.gmra.mxu0 %vm254_vm1, %v2291_v6  ;;  %1983 = vmatmul.msk.bf16.vlgmr.msra.gmra.mxu2 %vm254_vm1, %v499_v4 }
  0x39   : > { %677 = vmatpush.bf16.msra.mxu0 %v2295_v9  ;;  %735 = vmatpush.bf16.msra.mxu2 %v2135_v12  ;;  %v649_v19 = vld.sshfl [vmem:[#allocation1] sm:$0xff pattern:$0x73625140] }
  0x3a   : > { %1978 = vmatmul.msk.bf16.vlgmr.msra.gmra.mxu1 %vm254_vm1, %v2301_v11  ;;  %1984 = vmatmul.msk.bf16.vlgmr.msra.gmra.mxu3 %vm254_vm1, %v536_v14  ;;  %685 = vst [vmem:[#allocation1] ss:$4 sm:$0xff] %v2311_v18  ;;  %v650_v40 = vshrl.u32 %v649_v19, 16 }
  0x3b   : > { %702 = vmatpush.bf16.msra.mxu1 %v2295_v9  ;;  %759 = vmatpush.bf16.msra.mxu3 %v2135_v12 }
  0x3d   : > { %678 = vmatpush.bf16.msra.mxu0 %v2308_v15  ;;  %736 = vmatpush.bf16.msra.mxu2 %v2146_v16 }
  0x3f   : > { %703 = vmatpush.bf16.msra.mxu1 %v2308_v15  ;;  %760 = vmatpush.bf16.msra.mxu3 %v2146_v16 }
  0x41   : > { %v686_v24 = vld.sshfl [vmem:[#allocation1] sm:$0xff pattern:$0x73625140] }
  0x42   : > { %718 = vst [vmem:[#allocation1] ss:$4 sm:$0xff] %v2167_v22  ;;  %v652_v22 = vshll.u32 %v649_v19, 16  ;;  %v689_v39 = vshll.u32 %v686_v24, 16  ;;  %v687_v46 = vshrl.u32 %v686_v24, 16 }
  0x44   : > { %v654_v41 = vrot.slane %v652_v22, 1  ;;  %v691_v47 = vrot.slane %v689_v39, 1 }
  0x46   : > { %v655_v48 = vor.u32 %v654_v41, %v650_v40  ;;  %v692_v56 = vor.u32 %v691_v47, %v687_v46 }
  0x48   : > { %1989 = vmatmul.msk.bf16.vlgmr.msrb.gmra.mxu0 %vm254_vm1, %v2324_v25  ;;  %1995 = vmatmul.msk.bf16.vlgmr.msrb.gmra.mxu2 %vm254_vm1, %v2327_v26 }
  0x49   : > { %772 = vmatpush.bf16.msrb.mxu0 %v2138_v13  ;;  %810 = vmatpush.bf16.msrb.mxu2 %v2161_v20  ;;  %v719_v36 = vld.sshfl [vmem:[#allocation1] sm:$0xff pattern:$0x73625140] }
  0x4a   : > { %1990 = vmatmul.msk.bf16.vlgmr.msrb.gmra.mxu1 %vm254_vm1, %v2335_v28  ;;  %1996 = vmatmul.msk.bf16.vlgmr.msrb.gmra.mxu3 %vm254_vm1, %v2338_v35  ;;  %v722_v38 = vshll.u32 %v719_v36, 16  ;;  %742 = vst [vmem:[#allocation1] ss:$4 sm:$0xff] %v2209_v33  ;;  %v720_v42 = vshrl.u32 %v719_v36, 16 }
  0x4b   : > { %785 = vmatpush.bf16.msrb.mxu1 %v2138_v13  ;;  %835 = vmatpush.bf16.msrb.mxu3 %v2161_v20 }
  0x4c   : > { %v724_v43 = vrot.slane %v722_v38, 1 }
  0x4d   : > { %773 = vmatpush.bf16.msrb.mxu0 %v2151_v17  ;;  %811 = vmatpush.bf16.msrb.mxu2 %v2187_v29 }
  0x4e   : > { %v725_v50 = vor.u32 %v724_v43, %v720_v42  ;;  %v2393_v43 = vld [vmem:[%s2158_s6 + $0x14] sm:$0x3] }
  0x4f   : > { %786 = vmatpush.bf16.msrb.mxu1 %v2151_v17  ;;  %836 = vmatpush.bf16.msrb.mxu3 %v2187_v29 }
  0x51   : > { %v743_v33 = vld.sshfl [vmem:[#allocation1] sm:$0xff pattern:$0x73625140] }
  0x52   : > { %v744_v51 = vshrl.u32 %v743_v33, 16  ;;  %v746_v54 = vshll.u32 %v743_v33, 16  ;;  %793 = vst [vmem:[#allocation1] ss:$4 sm:$0xff] %v1923_v45 }
  0x54   : > { %v748_v60 = vrot.slane %v746_v54, 1 }
  0x56   : > { %v749_v61 = vor.u32 %v748_v60, %v744_v51 }
  0x58   : > { %2001 = vmatmul.msk.bf16.vlgmr.msra.gmra.mxu0 %vm254_vm1, %v655_v48  ;;  %2003 = vmatmul.msk.bf16.vlgmr.msra.gmra.mxu2 %vm254_vm1, %v725_v50 }
  0x59   : > { %850 = vmatpush.bf16.msra.mxu0 %v2164_v21  ;;  %889 = vmatpush.bf16.msra.mxu2 %v2201_v31  ;;  %v794_v63 = vld.sshfl [vmem:[#allocation1] sm:$0xff pattern:$0x73625140] }
  0x5a   : > { %2002 = vmatmul.msk.bf16.vlgmr.msra.gmra.mxu1 %vm254_vm1, %v692_v56  ;;  %2004 = vmatmul.msk.bf16.vlgmr.msra.gmra.mxu3 %vm254_vm1, %v749_v61  ;;  %v797_v0 = vshll.u32 %v794_v63, 16  ;;  %818 = vst [vmem:[#allocation1] ss:$4 sm:$0xff] %v1924_v62  ;;  %v795_v1 = vshrl.u32 %v794_v63, 16 }
  0x5b   : > { %863 = vmatpush.bf16.msra.mxu1 %v2164_v21  ;;  %913 = vmatpush.bf16.msra.mxu3 %v2201_v31 }
  0x5c   : > { %v799_v2 = vrot.slane %v797_v0, 1 }
  0x5d   : > { %851 = vmatpush.bf16.msra.mxu0 %v2192_v30  ;;  %890 = vmatpush.bf16.msra.mxu2 %v2216_v34 }
  0x5e   : > { %v800_v4 = vor.u32 %v799_v2, %v795_v1  ;;  %v2422_v1 = vld [vmem:[%s2158_s6 + $0x8] sm:$0x3] }
  0x5f   : > { %864 = vmatpush.bf16.msra.mxu1 %v2192_v30  ;;  %914 = vmatpush.bf16.msra.mxu3 %v2216_v34 }
  0x61   : > { %v819_v5 = vld.sshfl [vmem:[#allocation1] sm:$0xff pattern:$0x73625140] }
  0x62   : > { %v820_v7 = vshrl.u32 %v819_v5, 16  ;;  %v822_v8 = vshll.u32 %v819_v5, 16  ;;  %872 = vst [vmem:[#allocation1] ss:$4 sm:$0xff] %v2239_v44 }
  0x64   : > { %v824_v10 = vrot.slane %v822_v8, 1 }
  0x66   : > { %v825_v14 = vor.u32 %v824_v10, %v820_v7 }
  0x68   : > { %2005 = vmatmul.msk.bf16.vlgmr.msrb.gmra.mxu0 %vm254_vm1, %v2172_v23  ;;  %2007 = vmatmul.msk.bf16.vlgmr.msrb.gmra.mxu2 %vm254_vm1, %v800_v4 }
  0x69   : > { %940 = vmatpush.bf16.msrb.mxu0 %v2204_v32  ;;  %980 = vmatpush.bf16.msrb.mxu2 %v2251_v53  ;;  %v873_v19 = vld.sshfl [vmem:[#allocation1] sm:$0xff pattern:$0x73625140] }
  0x6a   : > { %2006 = vmatmul.msk.bf16.vlgmr.msrb.gmra.mxu1 %vm254_vm1, %v2179_v27  ;;  %2008 = vmatmul.msk.bf16.vlgmr.msrb.gmra.mxu3 %vm254_vm1, %v825_v14  ;;  %v876_v24 = vshll.u32 %v873_v19, 16  ;;  %896 = vst [vmem:[#allocation1] ss:$4 sm:$0xff] %v2268_v58  ;;  %v874_v23 = vshrl.u32 %v873_v19, 16  ;;  %v2384_v27 = vld [vmem:[%s2158_s6 + $0x12] sm:$0x3] }
  0x6b   : > { %965 = vmatpush.bf16.msrb.mxu1 %v2204_v32  ;;  %993 = vmatpush.bf16.msrb.mxu3 %v2251_v53 }
  0x6c   : > { %v878_v22 = vrot.slane %v876_v24, 1  ;;  %v2428_v24 = vld [vmem:[%s2158_s6 + $0xa] sm:$0x3] }
  0x6d   : > { %941 = vmatpush.bf16.msrb.mxu0 %v2226_v37  ;;  %981 = vmatpush.bf16.msrb.mxu2 %v2265_v57 }
  0x6e   : > { %v879_v36 = vor.u32 %v878_v22, %v874_v23 }
  0x6f   : > { %966 = vmatpush.bf16.msrb.mxu1 %v2226_v37  ;;  %994 = vmatpush.bf16.msrb.mxu3 %v2265_v57 }
  0x71   : > { %v897_v38 = vld.sshfl [vmem:[#allocation1] sm:$0xff pattern:$0x73625140] }
  0x72   : > { %v898_v39 = vshrl.u32 %v897_v38, 16  ;;  %v900_v40 = vshll.u32 %v897_v38, 16  ;;  %923 = vst [vmem:[#allocation1] ss:$4 sm:$0xff] %v2384_v27 }
  0x74   : > { %v902_v41 = vrot.slane %v900_v40, 1 }
  0x76   : > { %v903_v42 = vor.u32 %v902_v41, %v898_v39 }
  0x78   : > { %2009 = vmatmul.msk.bf16.vlgmr.msra.gmra.mxu0 %vm254_vm1, %v2291_v6  ;;  %2011 = vmatmul.msk.bf16.vlgmr.msra.gmra.mxu2 %vm254_vm1, %v879_v36 }
  0x79   : > { %1019 = vmatpush.bf16.msra.mxu0 %v2254_v55  ;;  %1070 = vmatpush.bf16.msra.mxu2 %v2295_v9  ;;  %v924_v45 = vld.sshfl [vmem:[#allocation1] sm:$0xff pattern:$0x73625140] }
  0x7a   : > { %2010 = vmatmul.msk.bf16.vlgmr.msra.gmra.mxu1 %vm254_vm1, %v2301_v11  ;;  %2012 = vmatmul.msk.bf16.vlgmr.msra.gmra.mxu3 %vm254_vm1, %v903_v42  ;;  %v927_v46 = vshll.u32 %v924_v45, 16  ;;  %948 = vst [vmem:[#allocation1] ss:$4 sm:$0xff] %v2393_v43  ;;  %v925_v47 = vshrl.u32 %v924_v45, 16 }
  0x7b   : > { %1043 = vmatpush.bf16.msra.mxu1 %v2254_v55  ;;  %1095 = vmatpush.bf16.msra.mxu3 %v2295_v9 }
  0x7c   : > { %v929_v48 = vrot.slane %v927_v46, 1 }
  0x7d   : > { %1020 = vmatpush.bf16.msra.mxu0 %v2275_v59  ;;  %1071 = vmatpush.bf16.msra.mxu2 %v2308_v15 }
  0x7e   : > { %v930_v50 = vor.u32 %v929_v48, %v925_v47 }
  0x7f   : > { %1044 = vmatpush.bf16.msra.mxu1 %v2275_v59  ;;  %1096 = vmatpush.bf16.msra.mxu3 %v2308_v15 }
  0x81   : > { %v949_v33 = vld.sshfl [vmem:[#allocation1] sm:$0xff pattern:$0x73625140] }
  0x82   : > { %v950_v51 = vshrl.u32 %v949_v33, 16  ;;  %v952_v54 = vshll.u32 %v949_v33, 16  ;;  %1002 = vst [vmem:[#allocation1] ss:$4 sm:$0xff] %v2288_v3 }
  0x84   : > { %v954_v56 = vrot.slane %v952_v54, 1 }
  0x86   : > { %v955_v60 = vor.u32 %v954_v56, %v950_v51 }
  0x88   : > { %2013 = vmatmul.msk.bf16.vlgmr.msrb.gmra.mxu0 %vm254_vm1, %v930_v50  ;;  %2015 = vmatmul.msk.bf16.vlgmr.msrb.gmra.mxu2 %vm254_vm1, %v2327_v26 }
  0x89   : > { %1114 = vmatpush.bf16.msrb.mxu0 %v2135_v12  ;;  %1140 = vmatpush.bf16.msrb.mxu2 %v2138_v13  ;;  %v1003_v61 = vld.sshfl [vmem:[#allocation1] sm:$0xff pattern:$0x73625140] }
  0x8a   : > { %2014 = vmatmul.msk.bf16.vlgmr.msrb.gmra.mxu1 %vm254_vm1, %v955_v60  ;;  %2016 = vmatmul.msk.bf16.vlgmr.msrb.gmra.mxu3 %vm254_vm1, %v2338_v35  ;;  %v1006_v62 = vshll.u32 %v1003_v61, 16  ;;  %1026 = vst [vmem:[#allocation1] ss:$4 sm:$0xff] %v2311_v18  ;;  %v1004_v63 = vshrl.u32 %v1003_v61, 16 }
  0x8b   : > { %1127 = vmatpush.bf16.msrb.mxu1 %v2135_v12  ;;  %1153 = vmatpush.bf16.msrb.mxu3 %v2138_v13 }
  0x8c   : > { %v1008_v0 = vrot.slane %v1006_v62, 1 }
  0x8d   : > { %1115 = vmatpush.bf16.msrb.mxu0 %v2146_v16  ;;  %1141 = vmatpush.bf16.msrb.mxu2 %v2151_v17 }
  0x8e   : > { %v1009_v2 = vor.u32 %v1008_v0, %v1004_v63 }
  0x8f   : > { %1128 = vmatpush.bf16.msrb.mxu1 %v2146_v16  ;;  %1154 = vmatpush.bf16.msrb.mxu3 %v2151_v17 }
  0x91   : > { %v1027_v4 = vld.sshfl [vmem:[#allocation1] sm:$0xff pattern:$0x73625140] }
  0x92   : > { %v1028_v7 = vshrl.u32 %v1027_v4, 16  ;;  %v1030_v8 = vshll.u32 %v1027_v4, 16  ;;  %1053 = vst [vmem:[#allocation1] ss:$4 sm:$0xff] %v2422_v1 }
  0x94   : > { %v1032_v14 = vrot.slane %v1030_v8, 1 }
  0x95   : > { %v271_v5 = vpop.f32.mrf.mxu0 }
  0x96   : > { %v1033_v19 = vor.u32 %v1032_v14, %v1028_v7 }
  0x97   : > { %v287_v10 = vpop.f32.mrf.mxu1 }
  0x98   : > { %2017 = vmatmul.msk.bf16.vlgmr.msra.gmra.mxu0 %vm254_vm1, %v1009_v2 }
  0x99   : > { %1177 = vmatpush.bf16.msra.mxu0 %v2161_v20  ;;  %v1054_v38 = vld.sshfl [vmem:[#allocation1] sm:$0xff pattern:$0x73625140] }
  0x9a   : > { %2018 = vmatmul.msk.bf16.vlgmr.msra.gmra.mxu1 %vm254_vm1, %v1033_v19  ;;  %v1055_v41 = vshrl.u32 %v1054_v38, 16  ;;  %v1057_v42 = vshll.u32 %v1054_v38, 16  ;;  %1078 = vst [vmem:[#allocation1] ss:$4 sm:$0xff] %v2428_v24 }
  0x9b   : > { %v315_v23 = vpop.f32.mrf.mxu2  ;;  %1201 = vmatpush.bf16.msra.mxu1 %v2161_v20 }
  0x9c   : > { %v316_v22 = vadd.f32 %v315_v23, %v271_v5  ;;  %v1059_v46 = vrot.slane %v1057_v42, 1 }
  0x9d   : > { %v331_v36 = vpop.f32.mrf.mxu3  ;;  %v273_v40 = vpop.f32.mrf.mxu0  ;;  %1178 = vmatpush.bf16.msra.mxu0 %v2187_v29 }
  0x9e   : > { %v332_v39 = vadd.f32 %v331_v36, %v287_v10  ;;  %v1060_v47 = vor.u32 %v1059_v46, %v1055_v41 }
  0x9f   : > { %v289_v45 = vpop.f32.mrf.mxu1  ;;  %1202 = vmatpush.bf16.msra.mxu1 %v2187_v29 }
  0xa0   : > { %2019 = vmatmul.msk.bf16.vlgmr.msra.gmra.mxu2 %vm254_vm1, %v1060_v47 }
  0xa1   : > { %v1079_v33 = vld.sshfl [vmem:[#allocation1] sm:$0xff pattern:$0x73625140]  ;;  %1216 = vmatpush.bf16.msra.mxu2 %v2164_v21 }
  0xa2   : > { %v1080_v54 = vshrl.u32 %v1079_v33, 16  ;;  %v1082_v56 = vshll.u32 %v1079_v33, 16  ;;  %1160 = vst [vmem:[#allocation1] ss:$4 sm:$0xff] %v2239_v44 }
  0xa3   : > { %v317_v48 = vpop.f32.mrf.mxu2 }
  0xa4   : > { %v1084_v61 = vrot.slane %v1082_v56, 1 }
  0xa5   : > { %v333_v50 = vpop.f32.mrf.mxu3  ;;  %v368_v51 = vpop.f32.mrf.mxu0  ;;  %1217 = vmatpush.bf16.msra.mxu2 %v2192_v30 }
  0xa6   : > { %v397_v60 = vadd.f32 %v368_v51, %v316_v22  ;;  %v1085_v0 = vor.u32 %v1084_v61, %v1080_v54 }
  0xa7   : > { %v393_v62 = vpop.f32.mrf.mxu1 }
  0xa8   : > { %2021 = vmatmul.msk.bf16.vlgmr.msrb.gmra.mxu0 %vm254_vm1, %v2291_v6  ;;  %v398_v63 = vadd.f32 %v393_v62, %v332_v39  ;;  %2020 = vmatmul.msk.bf16.vlgmr.msra.gmra.mxu3 %vm254_vm1, %v1085_v0 }
  0xa9   : > { %1244 = vmatpush.bf16.msrb.mxu0 %v2201_v31  ;;  %v1161_v7 = vld.sshfl [vmem:[#allocation1] sm:$0xff pattern:$0x73625140]  ;;  %1229 = vmatpush.bf16.msra.mxu3 %v2164_v21 }
  0xaa   : > { %2022 = vmatmul.msk.bf16.vlgmr.msrb.gmra.mxu1 %vm254_vm1, %v2301_v11  ;;  %v1164_v14 = vshll.u32 %v1161_v7, 16  ;;  %1184 = vst [vmem:[#allocation1] ss:$4 sm:$0xff] %v2268_v58  ;;  %v1162_v23 = vshrl.u32 %v1161_v7, 16 }
  0xab   : > { %v423_v2 = vpop.f32.mrf.mxu2  ;;  %1257 = vmatpush.bf16.msrb.mxu1 %v2201_v31 }
  0xac   : > { %v443_v4 = vadd.f32 %v423_v2, %v397_v60  ;;  %v1166_v22 = vrot.slane %v1164_v14, 1 }
  0xad   : > { %v439_v5 = vpop.f32.mrf.mxu3  ;;  %v370_v10 = vpop.f32.mrf.mxu0  ;;  %1245 = vmatpush.bf16.msrb.mxu0 %v2216_v34  ;;  %1230 = vmatpush.bf16.msra.mxu3 %v2192_v30 }
  0xae   : > { %v444_v8 = vadd.f32 %v439_v5, %v398_v63  ;;  %v1167_v39 = vor.u32 %v1166_v22, %v1162_v23 }
  0xaf   : > { %v395_v19 = vpop.f32.mrf.mxu1  ;;  %1258 = vmatpush.bf16.msrb.mxu1 %v2216_v34 }
  0xb0   : > { %2023 = vmatmul.msk.bf16.vlgmr.msrb.gmra.mxu2 %vm254_vm1, %v2244_v49 }
  0xb1   : > { %v1185_v40 = vld.sshfl [vmem:[#allocation1] sm:$0xff pattern:$0x73625140]  ;;  %1283 = vmatpush.bf16.msrb.mxu2 %v2204_v32 }
  0xb2   : > { %v1186_v42 = vshrl.u32 %v1185_v40, 16  ;;  %v1188_v45 = vshll.u32 %v1185_v40, 16  ;;  %1266 = vst [vmem:[#allocation1] ss:$4 sm:$0xff] %v2288_v3 }
  0xb3   : > { %v425_v36 = vpop.f32.mrf.mxu2 }
  0xb4   : > { %v1190_v47 = vrot.slane %v1188_v45, 1 }
  0xb5   : > { %v441_v38 = vpop.f32.mrf.mxu3  ;;  %v469_v41 = vpop.f32.mrf.mxu0  ;;  %1284 = vmatpush.bf16.msrb.mxu2 %v2226_v37 }
  0xb6   : > { %v489_v46 = vadd.f32 %v469_v41, %v443_v4  ;;  %v1191_v49 = vor.u32 %v1190_v47, %v1186_v42 }
  0xb7   : > { %v485_v48 = vpop.f32.mrf.mxu1 }
  0xb8   : > { %2025 = vmatmul.msk.bf16.vlgmr.msra.gmra.mxu0 %vm254_vm1, %v1167_v39  ;;  %v490_v50 = vadd.f32 %v485_v48, %v444_v8  ;;  %2024 = vmatmul.msk.bf16.vlgmr.msrb.gmra.mxu3 %vm254_vm1, %v2248_v52  ;;  %v2468_v52 = vld [vmem:[%s2158_s6 + $0xe] sm:$0x3] }
  0xb9   : > { %1325 = vmatpush.bf16.msra.mxu0 %v2251_v53  ;;  %1307 = vmatpush.bf16.msrb.mxu3 %v2204_v32  ;;  %v1267_v54 = vld.sshfl [vmem:[#allocation1] sm:$0xff pattern:$0x73625140] }
  0xba   : > { %2026 = vmatmul.msk.bf16.vlgmr.msra.gmra.mxu1 %vm254_vm1, %v1191_v49  ;;  %1290 = vst [vmem:[#allocation1] ss:$4 sm:$0xff] %v2311_v18  ;;  %v1270_v7 = vshll.u32 %v1267_v54, 16  ;;  %v1268_v19 = vshrl.u32 %v1267_v54, 16  ;;  %v1941_v49 = vld [vmem:[%s2158_s6 + $0xe] sm:$0x1] }
  0xbb   : > { %v524_v33 = vpop.f32.mrf.mxu2  ;;  %1341 = vmatpush.bf16.msra.mxu1 %v2251_v53 }
  0xbc   : > { %v553_v51 = vadd.f32 %v524_v33, %v489_v46  ;;  %v1272_v23 = vrot.slane %v1270_v7, 1  ;;  %v2510_v7 = vld [vmem:[%s2158_s6 + $0x14] sm:$0x1] }
  0xbd   : > { %v471_v56 = vpop.f32.mrf.mxu0  ;;  %1326 = vmatpush.bf16.msra.mxu0 %v2265_v57  ;;  %v549_v60 = vpop.f32.mrf.mxu3  ;;  %1308 = vmatpush.bf16.msrb.mxu3 %v2226_v37 }
  0xbe   : > { %v554_v61 = vadd.f32 %v549_v60, %v490_v50  ;;  %v1273_v40 = vor.u32 %v1272_v23, %v1268_v19  ;;  %v1942_v60 = vld [vmem:[%s2158_s6 + $0x10] sm:$0x1] }
  0xbf   : > { %v487_v62 = vpop.f32.mrf.mxu1  ;;  %1342 = vmatpush.bf16.msra.mxu1 %v2265_v57 }
  0xc0   : > { %2027 = vmatmul.msk.bf16.vlgmr.msra.gmra.mxu2 %vm254_vm1, %v2324_v25  ;;  %v2479_v25 = vld [vmem:[%s2158_s6 + $0x10] sm:$0x3] }
  0xc1   : > { %v1291_v0 = vld.sshfl [vmem:[#allocation1] sm:$0xff pattern:$0x73625140]  ;;  %1359 = vmatpush.bf16.msra.mxu2 %v2254_v55 }
  0xc2   : > { %1385 = vst [vmem:[#allocation1] ss:$4 sm:$0xff] %v2468_v52  ;;  %v1294_v41 = vshll.u32 %v1291_v0, 16  ;;  %v1292_v46 = vshrl.u32 %v1291_v0, 16 }
  0xc3   : > { %v526_v63 = vpop.f32.mrf.mxu2 }
  0xc4   : > { %v1296_v47 = vrot.slane %v1294_v41, 1 }
  0xc5   : > { %v579_v2 = vpop.f32.mrf.mxu0  ;;  %v551_v4 = vpop.f32.mrf.mxu3  ;;  %1360 = vmatpush.bf16.msra.mxu2 %v2275_v59 }
  0xc6   : > { %v599_v5 = vadd.f32 %v579_v2, %v553_v51  ;;  %v1297_v54 = vor.u32 %v1296_v47, %v1292_v46 }
  0xc7   : > { %v595_v8 = vpop.f32.mrf.mxu1 }
  0xc8   : > { %2029 = vmatmul.msk.bf16.vlgmr.msrb.gmra.mxu0 %vm254_vm1, %v2327_v26  ;;  %v600_v10 = vadd.f32 %v595_v8, %v554_v61  ;;  %2028 = vmatmul.msk.bf16.vlgmr.msra.gmra.mxu3 %vm254_vm1, %v2335_v28 }
  0xc9   : > { %1402 = vmatpush.bf16.msrb.mxu0 %v2295_v9  ;;  %1375 = vmatpush.bf16.msra.mxu3 %v2254_v55  ;;  %v1386_v36 = vld.sshfl [vmem:[#allocation1] sm:$0xff pattern:$0x73625140] }
  0xca   : > { %2030 = vmatmul.msk.bf16.vlgmr.msrb.gmra.mxu1 %vm254_vm1, %v2338_v35  ;;  %1410 = vst [vmem:[#allocation1] ss:$4 sm:$0xff] %v2479_v25  ;;  %v1387_v8 = vshrl.u32 %v1386_v36, 16 }
  0xcb   : > { %v625_v14 = vpop.f32.mrf.mxu2  ;;  %1427 = vmatpush.bf16.msrb.mxu1 %v2295_v9 }
  0xcc   : > { %v645_v22 = vadd.f32 %v625_v14, %v599_v5 }
  0xcd   : > { %v581_v38 = vpop.f32.mrf.mxu0  ;;  %1403 = vmatpush.bf16.msrb.mxu0 %v2308_v15  ;;  %v641_v39 = vpop.f32.mrf.mxu3  ;;  %1376 = vmatpush.bf16.msra.mxu3 %v2275_v59 }
  0xce   : > { %v646_v28 = vadd.f32 %v641_v39, %v600_v10 }
  0xcf   : > { %v597_v42 = vpop.f32.mrf.mxu1  ;;  %1428 = vmatpush.bf16.msrb.mxu1 %v2308_v15 }
  0xd0   : > { %2031 = vmatmul.msk.bf16.vlgmr.msrb.gmra.mxu2 %vm254_vm1, %v1273_v40 }
  0xd1   : > { %1457 = vmatpush.bf16.msrb.mxu2 %v2135_v12  ;;  %v1411_v48 = vld.sshfl [vmem:[#allocation1] sm:$0xff pattern:$0x73625140] }
  0xd2   : > { %1440 = vst [vmem:[#allocation1] ss:$4 sm:$0xff] %v2239_v44  ;;  %v1389_v44 = vshll.u32 %v1386_v36, 16  ;;  %v1414_v4 = vshll.u32 %v1411_v48, 16 }
  0xd3   : > { %v627_v45 = vpop.f32.mrf.mxu2 }
  0xd4   : > { %v1391_v10 = vrot.slane %v1389_v44, 1 }
  0xd5   : > { %v680_v50 = vpop.f32.mrf.mxu0  ;;  %v643_v33 = vpop.f32.mrf.mxu3  ;;  %1458 = vmatpush.bf16.msrb.mxu2 %v2146_v16 }
  0xd6   : > { %v2495_v51 = vadd.f32 %v680_v50, %v645_v22  ;;  %v1392_v14 = vor.u32 %v1391_v10, %v1387_v8 }
  0xd7   : > { %v705_v56 = vpop.f32.mrf.mxu1 }
  0xd8   : > { %2033 = vmatmul.msk.bf16.vlgmr.msra.gmra.mxu0 %vm254_vm1, %v1941_v49  ;;  %v2500_v61 = vadd.f32 %v705_v56, %v646_v28  ;;  %2032 = vmatmul.msk.bf16.vlgmr.msrb.gmra.mxu3 %vm254_vm1, %v1297_v54  ;;  %v2519_v28 = vld [vmem:[%s2158_s6 + $0x16] sm:$0x1] }
  0xd9   : > { %1494 = vmatpush.bf16.msra.mxu0 %v2138_v13  ;;  %1481 = vmatpush.bf16.msrb.mxu3 %v2135_v12  ;;  %v1441_v63 = vld.sshfl [vmem:[#allocation1] sm:$0xff pattern:$0x73625140] }
  0xda   : > { %2034 = vmatmul.msk.bf16.vlgmr.msra.gmra.mxu1 %vm254_vm1, %v1942_v60  ;;  %1464 = vst [vmem:[#allocation1] ss:$4 sm:$0xff] %v2268_v58  ;;  %v1416_v58 = vrot.slane %v1414_v4, 1 }
  0xdb   : > { %v738_v62 = vpop.f32.mrf.mxu2  ;;  %1507 = vmatpush.bf16.msra.mxu1 %v2138_v13  ;;  %v1412_v13 = vshrl.u32 %v1411_v48, 16 }
  0xdd   : > { %v682_v0 = vpop.f32.mrf.mxu0  ;;  %1495 = vmatpush.bf16.msra.mxu0 %v2151_v17  ;;  %v762_v2 = vpop.f32.mrf.mxu3  ;;  %1482 = vmatpush.bf16.msrb.mxu3 %v2146_v16  ;;  %v1417_v38 = vor.u32 %v1416_v58, %v1412_v13  ;;  %v1444_v16 = vshll.u32 %v1441_v63, 16 }
  0xdf   : > { %v707_v5 = vpop.f32.mrf.mxu1  ;;  %1508 = vmatpush.bf16.msra.mxu1 %v2151_v17  ;;  %v1446_v41 = vrot.slane %v1444_v16, 1 }
  0xe0   : > { %2035 = vmatmul.msk.bf16.vlgmr.msra.gmra.mxu2 %vm254_vm1, %v2510_v7 }
  0xe1   : > { %v1465_v19 = vld.sshfl [vmem:[#allocation1] sm:$0xff pattern:$0x73625140]  ;;  %1531 = vmatpush.bf16.msra.mxu2 %v2161_v20 }
  0xe2   : > { %1514 = vst [vmem:[#allocation1] ss:$4 sm:$0xff] %v2384_v27  ;;  %v1442_v27 = vshrl.u32 %v1441_v63, 16  ;;  %v1468_v49 = vshll.u32 %v1465_v19, 16  ;;  %v1466_v54 = vshrl.u32 %v1465_v19, 16 }
  0xe3   : > { %v740_v12 = vpop.f32.mrf.mxu2 }
  0xe4   : > { %v1447_v50 = vor.u32 %v1446_v41, %v1442_v27  ;;  %v1470_v56 = vrot.slane %v1468_v49, 1 }
  0xe5   : > { %v775_v23 = vpop.f32.mrf.mxu0  ;;  %v764_v22 = vpop.f32.mrf.mxu3  ;;  %1532 = vmatpush.bf16.msra.mxu2 %v2187_v29 }
  0xe6   : > { %v776_v36 = vadd.f32 %v775_v23, %v738_v62  ;;  %v1471_v44 = vor.u32 %v1470_v56, %v1466_v54 }
  0xe7   : > { %v788_v39 = vpop.f32.mrf.mxu1 }
  0xe8   : > { %2037 = vmatmul.msk.bf16.vlgmr.msrb.gmra.mxu0 %vm254_vm1, %v1392_v14  ;;  %v789_v17 = vadd.f32 %v788_v39, %v762_v2  ;;  %2036 = vmatmul.msk.bf16.vlgmr.msra.gmra.mxu3 %vm254_vm1, %v2519_v28 }
  0xe9   : > { %1570 = vmatpush.bf16.msrb.mxu0 %v2164_v21  ;;  %1555 = vmatpush.bf16.msra.mxu3 %v2161_v20  ;;  %v1515_v45 = vld.sshfl [vmem:[#allocation1] sm:$0xff pattern:$0x73625140] }
  0xea   : > { %2038 = vmatmul.msk.bf16.vlgmr.msrb.gmra.mxu1 %vm254_vm1, %v1417_v38  ;;  %1538 = vst [vmem:[#allocation1] ss:$4 sm:$0xff] %v2393_v43  ;;  %v1518_v63 = vshll.u32 %v1515_v45, 16 }
  0xeb   : > { %v813_v40 = vpop.f32.mrf.mxu2  ;;  %1583 = vmatpush.bf16.msrb.mxu1 %v2164_v21 }
  0xec   : > { %v842_v42 = vadd.f32 %v813_v40, %v776_v36  ;;  %v1520_v2 = vrot.slane %v1518_v63, 1 }
  0xed   : > { %v777_v46 = vpop.f32.mrf.mxu0  ;;  %1571 = vmatpush.bf16.msrb.mxu0 %v2192_v30  ;;  %v838_v47 = vpop.f32.mrf.mxu3  ;;  %1556 = vmatpush.bf16.msra.mxu3 %v2187_v29 }
  0xee   : > { %v843_v48 = vadd.f32 %v838_v47, %v789_v17 }
  0xef   : > { %v790_v33 = vpop.f32.mrf.mxu1  ;;  %1584 = vmatpush.bf16.msrb.mxu1 %v2192_v30 }
  0xf0   : > { %2039 = vmatmul.msk.bf16.vlgmr.msrb.gmra.mxu2 %vm254_vm1, %v1447_v50 }
  0xf1   : > { %v1539_v21 = vld.sshfl [vmem:[#allocation1] sm:$0xff pattern:$0x73625140]  ;;  %1609 = vmatpush.bf16.msrb.mxu2 %v2201_v31 }
  0xf2   : > { %1592 = vst [vmem:[#allocation1] ss:$4 sm:$0xff] %v2288_v3  ;;  %v1516_v3 = vshrl.u32 %v1515_v45, 16  ;;  %v1542_v13 = vshll.u32 %v1539_v21, 16 }
  0xf3   : > { %v815_v20 = vpop.f32.mrf.mxu2 }
  0xf4   : > { %v1521_v12 = vor.u32 %v1520_v2, %v1516_v3  ;;  %v1544_v14 = vrot.slane %v1542_v13, 1  ;;  %v2579_v3 = vld [vmem:[%s2615_s2] ss:$0 sm:$0xff] }
  0xf5   : > { %v853_v43 = vpop.f32.mrf.mxu0  ;;  %v840_v60 = vpop.f32.mrf.mxu3  ;;  %1610 = vmatpush.bf16.msrb.mxu2 %v2216_v34 }
  0xf6   : > { %v870_v62 = vadd.f32 %v853_v43, %v842_v42 }
  0xf7   : > { %v866_v0 = vpop.f32.mrf.mxu1 }
  0xf8   : > { %2041 = vmatmul.msk.bf16.vlgmr.msra.gmra.mxu0 %vm254_vm1, %v2291_v6  ;;  %v871_v29 = vadd.f32 %v866_v0, %v843_v48  ;;  %2040 = vmatmul.msk.bf16.vlgmr.msrb.gmra.mxu3 %vm254_vm1, %v1471_v44 }
  0xf9   : > { %1659 = vmatpush.bf16.msra.mxu0 %v2204_v32  ;;  %1633 = vmatpush.bf16.msrb.mxu3 %v2201_v31  ;;  %v1593_v5 = vld.sshfl [vmem:[#allocation1] sm:$0xff pattern:$0x73625140] }
  0xfa   : > { %2042 = vmatmul.msk.bf16.vlgmr.msra.gmra.mxu1 %vm254_vm1, %v2301_v11  ;;  %1616 = vst [vmem:[#allocation1] ss:$4 sm:$0xff] %v2311_v18  ;;  %v1540_v11 = vshrl.u32 %v1539_v21, 16  ;;  %v1596_v36 = vshll.u32 %v1593_v5, 16 }
  0xfb   : > { %v892_v30 = vpop.f32.mrf.mxu2  ;;  %1683 = vmatpush.bf16.msra.mxu1 %v2204_v32 }
  0xfc   : > { %v920_v4 = vadd.f32 %v892_v30, %v870_v62  ;;  %v1545_v22 = vor.u32 %v1544_v14, %v1540_v11  ;;  %v1598_v16 = vrot.slane %v1596_v36, 1  ;;  %v1947_v30 = vld [vmem:[%s2158_s6 + $0x14] sm:$0x3]  ;;  %v715_v36 = vadd.f32 %v2579_v3, %v2500_v61 }
  0xfd   : > { %v855_v6 = vpop.f32.mrf.mxu0  ;;  %1660 = vmatpush.bf16.msra.mxu0 %v2226_v37  ;;  %v916_v8 = vpop.f32.mrf.mxu3  ;;  %1634 = vmatpush.bf16.msrb.mxu3 %v2216_v34 }
  0xfe   : > { %v921_v10 = vadd.f32 %v916_v8, %v871_v29 }
  0xff   : > { %v868_v58 = vpop.f32.mrf.mxu1  ;;  %1684 = vmatpush.bf16.msra.mxu1 %v2226_v37 }
 0x100   : > { %2043 = vmatmul.msk.bf16.vlgmr.msra.gmra.mxu2 %vm254_vm1, %v1521_v12 }
 0x101   : > { %v1617_v32 = vld.sshfl [vmem:[#allocation1] sm:$0xff pattern:$0x73625140]  ;;  %1698 = vmatpush.bf16.msra.mxu2 %v2251_v53 }
 0x102   : > { %1642 = vst [vmem:[#allocation1] ss:$4 sm:$0xff] %v2422_v1  ;;  %v1594_v1 = vshrl.u32 %v1593_v5, 16  ;;  %v1620_v45 = vshll.u32 %v1617_v32, 16 }
 0x103   : > { %v894_v31 = vpop.f32.mrf.mxu2 }
 0x104   : > { %v1599_v42 = vor.u32 %v1598_v16, %v1594_v1  ;;  %v1948_v31 = vld [vmem:[%s2158_s6 + $0x16] sm:$0x3]  ;;  %v717_v16 = vmax.f32 %v715_v36, 0.0 }
 0x105   : > { %v943_v18 = vpop.f32.mrf.mxu0  ;;  %v918_v19 = vpop.f32.mrf.mxu3  ;;  %1699 = vmatpush.bf16.msra.mxu2 %v2265_v57 }
 0x106   : > { %v972_v23 = vadd.f32 %v943_v18, %v920_v4 }
 0x107   : > { %v968_v38 = vpop.f32.mrf.mxu1 }
 0x108   : > { %2045 = vmatmul.msk.bf16.vlgmr.msrb.gmra.mxu0 %vm254_vm1, %v2327_v26  ;;  %v973_v34 = vadd.f32 %v968_v38, %v921_v10  ;;  %2044 = vmatmul.msk.bf16.vlgmr.msra.gmra.mxu3 %vm254_vm1, %v1545_v22 }
 0x109   : > { %1737 = vmatpush.bf16.msrb.mxu0 %v2254_v55  ;;  %v1643_v17 = vld.sshfl [vmem:[#allocation1] sm:$0xff pattern:$0x73625140]  ;;  %1711 = vmatpush.bf16.msra.mxu3 %v2251_v53  ;;  %v1618_v53 = vshrl.u32 %v1617_v32, 16 }
 0x10a   : > { %2046 = vmatmul.msk.bf16.vlgmr.msrb.gmra.mxu1 %vm254_vm1, %v2338_v35  ;;  %v1646_v40 = vshll.u32 %v1643_v17, 16  ;;  %1666 = vst [vmem:[#allocation1] ss:$4 sm:$0xff] %v2428_v24  ;;  %v1644_v35 = vshrl.u32 %v1643_v17, 16 }
 0x10b   : > { %v983_v37 = vpop.f32.mrf.mxu2  ;;  %1761 = vmatpush.bf16.msrb.mxu1 %v2254_v55  ;;  %v1622_v55 = vrot.slane %v1620_v45, 1 }
 0x10c   : > { %v1000_v39 = vadd.f32 %v983_v37, %v972_v23  ;;  %v1648_v47 = vrot.slane %v1646_v40, 1 }
 0x10d   : > { %v945_v26 = vpop.f32.mrf.mxu0  ;;  %1738 = vmatpush.bf16.msrb.mxu0 %v2275_v59  ;;  %v996_v27 = vpop.f32.mrf.mxu3  ;;  %1712 = vmatpush.bf16.msra.mxu3 %v2265_v57  ;;  %v1623_v21 = vor.u32 %v1622_v55, %v1618_v53 }
 0x10e   : > { %v1001_v41 = vadd.f32 %v996_v27, %v973_v34  ;;  %v1649_v50 = vor.u32 %v1648_v47, %v1644_v35 }
 0x10f   : > { %v970_v46 = vpop.f32.mrf.mxu1  ;;  %1762 = vmatpush.bf16.msrb.mxu1 %v2275_v59 }
 0x110   : > { %2047 = vmatmul.msk.bf16.vlgmr.msrb.gmra.mxu2 %vm254_vm1, %v1599_v42 }
 0x111   : > { %v1667_v24 = vld.sshfl [vmem:[#allocation1] sm:$0xff pattern:$0x73625140]  ;;  %1788 = vmatpush.bf16.msrb.mxu2 %v2295_v9 }
 0x112   : > { %v1668_v33 = vshrl.u32 %v1667_v24, 16  ;;  %v1670_v20 = vshll.u32 %v1667_v24, 16  ;;  %1720 = vst [vmem:[#allocation1] ss:$4 sm:$0xff] %v2468_v52 }
 0x113   : > { %v985_v48 = vpop.f32.mrf.mxu2 }
 0x114   : > { %v1672_v57 = vrot.slane %v1670_v20, 1 }
 0x115   : > { %v1022_v49 = vpop.f32.mrf.mxu0  ;;  %v998_v56 = vpop.f32.mrf.mxu3  ;;  %1789 = vmatpush.bf16.msrb.mxu2 %v2308_v15 }
 0x116   : > { %v1050_v54 = vadd.f32 %v1022_v49, %v1000_v39  ;;  %v1673_v60 = vor.u32 %v1672_v57, %v1668_v33 }
 0x117   : > { %v1046_v43 = vpop.f32.mrf.mxu1 }
 0x118   : > { %2049 = vmatmul.msk.bf16.vlgmr.msra.gmra.mxu0 %vm254_vm1, %v1649_v50  ;;  %v1051_v59 = vadd.f32 %v1046_v43, %v1001_v41  ;;  %2048 = vmatmul.msk.bf16.vlgmr.msrb.gmra.mxu3 %vm254_vm1, %v1623_v21 }
 0x119   : > { %v1721_v62 = vld.sshfl [vmem:[#allocation1] sm:$0xff pattern:$0x73625140]  ;;  %1813 = vmatpush.bf16.msrb.mxu3 %v2295_v9 }
 0x11a   : > { %2050 = vmatmul.msk.bf16.vlgmr.msra.gmra.mxu1 %vm254_vm1, %v1673_v60  ;;  %v1724_v44 = vshll.u32 %v1721_v62, 16  ;;  %1744 = vst [vmem:[#allocation1] ss:$4 sm:$0xff] %v2479_v25  ;;  %v1722_v0 = vshrl.u32 %v1721_v62, 16 }
 0x11c   : > { %v1726_v29 = vrot.slane %v1724_v44, 1 }
 0x11d   : > { %v1024_v52 = vpop.f32.mrf.mxu0  ;;  %1814 = vmatpush.bf16.msrb.mxu3 %v2308_v15  ;;  %v714_v15 = vadd.f32 %v2579_v3, %v2495_v51 }
 0x11e   : > { %v1727_v9 = vor.u32 %v1726_v29, %v1722_v0 }
 0x11f   : > { %v1048_v63 = vpop.f32.mrf.mxu1 }
 0x120   : > { %2051 = vmatmul.msk.bf16.vlgmr.msra.gmra.mxu2 %vm254_vm1, %v2510_v7  ;;  %v716_v7 = vmax.f32 %v714_v15, 0.0 }
 0x121   : > { %v1745_v2 = vld.sshfl [vmem:[#allocation1] sm:$0xff pattern:$0x73625140] }
 0x122   : > { %v1746_v5 = vshrl.u32 %v1745_v2, 16  ;;  %v1748_v25 = vshll.u32 %v1745_v2, 16  ;;  %1771 = vst [vmem:[#allocation1] ss:$4 sm:$0xff] %v1947_v30 }
 0x123   : > { %v1073_v6 = vpop.f32.mrf.mxu2 }
 0x124   : > { %v1102_v8 = vadd.f32 %v1073_v6, %v1050_v54  ;;  %v1750_v10 = vrot.slane %v1748_v25, 1 }
 0x125   : > { %v1117_v4 = vpop.f32.mrf.mxu0 }
 0x126   : > { %v1104_v13 = vadd.f32 %v2579_v3, %v1102_v8  ;;  %v1751_v58 = vor.u32 %v1750_v10, %v1746_v5 }
 0x127   : > { %v1130_v12 = vpop.f32.mrf.mxu1 }
 0x128   : > { %2053 = vmatmul.msk.bf16.vlgmr.msrb.gmra.mxu0 %vm254_vm1, %v1727_v9  ;;  %v1106_v11 = vmax.f32 %v1104_v13, 0.0  ;;  %2052 = vmatmul.msk.bf16.vlgmr.msra.gmra.mxu3 %vm254_vm1, %v2519_v28 }
 0x129   : > { %v1772_v14 = vld.sshfl [vmem:[#allocation1] sm:$0xff pattern:$0x73625140] }
 0x12a   : > { %2054 = vmatmul.msk.bf16.vlgmr.msrb.gmra.mxu1 %vm254_vm1, %v1751_v58  ;;  %v2591_v32 = vmax.f32 %v716_v7, %v1106_v11  ;;  %v1773_v18 = vshrl.u32 %v1772_v14, 16  ;;  %v1775_v19 = vshll.u32 %v1772_v14, 16  ;;  %1796 = vst [vmem:[#allocation1] ss:$4 sm:$0xff] %v1948_v31 }
 0x12b   : > { %v1075_v23 = vpop.f32.mrf.mxu2  ;;  %v1098_v22 = vpop.f32.mrf.mxu3 }
 0x12c   : > { %v1103_v38 = vadd.f32 %v1098_v22, %v1051_v59  ;;  %v1777_v34 = vrot.slane %v1775_v19, 1 }
 0x12d   : > { %v1119_v51 = vpop.f32.mrf.mxu0 }
 0x12e   : > { %v1105_v1 = vadd.f32 %v2579_v3, %v1103_v38  ;;  %v1778_v28 = vor.u32 %v1777_v34, %v1773_v18 }
 0x12f   : > { %v1132_v37 = vpop.f32.mrf.mxu1 }
 0x130   : > { %v1107_v39 = vmax.f32 %v1105_v1, 0.0  ;;  %2055 = vmatmul.msk.bf16.vlgmr.msrb.gmra.mxu2 %vm254_vm1, %v1778_v28 }
 0x131   : > { %v1797_v17 = vld.sshfl [vmem:[#allocation1] sm:$0xff pattern:$0x73625140] }
 0x132   : > { %v2597_v26 = vmax.f32 %v717_v16, %v1107_v39  ;;  %v1798_v27 = vshrl.u32 %v1797_v17, 16  ;;  %v1800_v41 = vshll.u32 %v1797_v17, 16 }
 0x133   : > { %v1100_v42 = vpop.f32.mrf.mxu3  ;;  %v1143_v45 = vpop.f32.mrf.mxu2 }
 0x134   : > { %v1144_v46 = vadd.f32 %v1143_v45, %v1117_v4  ;;  %v1802_v61 = vrot.slane %v1800_v41, 1 }
 0x135   : > { %v1180_v40 = vpop.f32.mrf.mxu0 }
 0x136   : > { %v1208_v47 = vadd.f32 %v1180_v40, %v1144_v46  ;;  %v1803_v53 = vor.u32 %v1802_v61, %v1798_v27 }
 0x137   : > { %v1204_v35 = vpop.f32.mrf.mxu1 }
 0x138   : > { %2056 = vmatmul.msk.bf16.vlgmr.msrb.gmra.mxu3 %vm254_vm1, %v1803_v53 }
 0x13b   : > { %v1145_v48 = vpop.f32.mrf.mxu2  ;;  %v1156_v50 = vpop.f32.mrf.mxu3 }
 0x13c   : > { %v1157_v24 = vadd.f32 %v1156_v50, %v1130_v12 }
 0x13d   : > { %v1182_v55 = vpop.f32.mrf.mxu0 }
 0x13e   : > { %v1209_v33 = vadd.f32 %v1204_v35, %v1157_v24 }
 0x13f   : > { %v1206_v49 = vpop.f32.mrf.mxu1 }
 0x143   : > { %v1158_v54 = vpop.f32.mrf.mxu3  ;;  %v1219_v56 = vpop.f32.mrf.mxu2 }
 0x144   : > { %v1236_v21 = vadd.f32 %v1219_v56, %v1208_v47 }
 0x145   : > { %v1247_v20 = vpop.f32.mrf.mxu0 }
 0x146   : > { %v1264_v43 = vadd.f32 %v1247_v20, %v1236_v21 }
 0x147   : > { %v1260_v57 = vpop.f32.mrf.mxu1 }
 0x14b   : > { %v1221_v60 = vpop.f32.mrf.mxu2  ;;  %v1232_v62 = vpop.f32.mrf.mxu3 }
 0x14c   : > { %v1237_v52 = vadd.f32 %v1232_v62, %v1209_v33 }
 0x14d   : > { %v1249_v59 = vpop.f32.mrf.mxu0 }
 0x14e   : > { %v1265_v63 = vadd.f32 %v1260_v57, %v1237_v52 }
 0x14f   : > { %v1262_v44 = vpop.f32.mrf.mxu1 }
 0x153   : > { %v1234_v29 = vpop.f32.mrf.mxu3  ;;  %v1286_v30 = vpop.f32.mrf.mxu2 }
 0x154   : > { %v1314_v9 = vadd.f32 %v1286_v30, %v1264_v43 }
 0x155   : > { %v1328_v0 = vpop.f32.mrf.mxu0 }
 0x156   : > { %v1348_v4 = vadd.f32 %v1328_v0, %v1314_v9 }
 0x157   : > { %v1344_v2 = vpop.f32.mrf.mxu1 }
 0x15b   : > { %v1288_v25 = vpop.f32.mrf.mxu2  ;;  %v1310_v6 = vpop.f32.mrf.mxu3 }
 0x15c   : > { %v1315_v15 = vadd.f32 %v1310_v6, %v1265_v63 }
 0x15d   : > { %v1330_v5 = vpop.f32.mrf.mxu0 }
 0x15e   : > { %v1349_v10 = vadd.f32 %v1344_v2, %v1315_v15 }
 0x15f   : > { %v1346_v8 = vpop.f32.mrf.mxu1 }
 0x163   : > { %v1312_v13 = vpop.f32.mrf.mxu3  ;;  %v1362_v58 = vpop.f32.mrf.mxu2 }
 0x164   : > { %v1382_v31 = vadd.f32 %v1362_v58, %v1348_v4 }
 0x165   : > { %v1405_v12 = vpop.f32.mrf.mxu0 }
 0x166   : > { %v1434_v11 = vadd.f32 %v1405_v12, %v1382_v31 }
 0x167   : > { %v1430_v7 = vpop.f32.mrf.mxu1 }
 0x168   : > { %v1436_v6 = vadd.f32 %v2579_v3, %v1434_v11 }
 0x16a   : > { %v1438_v13 = vmax.f32 %v1436_v6, 0.0 }
 0x16b   : > { %v1364_v51 = vpop.f32.mrf.mxu2  ;;  %v1378_v18 = vpop.f32.mrf.mxu3 }
 0x16c   : > { %v1383_v19 = vadd.f32 %v1378_v18, %v1349_v10 }
 0x16d   : > { %v1407_v14 = vpop.f32.mrf.mxu0 }
 0x16e   : > { %v1435_v22 = vadd.f32 %v1430_v7, %v1383_v19 }
 0x16f   : > { %v1432_v23 = vpop.f32.mrf.mxu1 }
 0x170   : > { %v1437_v18 = vadd.f32 %v2579_v3, %v1435_v22 }
 0x173   : > { %v1380_v38 = vpop.f32.mrf.mxu3  ;;  %v1460_v34 = vpop.f32.mrf.mxu2 }
 0x174   : > { %v1439_v38 = vmax.f32 %v1437_v18, 0.0 }
 0x175   : > { %v1497_v36 = vpop.f32.mrf.mxu0 }
 0x176   : > { %v1498_v33 = vadd.f32 %v1497_v36, %v1460_v34 }
 0x177   : > { %v1510_v37 = vpop.f32.mrf.mxu1 }
 0x17b   : > { %v1462_v28 = vpop.f32.mrf.mxu2  ;;  %v1484_v16 = vpop.f32.mrf.mxu3 }
 0x17c   : > { %v1511_v59 = vadd.f32 %v1510_v37, %v1484_v16 }
 0x17d   : > { %v1499_v1 = vpop.f32.mrf.mxu0 }
 0x17f   : > { %v1512_v39 = vpop.f32.mrf.mxu1 }
 0x183   : > { %v1486_v40 = vpop.f32.mrf.mxu3  ;;  %v1534_v27 = vpop.f32.mrf.mxu2 }
 0x184   : > { %v1562_v20 = vadd.f32 %v1534_v27, %v1498_v33 }
 0x185   : > { %v1573_v17 = vpop.f32.mrf.mxu0 }
 0x186   : > { %v1590_v43 = vadd.f32 %v1573_v17, %v1562_v20 }
 0x187   : > { %v1586_v41 = vpop.f32.mrf.mxu1 }
 0x18b   : > { %v1536_v45 = vpop.f32.mrf.mxu2  ;;  %v1558_v46 = vpop.f32.mrf.mxu3 }
 0x18c   : > { %v1563_v62 = vadd.f32 %v1558_v46, %v1511_v59 }
 0x18d   : > { %v1575_v42 = vpop.f32.mrf.mxu0 }
 0x18e   : > { %v1591_v30 = vadd.f32 %v1586_v41, %v1563_v62 }
 0x18f   : > { %v1588_v61 = vpop.f32.mrf.mxu1 }
 0x193   : > { %v1560_v47 = vpop.f32.mrf.mxu3  ;;  %v1612_v53 = vpop.f32.mrf.mxu2 }
 0x194   : > { %v1640_v60 = vadd.f32 %v1612_v53, %v1590_v43 }
 0x195   : > { %v1662_v35 = vpop.f32.mrf.mxu0 }
 0x196   : > { %v1690_v0 = vadd.f32 %v1662_v35, %v1640_v60 }
 0x197   : > { %v1686_v55 = vpop.f32.mrf.mxu1 }
 0x19b   : > { %v1614_v50 = vpop.f32.mrf.mxu2  ;;  %v1636_v24 = vpop.f32.mrf.mxu3 }
 0x19c   : > { %v1641_v2 = vadd.f32 %v1636_v24, %v1591_v30 }
 0x19d   : > { %v1664_v48 = vpop.f32.mrf.mxu0 }
 0x19e   : > { %v1691_v15 = vadd.f32 %v1686_v55, %v1641_v2 }
 0x19f   : > { %v1688_v49 = vpop.f32.mrf.mxu1 }
 0x1a3   : > { %v1638_v56 = vpop.f32.mrf.mxu3  ;;  %v1701_v21 = vpop.f32.mrf.mxu2 }
 0x1a4   : > { %v1718_v9 = vadd.f32 %v1701_v21, %v1690_v0 }
 0x1a5   : > { %v1740_v54 = vpop.f32.mrf.mxu0 }
 0x1a6   : > { %v1768_v4 = vadd.f32 %v1740_v54, %v1718_v9 }
 0x1a7   : > { %v1764_v57 = vpop.f32.mrf.mxu1 }
 0x1ab   : > { %v1703_v44 = vpop.f32.mrf.mxu2  ;;  %v1714_v63 = vpop.f32.mrf.mxu3 }
 0x1ac   : > { %v1719_v10 = vadd.f32 %v1714_v63, %v1691_v15 }
 0x1ad   : > { %v1742_v52 = vpop.f32.mrf.mxu0 }
 0x1ae   : > { %v1769_v31 = vadd.f32 %v1764_v57, %v1719_v10 }
 0x1af   : > { %v1766_v29 = vpop.f32.mrf.mxu1 }
 0x1b3   : > { %v1716_v5 = vpop.f32.mrf.mxu3  ;;  %v1791_v25 = vpop.f32.mrf.mxu2 }
 0x1b4   : > { %v1820_v8 = vadd.f32 %v1791_v25, %v1768_v4 }
 0x1b6   : > { %v1822_v12 = vadd.f32 %v2579_v3, %v1820_v8 }
 0x1b8   : > { %v1824_v58 = vmax.f32 %v1822_v12, 0.0 }
 0x1ba   : > { %v1828_v7 = vmax.f32 %v1438_v13, %v1824_v58 }
 0x1bb   : > { %v1793_v14 = vpop.f32.mrf.mxu2  ;;  %v1816_v51 = vpop.f32.mrf.mxu3 }
 0x1bc   : > { %v1830_v19 = vmax.f32 %v2591_v32, %v1828_v7  ;;  %v1821_v23 = vadd.f32 %v1816_v51, %v1769_v31 }
 0x1be   : > { %v1832_v11 = vpack.c.bf16 %v1830_v19, %v1830_v19  ;;  %v1823_v36 = vadd.f32 %v2579_v3, %v1821_v23 }
 0x1c0   : > { %1835 = vst.msk [vmem:[%s168_s7] sm:$0x1] %vm1834_vm2, %v1832_v11  ;;  %v1825_v34 = vmax.f32 %v1823_v36, 0.0 }
 0x1c2   : > { %v1829_v37 = vmax.f32 %v1439_v38, %v1825_v34 }
 0x1c3   : > { %v1818_v1 = vpop.f32.mrf.mxu3 }
 0x1c4   : > { %v1831_v28 = vmax.f32 %v2597_v26, %v1829_v37 }
 0x1c6   : > { %v1833_v16 = vpack.c.bf16 %v1831_v28, %v1831_v28 }
 0x1c8   : > { %1836 = vst.msk [vmem:[%s168_s7 + $0x1] sm:$0x1] %vm1834_vm2, %v1833_v16 }
 0x1c9 PF: > { %s13_s12 = sadd.s32 1, %s2084_s12  }
 0x1ca   : > { %p10_p4 = scmp.ge.s32.totalorder %s13_s12, 4  }
 0x1cc   :  { %12 = sbr.rel (!%p10_p4) target bundleno = 1 (0x1), region = 77 }

// kernel: transposed_net_forward.9
= control target key start
LH: loop header
LB: loop body
LE: loop exit
PB: predicated region body
PF: predicated region fallthrough
CT: control target
= control target key end

     0   :  { %vm56_vm0 = vcmask 1041408   ;;  %vm52_vm1 = vcmask 293888   ;;  %vm153_vm2 = vcmask 785408   ;;  %vm287_vm3 = vcmask 523264   ;;  %s659_s1 = inlined_call_operand.vmem [shape: bf16[36,96], index: 1, kind: input, shape index: {}]   ;;  %s660_s3 = inlined_call_operand.vmem [shape: bf16[96,192], index: 3, kind: input, shape index: {}]   ;;  %s661_s2 = inlined_call_operand.vmem [shape: f32[1,96], index: 2, kind: input, shape index: {}]   ;;  %s662_s0 = inlined_call_operand.vmem [shape: bf16[8,36], index: 0, kind: input, shape index: {}]   ;;  %s663_s5 = inlined_call_operand.vmem [shape: bf16[192,64], index: 5, kind: input, shape index: {}]   ;;  %s664_s6 = inlined_call_operand.vmem [shape: f32[1,64], index: 6, kind: input, shape index: {}]   ;;  %s665_s4 = inlined_call_operand.vmem [shape: f32[1,192], index: 4, kind: input, shape index: {}]   ;;  %s666_s7 = inlined_call_operand.vmem [shape: f32[8,64], index: 7, kind: output, shape index: {}]  }
   0x1   :  { %v32_v0 = vld [vmem:[%s659_s1 + $0x10] sm:$0x3]  ;;  %v466_v3 = vld [vmem:[%s660_s3 + $0x54] sm:$0xf0]  ;;  %v465_v5 = vld [vmem:[%s660_s3 + $0x54] sm:$0xf] }
   0x2   :  { %v46_v1 = vunpack.c.l.b16 %v32_v0  ;;  %v396_v2 = vld [vmem:[%s660_s3 + $0x50] sm:$0xf]  ;;  %v398_v6 = vld [vmem:[%s660_s3 + $0x58] sm:$0xf0]  ;;  %v388_v7 = vld [vmem:[%s660_s3 + $0x40] sm:$0xf] }
   0x3   :  { %v397_v4 = vor.u32 %v466_v3, %v396_v2  ;;  %v401_v9 = vor.u32 %v465_v5, %v398_v6  ;;  %v464_v10 = vld [vmem:[%s660_s3 + $0x44] sm:$0xf0]  ;;  %v463_v11 = vld [vmem:[%s660_s3 + $0x44] sm:$0xf]  ;;  %v390_v12 = vld [vmem:[%s660_s3 + $0x48] sm:$0xf0] }
   0x4   :  { %v49_v8 = vpack.c.b16 %v46_v1, %v46_v1  ;;  %v389_v13 = vor.u32 %v464_v10, %v388_v7  ;;  %v393_v15 = vor.u32 %v463_v11, %v390_v12  ;;  %v380_v16 = vld [vmem:[%s660_s3 + $0x30] sm:$0xf]  ;;  %v462_v17 = vld [vmem:[%s660_s3 + $0x34] sm:$0xf0]  ;;  %v454_v18 = vld [vmem:[%s659_s1 + $0x8] sm:$0xff] }
   0x5   :  { %159 = vmatpush.bf16.msra.mxu1 %v397_v4  ;;  %172 = vmatpush.bf16.msra.mxu2 %v401_v9  ;;  %v461_v19 = vld [vmem:[%s660_s3 + $0x34] sm:$0xf]  ;;  %v382_v20 = vld [vmem:[%s660_s3 + $0x38] sm:$0xf0]  ;;  %v381_v21 = vor.u32 %v462_v17, %v380_v16  ;;  %v372_v23 = vld [vmem:[%s660_s3 + $0x20] sm:$0xf] }
   0x6   :  { %v58_v14 = vsel %vm56_vm0, %v49_v8, 0  ;;  %v385_v22 = vor.u32 %v461_v19, %v382_v20  ;;  %v460_v24 = vld [vmem:[%s660_s3 + $0x24] sm:$0xf0]  ;;  %v453_v25 = vld [vmem:[%s659_s1] sm:$0xff]  ;;  %v374_v27 = vld [vmem:[%s660_s3 + $0x28] sm:$0xf0] }
   0x7   :  { %65 = vmatpush.bf16.msra.mxu0 %v58_v14  ;;  %v459_v26 = vld [vmem:[%s660_s3 + $0x24] sm:$0xf]  ;;  %v373_v28 = vor.u32 %v460_v24, %v372_v23  ;;  %v27_v30 = vld [vmem:[%s662_s0] sm:$0xf]  ;;  %v364_v31 = vld [vmem:[%s660_s3 + $0x10] sm:$0xf] }
   0x8   :  { %v377_v29 = vor.u32 %v459_v26, %v374_v27  ;;  %v458_v32 = vld [vmem:[%s660_s3 + $0x14] sm:$0xf0]  ;;  %v457_v33 = vld [vmem:[%s660_s3 + $0x14] sm:$0xf]  ;;  %v366_v35 = vld [vmem:[%s660_s3 + $0x18] sm:$0xf0] }
   0x9   :  { %160 = vmatpush.bf16.msra.mxu1 %v389_v13  ;;  %173 = vmatpush.bf16.msra.mxu2 %v393_v15  ;;  %v365_v34 = vor.u32 %v458_v32, %v364_v31  ;;  %v369_v36 = vor.u32 %v457_v33, %v366_v35  ;;  %v356_v37 = vld [vmem:[%s660_s3] sm:$0xf]  ;;  %v456_v38 = vld [vmem:[%s660_s3 + $0x4] sm:$0xf0]  ;;  %v455_v39 = vld [vmem:[%s660_s3 + $0x4] sm:$0xf] }
   0xa   :  { %v357_v40 = vor.u32 %v456_v38, %v356_v37  ;;  %v358_v41 = vld [vmem:[%s660_s3 + $0x8] sm:$0xf0]  ;;  %v474_v43 = vld [vmem:[%s663_s5 + $0x38] sm:$0xff]  ;;  %v473_v44 = vld [vmem:[%s663_s5 + $0x30] sm:$0xff] }
   0xb   :  { %66 = vmatpush.bf16.msra.mxu0 %v454_v18  ;;  %v361_v42 = vor.u32 %v455_v39, %v358_v41  ;;  %291 = vmatpush.bf16.msra.mxu3 %v474_v43  ;;  %v478_v45 = vld [vmem:[%s663_s5 + $0x58] sm:$0xff]  ;;  %v472_v46 = vld [vmem:[%s663_s5 + $0x28] sm:$0xff]  ;;  %v471_v47 = vld [vmem:[%s663_s5 + $0x20] sm:$0xff] }
   0xc   :  { %v470_v48 = vld [vmem:[%s663_s5 + $0x18] sm:$0xff]  ;;  %v469_v49 = vld [vmem:[%s663_s5 + $0x10] sm:$0xff]  ;;  %v479_v50 = vld [vmem:[%s661_s2] ss:$0 sm:$0xff] }
   0xd   :  { %161 = vmatpush.bf16.msra.mxu1 %v381_v21  ;;  %174 = vmatpush.bf16.msra.mxu2 %v385_v22  ;;  %v468_v56 = vld [vmem:[%s663_s5 + $0x8] sm:$0xff]  ;;  %v477_v57 = vld [vmem:[%s663_s5 + $0x50] sm:$0xff]  ;;  %v467_v58 = vld [vmem:[%s663_s5] sm:$0xff] }
   0xe   :  { %v476_v59 = vld [vmem:[%s663_s5 + $0x48] sm:$0xff]  ;;  %v475_v60 = vld [vmem:[%s663_s5 + $0x40] sm:$0xff] }
   0xf   :  { %67 = vmatpush.bf16.msra.mxu0 %v453_v25  ;;  %292 = vmatpush.bf16.msra.mxu3 %v473_v44  ;;  %v87_v61 = vld [vmem:[%s665_s4] sm:$0x3] }
  0x10   :  { %v89_v62 = vperm.slane %v87_v61, 0  ;;  %v90_v2 = vperm.slane %v87_v61, 1  ;;  %v480_v10 = vld [vmem:[%s664_s6] ss:$0 sm:$0xff] }
  0x11   :  { %162 = vmatpush.bf16.msra.mxu1 %v373_v28  ;;  %175 = vmatpush.bf16.msra.mxu2 %v377_v29 }
  0x12   :  { %353 = vmatmul.msk.bf16.vlgmr.msra.gmra.mxu0 %vm52_vm1, %v27_v30 }
  0x13   :  { %308 = vmatpush.bf16.msrb.mxu0 %v478_v45  ;;  %293 = vmatpush.bf16.msra.mxu3 %v472_v46 }
  0x15   :  { %163 = vmatpush.bf16.msra.mxu1 %v365_v34  ;;  %176 = vmatpush.bf16.msra.mxu2 %v369_v36 }
  0x17   :  { %294 = vmatpush.bf16.msra.mxu3 %v471_v47  ;;  %309 = vmatpush.bf16.msrb.mxu0 %v477_v57 }
  0x19   :  { %164 = vmatpush.bf16.msra.mxu1 %v357_v40  ;;  %177 = vmatpush.bf16.msra.mxu2 %v361_v42 }
  0x1b   :  { %295 = vmatpush.bf16.msra.mxu3 %v470_v48  ;;  %310 = vmatpush.bf16.msrb.mxu0 %v476_v59 }
  0x1f   :  { %296 = vmatpush.bf16.msra.mxu3 %v469_v49  ;;  %311 = vmatpush.bf16.msrb.mxu0 %v475_v60 }
  0x23   :  { %297 = vmatpush.bf16.msra.mxu3 %v468_v56 }
  0x27   :  { %298 = vmatpush.bf16.msra.mxu3 %v467_v58 }
  0x8f   :  { %v69_v51 = vpop.f32.mrf.mxu0 }
  0x90   :  { %v70_v52 = vadd.f32 %v479_v50, %v69_v51 }
  0x92   :  { %v73_v53 = vmax.f32 %v70_v52, 0.0 }
  0x94   :  { %v74_v54 = vpack.c.bf16 %v73_v53, %v73_v53 }
  0x96   :  { %402 = vmatmul.msk.bf16.vlgmr.msra.gmra.mxu1 %vm153_vm2, %v74_v54  ;;  %403 = vmatmul.msk.bf16.vlgmr.msra.gmra.mxu2 %vm153_vm2, %v74_v54 }
  0x97   :  { %v71_v55 = vpop.f32.mrf.mxu0 }
 0x113   :  { %v166_v63 = vpop.f32.mrf.mxu1 }
 0x114   :  { %v167_v0 = vadd.f32 %v166_v63, %v89_v62 }
 0x116   :  { %v183_v1 = vmax.f32 %v167_v0, 0.0 }
 0x118   :  { %v185_v3 = vpack.c.bf16 %v183_v1, %v183_v1 }
 0x119   :  { %v179_v4 = vpop.f32.mrf.mxu2 }
 0x11a   :  { %v180_v5 = vadd.f32 %v179_v4, %v90_v2  ;;  %299 = vmatmul.bf16.vlgmr.msra.gmra.mxu3 %v185_v3 }
 0x11b   :  { %v168_v6 = vpop.f32.mrf.mxu1 }
 0x11c   :  { %v184_v7 = vmax.f32 %v180_v5, 0.0 }
 0x11e   :  { %v186_v8 = vpack.c.bf16 %v184_v7, %v184_v7 }
 0x120   :  { %452 = vmatmul.msk.bf16.vlgmr.msrb.gmra.mxu0 %vm287_vm3, %v186_v8 }
 0x121   :  { %v181_v9 = vpop.f32.mrf.mxu2 }
 0x19d   :  { %v300_v11 = vpop.f32.mrf.mxu3  ;;  %v313_v12 = vpop.f32.mrf.mxu0 }
 0x19e   :  { %v301_v13 = vadd.f32 %v480_v10, %v300_v11 }
 0x1a0   :  { %v314_v14 = vadd.f32 %v313_v12, %v301_v13 }
 0x1a2   :  { %v317_v15 = vand.u32 2147483647, %v314_v14  ;;  %vm337_vm8 = vcmp.ge.f32.partialorder %v314_v14, 0.0 }
 0x1a4   :  { %v318_v16 = vsub.f32 0.0, %v317_v15 }
 0x1a5   :  { %v302_v17 = vpop.f32.mrf.mxu3  ;;  %v315_v18 = vpop.f32.mrf.mxu0 }
 0x1a6   :  { %v319_v19 = vmul.f32 1.442695, %v318_v16 }
 0x1a8   :  { %481 = vpow2.f32 %v319_v19 }
 0x1ae   :  { %v482_v20 = vpop.eup %481 }
 0x1af   :  { %v321_v21 = vadd.f32 1.0, %v482_v20 }
 0x1b1   :  { %483 = vrcp.f32 %v321_v21  ;;  %v333_v25 = vand.u32 2147483648, %v321_v21  ;;  %v331_v27 = vand.u32 2147483647, %v321_v21  ;;  %vm327_vm5 = vweird.f32 %v321_v21 }
 0x1b3   :  { %v334_v29 = vor.u32 1.1754944e-38, %v333_v25  ;;  %vm332_vm7 = vcmp.eq.f32.partialorder %v331_v27, 8.507059e+37 }
 0x1b7   :  { %v484_v22 = vpop.eup %483 }
 0x1b8   :  { %v323_v23 = vmul.f32 %v484_v22, %v321_v21  ;;  %vm328_vm4 = vweird.f32 %v484_v22 }
 0x1b9   :  { %vm329_vm6 = vmor %vm327_vm5, %vm328_vm4 }
 0x1ba   :  { %v324_v24 = vsub.f32 1.0, %v323_v23 }
 0x1bc   :  { %v325_v26 = vmul.f32 %v484_v22, %v324_v24 }
 0x1be   :  { %v326_v28 = vadd.f32 %v484_v22, %v325_v26 }
 0x1c0   :  { %v330_v30 = vsel %vm329_vm6, %v484_v22, %v326_v28 }
 0x1c1   :  { %v335_v31 = vsel %vm332_vm7, %v334_v29, %v330_v30 }
 0x1c2   :  { %v338_v32 = vsub.f32 1.0, %v335_v31 }
 0x1c4   :  { %v339_v33 = vsel %vm337_vm8, %v335_v31, %v338_v32 }
 0x1c5   :  { %340 = vst.msk [vmem:[%s666_s7] sm:$0xff] %vm287_vm3, %v339_v33 }

// kernel: transposed_net_forward.6
= control target key start
LH: loop header
LB: loop body
LE: loop exit
PB: predicated region body
PF: predicated region fallthrough
CT: control target
= control target key end

     0   :  { %s3341_s12 = smov 0   ;;  %s4082_s0 = inlined_call_operand.vmem [shape: bf16[2,20,5,12], index: 0, kind: input, shape index: {}]   ;;  %s4083_s1 = inlined_call_operand.vmem [shape: bf16[9,12,24], index: 1, kind: input, shape index: {}]   ;;  %s4084_s2 = inlined_call_operand.vmem [shape: f32[1,24], index: 2, kind: input, shape index: {}]   ;;  %s4085_s3 = inlined_call_operand.vmem [shape: bf16[2,4,4,24], index: 3, kind: output, shape index: {}]  }
   0x1 LB: > { %s3015_s13 = sadd.s32 4294967295, %s3319_s12   ;;  %p3019_p0 = scmp.ge.s32.totalorder %s3319_s12, 1  ;;  %s3319_s12 = sphi %s3341_s12, %s13_s12  }
   0x2   : > { %p137_p1 = scmp.lt.s32.totalorder %s3319_s12, 3 }
   0x4   : > { %p138_p2 = pnand %p3019_p0, %p137_p1 }
   0x6   : > { %141 = sbr.rel (%p138_p2) target bundleno = 748 (0x2ec), region = 32 }
   0xb   : > { %v3097_v0 = vld [vmem:[%s4083_s1 + $0x8] sm:$0xf]  ;;  %v3279_v1 = vld [vmem:[%s4083_s1 + $0x8] sm:$0x30]  ;;  %vm279_vm0 = vcmask 1045504   ;;  %p161_p3 = scmp.lt.s32.totalorder %s3015_s13, 1 }
   0xc   : > { %v3098_v2 = vor.u32 %v3279_v1, %v3097_v0  ;;  %v3105_v3 = vld [vmem:[%s4083_s1] sm:$0xf]  ;;  %v3278_v4 = vld [vmem:[%s4083_s1] sm:$0x30]  ;;  %v3113_v6 = vld [vmem:[%s4083_s1 + $0x10] sm:$0xf] }
   0xd   : > { %s4093_s13 = smov (!%p161_p3, %s3015_s13), 1  ;;  %v3106_v5 = vor.u32 %v3278_v4, %v3105_v3  ;;  %v3280_v7 = vld [vmem:[%s4083_s1 + $0x10] sm:$0x30]  ;;  %vm275_vm1 = vcmask 97280   ;;  %v3121_v16 = vld [vmem:[%s4083_s1 + $0x18] sm:$0xf] }
   0xe   : > { %v3370_v8 = vsel %vm279_vm0, %v3098_v2, 0  ;;  %v3114_v9 = vor.u32 %v3280_v7, %v3113_v6  ;;  %s3287_s26 = smul.u32 80, %s4093_s13  ;;  %v3281_v17 = vld [vmem:[%s4083_s1 + $0x18] sm:$0x30]  ;;  %v3129_v44 = vld [vmem:[%s4083_s1 + $0x20] sm:$0xf] }
   0xf   : > { %290 = vmatpush.bf16.msra.mxu0 %v3370_v8  ;;  %306 = vmatpush.bf16.msra.mxu1 %v3370_v8  ;;  %v3376_v10 = vsel %vm279_vm0, %v3106_v5, 0  ;;  %v3122_v22 = vor.u32 %v3281_v17, %v3121_v16  ;;  %v3282_v45 = vld [vmem:[%s4083_s1 + $0x20] sm:$0x30]  ;;  %v3137_v56 = vld [vmem:[%s4083_s1 + $0x28] sm:$0xf]  ;;  %vm2955_vm3 = vcmask 189440  }
  0x10   : > { %322 = vmatpush.bf16.msra.mxu2 %v3370_v8  ;;  %338 = vmatpush.bf16.msra.mxu3 %v3370_v8  ;;  %s3383_s29 = scalar_lea.vmem %s4082_s0, %s3287_s26  ;;  %v3388_v11 = vsel %vm279_vm0, %v3114_v9, 0  ;;  %v3130_v50 = vor.u32 %v3282_v45, %v3129_v44  ;;  %v3283_v57 = vld [vmem:[%s4083_s1 + $0x28] sm:$0x30]  ;;  %v3145_v1 = vld [vmem:[%s4083_s1 + $0x30] sm:$0xf] }
  0x11   : > { %v3391_v12 = vld [vmem:[%s3383_s29 + $0x14] sm:$0x3]  ;;  %v3394_v13 = vld [vmem:[%s3383_s29 + $0x18] sm:$0x3]  ;;  %v3397_v14 = vld [vmem:[%s3383_s29 + $0x1c] sm:$0x3]  ;;  %v3138_v58 = vor.u32 %v3283_v57, %v3137_v56 }
  0x12   : > { %3099 = vmatmul.msk.bf16.vlgmr.msra.gmra.mxu0 %vm275_vm1, %v3391_v12  ;;  %3100 = vmatmul.msk.bf16.vlgmr.msra.gmra.mxu1 %vm275_vm1, %v3394_v13  ;;  %v3406_v15 = vld [vmem:[%s3383_s29 + $0x20] sm:$0x3]  ;;  %v209_v19 = vld [vmem:[%s3383_s29 + $0x4] sm:$0x7]  ;;  %v210_v20 = vld [vmem:[%s3383_s29 + $0x8] sm:$0x7] }
  0x13   : > { %362 = vmatpush.bf16.msrb.mxu0 %v3376_v10  ;;  %378 = vmatpush.bf16.msrb.mxu1 %v3376_v10  ;;  %v208_v18 = vld [vmem:[%s3383_s29] sm:$0x7]  ;;  %v211_v21 = vld [vmem:[%s3383_s29 + $0xc] sm:$0x7]  ;;  %v451_v24 = vunpack.c.l.b16 %v209_v19  ;;  %v200_v26 = vld [vmem:[%s3383_s29 + $0x4] sm:$0x3]  ;;  %v477_v27 = vunpack.c.l.b16 %v210_v20 }
  0x14   : > { %394 = vmatpush.bf16.msrb.mxu2 %v3376_v10  ;;  %410 = vmatpush.bf16.msrb.mxu3 %v3376_v10  ;;  %v417_v23 = vunpack.c.l.b16 %v208_v18  ;;  %v199_v25 = vld [vmem:[%s3383_s29] sm:$0x3]  ;;  %v503_v28 = vunpack.c.l.b16 %v211_v21  ;;  %v201_v29 = vld [vmem:[%s3383_s29 + $0x8] sm:$0x3]  ;;  %v202_v30 = vld [vmem:[%s3383_s29 + $0xc] sm:$0x3] }
  0x15   : > { %3101 = vmatmul.msk.bf16.vlgmr.msra.gmra.mxu2 %vm275_vm1, %v3397_v14  ;;  %3102 = vmatmul.msk.bf16.vlgmr.msra.gmra.mxu3 %vm275_vm1, %v3406_v15  ;;  %v3431_v31 = vsel %vm279_vm0, %v3122_v22, 0  ;;  %v452_v33 = vpack.c.b16 %v451_v24, %v451_v24  ;;  %v478_v34 = vpack.c.b16 %v477_v27, %v477_v27  ;;  %v3456_v55 = vsel %vm279_vm0, %v3130_v50, 0  ;;  %v3477_v59 = vld [vmem:[%s3383_s29 + $0x28] sm:$0x3]  ;;  %v3480_v60 = vld [vmem:[%s3383_s29 + $0x2c] sm:$0x3] }
  0x16   : > { %v418_v32 = vpack.c.b16 %v417_v23, %v417_v23  ;;  %v504_v35 = vpack.c.b16 %v503_v28, %v503_v28  ;;  %v3483_v61 = vld [vmem:[%s3383_s29 + $0x30] sm:$0x3]  ;;  %v3486_v62 = vld [vmem:[%s3383_s29 + $0x34] sm:$0x3]  ;;  %v3489_v63 = vsel %vm279_vm0, %v3138_v58, 0 }
  0x17   : > { %444 = vmatpush.bf16.msra.mxu0 %v3388_v11  ;;  %470 = vmatpush.bf16.msra.mxu1 %v3388_v11  ;;  %v456_v37 = vshll.u32 %v452_v33, 16  ;;  %v482_v38 = vshll.u32 %v478_v34, 16  ;;  %v454_v41 = vshrl.u32 %v452_v33, 16  ;;  %v480_v46 = vshrl.u32 %v478_v34, 16  ;;  %v3055_v0 = vld [vmem:[%s3383_s29 + $0x28] sm:$0x7] }
  0x18   : > { %496 = vmatpush.bf16.msra.mxu2 %v3388_v11  ;;  %522 = vmatpush.bf16.msra.mxu3 %v3388_v11  ;;  %v422_v36 = vshll.u32 %v418_v32, 16  ;;  %v508_v39 = vshll.u32 %v504_v35, 16  ;;  %v420_v40 = vshrl.u32 %v418_v32, 16  ;;  %v506_v48 = vshrl.u32 %v504_v35, 16  ;;  %v3284_v2 = vld [vmem:[%s4083_s1 + $0x30] sm:$0x30] }
  0x19   : > { %v458_v43 = vrot.slane %v456_v37, 1  ;;  %v484_v47 = vrot.slane %v482_v38, 1  ;;  %v3056_v3 = vld [vmem:[%s3383_s29 + $0x2c] sm:$0x7]  ;;  %v3057_v4 = vld [vmem:[%s3383_s29 + $0x30] sm:$0x7]  ;;  %v685_v6 = vunpack.c.l.b16 %v3055_v0  ;;  %v3146_v7 = vor.u32 %v3284_v2, %v3145_v1 }
  0x1a   : > { %v424_v42 = vrot.slane %v422_v36, 1  ;;  %v510_v49 = vrot.slane %v508_v39, 1  ;;  %v3058_v5 = vld [vmem:[%s3383_s29 + $0x34] sm:$0x7]  ;;  %v719_v9 = vunpack.c.l.b16 %v3056_v3  ;;  %v3514_v16 = vld [vmem:[%s3383_s29 + $0x3c] sm:$0x3]  ;;  %v745_v18 = vunpack.c.l.b16 %v3057_v4 }
  0x1b   : > { %v3449_v52 = vor.u32 %v458_v43, %v454_v41  ;;  %v3451_v53 = vor.u32 %v484_v47, %v480_v46  ;;  %v3517_v17 = vld [vmem:[%s3383_s29 + $0x40] sm:$0x3]  ;;  %v771_v19 = vunpack.c.l.b16 %v3058_v5  ;;  %v3520_v20 = vld [vmem:[%s3383_s29 + $0x44] sm:$0x3]  ;;  %v3523_v21 = vld [vmem:[%s3383_s29 + $0x48] sm:$0x3]  ;;  %v686_v22 = vpack.c.b16 %v685_v6, %v685_v6 }
  0x1c   : > { %v3447_v51 = vor.u32 %v424_v42, %v420_v40  ;;  %v3453_v54 = vor.u32 %v510_v49, %v506_v48  ;;  %v3526_v23 = vsel %vm279_vm0, %v3146_v7, 0  ;;  %v720_v24 = vpack.c.b16 %v719_v9, %v719_v9  ;;  %v3153_v36 = vld [vmem:[%s4083_s1 + $0x38] sm:$0xf]  ;;  %v3285_v37 = vld [vmem:[%s4083_s1 + $0x38] sm:$0x30] }
  0x1d   : > { %v690_v27 = vshll.u32 %v686_v22, 16  ;;  %v688_v32 = vshrl.u32 %v686_v22, 16  ;;  %v3154_v42 = vor.u32 %v3285_v37, %v3153_v36  ;;  %v3161_v48 = vld [vmem:[%s4083_s1 + $0x40] sm:$0xf]  ;;  %v3286_v49 = vld [vmem:[%s4083_s1 + $0x40] sm:$0x30] }
  0x1e   : > { %v724_v28 = vshll.u32 %v720_v24, 16  ;;  %v722_v34 = vshrl.u32 %v720_v24, 16  ;;  %v3162_v50 = vor.u32 %v3286_v49, %v3161_v48  ;;  %v3576_v56 = vld [vmem:[%s3383_s29 + $0x4] sm:$0x3]  ;;  %v3579_v57 = vld [vmem:[%s3383_s29 + $0x8] sm:$0x3] }
  0x1f   : > { %v692_v33 = vrot.slane %v690_v27, 1  ;;  %v3555_v47 = vsel %vm279_vm0, %v3154_v42, 0  ;;  %v3582_v58 = vld [vmem:[%s3383_s29 + $0xc] sm:$0x3]  ;;  %v3585_v0 = vld [vmem:[%s3383_s29 + $0x10] sm:$0x3] }
  0x20   : > { %v726_v35 = vrot.slane %v724_v28, 1  ;;  %4088 = vst [vmem:[#allocation2_spill] sm:$0xff] %v3585_v0  ;;  %v3588_v1 = vsel %vm279_vm0, %v3162_v50, 0  ;;  %v3071_v2 = vld [vmem:[%s3383_s29 + $0x4] sm:$0x7] }
  0x21   : > { %v3546_v43 = vor.u32 %v692_v33, %v688_v32  ;;  %v3072_v3 = vld [vmem:[%s3383_s29 + $0x8] sm:$0x7]  ;;  %v3073_v4 = vld [vmem:[%s3383_s29 + $0xc] sm:$0x7]  ;;  %v3074_v5 = vld [vmem:[%s3383_s29 + $0x10] sm:$0x7]  ;;  %v953_v6 = vunpack.c.l.b16 %v3071_v2 }
  0x22   : > { %3107 = vmatmul.msk.bf16.vlgmr.msrb.gmra.mxu0 %vm275_vm1, %v199_v25  ;;  %3108 = vmatmul.msk.bf16.vlgmr.msrb.gmra.mxu1 %vm275_vm1, %v200_v26  ;;  %v746_v25 = vpack.c.b16 %v745_v18, %v745_v18  ;;  %v772_v26 = vpack.c.b16 %v771_v19, %v771_v19  ;;  %v3548_v44 = vor.u32 %v726_v35, %v722_v34  ;;  %v987_v7 = vunpack.c.l.b16 %v3072_v3  ;;  %v3607_v9 = vld [vmem:[%s3383_s29 + $0x18] sm:$0x3]  ;;  %v3610_v18 = vld [vmem:[%s3383_s29 + $0x1c] sm:$0x3]  ;;  %v3613_v24 = vld [vmem:[%s3383_s29 + $0x20] sm:$0x3] }
  0x23   : > { %550 = vmatpush.bf16.msrb.mxu0 %v3431_v31  ;;  %566 = vmatpush.bf16.msrb.mxu1 %v3431_v31  ;;  %v1013_v19 = vunpack.c.l.b16 %v3073_v4  ;;  %v1039_v22 = vunpack.c.l.b16 %v3074_v5 }
  0x24   : > { %v748_v38 = vshrl.u32 %v746_v25, 16  ;;  %v774_v40 = vshrl.u32 %v772_v26, 16  ;;  %v988_v27 = vpack.c.b16 %v987_v7, %v987_v7 }
  0x25   : > { %3109 = vmatmul.msk.bf16.vlgmr.msrb.gmra.mxu2 %vm275_vm1, %v201_v29  ;;  %3110 = vmatmul.msk.bf16.vlgmr.msrb.gmra.mxu3 %vm275_vm1, %v202_v30  ;;  %v750_v29 = vshll.u32 %v746_v25, 16  ;;  %v776_v30 = vshll.u32 %v772_v26, 16  ;;  %v3616_v25 = vld [vmem:[%s3383_s29 + $0x24] sm:$0x3]  ;;  %v954_v26 = vpack.c.b16 %v953_v6, %v953_v6  ;;  %v1014_v28 = vpack.c.b16 %v1013_v19, %v1013_v19 }
  0x26   : > { %582 = vmatpush.bf16.msrb.mxu2 %v3431_v31  ;;  %598 = vmatpush.bf16.msrb.mxu3 %v3431_v31  ;;  %v992_v32 = vshll.u32 %v988_v27, 16  ;;  %v990_v37 = vshrl.u32 %v988_v27, 16 }
  0x27   : > { %v752_v39 = vrot.slane %v750_v29, 1  ;;  %v778_v41 = vrot.slane %v776_v30, 1  ;;  %v1040_v29 = vpack.c.b16 %v1039_v22, %v1039_v22  ;;  %v958_v30 = vshll.u32 %v954_v26, 16 }
  0x28   : > { %v1018_v33 = vshll.u32 %v1014_v28, 16  ;;  %v956_v35 = vshrl.u32 %v954_v26, 16 }
  0x29   : > { %v3550_v45 = vor.u32 %v752_v39, %v748_v38  ;;  %v3552_v46 = vor.u32 %v778_v41, %v774_v40  ;;  %v1044_v34 = vshll.u32 %v1040_v29, 16  ;;  %v960_v36 = vrot.slane %v958_v30, 1 }
  0x2a   : > { %v994_v38 = vrot.slane %v992_v32, 1  ;;  %v1016_v39 = vshrl.u32 %v1014_v28, 16  ;;  %v1020_v40 = vrot.slane %v1018_v33, 1  ;;  %v1042_v41 = vshrl.u32 %v1040_v29, 16 }
  0x2b   : > { %v1046_v42 = vrot.slane %v1044_v34, 1  ;;  %v3630_v48 = vor.u32 %v960_v36, %v956_v35  ;;  %v3043_v36 = vld [vmem:[%s3383_s29 + $0x14] sm:$0x7] }
  0x2c   : > { %v3632_v49 = vor.u32 %v994_v38, %v990_v37  ;;  %v3634_v3 = vor.u32 %v1020_v40, %v1016_v39  ;;  %v3044_v37 = vld [vmem:[%s3383_s29 + $0x18] sm:$0x7]  ;;  %v3046_v38 = vld [vmem:[%s3383_s29 + $0x20] sm:$0x7]  ;;  %v1184_v40 = vunpack.c.l.b16 %v3043_v36 }
  0x2d   : > { %v3636_v4 = vor.u32 %v1046_v42, %v1042_v41  ;;  %v1210_v41 = vunpack.c.l.b16 %v3044_v37 }
  0x32   : > { %3115 = vmatmul.msk.bf16.vlgmr.msra.gmra.mxu0 %vm275_vm1, %v3447_v51  ;;  %3116 = vmatmul.msk.bf16.vlgmr.msra.gmra.mxu1 %vm275_vm1, %v3449_v52 }
  0x33   : > { %626 = vmatpush.bf16.msra.mxu0 %v3456_v55  ;;  %642 = vmatpush.bf16.msra.mxu1 %v3456_v55 }
  0x35   : > { %3117 = vmatmul.msk.bf16.vlgmr.msra.gmra.mxu2 %vm275_vm1, %v3451_v53  ;;  %3118 = vmatmul.msk.bf16.vlgmr.msra.gmra.mxu3 %vm275_vm1, %v3453_v54 }
  0x36   : > { %658 = vmatpush.bf16.msra.mxu2 %v3456_v55  ;;  %674 = vmatpush.bf16.msra.mxu3 %v3456_v55 }
  0x42   : > { %3123 = vmatmul.msk.bf16.vlgmr.msrb.gmra.mxu0 %vm275_vm1, %v3477_v59  ;;  %3124 = vmatmul.msk.bf16.vlgmr.msrb.gmra.mxu1 %vm275_vm1, %v3480_v60 }
  0x43   : > { %712 = vmatpush.bf16.msrb.mxu0 %v3489_v63  ;;  %738 = vmatpush.bf16.msrb.mxu1 %v3489_v63 }
  0x45   : > { %3125 = vmatmul.msk.bf16.vlgmr.msrb.gmra.mxu2 %vm275_vm1, %v3483_v61  ;;  %3126 = vmatmul.msk.bf16.vlgmr.msrb.gmra.mxu3 %vm275_vm1, %v3486_v62 }
  0x46   : > { %764 = vmatpush.bf16.msrb.mxu2 %v3489_v63  ;;  %790 = vmatpush.bf16.msrb.mxu3 %v3489_v63 }
  0x52   : > { %3131 = vmatmul.msk.bf16.vlgmr.msra.gmra.mxu0 %vm275_vm1, %v3514_v16  ;;  %3132 = vmatmul.msk.bf16.vlgmr.msra.gmra.mxu1 %vm275_vm1, %v3517_v17 }
  0x53   : > { %818 = vmatpush.bf16.msra.mxu0 %v3526_v23  ;;  %834 = vmatpush.bf16.msra.mxu1 %v3526_v23 }
  0x55   : > { %3133 = vmatmul.msk.bf16.vlgmr.msra.gmra.mxu2 %vm275_vm1, %v3520_v20  ;;  %3134 = vmatmul.msk.bf16.vlgmr.msra.gmra.mxu3 %vm275_vm1, %v3523_v21 }
  0x56   : > { %850 = vmatpush.bf16.msra.mxu2 %v3526_v23  ;;  %866 = vmatpush.bf16.msra.mxu3 %v3526_v23 }
  0x62   : > { %3139 = vmatmul.msk.bf16.vlgmr.msrb.gmra.mxu0 %vm275_vm1, %v3546_v43  ;;  %3140 = vmatmul.msk.bf16.vlgmr.msrb.gmra.mxu1 %vm275_vm1, %v3548_v44 }
  0x63   : > { %894 = vmatpush.bf16.msrb.mxu0 %v3555_v47  ;;  %910 = vmatpush.bf16.msrb.mxu1 %v3555_v47 }
  0x65   : > { %3141 = vmatmul.msk.bf16.vlgmr.msrb.gmra.mxu2 %vm275_vm1, %v3550_v45  ;;  %3142 = vmatmul.msk.bf16.vlgmr.msrb.gmra.mxu3 %vm275_vm1, %v3552_v46 }
  0x66   : > { %926 = vmatpush.bf16.msrb.mxu2 %v3555_v47  ;;  %942 = vmatpush.bf16.msrb.mxu3 %v3555_v47 }
  0x72   : > { %3147 = vmatmul.msk.bf16.vlgmr.msra.gmra.mxu0 %vm275_vm1, %v3576_v56  ;;  %3148 = vmatmul.msk.bf16.vlgmr.msra.gmra.mxu1 %vm275_vm1, %v3579_v57 }
  0x73   : > { %980 = vmatpush.bf16.msra.mxu0 %v3588_v1  ;;  %1006 = vmatpush.bf16.msra.mxu1 %v3588_v1 }
  0x75   : > { %3149 = vmatmul.msk.bf16.vlgmr.msra.gmra.mxu2 %vm275_vm1, %v3582_v58  ;;  %3150 = vmatmul.msk.bf16.vlgmr.msra.gmra.mxu3 %vm275_vm1, %v3585_v0 }
  0x76   : > { %1032 = vmatpush.bf16.msra.mxu2 %v3588_v1  ;;  %1058 = vmatpush.bf16.msra.mxu3 %v3588_v1 }
  0x82   : > { %3155 = vmatmul.msk.bf16.vlgmr.msrb.gmra.mxu0 %vm275_vm1, %v3607_v9  ;;  %3156 = vmatmul.msk.bf16.vlgmr.msrb.gmra.mxu1 %vm275_vm1, %v3610_v18 }
  0x83   : > { %1086 = vmatpush.bf16.msrb.mxu0 %v3370_v8  ;;  %1099 = vmatpush.bf16.msrb.mxu1 %v3370_v8 }
  0x85   : > { %3157 = vmatmul.msk.bf16.vlgmr.msrb.gmra.mxu2 %vm275_vm1, %v3613_v24  ;;  %3158 = vmatmul.msk.bf16.vlgmr.msrb.gmra.mxu3 %vm275_vm1, %v3616_v25 }
  0x86   : > { %1112 = vmatpush.bf16.msrb.mxu2 %v3370_v8  ;;  %1125 = vmatpush.bf16.msrb.mxu3 %v3370_v8 }
  0x8f   : > { %v292_v50 = vpop.f32.mrf.mxu0  ;;  %v308_v2 = vpop.f32.mrf.mxu1 }
  0x92   : > { %3163 = vmatmul.msk.bf16.vlgmr.msra.gmra.mxu0 %vm275_vm1, %v3630_v48  ;;  %3164 = vmatmul.msk.bf16.vlgmr.msra.gmra.mxu1 %vm275_vm1, %v3632_v49 }
  0x93   : > { %1138 = vmatpush.bf16.msra.mxu0 %v3376_v10  ;;  %1151 = vmatpush.bf16.msra.mxu1 %v3376_v10 }
  0x95   : > { %3165 = vmatmul.msk.bf16.vlgmr.msra.gmra.mxu2 %vm275_vm1, %v3634_v3  ;;  %3166 = vmatmul.msk.bf16.vlgmr.msra.gmra.mxu3 %vm275_vm1, %v3636_v4 }
  0x96   : > { %1164 = vmatpush.bf16.msra.mxu2 %v3376_v10  ;;  %1177 = vmatpush.bf16.msra.mxu3 %v3376_v10 }
  0x97   : > { %v294_v7 = vpop.f32.mrf.mxu0  ;;  %v310_v19 = vpop.f32.mrf.mxu1 }
  0x98   : > { %v324_v5 = vpop.f32.mrf.mxu2  ;;  %v340_v6 = vpop.f32.mrf.mxu3  ;;  %v1262_v7 = vunpack.c.l.b16 %v3046_v38 }
  0x9f   : > { %v364_v27 = vpop.f32.mrf.mxu0  ;;  %v380_v28 = vpop.f32.mrf.mxu1 }
  0xa0   : > { %v326_v22 = vpop.f32.mrf.mxu2  ;;  %v342_v26 = vpop.f32.mrf.mxu3  ;;  %v365_v29 = vadd.f32 %v364_v27, %v292_v50  ;;  %v381_v30 = vadd.f32 %v380_v28, %v308_v2  ;;  %v1263_v27 = vpack.c.b16 %v1262_v7, %v1262_v7 }
  0xa2   : > { %3167 = vmatmul.msk.bf16.vlgmr.msrb.gmra.mxu0 %vm275_vm1, %v3447_v51  ;;  %3168 = vmatmul.msk.bf16.vlgmr.msrb.gmra.mxu1 %vm275_vm1, %v3449_v52 }
  0xa3   : > { %1203 = vmatpush.bf16.msrb.mxu0 %v3388_v11  ;;  %1229 = vmatpush.bf16.msrb.mxu1 %v3388_v11 }
  0xa5   : > { %3169 = vmatmul.msk.bf16.vlgmr.msrb.gmra.mxu2 %vm275_vm1, %v3451_v53  ;;  %3170 = vmatmul.msk.bf16.vlgmr.msrb.gmra.mxu3 %vm275_vm1, %v3453_v54  ;;  %v3045_v53 = vld [vmem:[%s3383_s29 + $0x1c] sm:$0x7] }
  0xa6   : > { %1255 = vmatpush.bf16.msrb.mxu2 %v3388_v11  ;;  %1281 = vmatpush.bf16.msrb.mxu3 %v3388_v11  ;;  %v1236_v2 = vunpack.c.l.b16 %v3045_v53 }
  0xa7   : > { %v366_v52 = vpop.f32.mrf.mxu0  ;;  %v382_v35 = vpop.f32.mrf.mxu1 }
  0xa8   : > { %v396_v51 = vpop.f32.mrf.mxu2  ;;  %v412_v32 = vpop.f32.mrf.mxu3  ;;  %v1237_v26 = vpack.c.b16 %v1236_v2, %v1236_v2 }
  0xa9   : > { %v397_v33 = vadd.f32 %v396_v51, %v324_v5  ;;  %v413_v34 = vadd.f32 %v412_v32, %v340_v6  ;;  %v1185_v5 = vpack.c.b16 %v1184_v40, %v1184_v40  ;;  %v1211_v6 = vpack.c.b16 %v1210_v41, %v1210_v41 }
  0xaa   : > { %v1241_v52 = vshll.u32 %v1237_v26, 16  ;;  %v1239_v38 = vshrl.u32 %v1237_v26, 16 }
  0xab   : > { %v1189_v28 = vshll.u32 %v1185_v5, 16  ;;  %v1187_v35 = vshrl.u32 %v1185_v5, 16  ;;  %v1213_v37 = vshrl.u32 %v1211_v6, 16 }
  0xad   : > { %v1191_v36 = vrot.slane %v1189_v28, 1 }
  0xaf   : > { %v446_v42 = vpop.f32.mrf.mxu0  ;;  %v472_v50 = vpop.f32.mrf.mxu1 }
  0xb0   : > { %v398_v39 = vpop.f32.mrf.mxu2  ;;  %v414_v54 = vpop.f32.mrf.mxu3  ;;  %v528_v19 = vadd.f32 %v446_v42, %v365_v29  ;;  %v529_v22 = vadd.f32 %v472_v50, %v381_v30  ;;  %v1215_v29 = vshll.u32 %v1211_v6, 16  ;;  %v1192_v50 = vor.u32 %v1191_v36, %v1187_v35 }
  0xb1   : > { %v1243_v39 = vrot.slane %v1241_v52, 1  ;;  %v1265_v54 = vshrl.u32 %v1263_v27, 16 }
  0xb2   : > { %3171 = vmatmul.msk.bf16.vlgmr.msra.gmra.mxu0 %vm275_vm1, %v3391_v12  ;;  %3172 = vmatmul.msk.bf16.vlgmr.msra.gmra.mxu1 %vm275_vm1, %v3394_v13  ;;  %v1217_v53 = vrot.slane %v1215_v29, 1 }
  0xb3   : > { %1298 = vmatpush.bf16.msra.mxu0 %v3431_v31  ;;  %1311 = vmatpush.bf16.msra.mxu1 %v3431_v31 }
  0xb4   : > { %v1218_v2 = vor.u32 %v1217_v53, %v1213_v37  ;;  %v3059_v53 = vld [vmem:[%s3383_s29 + $0x3c] sm:$0x7] }
  0xb5   : > { %3173 = vmatmul.msk.bf16.vlgmr.msra.gmra.mxu2 %vm275_vm1, %v3397_v14  ;;  %3174 = vmatmul.msk.bf16.vlgmr.msra.gmra.mxu3 %vm275_vm1, %v3406_v15  ;;  %v1267_v15 = vshll.u32 %v1263_v27, 16 }
  0xb6   : > { %1324 = vmatpush.bf16.msra.mxu2 %v3431_v31  ;;  %1337 = vmatpush.bf16.msra.mxu3 %v3431_v31 }
  0xb7   : > { %v448_v14 = vpop.f32.mrf.mxu0  ;;  %v474_v32 = vpop.f32.mrf.mxu1  ;;  %v1269_v40 = vrot.slane %v1267_v15, 1 }
  0xb8   : > { %v498_v12 = vpop.f32.mrf.mxu2  ;;  %v524_v13 = vpop.f32.mrf.mxu3 }
  0xb9   : > { %v530_v30 = vadd.f32 %v498_v12, %v397_v33  ;;  %v531_v51 = vadd.f32 %v524_v13, %v413_v34  ;;  %v1244_v33 = vor.u32 %v1243_v39, %v1239_v38  ;;  %v1270_v34 = vor.u32 %v1269_v40, %v1265_v54  ;;  %v3060_v38 = vld [vmem:[%s3383_s29 + $0x40] sm:$0x7]  ;;  %v3061_v39 = vld [vmem:[%s3383_s29 + $0x44] sm:$0x7]  ;;  %v3062_v54 = vld [vmem:[%s3383_s29 + $0x48] sm:$0x7] }
  0xbf   : > { %v552_v7 = vpop.f32.mrf.mxu0  ;;  %v568_v0 = vpop.f32.mrf.mxu1 }
  0xc0   : > { %v500_v41 = vpop.f32.mrf.mxu2  ;;  %v526_v42 = vpop.f32.mrf.mxu3  ;;  %v604_v12 = vadd.f32 %v552_v7, %v528_v19  ;;  %v605_v13 = vadd.f32 %v568_v0, %v529_v22 }
  0xc1   : > { %v1404_v42 = vunpack.c.l.b16 %v3059_v53 }
  0xc2   : > { %3175 = vmatmul.msk.bf16.vlgmr.msrb.gmra.mxu0 %vm275_vm1, %v1192_v50  ;;  %3176 = vmatmul.msk.bf16.vlgmr.msrb.gmra.mxu1 %vm275_vm1, %v1218_v2  ;;  %v1430_v50 = vunpack.c.l.b16 %v3060_v38 }
  0xc3   : > { %1354 = vmatpush.bf16.msrb.mxu0 %v3456_v55  ;;  %1367 = vmatpush.bf16.msrb.mxu1 %v3456_v55 }
  0xc5   : > { %3177 = vmatmul.msk.bf16.vlgmr.msrb.gmra.mxu2 %vm275_vm1, %v1244_v33  ;;  %3178 = vmatmul.msk.bf16.vlgmr.msrb.gmra.mxu3 %vm275_vm1, %v1270_v34  ;;  %v1456_v33 = vunpack.c.l.b16 %v3061_v39  ;;  %v1482_v34 = vunpack.c.l.b16 %v3062_v54 }
  0xc6   : > { %1380 = vmatpush.bf16.msrb.mxu2 %v3456_v55  ;;  %1393 = vmatpush.bf16.msrb.mxu3 %v3456_v55 }
  0xc7   : > { %v554_v22 = vpop.f32.mrf.mxu0  ;;  %v570_v26 = vpop.f32.mrf.mxu1 }
  0xc8   : > { %v584_v5 = vpop.f32.mrf.mxu2  ;;  %v600_v6 = vpop.f32.mrf.mxu3 }
  0xc9   : > { %v606_v19 = vadd.f32 %v584_v5, %v530_v30  ;;  %v607_v0 = vadd.f32 %v600_v6, %v531_v51  ;;  %v1405_v5 = vpack.c.b16 %v1404_v42, %v1404_v42  ;;  %v1431_v6 = vpack.c.b16 %v1430_v50, %v1430_v50 }
  0xcb   : > { %v1433_v53 = vshrl.u32 %v1431_v6, 16 }
  0xcf   : > { %v628_v29 = vpop.f32.mrf.mxu0  ;;  %v644_v14 = vpop.f32.mrf.mxu1 }
  0xd0   : > { %v586_v27 = vpop.f32.mrf.mxu2  ;;  %v602_v28 = vpop.f32.mrf.mxu3  ;;  %v680_v32 = vadd.f32 %v628_v29, %v604_v12  ;;  %v681_v52 = vadd.f32 %v644_v14, %v605_v13 }
  0xd1   : > { %v1409_v27 = vshll.u32 %v1405_v5, 16  ;;  %v1435_v28 = vshll.u32 %v1431_v6, 16 }
  0xd2   : > { %3179 = vmatmul.msk.bf16.vlgmr.msra.gmra.mxu0 %vm275_vm1, %v3514_v16  ;;  %3180 = vmatmul.msk.bf16.vlgmr.msra.gmra.mxu1 %vm275_vm1, %v3517_v17 }
  0xd3   : > { %1423 = vmatpush.bf16.msra.mxu0 %v3489_v63  ;;  %1449 = vmatpush.bf16.msra.mxu1 %v3489_v63  ;;  %v1437_v38 = vrot.slane %v1435_v28, 1 }
  0xd5   : > { %3181 = vmatmul.msk.bf16.vlgmr.msra.gmra.mxu2 %vm275_vm1, %v3520_v20  ;;  %3182 = vmatmul.msk.bf16.vlgmr.msra.gmra.mxu3 %vm275_vm1, %v3523_v21 }
  0xd6   : > { %1475 = vmatpush.bf16.msra.mxu2 %v3489_v63  ;;  %1501 = vmatpush.bf16.msra.mxu3 %v3489_v63 }
  0xd7   : > { %v630_v36 = vpop.f32.mrf.mxu0  ;;  %v646_v37 = vpop.f32.mrf.mxu1 }
  0xd8   : > { %v660_v30 = vpop.f32.mrf.mxu2  ;;  %v676_v51 = vpop.f32.mrf.mxu3  ;;  %v1407_v36 = vshrl.u32 %v1405_v5, 16  ;;  %v1411_v37 = vrot.slane %v1409_v27, 1 }
  0xd9   : > { %v682_v15 = vadd.f32 %v660_v30, %v606_v19  ;;  %v683_v35 = vadd.f32 %v676_v51, %v607_v0  ;;  %v1457_v19 = vpack.c.b16 %v1456_v33, %v1456_v33  ;;  %v1483_v0 = vpack.c.b16 %v1482_v34, %v1482_v34 }
  0xdb   : > { %v1461_v30 = vshll.u32 %v1457_v19, 16  ;;  %v1487_v51 = vshll.u32 %v1483_v0, 16  ;;  %v1459_v39 = vshrl.u32 %v1457_v19, 16 }
  0xdd   : > { %v1463_v54 = vrot.slane %v1461_v30, 1 }
  0xdf   : > { %v714_v2 = vpop.f32.mrf.mxu0  ;;  %v740_v7 = vpop.f32.mrf.mxu1  ;;  %v3718_v33 = vor.u32 %v1463_v54, %v1459_v39  ;;  %v3075_v39 = vld [vmem:[%s3383_s29 + $0x18] sm:$0x7]  ;;  %v3076_v54 = vld [vmem:[%s3383_s29 + $0x1c] sm:$0x7] }
  0xe0   : > { %v662_v40 = vpop.f32.mrf.mxu2  ;;  %v678_v41 = vpop.f32.mrf.mxu3  ;;  %v796_v12 = vadd.f32 %v714_v2, %v680_v32  ;;  %v797_v13 = vadd.f32 %v740_v7, %v681_v52  ;;  %v3714_v2 = vor.u32 %v1411_v37, %v1407_v36  ;;  %v3716_v7 = vor.u32 %v1437_v38, %v1433_v53 }
  0xe1   : > { %v1485_v40 = vshrl.u32 %v1483_v0, 16  ;;  %v1489_v41 = vrot.slane %v1487_v51, 1 }
  0xe2   : > { %3183 = vmatmul.msk.bf16.vlgmr.msrb.gmra.mxu0 %vm275_vm1, %v3546_v43  ;;  %3184 = vmatmul.msk.bf16.vlgmr.msrb.gmra.mxu1 %vm275_vm1, %v3548_v44 }
  0xe3   : > { %1518 = vmatpush.bf16.msrb.mxu0 %v3526_v23  ;;  %1531 = vmatpush.bf16.msrb.mxu1 %v3526_v23  ;;  %v3720_v34 = vor.u32 %v1489_v41, %v1485_v40  ;;  %v3077_v40 = vld [vmem:[%s3383_s29 + $0x20] sm:$0x7]  ;;  %v3078_v41 = vld [vmem:[%s3383_s29 + $0x24] sm:$0x7] }
  0xe5   : > { %3185 = vmatmul.msk.bf16.vlgmr.msrb.gmra.mxu2 %vm275_vm1, %v3550_v45  ;;  %3186 = vmatmul.msk.bf16.vlgmr.msrb.gmra.mxu3 %vm275_vm1, %v3552_v46  ;;  %4089 = vst [vmem:[#allocation3_spill] sm:$0xff] %v3720_v34 }
  0xe6   : > { %1544 = vmatpush.bf16.msrb.mxu2 %v3526_v23  ;;  %1557 = vmatpush.bf16.msrb.mxu3 %v3526_v23 }
  0xe7   : > { %v716_v32 = vpop.f32.mrf.mxu0  ;;  %v742_v52 = vpop.f32.mrf.mxu1 }
  0xe8   : > { %v766_v22 = vpop.f32.mrf.mxu2  ;;  %v792_v26 = vpop.f32.mrf.mxu3 }
  0xe9   : > { %v798_v29 = vadd.f32 %v766_v22, %v682_v15  ;;  %v799_v14 = vadd.f32 %v792_v26, %v683_v35 }
  0xef   : > { %v820_v15 = vpop.f32.mrf.mxu0  ;;  %v836_v35 = vpop.f32.mrf.mxu1 }
  0xf0   : > { %v768_v42 = vpop.f32.mrf.mxu2  ;;  %v794_v50 = vpop.f32.mrf.mxu3  ;;  %v872_v5 = vadd.f32 %v820_v15, %v796_v12  ;;  %v873_v22 = vadd.f32 %v836_v35, %v797_v13  ;;  %v1624_v15 = vunpack.c.l.b16 %v3075_v39  ;;  %v1650_v35 = vunpack.c.l.b16 %v3076_v54 }
  0xf2   : > { %3187 = vmatmul.msk.bf16.vlgmr.msra.gmra.mxu0 %vm275_vm1, %v3714_v2  ;;  %3188 = vmatmul.msk.bf16.vlgmr.msra.gmra.mxu1 %vm275_vm1, %v3716_v7 }
  0xf3   : > { %1574 = vmatpush.bf16.msra.mxu0 %v3555_v47  ;;  %1587 = vmatpush.bf16.msra.mxu1 %v3555_v47 }
  0xf5   : > { %3189 = vmatmul.msk.bf16.vlgmr.msra.gmra.mxu2 %vm275_vm1, %v3718_v33  ;;  %3190 = vmatmul.msk.bf16.vlgmr.msra.gmra.mxu3 %vm275_vm1, %v3720_v34 }
  0xf6   : > { %1600 = vmatpush.bf16.msra.mxu2 %v3555_v47  ;;  %1613 = vmatpush.bf16.msra.mxu3 %v3555_v47 }
  0xf7   : > { %v822_v0 = vpop.f32.mrf.mxu0  ;;  %v838_v26 = vpop.f32.mrf.mxu1 }
  0xf8   : > { %v852_v12 = vpop.f32.mrf.mxu2  ;;  %v868_v13 = vpop.f32.mrf.mxu3 }
  0xf9   : > { %v874_v6 = vadd.f32 %v852_v12, %v798_v29  ;;  %v875_v19 = vadd.f32 %v868_v13, %v799_v14  ;;  %v1676_v12 = vunpack.c.l.b16 %v3077_v40  ;;  %v1702_v13 = vunpack.c.l.b16 %v3078_v41 }
  0xff   : > { %v896_v32 = vpop.f32.mrf.mxu0  ;;  %v912_v52 = vpop.f32.mrf.mxu1 }
 0x100   : > { %v854_v27 = vpop.f32.mrf.mxu2  ;;  %v870_v28 = vpop.f32.mrf.mxu3  ;;  %v948_v30 = vadd.f32 %v896_v32, %v872_v5  ;;  %v949_v51 = vadd.f32 %v912_v52, %v873_v22 }
 0x101   : > { %v1677_v27 = vpack.c.b16 %v1676_v12, %v1676_v12  ;;  %v1703_v28 = vpack.c.b16 %v1702_v13, %v1702_v13 }
 0x102   : > { %3191 = vmatmul.msk.bf16.vlgmr.msrb.gmra.mxu0 %vm275_vm1, %v3607_v9  ;;  %3192 = vmatmul.msk.bf16.vlgmr.msrb.gmra.mxu1 %vm275_vm1, %v3610_v18 }
 0x103   : > { %1643 = vmatpush.bf16.msrb.mxu0 %v3588_v1  ;;  %1669 = vmatpush.bf16.msrb.mxu1 %v3588_v1  ;;  %v1681_v39 = vshll.u32 %v1677_v27, 16  ;;  %v1707_v54 = vshll.u32 %v1703_v28, 16 }
 0x105   : > { %3193 = vmatmul.msk.bf16.vlgmr.msrb.gmra.mxu2 %vm275_vm1, %v3613_v24  ;;  %3194 = vmatmul.msk.bf16.vlgmr.msrb.gmra.mxu3 %vm275_vm1, %v3616_v25 }
 0x106   : > { %1695 = vmatpush.bf16.msrb.mxu2 %v3588_v1  ;;  %1721 = vmatpush.bf16.msrb.mxu3 %v3588_v1 }
 0x107   : > { %v898_v53 = vpop.f32.mrf.mxu0  ;;  %v914_v38 = vpop.f32.mrf.mxu1 }
 0x108   : > { %v928_v29 = vpop.f32.mrf.mxu2  ;;  %v944_v14 = vpop.f32.mrf.mxu3 }
 0x109   : > { %v950_v36 = vadd.f32 %v928_v29, %v874_v6  ;;  %v951_v37 = vadd.f32 %v944_v14, %v875_v19  ;;  %v1625_v6 = vpack.c.b16 %v1624_v15, %v1624_v15  ;;  %v1651_v19 = vpack.c.b16 %v1650_v35, %v1650_v35 }
 0x10a   : > { %v1679_v15 = vshrl.u32 %v1677_v27, 16  ;;  %v1683_v35 = vrot.slane %v1681_v39, 1 }
 0x10b   : > { %v1627_v40 = vshrl.u32 %v1625_v6, 16 }
 0x10f   : > { %v982_v5 = vpop.f32.mrf.mxu0  ;;  %v1008_v22 = vpop.f32.mrf.mxu1 }
 0x110   : > { %v930_v42 = vpop.f32.mrf.mxu2  ;;  %v946_v50 = vpop.f32.mrf.mxu3  ;;  %v3750_v0 = vadd.f32 %v982_v5, %v948_v30  ;;  %v3752_v26 = vadd.f32 %v1008_v22, %v949_v51  ;;  %v1629_v30 = vshll.u32 %v1625_v6, 16  ;;  %v1655_v51 = vshll.u32 %v1651_v19, 16 }
 0x111   : > { %v1653_v42 = vshrl.u32 %v1651_v19, 16  ;;  %v1705_v5 = vshrl.u32 %v1703_v28, 16  ;;  %v1709_v22 = vrot.slane %v1707_v54, 1 }
 0x112   : > { %3195 = vmatmul.msk.bf16.vlgmr.msra.gmra.mxu0 %vm275_vm1, %v3630_v48  ;;  %3196 = vmatmul.msk.bf16.vlgmr.msra.gmra.mxu1 %vm275_vm1, %v3632_v49  ;;  %v1631_v41 = vrot.slane %v1629_v30, 1  ;;  %v1657_v50 = vrot.slane %v1655_v51, 1 }
 0x113   : > { %1746 = vmatpush.bf16.msra.mxu0 %v3370_v8  ;;  %1759 = vmatpush.bf16.msra.mxu1 %v3370_v8 }
 0x114   : > { %v3770_v34 = vor.u32 %v1631_v41, %v1627_v40 }
 0x115   : > { %3197 = vmatmul.msk.bf16.vlgmr.msra.gmra.mxu2 %vm275_vm1, %v3634_v3  ;;  %3198 = vmatmul.msk.bf16.vlgmr.msra.gmra.mxu3 %vm275_vm1, %v3636_v4 }
 0x116   : > { %1772 = vmatpush.bf16.msra.mxu2 %v3370_v8  ;;  %1785 = vmatpush.bf16.msra.mxu3 %v3370_v8 }
 0x117   : > { %v984_v53 = vpop.f32.mrf.mxu0  ;;  %v1010_v38 = vpop.f32.mrf.mxu1 }
 0x118   : > { %v1034_v32 = vpop.f32.mrf.mxu2  ;;  %v1060_v52 = vpop.f32.mrf.mxu3  ;;  %v3776_v53 = vor.u32 %v1709_v22, %v1705_v5 }
 0x119   : > { %v3766_v29 = vadd.f32 %v1034_v32, %v950_v36  ;;  %v3768_v14 = vadd.f32 %v1060_v52, %v951_v37  ;;  %v3772_v36 = vor.u32 %v1657_v50, %v1653_v42  ;;  %v3774_v52 = vor.u32 %v1683_v35, %v1679_v15 }
 0x11f   : > { %v1088_v37 = vpop.f32.mrf.mxu0  ;;  %v1101_v32 = vpop.f32.mrf.mxu1 }
 0x120   : > { %v1036_v12 = vpop.f32.mrf.mxu2  ;;  %v1062_v13 = vpop.f32.mrf.mxu3 }
 0x122   : > { %3199 = vmatmul.msk.bf16.vlgmr.msrb.gmra.mxu0 %vm275_vm1, %v3770_v34  ;;  %3200 = vmatmul.msk.bf16.vlgmr.msrb.gmra.mxu1 %vm275_vm1, %v3772_v36 }
 0x123   : > { %1798 = vmatpush.bf16.msrb.mxu0 %v3376_v10  ;;  %1811 = vmatpush.bf16.msrb.mxu1 %v3376_v10 }
 0x125   : > { %3201 = vmatmul.msk.bf16.vlgmr.msrb.gmra.mxu2 %vm275_vm1, %v3774_v52  ;;  %3202 = vmatmul.msk.bf16.vlgmr.msrb.gmra.mxu3 %vm275_vm1, %v3776_v53 }
 0x126   : > { %1824 = vmatpush.bf16.msrb.mxu2 %v3376_v10  ;;  %1837 = vmatpush.bf16.msrb.mxu3 %v3376_v10 }
 0x127   : > { %v1090_v27 = vpop.f32.mrf.mxu0  ;;  %v1103_v28 = vpop.f32.mrf.mxu1 }
 0x128   : > { %v1114_v6 = vpop.f32.mrf.mxu2  ;;  %v1127_v19 = vpop.f32.mrf.mxu3 }
 0x12f   : > { %v1140_v38 = vpop.f32.mrf.mxu0  ;;  %v1153_v39 = vpop.f32.mrf.mxu1 }
 0x130   : > { %v1116_v30 = vpop.f32.mrf.mxu2  ;;  %v1129_v51 = vpop.f32.mrf.mxu3  ;;  %v1141_v54 = vadd.f32 %v1140_v38, %v1088_v37  ;;  %v1154_v40 = vadd.f32 %v1153_v39, %v1101_v32 }
 0x132   : > { %3203 = vmatmul.msk.bf16.vlgmr.msra.gmra.mxu0 %vm275_vm1, %v3514_v16  ;;  %3204 = vmatmul.msk.bf16.vlgmr.msra.gmra.mxu1 %vm275_vm1, %v3517_v17 }
 0x133   : > { %1850 = vmatpush.bf16.msra.mxu0 %v3388_v11  ;;  %1863 = vmatpush.bf16.msra.mxu1 %v3388_v11 }
 0x135   : > { %3205 = vmatmul.msk.bf16.vlgmr.msra.gmra.mxu2 %vm275_vm1, %v3520_v20  ;;  %3206 = vmatmul.msk.bf16.vlgmr.msra.gmra.mxu3 %vm275_vm1, %v3523_v21 }
 0x136   : > { %1876 = vmatpush.bf16.msra.mxu2 %v3388_v11  ;;  %1889 = vmatpush.bf16.msra.mxu3 %v3388_v11 }
 0x137   : > { %v1142_v15 = vpop.f32.mrf.mxu0  ;;  %v1155_v17 = vpop.f32.mrf.mxu1 }
 0x138   : > { %v1166_v41 = vpop.f32.mrf.mxu2  ;;  %v1179_v42 = vpop.f32.mrf.mxu3 }
 0x139   : > { %v1167_v16 = vadd.f32 %v1166_v41, %v1114_v6  ;;  %v1180_v50 = vadd.f32 %v1179_v42, %v1127_v19 }
 0x13f   : > { %v1205_v20 = vpop.f32.mrf.mxu0  ;;  %v1231_v22 = vpop.f32.mrf.mxu1 }
 0x140   : > { %v1168_v35 = vpop.f32.mrf.mxu2  ;;  %v1181_v5 = vpop.f32.mrf.mxu3  ;;  %v1287_v12 = vadd.f32 %v1205_v20, %v1141_v54  ;;  %v1288_v21 = vadd.f32 %v1231_v22, %v1154_v40 }
 0x141   : > { %v4090_v5 = vld [vmem:[#allocation2_spill] sm:$0xff] }
 0x142   : > { %3207 = vmatmul.msk.bf16.vlgmr.msrb.gmra.mxu0 %vm275_vm1, %v3477_v59  ;;  %3208 = vmatmul.msk.bf16.vlgmr.msrb.gmra.mxu1 %vm275_vm1, %v3480_v60 }
 0x143   : > { %1906 = vmatpush.bf16.msrb.mxu0 %v3431_v31  ;;  %1919 = vmatpush.bf16.msrb.mxu1 %v3431_v31 }
 0x145   : > { %3209 = vmatmul.msk.bf16.vlgmr.msrb.gmra.mxu2 %vm275_vm1, %v3483_v61  ;;  %3210 = vmatmul.msk.bf16.vlgmr.msrb.gmra.mxu3 %vm275_vm1, %v3486_v62 }
 0x146   : > { %1932 = vmatpush.bf16.msrb.mxu2 %v3431_v31  ;;  %1945 = vmatpush.bf16.msrb.mxu3 %v3431_v31 }
 0x147   : > { %v1207_v6 = vpop.f32.mrf.mxu0  ;;  %v1233_v60 = vpop.f32.mrf.mxu1 }
 0x148   : > { %v1257_v13 = vpop.f32.mrf.mxu2  ;;  %v1283_v37 = vpop.f32.mrf.mxu3 }
 0x149   : > { %v1289_v59 = vadd.f32 %v1257_v13, %v1167_v16  ;;  %v1290_v32 = vadd.f32 %v1283_v37, %v1180_v50 }
 0x14f   : > { %v1300_v61 = vpop.f32.mrf.mxu0  ;;  %v1313_v28 = vpop.f32.mrf.mxu1 }
 0x150   : > { %v1259_v19 = vpop.f32.mrf.mxu2  ;;  %v1285_v27 = vpop.f32.mrf.mxu3  ;;  %v1343_v30 = vadd.f32 %v1300_v61, %v1287_v12  ;;  %v1344_v62 = vadd.f32 %v1313_v28, %v1288_v21 }
 0x152   : > { %3211 = vmatmul.msk.bf16.vlgmr.msra.gmra.mxu0 %vm275_vm1, %v3546_v43  ;;  %3212 = vmatmul.msk.bf16.vlgmr.msra.gmra.mxu1 %vm275_vm1, %v3548_v44 }
 0x153   : > { %1962 = vmatpush.bf16.msra.mxu0 %v3456_v55  ;;  %1975 = vmatpush.bf16.msra.mxu1 %v3456_v55 }
 0x155   : > { %3213 = vmatmul.msk.bf16.vlgmr.msra.gmra.mxu2 %vm275_vm1, %v3550_v45  ;;  %3214 = vmatmul.msk.bf16.vlgmr.msra.gmra.mxu3 %vm275_vm1, %v3552_v46 }
 0x156   : > { %1988 = vmatpush.bf16.msra.mxu2 %v3456_v55  ;;  %2001 = vmatpush.bf16.msra.mxu3 %v3456_v55 }
 0x157   : > { %v1302_v40 = vpop.f32.mrf.mxu0  ;;  %v1315_v41 = vpop.f32.mrf.mxu1 }
 0x158   : > { %v1326_v51 = vpop.f32.mrf.mxu2  ;;  %v1339_v38 = vpop.f32.mrf.mxu3 }
 0x159   : > { %v1345_v39 = vadd.f32 %v1326_v51, %v1289_v59  ;;  %v1346_v54 = vadd.f32 %v1339_v38, %v1290_v32 }
 0x15f   : > { %v1356_v50 = vpop.f32.mrf.mxu0  ;;  %v1369_v15 = vpop.f32.mrf.mxu1 }
 0x160   : > { %v1328_v42 = vpop.f32.mrf.mxu2  ;;  %v1341_v16 = vpop.f32.mrf.mxu3  ;;  %v1399_v17 = vadd.f32 %v1356_v50, %v1343_v30  ;;  %v1400_v35 = vadd.f32 %v1369_v15, %v1344_v62 }
 0x162   : > { %3215 = vmatmul.msk.bf16.vlgmr.msrb.gmra.mxu0 %vm275_vm1, %v3576_v56  ;;  %3216 = vmatmul.msk.bf16.vlgmr.msrb.gmra.mxu1 %vm275_vm1, %v3579_v57 }
 0x163   : > { %2018 = vmatpush.bf16.msrb.mxu0 %v3489_v63  ;;  %2031 = vmatpush.bf16.msrb.mxu1 %v3489_v63 }
 0x165   : > { %3217 = vmatmul.msk.bf16.vlgmr.msrb.gmra.mxu2 %vm275_vm1, %v3582_v58  ;;  %3218 = vmatmul.msk.bf16.vlgmr.msrb.gmra.mxu3 %vm275_vm1, %v4090_v5  ;;  %v3080_v5 = vld [vmem:[%s3383_s29 + $0x30] sm:$0x3] }
 0x166   : > { %2044 = vmatpush.bf16.msrb.mxu2 %v3489_v63  ;;  %2057 = vmatpush.bf16.msrb.mxu3 %v3489_v63 }
 0x167   : > { %v1358_v21 = vpop.f32.mrf.mxu0  ;;  %v1371_v57 = vpop.f32.mrf.mxu1 }
 0x168   : > { %v1382_v20 = vpop.f32.mrf.mxu2  ;;  %v1395_v22 = vpop.f32.mrf.mxu3 }
 0x169   : > { %v1401_v56 = vadd.f32 %v1382_v20, %v1345_v39  ;;  %v1402_v12 = vadd.f32 %v1395_v22, %v1346_v54 }
 0x16f   : > { %v1425_v58 = vpop.f32.mrf.mxu0  ;;  %v1451_v59 = vpop.f32.mrf.mxu1 }
 0x170   : > { %v1384_v13 = vpop.f32.mrf.mxu2  ;;  %v1397_v37 = vpop.f32.mrf.mxu3  ;;  %v1507_v32 = vadd.f32 %v1425_v58, %v1399_v17  ;;  %v1508_v6 = vadd.f32 %v1451_v59, %v1400_v35  ;;  %v3079_v35 = vld [vmem:[%s3383_s29 + $0x2c] sm:$0x3] }
 0x172   : > { %3219 = vmatmul.msk.bf16.vlgmr.msra.gmra.mxu0 %vm275_vm1, %v3607_v9  ;;  %3220 = vmatmul.msk.bf16.vlgmr.msra.gmra.mxu1 %vm275_vm1, %v3610_v18 }
 0x173   : > { %2077 = vmatpush.bf16.msra.mxu0 %v3526_v23  ;;  %2093 = vmatpush.bf16.msra.mxu1 %v3526_v23 }
 0x175   : > { %3221 = vmatmul.msk.bf16.vlgmr.msra.gmra.mxu2 %vm275_vm1, %v3613_v24  ;;  %3222 = vmatmul.msk.bf16.vlgmr.msra.gmra.mxu3 %vm275_vm1, %v3616_v25 }
 0x176   : > { %2109 = vmatpush.bf16.msra.mxu2 %v3526_v23  ;;  %2125 = vmatpush.bf16.msra.mxu3 %v3526_v23 }
 0x177   : > { %v1427_v61 = vpop.f32.mrf.mxu0  ;;  %v1453_v18 = vpop.f32.mrf.mxu1 }
 0x178   : > { %v1477_v60 = vpop.f32.mrf.mxu2  ;;  %v1503_v19 = vpop.f32.mrf.mxu3 }
 0x179   : > { %v1509_v9 = vadd.f32 %v1477_v60, %v1401_v56  ;;  %v1510_v27 = vadd.f32 %v1503_v19, %v1402_v12  ;;  %v3081_v56 = vld [vmem:[%s3383_s29 + $0x34] sm:$0x3]  ;;  %v3082_v12 = vld [vmem:[%s3383_s29 + $0x38] sm:$0x3]  ;;  %v3088_v60 = vld [vmem:[%s3383_s29 + $0x30] sm:$0x7] }
 0x17a   : > { %v3089_v19 = vld [vmem:[%s3383_s29 + $0x34] sm:$0x7] }
 0x17f   : > { %v1520_v24 = vpop.f32.mrf.mxu0  ;;  %v1533_v62 = vpop.f32.mrf.mxu1 }
 0x180   : > { %v1479_v28 = vpop.f32.mrf.mxu2  ;;  %v1505_v30 = vpop.f32.mrf.mxu3  ;;  %v1563_v51 = vadd.f32 %v1520_v24, %v1507_v32  ;;  %v1564_v25 = vadd.f32 %v1533_v62, %v1508_v6  ;;  %v3877_v32 = vld [vmem:[%s4084_s2] ss:$0 sm:$0xff]  ;;  %v3087_v6 = vld [vmem:[%s3383_s29 + $0x2c] sm:$0x7]  ;;  %v2256_v62 = vunpack.c.l.b16 %v3089_v19 }
 0x181   : > { %v1072_v61 = vadd.f32 %v3877_v32, %v3752_v26  ;;  %v2204_v18 = vunpack.c.l.b16 %v3087_v6  ;;  %v2230_v28 = vunpack.c.l.b16 %v3088_v60 }
 0x182   : > { %3223 = vmatmul.msk.bf16.vlgmr.msrb.gmra.mxu0 %vm275_vm1, %v3630_v48  ;;  %3224 = vmatmul.msk.bf16.vlgmr.msrb.gmra.mxu1 %vm275_vm1, %v3632_v49 }
 0x183   : > { %2145 = vmatpush.bf16.msrb.mxu0 %v3555_v47  ;;  %2161 = vmatpush.bf16.msrb.mxu1 %v3555_v47  ;;  %v1076_v26 = vmax.f32 %v1072_v61, 0.0 }
 0x185   : > { %3225 = vmatmul.msk.bf16.vlgmr.msrb.gmra.mxu2 %vm275_vm1, %v3634_v3  ;;  %3226 = vmatmul.msk.bf16.vlgmr.msrb.gmra.mxu3 %vm275_vm1, %v3636_v4 }
 0x186   : > { %2177 = vmatpush.bf16.msrb.mxu2 %v3555_v47  ;;  %2193 = vmatpush.bf16.msrb.mxu3 %v3555_v47 }
 0x187   : > { %v1522_v41 = vpop.f32.mrf.mxu0  ;;  %v1535_v42 = vpop.f32.mrf.mxu1 }
 0x188   : > { %v1546_v38 = vpop.f32.mrf.mxu2  ;;  %v1559_v39 = vpop.f32.mrf.mxu3  ;;  %v3894_v42 = vld [vmem:[%s3383_s29 + $0x48] sm:$0x3] }
 0x189   : > { %v1565_v54 = vadd.f32 %v1546_v38, %v1509_v9  ;;  %v1566_v40 = vadd.f32 %v1559_v39, %v1510_v27  ;;  %v3090_v9 = vld [vmem:[%s3383_s29 + $0x38] sm:$0x7]  ;;  %v1071_v27 = vadd.f32 %v3877_v32, %v3750_v0  ;;  %v3888_v38 = vld [vmem:[%s3383_s29 + $0x40] sm:$0x3]  ;;  %v3891_v39 = vld [vmem:[%s3383_s29 + $0x44] sm:$0x3] }
 0x18a   : > { %v3897_v0 = vld [vmem:[%s3383_s29 + $0x4c] sm:$0x3] }
 0x18f   : > { %v1576_v15 = vpop.f32.mrf.mxu0  ;;  %v1589_v17 = vpop.f32.mrf.mxu1 }
 0x190   : > { %v1548_v16 = vpop.f32.mrf.mxu2  ;;  %v1561_v50 = vpop.f32.mrf.mxu3  ;;  %v1619_v20 = vadd.f32 %v1576_v15, %v1563_v51  ;;  %v1620_v22 = vadd.f32 %v1589_v17, %v1564_v25  ;;  %v2231_v15 = vpack.c.b16 %v2230_v28, %v2230_v28 }
 0x191   : > { %v1075_v16 = vmax.f32 %v1071_v27, 0.0  ;;  %v2205_v50 = vpack.c.b16 %v2204_v18, %v2204_v18 }
 0x192   : > { %3227 = vmatmul.msk.bf16.vlgmr.msra.gmra.mxu0 %vm275_vm1, %v3079_v35  ;;  %3228 = vmatmul.msk.bf16.vlgmr.msra.gmra.mxu1 %vm275_vm1, %v3080_v5  ;;  %v2257_v5 = vpack.c.b16 %v2256_v62, %v2256_v62 }
 0x193   : > { %2223 = vmatpush.bf16.msra.mxu0 %v3588_v1  ;;  %2249 = vmatpush.bf16.msra.mxu1 %v3588_v1 }
 0x194   : > { %v2261_v27 = vshll.u32 %v2257_v5, 16 }
 0x195   : > { %3229 = vmatmul.msk.bf16.vlgmr.msra.gmra.mxu2 %vm275_vm1, %v3081_v56  ;;  %3230 = vmatmul.msk.bf16.vlgmr.msra.gmra.mxu3 %vm275_vm1, %v3082_v12  ;;  %v1074_v56 = vadd.f32 %v3877_v32, %v3768_v14 }
 0x196   : > { %2275 = vmatpush.bf16.msra.mxu2 %v3588_v1  ;;  %2301 = vmatpush.bf16.msra.mxu3 %v3588_v1 }
 0x197   : > { %v1578_v58 = vpop.f32.mrf.mxu0  ;;  %v1591_v59 = vpop.f32.mrf.mxu1  ;;  %v1078_v62 = vmax.f32 %v1074_v56, 0.0 }
 0x198   : > { %v1602_v21 = vpop.f32.mrf.mxu2  ;;  %v1615_v57 = vpop.f32.mrf.mxu3  ;;  %v2876_v58 = vmul.f32 %v1076_v26, %v1076_v26  ;;  %v2209_v59 = vshll.u32 %v2205_v50, 16 }
 0x199   : > { %v1621_v13 = vadd.f32 %v1602_v21, %v1565_v54  ;;  %v1622_v37 = vadd.f32 %v1615_v57, %v1566_v40  ;;  %v2282_v54 = vunpack.c.l.b16 %v3090_v9  ;;  %v2875_v57 = vmul.f32 %v1075_v16, %v1075_v16 }
 0x19a   : > { %v2235_v9 = vshll.u32 %v2231_v15, 16  ;;  %v2233_v16 = vshrl.u32 %v2231_v15, 16  ;;  %v2878_v56 = vmul.f32 %v1078_v62, %v1078_v62 }
 0x19c   : > { %v2237_v26 = vrot.slane %v2235_v9, 1 }
 0x19f   : > { %v1645_v51 = vpop.f32.mrf.mxu0  ;;  %v1671_v25 = vpop.f32.mrf.mxu1 }
 0x1a0   : > { %v1604_v30 = vpop.f32.mrf.mxu2  ;;  %v1617_v24 = vpop.f32.mrf.mxu3  ;;  %v1727_v40 = vadd.f32 %v1645_v51, %v1619_v20  ;;  %v1728_v41 = vadd.f32 %v1671_v25, %v1620_v22  ;;  %v2283_v20 = vpack.c.b16 %v2282_v54, %v2282_v54  ;;  %v1073_v22 = vadd.f32 %v3877_v32, %v3766_v29 }
 0x1a2   : > { %v1731_v17 = vadd.f32 %v3877_v32, %v1727_v40  ;;  %v1732_v35 = vadd.f32 %v3877_v32, %v1728_v41  ;;  %3231 = vmatmul.msk.bf16.vlgmr.msrb.gmra.mxu0 %vm275_vm1, %v3888_v38  ;;  %3232 = vmatmul.msk.bf16.vlgmr.msrb.gmra.mxu1 %vm275_vm1, %v3891_v39  ;;  %v2287_v30 = vshll.u32 %v2283_v20, 16  ;;  %v1077_v24 = vmax.f32 %v1073_v22, 0.0 }
 0x1a3   : > { %2326 = vmatpush.bf16.msrb.mxu0 %v3370_v8  ;;  %2339 = vmatpush.bf16.msrb.mxu1 %v3370_v8  ;;  %v2207_v40 = vshrl.u32 %v2205_v50, 16  ;;  %v2211_v41 = vrot.slane %v2209_v59, 1 }
 0x1a4   : > { %v1735_v12 = vmax.f32 %v1731_v17, 0.0  ;;  %v1736_v21 = vmax.f32 %v1732_v35, 0.0  ;;  %v2259_v17 = vshrl.u32 %v2257_v5, 16  ;;  %v2877_v22 = vmul.f32 %v1077_v24, %v1077_v24 }
 0x1a5   : > { %3233 = vmatmul.msk.bf16.vlgmr.msrb.gmra.mxu2 %vm275_vm1, %v3894_v42  ;;  %3234 = vmatmul.msk.bf16.vlgmr.msrb.gmra.mxu3 %vm275_vm1, %v3897_v0 }
 0x1a6   : > { %2352 = vmatpush.bf16.msrb.mxu2 %v3370_v8  ;;  %2365 = vmatpush.bf16.msrb.mxu3 %v3370_v8  ;;  %v2879_v6 = vmul.f32 %v1735_v12, %v1735_v12  ;;  %v2880_v60 = vmul.f32 %v1736_v21, %v1736_v21  ;;  %v2285_v12 = vshrl.u32 %v2283_v20, 16  ;;  %v2289_v21 = vrot.slane %v2287_v30, 1 }
 0x1a7   : > { %v1647_v18 = vpop.f32.mrf.mxu0  ;;  %v1673_v28 = vpop.f32.mrf.mxu1 }
 0x1a8   : > { %v1697_v19 = vpop.f32.mrf.mxu2  ;;  %v1723_v29 = vpop.f32.mrf.mxu3  ;;  %v3917_v51 = vadd.f32 %v2879_v6, %v2875_v57  ;;  %v3919_v25 = vadd.f32 %v2880_v60, %v2876_v58  ;;  %v3933_v20 = vor.u32 %v2289_v21, %v2285_v12  ;;  %v3306_v12 = vld [vmem:[%s3383_s29 + $0x40] sm:$0x3]  ;;  %v3308_v21 = vld [vmem:[%s3383_s29 + $0x48] sm:$0x3] }
 0x1a9   : > { %v1729_v14 = vadd.f32 %v1697_v19, %v1621_v13  ;;  %v1730_v61 = vadd.f32 %v1723_v29, %v1622_v37  ;;  %v2263_v13 = vrot.slane %v2261_v27, 1  ;;  %v3923_v19 = vor.u32 %v2211_v41, %v2207_v40 }
 0x1aa   : > { %v3925_v29 = vor.u32 %v2237_v26, %v2233_v16 }
 0x1ab   : > { %v1733_v54 = vadd.f32 %v3877_v32, %v1729_v14  ;;  %v1734_v8 = vadd.f32 %v3877_v32, %v1730_v61  ;;  %v3931_v9 = vor.u32 %v2263_v13, %v2259_v17 }
 0x1ad   : > { %v1737_v37 = vmax.f32 %v1733_v54, 0.0  ;;  %v1738_v35 = vmax.f32 %v1734_v8, 0.0 }
 0x1af   : > { %v2881_v57 = vmul.f32 %v1737_v37, %v1737_v37  ;;  %v2882_v6 = vmul.f32 %v1738_v35, %v1738_v35  ;;  %v1748_v5 = vpop.f32.mrf.mxu0  ;;  %v1761_v59 = vpop.f32.mrf.mxu1  ;;  %v3305_v35 = vld [vmem:[%s3383_s29 + $0x3c] sm:$0x3] }
 0x1b0   : > { %v1699_v58 = vpop.f32.mrf.mxu2  ;;  %v1725_v60 = vpop.f32.mrf.mxu3 }
 0x1b1   : > { %v3927_v50 = vadd.f32 %v2881_v57, %v2877_v22  ;;  %v3929_v15 = vadd.f32 %v2882_v6, %v2878_v56 }
 0x1b2   : > { %3235 = vmatmul.msk.bf16.vlgmr.msra.gmra.mxu0 %vm275_vm1, %v3923_v19  ;;  %3236 = vmatmul.msk.bf16.vlgmr.msra.gmra.mxu1 %vm275_vm1, %v3925_v29 }
 0x1b3   : > { %2378 = vmatpush.bf16.msra.mxu0 %v3376_v10  ;;  %2391 = vmatpush.bf16.msra.mxu1 %v3376_v10 }
 0x1b5   : > { %3237 = vmatmul.msk.bf16.vlgmr.msra.gmra.mxu2 %vm275_vm1, %v3931_v9  ;;  %3238 = vmatmul.msk.bf16.vlgmr.msra.gmra.mxu3 %vm275_vm1, %v3933_v20 }
 0x1b6   : > { %2404 = vmatpush.bf16.msra.mxu2 %v3376_v10  ;;  %2417 = vmatpush.bf16.msra.mxu3 %v3376_v10 }
 0x1b7   : > { %v1750_v61 = vpop.f32.mrf.mxu0  ;;  %v1763_v18 = vpop.f32.mrf.mxu1 }
 0x1b8   : > { %v1774_v27 = vpop.f32.mrf.mxu2  ;;  %v1787_v14 = vpop.f32.mrf.mxu3 }
 0x1bf   : > { %v1800_v24 = vpop.f32.mrf.mxu0  ;;  %v1813_v62 = vpop.f32.mrf.mxu1 }
 0x1c0   : > { %v1776_v28 = vpop.f32.mrf.mxu2  ;;  %v1789_v30 = vpop.f32.mrf.mxu3  ;;  %v1801_v54 = vadd.f32 %v1800_v24, %v1748_v5  ;;  %v1814_v8 = vadd.f32 %v1813_v62, %v1761_v59 }
 0x1c2   : > { %3239 = vmatmul.msk.bf16.vlgmr.msrb.gmra.mxu0 %vm275_vm1, %v3546_v43  ;;  %3240 = vmatmul.msk.bf16.vlgmr.msrb.gmra.mxu1 %vm275_vm1, %v3548_v44 }
 0x1c3   : > { %2430 = vmatpush.bf16.msrb.mxu0 %v3388_v11  ;;  %2443 = vmatpush.bf16.msrb.mxu1 %v3388_v11 }
 0x1c5   : > { %3241 = vmatmul.msk.bf16.vlgmr.msrb.gmra.mxu2 %vm275_vm1, %v3550_v45  ;;  %3242 = vmatmul.msk.bf16.vlgmr.msrb.gmra.mxu3 %vm275_vm1, %v3552_v46 }
 0x1c6   : > { %2456 = vmatpush.bf16.msrb.mxu2 %v3388_v11  ;;  %2469 = vmatpush.bf16.msrb.mxu3 %v3388_v11  ;;  %v3307_v11 = vld [vmem:[%s3383_s29 + $0x44] sm:$0x3] }
 0x1c7   : > { %v1802_v45 = vpop.f32.mrf.mxu0  ;;  %v1815_v41 = vpop.f32.mrf.mxu1 }
 0x1c8   : > { %v1826_v10 = vpop.f32.mrf.mxu2  ;;  %v1839_v43 = vpop.f32.mrf.mxu3  ;;  %v3310_v45 = vld [vmem:[%s3383_s29 + $0x1c] sm:$0x3]  ;;  %v3312_v41 = vld [vmem:[%s3383_s29 + $0x24] sm:$0x3] }
 0x1c9   : > { %v1827_v44 = vadd.f32 %v1826_v10, %v1774_v27  ;;  %v1840_v40 = vadd.f32 %v1839_v43, %v1787_v14 }
 0x1cf   : > { %v1852_v26 = vpop.f32.mrf.mxu0  ;;  %v1865_v17 = vpop.f32.mrf.mxu1 }
 0x1d0   : > { %v1828_v16 = vpop.f32.mrf.mxu2  ;;  %v1841_v46 = vpop.f32.mrf.mxu3  ;;  %v1895_v13 = vadd.f32 %v1852_v26, %v1801_v54  ;;  %v1896_v37 = vadd.f32 %v1865_v17, %v1814_v8 }
 0x1d2   : > { %3243 = vmatmul.msk.bf16.vlgmr.msra.gmra.mxu0 %vm275_vm1, %v3305_v35  ;;  %3244 = vmatmul.msk.bf16.vlgmr.msra.gmra.mxu1 %vm275_vm1, %v3306_v12 }
 0x1d3   : > { %2486 = vmatpush.bf16.msra.mxu0 %v3431_v31  ;;  %2499 = vmatpush.bf16.msra.mxu1 %v3431_v31 }
 0x1d5   : > { %3245 = vmatmul.msk.bf16.vlgmr.msra.gmra.mxu2 %vm275_vm1, %v3307_v11  ;;  %3246 = vmatmul.msk.bf16.vlgmr.msra.gmra.mxu3 %vm275_vm1, %v3308_v21 }
 0x1d6   : > { %2512 = vmatpush.bf16.msra.mxu2 %v3431_v31  ;;  %2525 = vmatpush.bf16.msra.mxu3 %v3431_v31  ;;  %v4091_v31 = vld [vmem:[#allocation3_spill] sm:$0xff] }
 0x1d7   : > { %v1854_v58 = vpop.f32.mrf.mxu0  ;;  %v1867_v60 = vpop.f32.mrf.mxu1 }
 0x1d8   : > { %v1878_v22 = vpop.f32.mrf.mxu2  ;;  %v1891_v56 = vpop.f32.mrf.mxu3 }
 0x1d9   : > { %v1897_v57 = vadd.f32 %v1878_v22, %v1827_v44  ;;  %v1898_v6 = vadd.f32 %v1891_v56, %v1840_v40  ;;  %v3309_v40 = vld [vmem:[%s3383_s29 + $0x18] sm:$0x3] }
 0x1df   : > { %v1908_v27 = vpop.f32.mrf.mxu0  ;;  %v1921_v14 = vpop.f32.mrf.mxu1 }
 0x1e0   : > { %v1880_v5 = vpop.f32.mrf.mxu2  ;;  %v1893_v59 = vpop.f32.mrf.mxu3  ;;  %v1951_v61 = vadd.f32 %v1908_v27, %v1895_v13  ;;  %v1952_v18 = vadd.f32 %v1921_v14, %v1896_v37 }
 0x1e2   : > { %3247 = vmatmul.msk.bf16.vlgmr.msrb.gmra.mxu0 %vm275_vm1, %v3714_v2  ;;  %3248 = vmatmul.msk.bf16.vlgmr.msrb.gmra.mxu1 %vm275_vm1, %v3716_v7 }
 0x1e3   : > { %2542 = vmatpush.bf16.msrb.mxu0 %v3456_v55  ;;  %2555 = vmatpush.bf16.msrb.mxu1 %v3456_v55 }
 0x1e5   : > { %3249 = vmatmul.msk.bf16.vlgmr.msrb.gmra.mxu2 %vm275_vm1, %v3718_v33  ;;  %3250 = vmatmul.msk.bf16.vlgmr.msrb.gmra.mxu3 %vm275_vm1, %v4091_v31 }
 0x1e6   : > { %2568 = vmatpush.bf16.msrb.mxu2 %v3456_v55  ;;  %2581 = vmatpush.bf16.msrb.mxu3 %v3456_v55  ;;  %v3311_v55 = vld [vmem:[%s3383_s29 + $0x20] sm:$0x3] }
 0x1e7   : > { %v1910_v33 = vpop.f32.mrf.mxu0  ;;  %v1923_v24 = vpop.f32.mrf.mxu1 }
 0x1e8   : > { %v1934_v2 = vpop.f32.mrf.mxu2  ;;  %v1947_v28 = vpop.f32.mrf.mxu3 }
 0x1e9   : > { %v1953_v7 = vadd.f32 %v1934_v2, %v1897_v57  ;;  %v1954_v30 = vadd.f32 %v1947_v28, %v1898_v6 }
 0x1ef   : > { %v1964_v8 = vpop.f32.mrf.mxu0  ;;  %v1977_v10 = vpop.f32.mrf.mxu1 }
 0x1f0   : > { %v1936_v62 = vpop.f32.mrf.mxu2  ;;  %v1949_v54 = vpop.f32.mrf.mxu3  ;;  %v2007_v43 = vadd.f32 %v1964_v8, %v1951_v61  ;;  %v2008_v44 = vadd.f32 %v1977_v10, %v1952_v18  ;;  %v3094_v8 = vld [vmem:[%s3383_s29 + $0x4c] sm:$0x7] }
 0x1f1   : > { %v3091_v62 = vld [vmem:[%s3383_s29 + $0x40] sm:$0x7]  ;;  %v3092_v54 = vld [vmem:[%s3383_s29 + $0x44] sm:$0x7] }
 0x1f2   : > { %3251 = vmatmul.msk.bf16.vlgmr.msra.gmra.mxu0 %vm275_vm1, %v3309_v40  ;;  %3252 = vmatmul.msk.bf16.vlgmr.msra.gmra.mxu1 %vm275_vm1, %v3310_v45  ;;  %v2760_v10 = vunpack.c.l.b16 %v3091_v62 }
 0x1f3   : > { %2598 = vmatpush.bf16.msra.mxu0 %v3489_v63  ;;  %2611 = vmatpush.bf16.msra.mxu1 %v3489_v63 }
 0x1f5   : > { %3253 = vmatmul.msk.bf16.vlgmr.msra.gmra.mxu2 %vm275_vm1, %v3311_v55  ;;  %3254 = vmatmul.msk.bf16.vlgmr.msra.gmra.mxu3 %vm275_vm1, %v3312_v41  ;;  %v2838_v41 = vunpack.c.l.b16 %v3094_v8 }
 0x1f6   : > { %2624 = vmatpush.bf16.msra.mxu2 %v3489_v63  ;;  %2637 = vmatpush.bf16.msra.mxu3 %v3489_v63 }
 0x1f7   : > { %v1966_v13 = vpop.f32.mrf.mxu0  ;;  %v1979_v37 = vpop.f32.mrf.mxu1 }
 0x1f8   : > { %v1990_v16 = vpop.f32.mrf.mxu2  ;;  %v2003_v46 = vpop.f32.mrf.mxu3 }
 0x1f9   : > { %v2009_v26 = vadd.f32 %v1990_v16, %v1953_v7  ;;  %v2010_v17 = vadd.f32 %v2003_v46, %v1954_v30  ;;  %v2761_v46 = vpack.c.b16 %v2760_v10, %v2760_v10 }
 0x1ff   : > { %v2020_v11 = vpop.f32.mrf.mxu0  ;;  %v2033_v21 = vpop.f32.mrf.mxu1 }
 0x200   : > { %v1992_v35 = vpop.f32.mrf.mxu2  ;;  %v2005_v12 = vpop.f32.mrf.mxu3  ;;  %v2063_v22 = vadd.f32 %v2020_v11, %v2007_v43  ;;  %v2064_v56 = vadd.f32 %v2033_v21, %v2008_v44  ;;  %v2765_v21 = vshll.u32 %v2761_v46, 16 }
 0x201   : > { %v2839_v35 = vpack.c.b16 %v2838_v41, %v2838_v41 }
 0x202   : > { %3255 = vmatmul.msk.bf16.vlgmr.msrb.gmra.mxu0 %vm275_vm1, %v3630_v48  ;;  %3256 = vmatmul.msk.bf16.vlgmr.msrb.gmra.mxu1 %vm275_vm1, %v3632_v49 }
 0x203   : > { %2654 = vmatpush.bf16.msrb.mxu0 %v3526_v23  ;;  %2667 = vmatpush.bf16.msrb.mxu1 %v3526_v23 }
 0x205   : > { %3257 = vmatmul.msk.bf16.vlgmr.msrb.gmra.mxu2 %vm275_vm1, %v3634_v3  ;;  %3258 = vmatmul.msk.bf16.vlgmr.msrb.gmra.mxu3 %vm275_vm1, %v3636_v4 }
 0x206   : > { %2680 = vmatpush.bf16.msrb.mxu2 %v3526_v23  ;;  %2693 = vmatpush.bf16.msrb.mxu3 %v3526_v23 }
 0x207   : > { %v2022_v58 = vpop.f32.mrf.mxu0  ;;  %v2035_v49 = vpop.f32.mrf.mxu1 }
 0x208   : > { %v2046_v63 = vpop.f32.mrf.mxu2  ;;  %v2059_v57 = vpop.f32.mrf.mxu3 }
 0x209   : > { %v2065_v48 = vadd.f32 %v2046_v63, %v2009_v26  ;;  %v2066_v6 = vadd.f32 %v2059_v57, %v2010_v17 }
 0x20f   : > { %v2079_v3 = vpop.f32.mrf.mxu0  ;;  %v2095_v59 = vpop.f32.mrf.mxu1 }
 0x210   : > { %v2048_v60 = vpop.f32.mrf.mxu2  ;;  %v2061_v5 = vpop.f32.mrf.mxu3  ;;  %v2131_v27 = vadd.f32 %v2079_v3, %v2063_v22  ;;  %v2132_v4 = vadd.f32 %v2095_v59, %v2064_v56  ;;  %v2763_v59 = vshrl.u32 %v2761_v46, 16 }
 0x211   : > { %v2843_v60 = vshll.u32 %v2839_v35, 16 }
 0x212   : > { %3259 = vmatmul.msk.bf16.vlgmr.msra.gmra.mxu0 %vm275_vm1, %v3770_v34  ;;  %3260 = vmatmul.msk.bf16.vlgmr.msra.gmra.mxu1 %vm275_vm1, %v3772_v36 }
 0x213   : > { %2710 = vmatpush.bf16.msra.mxu0 %v3555_v47  ;;  %2723 = vmatpush.bf16.msra.mxu1 %v3555_v47 }
 0x215   : > { %3261 = vmatmul.msk.bf16.vlgmr.msra.gmra.mxu2 %vm275_vm1, %v3774_v52  ;;  %3262 = vmatmul.msk.bf16.vlgmr.msra.gmra.mxu3 %vm275_vm1, %v3776_v53 }
 0x216   : > { %2736 = vmatpush.bf16.msra.mxu2 %v3555_v47  ;;  %2749 = vmatpush.bf16.msra.mxu3 %v3555_v47 }
 0x217   : > { %v2081_v18 = vpop.f32.mrf.mxu0  ;;  %v2097_v36 = vpop.f32.mrf.mxu1 }
 0x218   : > { %v2111_v23 = vpop.f32.mrf.mxu2  ;;  %v2127_v14 = vpop.f32.mrf.mxu3  ;;  %v2841_v36 = vshrl.u32 %v2839_v35, 16 }
 0x219   : > { %v2133_v34 = vadd.f32 %v2111_v23, %v2065_v48  ;;  %v2134_v61 = vadd.f32 %v2127_v14, %v2066_v6 }
 0x21f   : > { %v2147_v52 = vpop.f32.mrf.mxu0  ;;  %v2163_v28 = vpop.f32.mrf.mxu1 }
 0x220   : > { %v2113_v31 = vpop.f32.mrf.mxu2  ;;  %v2129_v2 = vpop.f32.mrf.mxu3  ;;  %v2199_v7 = vadd.f32 %v2147_v52, %v2131_v27  ;;  %v2200_v53 = vadd.f32 %v2163_v28, %v2132_v4  ;;  %v2767_v27 = vrot.slane %v2765_v21, 1 }
 0x221   : > { %v2845_v31 = vrot.slane %v2843_v60, 1 }
 0x222   : > { %3263 = vmatmul.msk.bf16.vlgmr.msrb.gmra.mxu0 %vm275_vm1, %v3888_v38  ;;  %3264 = vmatmul.msk.bf16.vlgmr.msrb.gmra.mxu1 %vm275_vm1, %v3891_v39 }
 0x223   : > { %2779 = vmatpush.bf16.msrb.mxu0 %v3588_v1  ;;  %2805 = vmatpush.bf16.msrb.mxu1 %v3588_v1 }
 0x225   : > { %3265 = vmatmul.msk.bf16.vlgmr.msrb.gmra.mxu2 %vm275_vm1, %v3894_v42  ;;  %3266 = vmatmul.msk.bf16.vlgmr.msrb.gmra.mxu3 %vm275_vm1, %v3897_v0  ;;  %v3093_v42 = vld [vmem:[%s3383_s29 + $0x48] sm:$0x7]  ;;  %v2786_v0 = vunpack.c.l.b16 %v3092_v54  ;;  %s3277_s29 = sshll.u32 %s4093_s13, 3 }
 0x226   : > { %2831 = vmatpush.bf16.msrb.mxu2 %v3588_v1  ;;  %2857 = vmatpush.bf16.msrb.mxu3 %v3588_v1  ;;  %v2812_v40 = vunpack.c.l.b16 %v3093_v42  ;;  %s170_s7 = scalar_lea.vmem %s4085_s3, %s3277_s29 }
 0x227   : > { %v2149_v39 = vpop.f32.mrf.mxu0  ;;  %v2165_v24 = vpop.f32.mrf.mxu1  ;;  %v2787_v26 = vpack.c.b16 %v2786_v0, %v2786_v0 }
 0x228   : > { %v2179_v47 = vpop.f32.mrf.mxu2  ;;  %v2195_v38 = vpop.f32.mrf.mxu3  ;;  %v2813_v37 = vpack.c.b16 %v2812_v40, %v2812_v40  ;;  %v2846_v39 = vor.u32 %v2845_v31, %v2841_v36 }
 0x229   : > { %v2201_v30 = vadd.f32 %v2179_v47, %v2133_v34  ;;  %v2202_v33 = vadd.f32 %v2195_v38, %v2134_v61  ;;  %v2791_v48 = vshll.u32 %v2787_v26, 16  ;;  %v2789_v4 = vshrl.u32 %v2787_v26, 16 }
 0x22a   : > { %v2815_v14 = vshrl.u32 %v2813_v37, 16 }
 0x22b   : > { %v2793_v23 = vrot.slane %v2791_v48, 1 }
 0x22f   : > { %v2225_v45 = vpop.f32.mrf.mxu0  ;;  %v2251_v55 = vpop.f32.mrf.mxu1 }
 0x230   : > { %v2181_v43 = vpop.f32.mrf.mxu2  ;;  %v2197_v44 = vpop.f32.mrf.mxu3  ;;  %v2307_v16 = vadd.f32 %v2225_v45, %v2199_v7  ;;  %v2308_v1 = vadd.f32 %v2251_v55, %v2200_v53  ;;  %v2794_v7 = vor.u32 %v2793_v23, %v2789_v4 }
 0x232   : > { %v2311_v17 = vadd.f32 %v3877_v32, %v2307_v16  ;;  %v2312_v13 = vadd.f32 %v3877_v32, %v2308_v1  ;;  %3267 = vmatmul.msk.bf16.vlgmr.msra.gmra.mxu0 %vm275_vm1, %v3923_v19  ;;  %3268 = vmatmul.msk.bf16.vlgmr.msra.gmra.mxu1 %vm275_vm1, %v3925_v29  ;;  %v2817_v19 = vshll.u32 %v2813_v37, 16 }
 0x234   : > { %v2315_v12 = vmax.f32 %v2311_v17, 0.0  ;;  %v2316_v11 = vmax.f32 %v2312_v13, 0.0  ;;  %v2819_v34 = vrot.slane %v2817_v19, 1 }
 0x235   : > { %3269 = vmatmul.msk.bf16.vlgmr.msra.gmra.mxu2 %vm275_vm1, %v3931_v9  ;;  %3270 = vmatmul.msk.bf16.vlgmr.msra.gmra.mxu3 %vm275_vm1, %v3933_v20 }
 0x236   : > { %v2887_v22 = vmul.f32 %v2315_v12, %v2315_v12  ;;  %v2888_v56 = vmul.f32 %v2316_v11, %v2316_v11 }
 0x237   : > { %v2227_v29 = vpop.f32.mrf.mxu0  ;;  %v2253_v49 = vpop.f32.mrf.mxu1 }
 0x238   : > { %v2277_v63 = vpop.f32.mrf.mxu2  ;;  %v2303_v57 = vpop.f32.mrf.mxu3  ;;  %v4046_v9 = vadd.f32 %v2887_v22, %v3917_v51  ;;  %v4049_v20 = vadd.f32 %v2888_v56, %v3919_v25  ;;  %v2768_v25 = vor.u32 %v2767_v27, %v2763_v59 }
 0x239   : > { %v2309_v6 = vadd.f32 %v2277_v63, %v2201_v30  ;;  %v2310_v58 = vadd.f32 %v2303_v57, %v2202_v33  ;;  %v2820_v33 = vor.u32 %v2819_v34, %v2815_v14 }
 0x23b   : > { %v2313_v5 = vadd.f32 %v3877_v32, %v2309_v6  ;;  %v2314_v3 = vadd.f32 %v3877_v32, %v2310_v58 }
 0x23d   : > { %v2317_v61 = vmax.f32 %v2313_v5, 0.0  ;;  %v2318_v18 = vmax.f32 %v2314_v3, 0.0 }
 0x23f   : > { %v2889_v2 = vmul.f32 %v2317_v61, %v2317_v61  ;;  %v2890_v51 = vmul.f32 %v2318_v18, %v2318_v18  ;;  %v2328_v38 = vpop.f32.mrf.mxu0  ;;  %v2341_v30 = vpop.f32.mrf.mxu1 }
 0x240   : > { %v2279_v52 = vpop.f32.mrf.mxu2  ;;  %v2305_v28 = vpop.f32.mrf.mxu3 }
 0x241   : > { %v4054_v53 = vadd.f32 %v2889_v2, %v3927_v50  ;;  %v4057_v47 = vadd.f32 %v2890_v51, %v3929_v15 }
 0x242   : > { %3271 = vmatmul.msk.bf16.vlgmr.msrb.gmra.mxu0 %vm275_vm1, %v2768_v25  ;;  %3272 = vmatmul.msk.bf16.vlgmr.msrb.gmra.mxu1 %vm275_vm1, %v2794_v7 }
 0x245   : > { %3273 = vmatmul.msk.bf16.vlgmr.msrb.gmra.mxu2 %vm275_vm1, %v2820_v33  ;;  %3274 = vmatmul.msk.bf16.vlgmr.msrb.gmra.mxu3 %vm275_vm1, %v2846_v39 }
 0x247   : > { %v2330_v54 = vpop.f32.mrf.mxu0  ;;  %v2343_v50 = vpop.f32.mrf.mxu1 }
 0x248   : > { %v2354_v24 = vpop.f32.mrf.mxu2  ;;  %v2367_v62 = vpop.f32.mrf.mxu3 }
 0x24f   : > { %v2380_v15 = vpop.f32.mrf.mxu0  ;;  %v2393_v10 = vpop.f32.mrf.mxu1 }
 0x250   : > { %v2356_v42 = vpop.f32.mrf.mxu2  ;;  %v2369_v8 = vpop.f32.mrf.mxu3  ;;  %v2381_v0 = vadd.f32 %v2380_v15, %v2328_v38  ;;  %v2394_v43 = vadd.f32 %v2393_v10, %v2341_v30 }
 0x257   : > { %v2382_v41 = vpop.f32.mrf.mxu0  ;;  %v2395_v16 = vpop.f32.mrf.mxu1 }
 0x258   : > { %v2406_v44 = vpop.f32.mrf.mxu2  ;;  %v2419_v40 = vpop.f32.mrf.mxu3 }
 0x259   : > { %v2407_v45 = vadd.f32 %v2406_v44, %v2354_v24  ;;  %v2420_v55 = vadd.f32 %v2419_v40, %v2367_v62 }
 0x25f   : > { %v2432_v26 = vpop.f32.mrf.mxu0  ;;  %v2445_v17 = vpop.f32.mrf.mxu1 }
 0x260   : > { %v2408_v1 = vpop.f32.mrf.mxu2  ;;  %v2421_v46 = vpop.f32.mrf.mxu3  ;;  %v2475_v13 = vadd.f32 %v2432_v26, %v2381_v0  ;;  %v2476_v37 = vadd.f32 %v2445_v17, %v2394_v43 }
 0x267   : > { %v2434_v22 = vpop.f32.mrf.mxu0  ;;  %v2447_v56 = vpop.f32.mrf.mxu1 }
 0x268   : > { %v2458_v35 = vpop.f32.mrf.mxu2  ;;  %v2471_v12 = vpop.f32.mrf.mxu3 }
 0x269   : > { %v2477_v11 = vadd.f32 %v2458_v35, %v2407_v45  ;;  %v2478_v21 = vadd.f32 %v2471_v12, %v2420_v55 }
 0x26f   : > { %v2488_v48 = vpop.f32.mrf.mxu0  ;;  %v2501_v19 = vpop.f32.mrf.mxu1 }
 0x270   : > { %v2460_v63 = vpop.f32.mrf.mxu2  ;;  %v2473_v57 = vpop.f32.mrf.mxu3  ;;  %v2531_v6 = vadd.f32 %v2488_v48, %v2475_v13  ;;  %v2532_v58 = vadd.f32 %v2501_v19, %v2476_v37 }
 0x277   : > { %v2490_v3 = vpop.f32.mrf.mxu0  ;;  %v2503_v59 = vpop.f32.mrf.mxu1 }
 0x278   : > { %v2514_v29 = vpop.f32.mrf.mxu2  ;;  %v2527_v49 = vpop.f32.mrf.mxu3 }
 0x279   : > { %v2533_v60 = vadd.f32 %v2514_v29, %v2477_v11  ;;  %v2534_v5 = vadd.f32 %v2527_v49, %v2478_v21 }
 0x27f   : > { %v2544_v23 = vpop.f32.mrf.mxu0  ;;  %v2557_v14 = vpop.f32.mrf.mxu1 }
 0x280   : > { %v2516_v27 = vpop.f32.mrf.mxu2  ;;  %v2529_v4 = vpop.f32.mrf.mxu3  ;;  %v2587_v55 = vadd.f32 %v2544_v23, %v2531_v6  ;;  %v2588_v41 = vadd.f32 %v2557_v14, %v2532_v58 }
 0x287   : > { %v2546_v18 = vpop.f32.mrf.mxu0  ;;  %v2559_v36 = vpop.f32.mrf.mxu1 }
 0x288   : > { %v2570_v34 = vpop.f32.mrf.mxu2  ;;  %v2583_v61 = vpop.f32.mrf.mxu3 }
 0x289   : > { %v2589_v12 = vadd.f32 %v2570_v34, %v2533_v60  ;;  %v2590_v11 = vadd.f32 %v2583_v61, %v2534_v5 }
 0x28f   : > { %v2600_v51 = vpop.f32.mrf.mxu0  ;;  %v2613_v52 = vpop.f32.mrf.mxu1 }
 0x290   : > { %v2572_v31 = vpop.f32.mrf.mxu2  ;;  %v2585_v2 = vpop.f32.mrf.mxu3  ;;  %v2643_v16 = vadd.f32 %v2600_v51, %v2587_v55  ;;  %v2644_v1 = vadd.f32 %v2613_v52, %v2588_v41 }
 0x297   : > { %v2602_v7 = vpop.f32.mrf.mxu0  ;;  %v2615_v38 = vpop.f32.mrf.mxu1 }
 0x298   : > { %v2626_v28 = vpop.f32.mrf.mxu2  ;;  %v2639_v25 = vpop.f32.mrf.mxu3 }
 0x299   : > { %v2645_v57 = vadd.f32 %v2626_v28, %v2589_v12  ;;  %v2646_v48 = vadd.f32 %v2639_v25, %v2590_v11 }
 0x29f   : > { %v2656_v39 = vpop.f32.mrf.mxu0  ;;  %v2669_v24 = vpop.f32.mrf.mxu1 }
 0x2a0   : > { %v2628_v30 = vpop.f32.mrf.mxu2  ;;  %v2641_v33 = vpop.f32.mrf.mxu3  ;;  %v2699_v46 = vadd.f32 %v2656_v39, %v2643_v16  ;;  %v2700_v26 = vadd.f32 %v2669_v24, %v2644_v1 }
 0x2a7   : > { %v2658_v50 = vpop.f32.mrf.mxu0  ;;  %v2671_v42 = vpop.f32.mrf.mxu1 }
 0x2a8   : > { %v2682_v62 = vpop.f32.mrf.mxu2  ;;  %v2695_v54 = vpop.f32.mrf.mxu3 }
 0x2a9   : > { %v2701_v58 = vadd.f32 %v2682_v62, %v2645_v57  ;;  %v2702_v29 = vadd.f32 %v2695_v54, %v2646_v48 }
 0x2af   : > { %v2712_v10 = vpop.f32.mrf.mxu0  ;;  %v2725_v0 = vpop.f32.mrf.mxu1 }
 0x2b0   : > { %v2684_v8 = vpop.f32.mrf.mxu2  ;;  %v2697_v15 = vpop.f32.mrf.mxu3  ;;  %v2755_v17 = vadd.f32 %v2712_v10, %v2699_v46  ;;  %v2756_v13 = vadd.f32 %v2725_v0, %v2700_v26 }
 0x2b7   : > { %v2714_v40 = vpop.f32.mrf.mxu0  ;;  %v2727_v45 = vpop.f32.mrf.mxu1 }
 0x2b8   : > { %v2738_v43 = vpop.f32.mrf.mxu2  ;;  %v2751_v44 = vpop.f32.mrf.mxu3 }
 0x2b9   : > { %v2757_v59 = vadd.f32 %v2738_v43, %v2701_v58  ;;  %v2758_v27 = vadd.f32 %v2751_v44, %v2702_v29 }
 0x2bf   : > { %v2781_v21 = vpop.f32.mrf.mxu0  ;;  %v2807_v22 = vpop.f32.mrf.mxu1 }
 0x2c0   : > { %v2740_v37 = vpop.f32.mrf.mxu2  ;;  %v2753_v35 = vpop.f32.mrf.mxu3  ;;  %v2863_v56 = vadd.f32 %v2781_v21, %v2755_v17  ;;  %v2864_v63 = vadd.f32 %v2807_v22, %v2756_v13 }
 0x2c2   : > { %v2867_v19 = vadd.f32 %v3877_v32, %v2863_v56  ;;  %v2868_v6 = vadd.f32 %v3877_v32, %v2864_v63 }
 0x2c4   : > { %v2871_v49 = vmax.f32 %v2867_v19, 0.0  ;;  %v2872_v3 = vmax.f32 %v2868_v6, 0.0 }
 0x2c6   : > { %v2895_v4 = vmul.f32 %v2871_v49, %v2871_v49  ;;  %v2896_v23 = vmul.f32 %v2872_v3, %v2872_v3 }
 0x2c7   : > { %v2783_v61 = vpop.f32.mrf.mxu0  ;;  %v2809_v18 = vpop.f32.mrf.mxu1 }
 0x2c8   : > { %v2833_v60 = vpop.f32.mrf.mxu2  ;;  %v2859_v5 = vpop.f32.mrf.mxu3  ;;  %v2899_v36 = vadd.f32 %v2895_v4, %v4046_v9  ;;  %v2900_v31 = vadd.f32 %v2896_v23, %v4049_v20 }
 0x2c9   : > { %v2865_v14 = vadd.f32 %v2833_v60, %v2757_v59  ;;  %v2866_v34 = vadd.f32 %v2859_v5, %v2758_v27 }
 0x2ca   : > { %3297 = vrsqrt.f32 %v2899_v36  ;;  %vm2910_vm2 = vcmp.eq.f32.partialorder %v2899_v36, inf  ;;  %vm2912_vm4 = vcmp.eq.f32.partialorder %v2899_v36, 0.0  ;;  %v2913_v55 = vand.u32 2147483648, %v2899_v36 }
 0x2cb   : > { %v2869_v2 = vadd.f32 %v3877_v32, %v2865_v14  ;;  %v2870_v51 = vadd.f32 %v3877_v32, %v2866_v34  ;;  %3299 = vrsqrt.f32 %v2900_v31  ;;  %vm2922_vm5 = vcmp.eq.f32.partialorder %v2900_v31, inf }
 0x2cc   : > { %v2925_v46 = vand.u32 2147483648, %v2900_v31  ;;  %vm2924_vm6 = vcmp.eq.f32.partialorder %v2900_v31, 0.0 }
 0x2cd   : > { %v2873_v52 = vmax.f32 %v2869_v2, 0.0  ;;  %v2874_v28 = vmax.f32 %v2870_v51, 0.0 }
 0x2cf   : > { %v2897_v25 = vmul.f32 %v2873_v52, %v2873_v52  ;;  %v2898_v7 = vmul.f32 %v2874_v28, %v2874_v28 }
 0x2d0   : > { %v2835_v38 = vpop.f32.mrf.mxu2  ;;  %v2861_v30 = vpop.f32.mrf.mxu3 }
 0x2d1   : > { %v3298_v33 = vpop.eup %3297  ;;  %v2901_v39 = vadd.f32 %v2897_v25, %v4054_v53  ;;  %v2902_v24 = vadd.f32 %v2898_v7, %v4057_v47 }
 0x2d2   : > { %v3300_v9 = vpop.eup %3299  ;;  %v2904_v62 = vmul.f32 %v3298_v33, %v2899_v36 }
 0x2d3   : > { %v2916_v20 = vmul.f32 %v3300_v9, %v2900_v31  ;;  %3301 = vrsqrt.f32 %v2901_v39  ;;  %vm2934_vm7 = vcmp.eq.f32.partialorder %v2901_v39, inf  ;;  %v2937_v48 = vand.u32 2147483648, %v2901_v39 }
 0x2d4   : > { %v2905_v54 = vmul.f32 %v3298_v33, %v2904_v62  ;;  %3303 = vrsqrt.f32 %v2902_v24  ;;  %vm2936_vm8 = vcmp.eq.f32.partialorder %v2901_v39, 0.0  ;;  %vm2946_vm9 = vcmp.eq.f32.partialorder %v2902_v24, inf }
 0x2d5   : > { %v2917_v32 = vmul.f32 %v3300_v9, %v2916_v20  ;;  %v2949_v58 = vand.u32 2147483648, %v2902_v24  ;;  %vm2948_vm10 = vcmp.eq.f32.partialorder %v2902_v24, 0.0 }
 0x2d6   : > { %v2906_v50 = vmul.f32 0.5, %v2905_v54 }
 0x2d7   : > { %v2918_v42 = vmul.f32 0.5, %v2917_v32 }
 0x2d8   : > { %v2907_v8 = vsub.f32 1.5, %v2906_v50 }
 0x2d9   : > { %v3302_v15 = vpop.eup %3301  ;;  %v2919_v10 = vsub.f32 1.5, %v2918_v42 }
 0x2da   : > { %v3304_v0 = vpop.eup %3303  ;;  %v2908_v43 = vmul.f32 %v3298_v33, %v2907_v8  ;;  %v2928_v44 = vmul.f32 %v3302_v15, %v2901_v39 }
 0x2db   : > { %v2920_v40 = vmul.f32 %v3300_v9, %v2919_v10  ;;  %v2940_v53 = vmul.f32 %v3304_v0, %v2902_v24 }
 0x2dc   : > { %v2909_v47 = vmul.f32 %v2908_v43, %v2899_v36  ;;  %v2929_v45 = vmul.f32 %v3302_v15, %v2928_v44 }
 0x2dd   : > { %v2921_v41 = vmul.f32 %v2920_v40, %v2900_v31  ;;  %v2941_v16 = vmul.f32 %v3304_v0, %v2940_v53 }
 0x2de   : > { %v2911_v1 = vsel %vm2910_vm2, %v2899_v36, %v2909_v47  ;;  %v2930_v26 = vmul.f32 0.5, %v2929_v45 }
 0x2df   : > { %v2914_v17 = vsel %vm2912_vm4, %v2913_v55, %v2911_v1  ;;  %v2923_v13 = vsel %vm2922_vm5, %v2900_v31, %v2921_v41  ;;  %v2942_v37 = vmul.f32 0.5, %v2941_v16 }
 0x2e0   : > { %v2951_v35 = vpack.c.bf16 %v2914_v17, %v2914_v17  ;;  %v2926_v12 = vsel %vm2924_vm6, %v2925_v46, %v2923_v13  ;;  %v2931_v11 = vsub.f32 1.5, %v2930_v26 }
 0x2e1   : > { %v2952_v21 = vpack.c.bf16 %v2926_v12, %v2926_v12  ;;  %v2943_v22 = vsub.f32 1.5, %v2942_v37 }
 0x2e2   : > { %2956 = vst.msk [vmem:[%s170_s7] sm:$0x3] %vm2955_vm3, %v2951_v35  ;;  %v2932_v56 = vmul.f32 %v3302_v15, %v2931_v11 }
 0x2e3   : > { %2957 = vst.msk [vmem:[%s170_s7 + $0x2] sm:$0x3] %vm2955_vm3, %v2952_v21  ;;  %v2944_v63 = vmul.f32 %v3304_v0, %v2943_v22 }
 0x2e4   : > { %v2933_v57 = vmul.f32 %v2932_v56, %v2901_v39 }
 0x2e5   : > { %v2945_v19 = vmul.f32 %v2944_v63, %v2902_v24 }
 0x2e6   : > { %v2935_v6 = vsel %vm2934_vm7, %v2901_v39, %v2933_v57 }
 0x2e7   : > { %v2938_v29 = vsel %vm2936_vm8, %v2937_v48, %v2935_v6  ;;  %v2947_v49 = vsel %vm2946_vm9, %v2902_v24, %v2945_v19 }
 0x2e8   : > { %v2953_v3 = vpack.c.bf16 %v2938_v29, %v2938_v29  ;;  %v2950_v59 = vsel %vm2948_vm10, %v2949_v58, %v2947_v49 }
 0x2e9   : > { %v2954_v27 = vpack.c.bf16 %v2950_v59, %v2950_v59 }
 0x2ea   : > { %2958 = vst.msk [vmem:[%s170_s7 + $0x4] sm:$0x3] %vm2955_vm3, %v2953_v3 }
 0x2eb   : > { %2959 = vst.msk [vmem:[%s170_s7 + $0x6] sm:$0x3] %vm2955_vm3, %v2954_v27 }
 0x2ec PF: > { %s13_s12 = sadd.s32 1, %s3319_s12  }
 0x2ed   : > { %p10_p4 = scmp.ge.s32.totalorder %s13_s12, 4  }
 0x2ef   :  { %12 = sbr.rel (!%p10_p4) target bundleno = 1 (0x1), region = 77 }

// kernel: transposed_net_forward.5
= control target key start
LH: loop header
LB: loop body
LE: loop exit
PB: predicated region body
PF: predicated region fallthrough
CT: control target
= control target key end

     0   :  { %s6476_s12 = smov 0   ;;  %s8101_s0 = inlined_call_operand.vmem [shape: bf16[2,36,9,3], index: 0, kind: input, shape index: {}]   ;;  %s8102_s1 = inlined_call_operand.vmem [shape: bf16[9,3,12], index: 1, kind: input, shape index: {}]   ;;  %s8103_s2 = inlined_call_operand.vmem [shape: f32[1,12], index: 2, kind: input, shape index: {}]   ;;  %s8104_s3 = inlined_call_operand.vmem [shape: bf16[2,8,8,12], index: 3, kind: output, shape index: {}]  }
   0x1 LB: > { %s5648_s13 = sadd.s32 4294967295, %s6453_s12   ;;  %p5652_p0 = scmp.ge.s32.totalorder %s6453_s12, 1  ;;  %s6453_s12 = sphi %s6476_s12, %s13_s12  }
   0x2   : > { %p137_p1 = scmp.lt.s32.totalorder %s6453_s12, 3 }
   0x4   : > { %p138_p2 = pnand %p5652_p0, %p137_p1 }
   0x6   : > { %141 = sbr.rel (%p138_p2) target bundleno = 1302 (0x516), region = 32 }
   0xb   : > { %v5656_v0 = vld [vmem:[%s8102_s1 + $0x2] sm:$0x3]  ;;  %vm329_vm0 = vcmask 1040384   ;;  %vm330_vm1 = vcmask 1041408   ;;  %p161_p3 = scmp.lt.s32.totalorder %s5648_s13, 1  ;;  %v6455_v1 = vmov 65535  }
   0xc   : > { %v331_v2 = vsel %vm329_vm0, 4294967295, %v6455_v1  ;;  %v172_v5 = vld [vmem:[%s8102_s1] sm:$0x3]  ;;  %vm325_vm2 = vcmask 23552   ;;  %v5657_v15 = vld [vmem:[%s8102_s1 + $0x4] sm:$0x3] }
   0xd   : > { %v6487_v3 = vsel %vm330_vm1, %v331_v2, 0  ;;  %s8279_s13 = smov (!%p161_p3, %s5648_s13), 1  ;;  %v5658_v49 = vld [vmem:[%s8102_s1 + $0x6] sm:$0x3]  ;;  %vm5584_vm3 = vcmask 93184  }
   0xe   : > { %v6492_v4 = vand.u32 %v5656_v0, %v6487_v3  ;;  %s6387_s16 = smul.u32 288, %s8279_s13  ;;  %v6513_v9 = vand.u32 %v6487_v3, %v172_v5  ;;  %v6546_v20 = vand.u32 %v5657_v15, %v6487_v3  ;;  %v6596_v62 = vand.u32 %v5658_v49, %v6487_v3  ;;  %s6322_s15 = sshll.u32 %s8279_s13, 5 }
   0xf   : > { %s8060_s18 = scalar_lea.vmem %s8104_s3, %s6322_s15 }
  0x10   : > { %343 = vmatpush.bf16.msra.mxu0 %v6492_v4  ;;  %359 = vmatpush.bf16.msra.mxu1 %v6492_v4  ;;  %s6505_s21 = scalar_lea.vmem %s8101_s0, %s6387_s16 }
  0x11   : > { %375 = vmatpush.bf16.msra.mxu2 %v6492_v4  ;;  %391 = vmatpush.bf16.msra.mxu3 %v6492_v4  ;;  %v5664_v6 = vld [vmem:[%s6505_s21 + $0x48] sm:$0xf]  ;;  %v5665_v7 = vld [vmem:[%s6505_s21 + $0x50] sm:$0xf]  ;;  %v5666_v8 = vld [vmem:[%s6505_s21 + $0x58] sm:$0xf] }
  0x12   : > { %v5667_v10 = vld [vmem:[%s6505_s21 + $0x60] sm:$0xf]  ;;  %v5668_v11 = vld [vmem:[%s6505_s21 + $0x68] sm:$0xf]  ;;  %v5669_v12 = vld [vmem:[%s6505_s21 + $0x70] sm:$0xf] }
  0x13   : > { %5776 = vmatmul.msk.bf16.vlgmr.msra.gmra.mxu0 %vm325_vm2, %v5664_v6  ;;  %5777 = vmatmul.msk.bf16.vlgmr.msra.gmra.mxu1 %vm325_vm2, %v5665_v7  ;;  %v5670_v13 = vld [vmem:[%s6505_s21 + $0x78] sm:$0xf]  ;;  %v5671_v14 = vld [vmem:[%s6505_s21 + $0x80] sm:$0xf]  ;;  %v191_v17 = vld [vmem:[%s6505_s21 + $0x8] sm:$0xf] }
  0x14   : > { %5778 = vmatmul.msk.bf16.vlgmr.msra.gmra.mxu2 %vm325_vm2, %v5666_v8  ;;  %5779 = vmatmul.msk.bf16.vlgmr.msra.gmra.mxu3 %vm325_vm2, %v5667_v10  ;;  %v190_v16 = vld [vmem:[%s6505_s21] sm:$0xf]  ;;  %v192_v18 = vld [vmem:[%s6505_s21 + $0x10] sm:$0xf]  ;;  %v193_v19 = vld [vmem:[%s6505_s21 + $0x18] sm:$0xf] }
  0x15   : > { %439 = vmatpush.bf16.msrb.mxu2 %v6492_v4  ;;  %455 = vmatpush.bf16.msrb.mxu3 %v6492_v4  ;;  %v194_v21 = vld [vmem:[%s6505_s21 + $0x20] sm:$0xf]  ;;  %v195_v22 = vld [vmem:[%s6505_s21 + $0x28] sm:$0xf]  ;;  %v196_v23 = vld [vmem:[%s6505_s21 + $0x30] sm:$0xf] }
  0x16   : > { %407 = vmatpush.bf16.msrb.mxu0 %v6492_v4  ;;  %423 = vmatpush.bf16.msrb.mxu1 %v6492_v4  ;;  %v197_v24 = vld [vmem:[%s6505_s21 + $0x38] sm:$0xf]  ;;  %v5794_v25 = vld [vmem:[%s6505_s21] sm:$0xf]  ;;  %v6323_v26 = vld [vmem:[%s6505_s21] sm:$0x10] }
  0x17   : > { %v5799_v27 = vld [vmem:[%s6505_s21 + $0x8] sm:$0xf]  ;;  %v6324_v28 = vld [vmem:[%s6505_s21 + $0x8] sm:$0x10]  ;;  %v5804_v29 = vld [vmem:[%s6505_s21 + $0x10] sm:$0xf]  ;;  %v5795_v33 = vor.u32 %v6323_v26, %v5794_v25 }
  0x18   : > { %v6325_v30 = vld [vmem:[%s6505_s21 + $0x10] sm:$0x10]  ;;  %v5809_v31 = vld [vmem:[%s6505_s21 + $0x18] sm:$0xf]  ;;  %v6326_v32 = vld [vmem:[%s6505_s21 + $0x18] sm:$0x10]  ;;  %v5800_v34 = vor.u32 %v6324_v28, %v5799_v27 }
  0x19   : > { %506 = vmatpush.bf16.msra.mxu2 %v6513_v9  ;;  %522 = vmatpush.bf16.msra.mxu3 %v6513_v9  ;;  %v5805_v35 = vor.u32 %v6325_v30, %v5804_v29  ;;  %v5810_v36 = vor.u32 %v6326_v32, %v5809_v31  ;;  %v600_v37 = vshll.u32 %v5795_v33, 16  ;;  %v598_v41 = vshrl.u32 %v5795_v33, 16  ;;  %v5814_v52 = vld [vmem:[%s6505_s21 + $0x20] sm:$0xf]  ;;  %v6327_v53 = vld [vmem:[%s6505_s21 + $0x20] sm:$0x10] }
  0x1a   : > { %474 = vmatpush.bf16.msra.mxu0 %v6513_v9  ;;  %490 = vmatpush.bf16.msra.mxu1 %v6513_v9  ;;  %v631_v38 = vshll.u32 %v5800_v34, 16  ;;  %v629_v43 = vshrl.u32 %v5800_v34, 16  ;;  %v5819_v56 = vld [vmem:[%s6505_s21 + $0x28] sm:$0xf]  ;;  %v6328_v57 = vld [vmem:[%s6505_s21 + $0x28] sm:$0x10]  ;;  %v5815_v63 = vor.u32 %v6327_v53, %v5814_v52 }
  0x1b   : > { %v659_v39 = vshll.u32 %v5805_v35, 16  ;;  %v687_v40 = vshll.u32 %v5810_v36, 16  ;;  %v602_v42 = vrot.slane %v600_v37, 1  ;;  %v657_v45 = vshrl.u32 %v5805_v35, 16  ;;  %v5824_v58 = vld [vmem:[%s6505_s21 + $0x30] sm:$0xf] }
  0x1c   : > { %v633_v44 = vrot.slane %v631_v38, 1  ;;  %v685_v47 = vshrl.u32 %v5810_v36, 16  ;;  %v6329_v59 = vld [vmem:[%s6505_s21 + $0x30] sm:$0x10]  ;;  %v5829_v60 = vld [vmem:[%s6505_s21 + $0x38] sm:$0xf]  ;;  %v5820_v0 = vor.u32 %v6328_v57, %v5819_v56 }
  0x1d   : > { %v661_v46 = vrot.slane %v659_v39, 1  ;;  %v689_v48 = vrot.slane %v687_v40, 1  ;;  %v6579_v50 = vor.u32 %v602_v42, %v598_v41  ;;  %v6330_v61 = vld [vmem:[%s6505_s21 + $0x38] sm:$0x10]  ;;  %v5825_v1 = vor.u32 %v6329_v59, %v5824_v58  ;;  %v5681_v25 = vld [vmem:[%s6505_s21 + $0x98] sm:$0xf] }
  0x1e   : > { %v6581_v51 = vor.u32 %v633_v44, %v629_v43  ;;  %v5830_v2 = vor.u32 %v6330_v61, %v5829_v60  ;;  %v715_v5 = vshll.u32 %v5815_v63, 16  ;;  %v743_v6 = vshll.u32 %v5820_v0, 16  ;;  %v5682_v26 = vld [vmem:[%s6505_s21 + $0xa0] sm:$0xf]  ;;  %v5683_v27 = vld [vmem:[%s6505_s21 + $0xa8] sm:$0xf] }
  0x1f   : > { %v6585_v54 = vor.u32 %v661_v46, %v657_v45  ;;  %v6587_v55 = vor.u32 %v689_v48, %v685_v47  ;;  %v771_v7 = vshll.u32 %v5825_v1, 16  ;;  %v713_v10 = vshrl.u32 %v5815_v63, 16  ;;  %v5684_v29 = vld [vmem:[%s6505_s21 + $0xb0] sm:$0xf]  ;;  %v5685_v30 = vld [vmem:[%s6505_s21 + $0xb8] sm:$0xf] }
  0x20   : > { %v799_v8 = vshll.u32 %v5830_v2, 16  ;;  %v5686_v31 = vld [vmem:[%s6505_s21 + $0xc0] sm:$0xf]  ;;  %v5687_v32 = vld [vmem:[%s6505_s21 + $0xc8] sm:$0xf] }
  0x21   : > { %v773_v15 = vrot.slane %v771_v7, 1  ;;  %v5660_v33 = vld [vmem:[%s8102_s1 + $0xa] sm:$0x3]  ;;  %v5688_v36 = vld [vmem:[%s6505_s21 + $0xd8] sm:$0xf] }
  0x22   : > { %v5689_v37 = vld [vmem:[%s6505_s21 + $0xe0] sm:$0xf]  ;;  %v5690_v38 = vld [vmem:[%s6505_s21 + $0xe8] sm:$0xf]  ;;  %v5691_v39 = vld [vmem:[%s6505_s21 + $0xf0] sm:$0xf]  ;;  %v6672_v40 = vand.u32 %v5660_v33, %v6487_v3 }
  0x23   : > { %5780 = vmatmul.msk.bf16.vlgmr.msrb.gmra.mxu0 %vm325_vm2, %v5668_v11  ;;  %5781 = vmatmul.msk.bf16.vlgmr.msrb.gmra.mxu1 %vm325_vm2, %v5669_v12  ;;  %v717_v11 = vrot.slane %v715_v5, 1  ;;  %v741_v12 = vshrl.u32 %v5820_v0, 16  ;;  %v5692_v45 = vld [vmem:[%s6505_s21 + $0xf8] sm:$0xf]  ;;  %v5693_v46 = vld [vmem:[%s6505_s21 + $0x100] sm:$0xf] }
  0x24   : > { %5782 = vmatmul.msk.bf16.vlgmr.msrb.gmra.mxu2 %vm325_vm2, %v5670_v13  ;;  %5783 = vmatmul.msk.bf16.vlgmr.msrb.gmra.mxu3 %vm325_vm2, %v5671_v14  ;;  %v745_v13 = vrot.slane %v743_v6, 1  ;;  %v769_v14 = vshrl.u32 %v5825_v1, 16  ;;  %8167 = vst [vmem:[#allocation3_spill] sm:$0xff] %v6672_v40  ;;  %v5694_v49 = vld [vmem:[%s6505_s21 + $0x108] sm:$0xf] }
  0x25   : > { %570 = vmatpush.bf16.msrb.mxu2 %v6513_v9  ;;  %586 = vmatpush.bf16.msrb.mxu3 %v6513_v9  ;;  %v5695_v52 = vld [vmem:[%s6505_s21 + $0x110] sm:$0xf]  ;;  %v6339_v56 = vld [vmem:[%s6505_s21 + $0x90] sm:$0x10]  ;;  %v5855_v59 = vld [vmem:[%s6505_s21 + $0x98] sm:$0xf] }
  0x26   : > { %538 = vmatpush.bf16.msrb.mxu0 %v6513_v9  ;;  %554 = vmatpush.bf16.msrb.mxu1 %v6513_v9  ;;  %v5850_v53 = vld [vmem:[%s6505_s21 + $0x90] sm:$0xf]  ;;  %v6340_v60 = vld [vmem:[%s6505_s21 + $0x98] sm:$0x10]  ;;  %v5860_v61 = vld [vmem:[%s6505_s21 + $0xa0] sm:$0xf] }
  0x27   : > { %v6341_v63 = vld [vmem:[%s6505_s21 + $0xa0] sm:$0x10]  ;;  %v5865_v0 = vld [vmem:[%s6505_s21 + $0xa8] sm:$0xf]  ;;  %v6342_v1 = vld [vmem:[%s6505_s21 + $0xa8] sm:$0x10]  ;;  %v5856_v5 = vor.u32 %v6340_v60, %v5855_v59 }
  0x28   : > { %v5861_v6 = vor.u32 %v6341_v63, %v5860_v61  ;;  %v5866_v7 = vor.u32 %v6342_v1, %v5865_v0  ;;  %v5885_v59 = vld [vmem:[%s6505_s21 + $0xc8] sm:$0xf]  ;;  %v6346_v60 = vld [vmem:[%s6505_s21 + $0xc8] sm:$0x10] }
  0x33   : > { %5784 = vmatmul.msk.bf16.vlgmr.msra.gmra.mxu0 %vm325_vm2, %v190_v16  ;;  %5785 = vmatmul.msk.bf16.vlgmr.msra.gmra.mxu1 %vm325_vm2, %v191_v17  ;;  %v797_v16 = vshrl.u32 %v5830_v2, 16  ;;  %v801_v17 = vrot.slane %v799_v8, 1  ;;  %v5851_v2 = vor.u32 %v6339_v56, %v5850_v53  ;;  %v6345_v56 = vld [vmem:[%s6505_s21 + $0xc0] sm:$0x10] }
  0x34   : > { %5786 = vmatmul.msk.bf16.vlgmr.msra.gmra.mxu2 %vm325_vm2, %v192_v18  ;;  %5787 = vmatmul.msk.bf16.vlgmr.msra.gmra.mxu3 %vm325_vm2, %v193_v19  ;;  %v6610_v18 = vor.u32 %v717_v11, %v713_v10  ;;  %v6612_v19 = vor.u32 %v745_v13, %v741_v12  ;;  %v1144_v12 = vshll.u32 %v5856_v5, 16 }
  0x35   : > { %673 = vmatpush.bf16.msra.mxu2 %v6546_v20  ;;  %701 = vmatpush.bf16.msra.mxu3 %v6546_v20  ;;  %v1113_v11 = vshll.u32 %v5851_v2, 16 }
  0x36   : > { %617 = vmatpush.bf16.msra.mxu0 %v6546_v20  ;;  %645 = vmatpush.bf16.msra.mxu1 %v6546_v20 }
  0x43   : > { %5788 = vmatmul.msk.bf16.vlgmr.msrb.gmra.mxu0 %vm325_vm2, %v194_v21  ;;  %5789 = vmatmul.msk.bf16.vlgmr.msrb.gmra.mxu1 %vm325_vm2, %v195_v22  ;;  %v6614_v21 = vor.u32 %v773_v15, %v769_v14  ;;  %v6616_v22 = vor.u32 %v801_v17, %v797_v16  ;;  %v1172_v15 = vshll.u32 %v5861_v6, 16  ;;  %v1200_v16 = vshll.u32 %v5866_v7, 16 }
  0x44   : > { %5790 = vmatmul.msk.bf16.vlgmr.msrb.gmra.mxu2 %vm325_vm2, %v196_v23  ;;  %5791 = vmatmul.msk.bf16.vlgmr.msrb.gmra.mxu3 %vm325_vm2, %v197_v24  ;;  %v5659_v23 = vld [vmem:[%s8102_s1 + $0x8] sm:$0x3]  ;;  %v5680_v24 = vld [vmem:[%s6505_s21 + $0x90] sm:$0xf]  ;;  %v1111_v17 = vshrl.u32 %v5851_v2, 16 }
  0x45   : > { %785 = vmatpush.bf16.msrb.mxu2 %v6546_v20  ;;  %813 = vmatpush.bf16.msrb.mxu3 %v6546_v20  ;;  %v6638_v28 = vand.u32 %v5659_v23, %v6487_v3  ;;  %v1115_v23 = vrot.slane %v1113_v11, 1 }
  0x46   : > { %729 = vmatpush.bf16.msrb.mxu0 %v6546_v20  ;;  %757 = vmatpush.bf16.msrb.mxu1 %v6546_v20 }
  0x47   : > { %8166 = vst [vmem:[#allocation2_spill] sm:$0xff] %v6638_v28 }
  0x53   : > { %5796 = vmatmul.msk.bf16.vlgmr.msra.gmra.mxu0 %vm325_vm2, %v6579_v50  ;;  %5801 = vmatmul.msk.bf16.vlgmr.msra.gmra.mxu1 %vm325_vm2, %v6581_v51 }
  0x54   : > { %5806 = vmatmul.msk.bf16.vlgmr.msra.gmra.mxu2 %vm325_vm2, %v6585_v54  ;;  %5811 = vmatmul.msk.bf16.vlgmr.msra.gmra.mxu3 %vm325_vm2, %v6587_v55 }
  0x55   : > { %872 = vmatpush.bf16.msra.mxu2 %v6596_v62  ;;  %888 = vmatpush.bf16.msra.mxu3 %v6596_v62 }
  0x56   : > { %840 = vmatpush.bf16.msra.mxu0 %v6596_v62  ;;  %856 = vmatpush.bf16.msra.mxu1 %v6596_v62 }
  0x63   : > { %5816 = vmatmul.msk.bf16.vlgmr.msrb.gmra.mxu0 %vm325_vm2, %v6610_v18  ;;  %5821 = vmatmul.msk.bf16.vlgmr.msrb.gmra.mxu1 %vm325_vm2, %v6612_v19 }
  0x64   : > { %5826 = vmatmul.msk.bf16.vlgmr.msrb.gmra.mxu2 %vm325_vm2, %v6614_v21  ;;  %5831 = vmatmul.msk.bf16.vlgmr.msrb.gmra.mxu3 %vm325_vm2, %v6616_v22 }
  0x65   : > { %936 = vmatpush.bf16.msrb.mxu2 %v6596_v62  ;;  %952 = vmatpush.bf16.msrb.mxu3 %v6596_v62 }
  0x66   : > { %904 = vmatpush.bf16.msrb.mxu0 %v6596_v62  ;;  %920 = vmatpush.bf16.msrb.mxu1 %v6596_v62 }
  0x73   : > { %5832 = vmatmul.msk.bf16.vlgmr.msra.gmra.mxu0 %vm325_vm2, %v5680_v24  ;;  %5833 = vmatmul.msk.bf16.vlgmr.msra.gmra.mxu1 %vm325_vm2, %v5681_v25  ;;  %v1142_v24 = vshrl.u32 %v5856_v5, 16  ;;  %v1146_v25 = vrot.slane %v1144_v12, 1 }
  0x74   : > { %5834 = vmatmul.msk.bf16.vlgmr.msra.gmra.mxu2 %vm325_vm2, %v5682_v26  ;;  %5835 = vmatmul.msk.bf16.vlgmr.msra.gmra.mxu3 %vm325_vm2, %v5683_v27  ;;  %v1170_v26 = vshrl.u32 %v5861_v6, 16  ;;  %v1174_v27 = vrot.slane %v1172_v15, 1 }
  0x75   : > { %1011 = vmatpush.bf16.msra.mxu2 %v6638_v28  ;;  %1027 = vmatpush.bf16.msra.mxu3 %v6638_v28 }
  0x76   : > { %979 = vmatpush.bf16.msra.mxu0 %v6638_v28  ;;  %995 = vmatpush.bf16.msra.mxu1 %v6638_v28 }
  0x83   : > { %5836 = vmatmul.msk.bf16.vlgmr.msrb.gmra.mxu0 %vm325_vm2, %v5684_v29  ;;  %5837 = vmatmul.msk.bf16.vlgmr.msrb.gmra.mxu1 %vm325_vm2, %v5685_v30  ;;  %v1198_v29 = vshrl.u32 %v5866_v7, 16  ;;  %v1202_v30 = vrot.slane %v1200_v16, 1 }
  0x84   : > { %5838 = vmatmul.msk.bf16.vlgmr.msrb.gmra.mxu2 %vm325_vm2, %v5686_v31  ;;  %5839 = vmatmul.msk.bf16.vlgmr.msrb.gmra.mxu3 %vm325_vm2, %v5687_v32  ;;  %v5661_v31 = vld [vmem:[%s8102_s1 + $0xc] sm:$0x3] }
  0x85   : > { %1075 = vmatpush.bf16.msrb.mxu2 %v6638_v28  ;;  %1091 = vmatpush.bf16.msrb.mxu3 %v6638_v28  ;;  %v6740_v61 = vand.u32 %v5661_v31, %v6487_v3 }
  0x86   : > { %1043 = vmatpush.bf16.msrb.mxu0 %v6638_v28  ;;  %1059 = vmatpush.bf16.msrb.mxu1 %v6638_v28 }
  0x87   : > { %8168 = vst [vmem:[#allocation4_spill] sm:$0xff] %v6740_v61 }
  0x90   : > { %v6663_v34 = vpop.f32.mrf.mxu0  ;;  %v6665_v35 = vpop.f32.mrf.mxu1 }
  0x93   : > { %5840 = vmatmul.msk.bf16.vlgmr.msra.gmra.mxu0 %vm325_vm2, %v5688_v36  ;;  %5841 = vmatmul.msk.bf16.vlgmr.msra.gmra.mxu1 %vm325_vm2, %v5689_v37  ;;  %v6717_v36 = vor.u32 %v1115_v23, %v1111_v17  ;;  %v6719_v37 = vor.u32 %v1146_v25, %v1142_v24 }
  0x94   : > { %5842 = vmatmul.msk.bf16.vlgmr.msra.gmra.mxu2 %vm325_vm2, %v5690_v38  ;;  %5843 = vmatmul.msk.bf16.vlgmr.msra.gmra.mxu3 %vm325_vm2, %v5691_v39  ;;  %v5870_v38 = vld [vmem:[%s6505_s21 + $0xb0] sm:$0xf]  ;;  %v6343_v39 = vld [vmem:[%s6505_s21 + $0xb0] sm:$0x10] }
  0x95   : > { %1186 = vmatpush.bf16.msra.mxu2 %v6672_v40  ;;  %1214 = vmatpush.bf16.msra.mxu3 %v6672_v40  ;;  %v5871_v63 = vor.u32 %v6343_v39, %v5870_v38 }
  0x96   : > { %1130 = vmatpush.bf16.msra.mxu0 %v6672_v40  ;;  %1158 = vmatpush.bf16.msra.mxu1 %v6672_v40 }
  0x97   : > { %v6682_v41 = vpop.f32.mrf.mxu2  ;;  %v6684_v42 = vpop.f32.mrf.mxu3  ;;  %v1228_v5 = vshll.u32 %v5871_v63, 16  ;;  %v1226_v16 = vshrl.u32 %v5871_v63, 16 }
  0x98   : > { %v347_v43 = vpop.f32.mrf.mxu0  ;;  %v363_v44 = vpop.f32.mrf.mxu1 }
  0x99   : > { %v1230_v17 = vrot.slane %v1228_v5, 1 }
  0x9f   : > { %v379_v47 = vpop.f32.mrf.mxu2  ;;  %v395_v48 = vpop.f32.mrf.mxu3 }
  0xa0   : > { %v6692_v57 = vpop.f32.mrf.mxu0  ;;  %v6694_v58 = vpop.f32.mrf.mxu1  ;;  %v5875_v47 = vld [vmem:[%s6505_s21 + $0xb8] sm:$0xf]  ;;  %v6344_v48 = vld [vmem:[%s6505_s21 + $0xb8] sm:$0x10] }
  0xa1   : > { %v5876_v0 = vor.u32 %v6344_v48, %v5875_v47 }
  0xa3   : > { %5844 = vmatmul.msk.bf16.vlgmr.msrb.gmra.mxu0 %vm325_vm2, %v5692_v45  ;;  %5845 = vmatmul.msk.bf16.vlgmr.msrb.gmra.mxu1 %vm325_vm2, %v5693_v46  ;;  %v6723_v45 = vor.u32 %v1174_v27, %v1170_v26  ;;  %v6725_v46 = vor.u32 %v1202_v30, %v1198_v29  ;;  %v1256_v6 = vshll.u32 %v5876_v0, 16  ;;  %v1254_v23 = vshrl.u32 %v5876_v0, 16 }
  0xa4   : > { %5846 = vmatmul.msk.bf16.vlgmr.msrb.gmra.mxu2 %vm325_vm2, %v5694_v49  ;;  %5847 = vmatmul.msk.bf16.vlgmr.msrb.gmra.mxu3 %vm325_vm2, %v5695_v52  ;;  %v5880_v49 = vld [vmem:[%s6505_s21 + $0xc0] sm:$0xf] }
  0xa5   : > { %1298 = vmatpush.bf16.msrb.mxu2 %v6672_v40  ;;  %1326 = vmatpush.bf16.msrb.mxu3 %v6672_v40  ;;  %v1258_v24 = vrot.slane %v1256_v6, 1  ;;  %v5714_v6 = vld [vmem:[%s6505_s21 + $0x18] sm:$0xf] }
  0xa6   : > { %1242 = vmatpush.bf16.msrb.mxu0 %v6672_v40  ;;  %1270 = vmatpush.bf16.msrb.mxu1 %v6672_v40 }
  0xa7   : > { %v6710_v8 = vpop.f32.mrf.mxu2  ;;  %v6712_v10 = vpop.f32.mrf.mxu3 }
  0xa8   : > { %v411_v13 = vpop.f32.mrf.mxu0  ;;  %v427_v14 = vpop.f32.mrf.mxu1 }
  0xaf   : > { %v443_v32 = vpop.f32.mrf.mxu2  ;;  %v459_v33 = vpop.f32.mrf.mxu3 }
  0xb0   : > { %v476_v43 = vpop.f32.mrf.mxu0  ;;  %v492_v44 = vpop.f32.mrf.mxu1  ;;  %v6756_v32 = vor.u32 %v1230_v17, %v1226_v16  ;;  %v6758_v33 = vor.u32 %v1258_v24, %v1254_v23 }
  0xb1   : > { %v6731_v52 = vadd.f32 %v476_v43, %v6663_v34  ;;  %v6734_v53 = vadd.f32 %v492_v44, %v6665_v35  ;;  %v5881_v34 = vor.u32 %v6345_v56, %v5880_v49  ;;  %v5886_v35 = vor.u32 %v6346_v60, %v5885_v59  ;;  %v5662_v59 = vld [vmem:[%s8102_s1 + $0xe] sm:$0x3] }
  0xb3   : > { %5852 = vmatmul.msk.bf16.vlgmr.msra.gmra.mxu0 %vm325_vm2, %v6717_v36  ;;  %5857 = vmatmul.msk.bf16.vlgmr.msra.gmra.mxu1 %vm325_vm2, %v6719_v37  ;;  %v1284_v14 = vshll.u32 %v5881_v34, 16  ;;  %v1312_v15 = vshll.u32 %v5886_v35, 16  ;;  %v1282_v25 = vshrl.u32 %v5881_v34, 16  ;;  %v1310_v27 = vshrl.u32 %v5886_v35, 16  ;;  %v5712_v35 = vld [vmem:[%s6505_s21 + $0x8] sm:$0xf] }
  0xb4   : > { %5862 = vmatmul.msk.bf16.vlgmr.msra.gmra.mxu2 %vm325_vm2, %v6723_v45  ;;  %5867 = vmatmul.msk.bf16.vlgmr.msra.gmra.mxu3 %vm325_vm2, %v6725_v46 }
  0xb5   : > { %1385 = vmatpush.bf16.msra.mxu2 %v6740_v61  ;;  %1401 = vmatpush.bf16.msra.mxu3 %v6740_v61  ;;  %v1286_v26 = vrot.slane %v1284_v14, 1  ;;  %v1314_v29 = vrot.slane %v1312_v15, 1 }
  0xb6   : > { %1353 = vmatpush.bf16.msra.mxu0 %v6740_v61  ;;  %1369 = vmatpush.bf16.msra.mxu1 %v6740_v61 }
  0xb7   : > { %v508_v1 = vpop.f32.mrf.mxu2  ;;  %v524_v2 = vpop.f32.mrf.mxu3  ;;  %v6760_v38 = vor.u32 %v1286_v26, %v1282_v25  ;;  %v6762_v39 = vor.u32 %v1314_v29, %v1310_v27  ;;  %v5716_v25 = vld [vmem:[%s6505_s21 + $0x28] sm:$0xf]  ;;  %v5717_v26 = vld [vmem:[%s6505_s21 + $0x30] sm:$0xf] }
  0xb8   : > { %v509_v7 = vadd.f32 %v508_v1, %v6682_v41  ;;  %v525_v11 = vadd.f32 %v524_v2, %v6684_v42  ;;  %v478_v12 = vpop.f32.mrf.mxu0  ;;  %v494_v13 = vpop.f32.mrf.mxu1  ;;  %v5713_v1 = vld [vmem:[%s6505_s21 + $0x10] sm:$0xf] }
  0xb9   : > { %8169 = vst [vmem:[#allocation5_spill] sm:$0xff] %v6760_v38 }
  0xba   : > { %8170 = vst [vmem:[#allocation6_spill] sm:$0xff] %v6762_v39 }
  0xbf   : > { %v510_v30 = vpop.f32.mrf.mxu2  ;;  %v526_v31 = vpop.f32.mrf.mxu3 }
  0xc0   : > { %v540_v41 = vpop.f32.mrf.mxu0  ;;  %v556_v42 = vpop.f32.mrf.mxu1  ;;  %v5718_v30 = vld [vmem:[%s6505_s21 + $0x38] sm:$0xf]  ;;  %v5719_v31 = vld [vmem:[%s6505_s21 + $0x40] sm:$0xf] }
  0xc1   : > { %v541_v43 = vadd.f32 %v540_v41, %v6692_v57  ;;  %v557_v44 = vadd.f32 %v556_v42, %v6694_v58 }
  0xc3   : > { %5872 = vmatmul.msk.bf16.vlgmr.msrb.gmra.mxu0 %vm325_vm2, %v6756_v32  ;;  %5877 = vmatmul.msk.bf16.vlgmr.msrb.gmra.mxu1 %vm325_vm2, %v6758_v33 }
  0xc4   : > { %5882 = vmatmul.msk.bf16.vlgmr.msrb.gmra.mxu2 %vm325_vm2, %v6760_v38  ;;  %5887 = vmatmul.msk.bf16.vlgmr.msrb.gmra.mxu3 %vm325_vm2, %v6762_v39 }
  0xc5   : > { %1449 = vmatpush.bf16.msrb.mxu2 %v6740_v61  ;;  %1465 = vmatpush.bf16.msrb.mxu3 %v6740_v61 }
  0xc6   : > { %1417 = vmatpush.bf16.msrb.mxu0 %v6740_v61  ;;  %1433 = vmatpush.bf16.msrb.mxu1 %v6740_v61 }
  0xc7   : > { %v572_v57 = vpop.f32.mrf.mxu2  ;;  %v588_v58 = vpop.f32.mrf.mxu3 }
  0xc8   : > { %v573_v47 = vadd.f32 %v572_v57, %v6710_v8  ;;  %v589_v48 = vadd.f32 %v588_v58, %v6712_v10  ;;  %v542_v49 = vpop.f32.mrf.mxu0  ;;  %v558_v56 = vpop.f32.mrf.mxu1  ;;  %v5715_v8 = vld [vmem:[%s6505_s21 + $0x20] sm:$0xf]  ;;  %v6790_v10 = vand.u32 %v5662_v59, %v6487_v3  ;;  %v5663_v57 = vld [vmem:[%s8102_s1 + $0x10] sm:$0x3] }
  0xca   : > { %8171 = vst [vmem:[#allocation7_spill] sm:$0xff] %v6790_v10 }
  0xcf   : > { %v574_v60 = vpop.f32.mrf.mxu2  ;;  %v590_v63 = vpop.f32.mrf.mxu3 }
  0xd0   : > { %v619_v0 = vpop.f32.mrf.mxu0  ;;  %v647_v34 = vpop.f32.mrf.mxu1  ;;  %v6820_v60 = vld [vmem:[%s6505_s21 + $0x50] sm:$0xf]  ;;  %v6823_v63 = vld [vmem:[%s6505_s21 + $0x58] sm:$0xf] }
  0xd1   : > { %v819_v2 = vadd.f32 %v619_v0, %v6731_v52  ;;  %v820_v5 = vadd.f32 %v647_v34, %v6734_v53  ;;  %v6833_v34 = vld [vmem:[%s6505_s21 + $0x68] sm:$0xf] }
  0xd3   : > { %5888 = vmatmul.msk.bf16.vlgmr.msra.gmra.mxu0 %vm325_vm2, %v5712_v35  ;;  %5889 = vmatmul.msk.bf16.vlgmr.msra.gmra.mxu1 %vm325_vm2, %v5713_v1  ;;  %v6836_v35 = vand.u32 %v5663_v57, %v6487_v3 }
  0xd4   : > { %5890 = vmatmul.msk.bf16.vlgmr.msra.gmra.mxu2 %vm325_vm2, %v5714_v6  ;;  %5891 = vmatmul.msk.bf16.vlgmr.msra.gmra.mxu3 %vm325_vm2, %v5715_v8 }
  0xd5   : > { %1524 = vmatpush.bf16.msra.mxu2 %v6790_v10  ;;  %1540 = vmatpush.bf16.msra.mxu3 %v6790_v10  ;;  %8172 = vst [vmem:[#allocation8_spill] sm:$0xff] %v6836_v35 }
  0xd6   : > { %1492 = vmatpush.bf16.msra.mxu0 %v6790_v10  ;;  %1508 = vmatpush.bf16.msra.mxu1 %v6790_v10 }
  0xd7   : > { %v675_v52 = vpop.f32.mrf.mxu2  ;;  %v703_v53 = vpop.f32.mrf.mxu3 }
  0xd8   : > { %v821_v12 = vadd.f32 %v675_v52, %v509_v7  ;;  %v822_v13 = vadd.f32 %v703_v53, %v525_v11  ;;  %v621_v14 = vpop.f32.mrf.mxu0  ;;  %v649_v15 = vpop.f32.mrf.mxu1  ;;  %v6855_v52 = vld [vmem:[%s6505_s21 + $0x70] sm:$0xf]  ;;  %v6858_v53 = vld [vmem:[%s6505_s21 + $0x78] sm:$0xf] }
  0xdf   : > { %v677_v16 = vpop.f32.mrf.mxu2  ;;  %v705_v17 = vpop.f32.mrf.mxu3 }
  0xe0   : > { %v731_v23 = vpop.f32.mrf.mxu0  ;;  %v759_v24 = vpop.f32.mrf.mxu1  ;;  %v6861_v16 = vld [vmem:[%s6505_s21 + $0x80] sm:$0xf]  ;;  %v6864_v17 = vld [vmem:[%s6505_s21 + $0x88] sm:$0xf] }
  0xe1   : > { %v823_v27 = vadd.f32 %v731_v23, %v541_v43  ;;  %v824_v29 = vadd.f32 %v759_v24, %v557_v44  ;;  %8173 = vst [vmem:[#allocation9_spill] sm:$0xff] %v6861_v16  ;;  %v6355_v23 = vld [vmem:[%s6505_s21 + $0x8] sm:$0x10] }
  0xe2   : > { %8174 = vst [vmem:[#allocation10_spill] sm:$0xff] %v6864_v17 }
  0xe3   : > { %5892 = vmatmul.msk.bf16.vlgmr.msrb.gmra.mxu0 %vm325_vm2, %v5716_v25  ;;  %5893 = vmatmul.msk.bf16.vlgmr.msrb.gmra.mxu1 %vm325_vm2, %v5717_v26  ;;  %v5911_v25 = vld [vmem:[%s6505_s21 + $0x10] sm:$0xf]  ;;  %v6356_v26 = vld [vmem:[%s6505_s21 + $0x10] sm:$0x10] }
  0xe4   : > { %5894 = vmatmul.msk.bf16.vlgmr.msrb.gmra.mxu2 %vm325_vm2, %v5718_v30  ;;  %5895 = vmatmul.msk.bf16.vlgmr.msrb.gmra.mxu3 %vm325_vm2, %v5719_v31  ;;  %v5916_v30 = vld [vmem:[%s6505_s21 + $0x18] sm:$0xf] }
  0xe5   : > { %1588 = vmatpush.bf16.msrb.mxu2 %v6790_v10  ;;  %1604 = vmatpush.bf16.msrb.mxu3 %v6790_v10 }
  0xe6   : > { %1556 = vmatpush.bf16.msrb.mxu0 %v6790_v10  ;;  %1572 = vmatpush.bf16.msrb.mxu1 %v6790_v10 }
  0xe7   : > { %v787_v7 = vpop.f32.mrf.mxu2  ;;  %v815_v11 = vpop.f32.mrf.mxu3 }
  0xe8   : > { %v6812_v41 = vadd.f32 %v787_v7, %v573_v47  ;;  %v6814_v42 = vadd.f32 %v815_v11, %v589_v48  ;;  %v733_v43 = vpop.f32.mrf.mxu0  ;;  %v761_v44 = vpop.f32.mrf.mxu1  ;;  %v6830_v48 = vld [vmem:[%s6505_s21 + $0x60] sm:$0xf]  ;;  %v6357_v11 = vld [vmem:[%s6505_s21 + $0x18] sm:$0x10] }
  0xe9   : > { %v5921_v43 = vld [vmem:[%s6505_s21 + $0x20] sm:$0xf]  ;;  %v6358_v44 = vld [vmem:[%s6505_s21 + $0x20] sm:$0x10] }
  0xef   : > { %v789_v58 = vpop.f32.mrf.mxu2  ;;  %v817_v49 = vpop.f32.mrf.mxu3 }
  0xf0   : > { %v842_v56 = vpop.f32.mrf.mxu0  ;;  %v858_v59 = vpop.f32.mrf.mxu1  ;;  %v5912_v58 = vor.u32 %v6356_v26, %v5911_v25 }
  0xf1   : > { %v6825_v0 = vadd.f32 %v842_v56, %v819_v2  ;;  %v6827_v47 = vadd.f32 %v858_v59, %v820_v5 }
  0xf3   : > { %5896 = vmatmul.msk.bf16.vlgmr.msra.gmra.mxu0 %vm325_vm2, %v6820_v60  ;;  %5897 = vmatmul.msk.bf16.vlgmr.msra.gmra.mxu1 %vm325_vm2, %v6823_v63 }
  0xf4   : > { %5898 = vmatmul.msk.bf16.vlgmr.msra.gmra.mxu2 %vm325_vm2, %v6830_v48  ;;  %5899 = vmatmul.msk.bf16.vlgmr.msra.gmra.mxu3 %vm325_vm2, %v6833_v34 }
  0xf5   : > { %1699 = vmatpush.bf16.msra.mxu2 %v6836_v35  ;;  %1727 = vmatpush.bf16.msra.mxu3 %v6836_v35 }
  0xf6   : > { %1643 = vmatpush.bf16.msra.mxu0 %v6836_v35  ;;  %1671 = vmatpush.bf16.msra.mxu1 %v6836_v35 }
  0xf7   : > { %v874_v3 = vpop.f32.mrf.mxu2  ;;  %v890_v1 = vpop.f32.mrf.mxu3 }
  0xf8   : > { %v6850_v2 = vadd.f32 %v874_v3, %v821_v12  ;;  %v6852_v5 = vadd.f32 %v890_v1, %v822_v13  ;;  %v844_v6 = vpop.f32.mrf.mxu0  ;;  %v860_v8 = vpop.f32.mrf.mxu1  ;;  %v5906_v12 = vld [vmem:[%s6505_s21 + $0x8] sm:$0xf]  ;;  %v1657_v3 = vshll.u32 %v5912_v58, 16 }
  0xf9   : > { %v5907_v57 = vor.u32 %v6355_v23, %v5906_v12 }
  0xfa   : > { %v1659_v25 = vrot.slane %v1657_v3, 1 }
  0xfb   : > { %v1626_v59 = vshll.u32 %v5907_v57, 16  ;;  %v1624_v23 = vshrl.u32 %v5907_v57, 16  ;;  %v5926_v57 = vld [vmem:[%s6505_s21 + $0x28] sm:$0xf] }
  0xff   : > { %v876_v14 = vpop.f32.mrf.mxu2  ;;  %v892_v15 = vpop.f32.mrf.mxu3 }
 0x100   : > { %v906_v24 = vpop.f32.mrf.mxu0  ;;  %v922_v13 = vpop.f32.mrf.mxu1 }
 0x101   : > { %v6871_v31 = vadd.f32 %v906_v24, %v823_v27  ;;  %v6873_v7 = vadd.f32 %v922_v13, %v824_v29  ;;  %v5917_v27 = vor.u32 %v6357_v11, %v5916_v30  ;;  %v5922_v29 = vor.u32 %v6358_v44, %v5921_v43 }
 0x102   : > { %v1628_v24 = vrot.slane %v1626_v59, 1  ;;  %v1655_v13 = vshrl.u32 %v5912_v58, 16 }
 0x103   : > { %5900 = vmatmul.msk.bf16.vlgmr.msrb.gmra.mxu0 %vm325_vm2, %v6855_v52  ;;  %5901 = vmatmul.msk.bf16.vlgmr.msrb.gmra.mxu1 %vm325_vm2, %v6858_v53  ;;  %v1685_v15 = vshll.u32 %v5917_v27, 16  ;;  %v1713_v12 = vshll.u32 %v5922_v29, 16  ;;  %v1683_v26 = vshrl.u32 %v5917_v27, 16 }
 0x104   : > { %5902 = vmatmul.msk.bf16.vlgmr.msrb.gmra.mxu2 %vm325_vm2, %v6861_v16  ;;  %5903 = vmatmul.msk.bf16.vlgmr.msrb.gmra.mxu3 %vm325_vm2, %v6864_v17  ;;  %v6896_v44 = vor.u32 %v1628_v24, %v1624_v23  ;;  %v6361_v23 = vld [vmem:[%s6505_s21 + $0x38] sm:$0x10]  ;;  %v5941_v24 = vld [vmem:[%s6505_s21 + $0x40] sm:$0xf] }
 0x105   : > { %1811 = vmatpush.bf16.msrb.mxu2 %v6836_v35  ;;  %1839 = vmatpush.bf16.msrb.mxu3 %v6836_v35  ;;  %v1687_v30 = vrot.slane %v1685_v15, 1  ;;  %v1715_v11 = vrot.slane %v1713_v12, 1 }
 0x106   : > { %1755 = vmatpush.bf16.msrb.mxu0 %v6836_v35  ;;  %1783 = vmatpush.bf16.msrb.mxu1 %v6836_v35  ;;  %8175 = vst [vmem:[#allocation11_spill] sm:$0xff] %v6896_v44 }
 0x107   : > { %v938_v49 = vpop.f32.mrf.mxu2  ;;  %v954_v56 = vpop.f32.mrf.mxu3  ;;  %v6902_v3 = vor.u32 %v1687_v30, %v1683_v26 }
 0x108   : > { %v6891_v1 = vadd.f32 %v938_v49, %v6812_v41  ;;  %v6894_v6 = vadd.f32 %v954_v56, %v6814_v42  ;;  %v908_v8 = vpop.f32.mrf.mxu0  ;;  %v924_v14 = vpop.f32.mrf.mxu1  ;;  %v1711_v41 = vshrl.u32 %v5922_v29, 16  ;;  %v6898_v49 = vor.u32 %v1659_v25, %v1655_v13  ;;  %v6359_v56 = vld [vmem:[%s6505_s21 + $0x28] sm:$0x10]  ;;  %v6360_v29 = vld [vmem:[%s6505_s21 + $0x30] sm:$0x10] }
 0x109   : > { %8177 = vst [vmem:[#allocation13_spill] sm:$0xff] %v6902_v3  ;;  %v5931_v8 = vld [vmem:[%s6505_s21 + $0x30] sm:$0xf]  ;;  %v5936_v14 = vld [vmem:[%s6505_s21 + $0x38] sm:$0xf]  ;;  %v5927_v25 = vor.u32 %v6359_v56, %v5926_v57 }
 0x10a   : > { %8176 = vst [vmem:[#allocation12_spill] sm:$0xff] %v6898_v49  ;;  %v6904_v27 = vor.u32 %v1715_v11, %v1711_v41  ;;  %v6362_v13 = vld [vmem:[%s6505_s21 + $0x40] sm:$0x10]  ;;  %v5932_v26 = vor.u32 %v6360_v29, %v5931_v8 }
 0x10b   : > { %v1741_v11 = vshll.u32 %v5927_v25, 16  ;;  %v1739_v29 = vshrl.u32 %v5927_v25, 16 }
 0x10c   : > { %8178 = vst [vmem:[#allocation14_spill] sm:$0xff] %v6904_v27 }
 0x10f   : > { %v940_v42 = vpop.f32.mrf.mxu2  ;;  %v956_v43 = vpop.f32.mrf.mxu3 }
 0x110   : > { %v981_v58 = vpop.f32.mrf.mxu0  ;;  %v997_v59 = vpop.f32.mrf.mxu1  ;;  %v1769_v42 = vshll.u32 %v5932_v26, 16 }
 0x111   : > { %v6910_v15 = vadd.f32 %v981_v58, %v6825_v0  ;;  %v6913_v12 = vadd.f32 %v997_v59, %v6827_v47  ;;  %v5937_v0 = vor.u32 %v6361_v23, %v5936_v14  ;;  %v5942_v47 = vor.u32 %v6362_v13, %v5941_v24 }
 0x112   : > { %v1743_v14 = vrot.slane %v1741_v11, 1  ;;  %v1767_v23 = vshrl.u32 %v5932_v26, 16  ;;  %v1771_v24 = vrot.slane %v1769_v42, 1 }
 0x113   : > { %5908 = vmatmul.msk.bf16.vlgmr.msra.gmra.mxu0 %vm325_vm2, %v6896_v44  ;;  %5913 = vmatmul.msk.bf16.vlgmr.msra.gmra.mxu1 %vm325_vm2, %v6898_v49  ;;  %v1797_v59 = vshll.u32 %v5937_v0, 16  ;;  %v1825_v8 = vshll.u32 %v5942_v47, 16  ;;  %v1795_v13 = vshrl.u32 %v5937_v0, 16 }
 0x114   : > { %5918 = vmatmul.msk.bf16.vlgmr.msra.gmra.mxu2 %vm325_vm2, %v6902_v3  ;;  %5923 = vmatmul.msk.bf16.vlgmr.msra.gmra.mxu3 %vm325_vm2, %v6904_v27  ;;  %v1823_v27 = vshrl.u32 %v5942_v47, 16  ;;  %v6932_v17 = vor.u32 %v1743_v14, %v1739_v29  ;;  %v6934_v16 = vor.u32 %v1771_v24, %v1767_v23 }
 0x115   : > { %1905 = vmatpush.bf16.msra.mxu2 %v6492_v4  ;;  %1918 = vmatpush.bf16.msra.mxu3 %v6492_v4  ;;  %v1799_v35 = vrot.slane %v1797_v59, 1  ;;  %v1827_v3 = vrot.slane %v1825_v8, 1 }
 0x116   : > { %1879 = vmatpush.bf16.msra.mxu0 %v6492_v4  ;;  %1892 = vmatpush.bf16.msra.mxu1 %v6492_v4  ;;  %8179 = vst [vmem:[#allocation15_spill] sm:$0xff] %v6932_v17 }
 0x117   : > { %v1013_v30 = vpop.f32.mrf.mxu2  ;;  %v1029_v41 = vpop.f32.mrf.mxu3  ;;  %8180 = vst [vmem:[#allocation16_spill] sm:$0xff] %v6934_v16 }
 0x118   : > { %v1099_v43 = vadd.f32 %v1013_v30, %v6850_v2  ;;  %v1100_v57 = vadd.f32 %v1029_v41, %v6852_v5  ;;  %v983_v56 = vpop.f32.mrf.mxu0  ;;  %v999_v58 = vpop.f32.mrf.mxu1  ;;  %v6936_v30 = vor.u32 %v1799_v35, %v1795_v13  ;;  %v6938_v41 = vor.u32 %v1827_v3, %v1823_v27 }
 0x11a   : > { %8181 = vst [vmem:[#allocation17_spill] sm:$0xff] %v6936_v30 }
 0x11b   : > { %8182 = vst [vmem:[#allocation18_spill] sm:$0xff] %v6938_v41 }
 0x11f   : > { %v1015_v49 = vpop.f32.mrf.mxu2  ;;  %v1031_v44 = vpop.f32.mrf.mxu3 }
 0x120   : > { %v1045_v2 = vpop.f32.mrf.mxu0  ;;  %v1061_v5 = vpop.f32.mrf.mxu1 }
 0x121   : > { %v1101_v25 = vadd.f32 %v1045_v2, %v6871_v31  ;;  %v1102_v26 = vadd.f32 %v1061_v5, %v6873_v7 }
 0x123   : > { %5928 = vmatmul.msk.bf16.vlgmr.msrb.gmra.mxu0 %vm325_vm2, %v6932_v17  ;;  %5933 = vmatmul.msk.bf16.vlgmr.msrb.gmra.mxu1 %vm325_vm2, %v6934_v16 }
 0x124   : > { %5938 = vmatmul.msk.bf16.vlgmr.msrb.gmra.mxu2 %vm325_vm2, %v6936_v30  ;;  %5943 = vmatmul.msk.bf16.vlgmr.msrb.gmra.mxu3 %vm325_vm2, %v6938_v41 }
 0x125   : > { %1957 = vmatpush.bf16.msrb.mxu2 %v6492_v4  ;;  %1970 = vmatpush.bf16.msrb.mxu3 %v6492_v4 }
 0x126   : > { %1931 = vmatpush.bf16.msrb.mxu0 %v6492_v4  ;;  %1944 = vmatpush.bf16.msrb.mxu1 %v6492_v4 }
 0x127   : > { %v1077_v35 = vpop.f32.mrf.mxu2  ;;  %v1093_v31 = vpop.f32.mrf.mxu3 }
 0x128   : > { %v1103_v7 = vadd.f32 %v1077_v35, %v6891_v1  ;;  %v1104_v44 = vadd.f32 %v1093_v31, %v6894_v6  ;;  %v1047_v49 = vpop.f32.mrf.mxu0  ;;  %v1063_v3 = vpop.f32.mrf.mxu1  ;;  %v6400_v35 = vld [vmem:[%s6505_s21 + $0x58] sm:$0xf]  ;;  %v6401_v31 = vld [vmem:[%s6505_s21 + $0x60] sm:$0xf] }
 0x12f   : > { %v1079_v27 = vpop.f32.mrf.mxu2  ;;  %v1095_v0 = vpop.f32.mrf.mxu3 }
 0x130   : > { %v1132_v47 = vpop.f32.mrf.mxu0  ;;  %v1160_v11 = vpop.f32.mrf.mxu1 }
 0x131   : > { %v1332_v42 = vadd.f32 %v1132_v47, %v6910_v15  ;;  %v1333_v56 = vadd.f32 %v1160_v11, %v6913_v12 }
 0x133   : > { %5944 = vmatmul.msk.bf16.vlgmr.msra.gmra.mxu0 %vm325_vm2, %v6579_v50  ;;  %5945 = vmatmul.msk.bf16.vlgmr.msra.gmra.mxu1 %vm325_vm2, %v6581_v51 }
 0x134   : > { %5946 = vmatmul.msk.bf16.vlgmr.msra.gmra.mxu2 %vm325_vm2, %v6585_v54  ;;  %5947 = vmatmul.msk.bf16.vlgmr.msra.gmra.mxu3 %vm325_vm2, %v6587_v55 }
 0x135   : > { %2009 = vmatpush.bf16.msra.mxu2 %v6513_v9  ;;  %2022 = vmatpush.bf16.msra.mxu3 %v6513_v9 }
 0x136   : > { %1983 = vmatpush.bf16.msra.mxu0 %v6513_v9  ;;  %1996 = vmatpush.bf16.msra.mxu1 %v6513_v9 }
 0x137   : > { %v1188_v1 = vpop.f32.mrf.mxu2  ;;  %v1216_v6 = vpop.f32.mrf.mxu3 }
 0x138   : > { %v1334_v50 = vadd.f32 %v1188_v1, %v1099_v43  ;;  %v1335_v15 = vadd.f32 %v1216_v6, %v1100_v57  ;;  %v1134_v12 = vpop.f32.mrf.mxu0  ;;  %v1162_v51 = vpop.f32.mrf.mxu1 }
 0x139   : > { %v5967_v12 = vld [vmem:[%s6505_s21 + $0x50] sm:$0xf]  ;;  %v6332_v51 = vld [vmem:[%s6505_s21 + $0x50] sm:$0x10] }
 0x13f   : > { %v1190_v58 = vpop.f32.mrf.mxu2  ;;  %v1218_v59 = vpop.f32.mrf.mxu3 }
 0x140   : > { %v1244_v54 = vpop.f32.mrf.mxu0  ;;  %v1272_v8 = vpop.f32.mrf.mxu1  ;;  %v6333_v59 = vld [vmem:[%s6505_s21 + $0x58] sm:$0x10] }
 0x141   : > { %v1336_v29 = vadd.f32 %v1244_v54, %v1101_v25  ;;  %v1337_v55 = vadd.f32 %v1272_v8, %v1102_v26  ;;  %v6398_v25 = vld [vmem:[%s6505_s21 + $0x48] sm:$0xf]  ;;  %v6399_v26 = vld [vmem:[%s6505_s21 + $0x50] sm:$0xf]  ;;  %v5977_v54 = vld [vmem:[%s6505_s21 + $0x60] sm:$0xf] }
 0x142   : > { %v6334_v8 = vld [vmem:[%s6505_s21 + $0x60] sm:$0x10] }
 0x143   : > { %5948 = vmatmul.msk.bf16.vlgmr.msrb.gmra.mxu0 %vm325_vm2, %v6610_v18  ;;  %5949 = vmatmul.msk.bf16.vlgmr.msrb.gmra.mxu1 %vm325_vm2, %v6612_v19 }
 0x144   : > { %5950 = vmatmul.msk.bf16.vlgmr.msrb.gmra.mxu2 %vm325_vm2, %v6614_v21  ;;  %5951 = vmatmul.msk.bf16.vlgmr.msrb.gmra.mxu3 %vm325_vm2, %v6616_v22 }
 0x145   : > { %2061 = vmatpush.bf16.msrb.mxu2 %v6513_v9  ;;  %2074 = vmatpush.bf16.msrb.mxu3 %v6513_v9 }
 0x146   : > { %2035 = vmatpush.bf16.msrb.mxu0 %v6513_v9  ;;  %2048 = vmatpush.bf16.msrb.mxu1 %v6513_v9 }
 0x147   : > { %v1300_v18 = vpop.f32.mrf.mxu2  ;;  %v1328_v43 = vpop.f32.mrf.mxu3 }
 0x148   : > { %v1338_v19 = vadd.f32 %v1300_v18, %v1103_v7  ;;  %v1339_v57 = vadd.f32 %v1328_v43, %v1104_v44  ;;  %v1246_v21 = vpop.f32.mrf.mxu0  ;;  %v1274_v14 = vpop.f32.mrf.mxu1  ;;  %v6402_v18 = vld [vmem:[%s6505_s21 + $0x68] sm:$0xf]  ;;  %v6403_v43 = vld [vmem:[%s6505_s21 + $0x70] sm:$0xf] }
 0x149   : > { %v5968_v14 = vor.u32 %v6332_v51, %v5967_v12 }
 0x14f   : > { %v1302_v23 = vpop.f32.mrf.mxu2  ;;  %v1330_v22 = vpop.f32.mrf.mxu3 }
 0x150   : > { %v1355_v24 = vpop.f32.mrf.mxu0  ;;  %v1371_v13 = vpop.f32.mrf.mxu1  ;;  %v6404_v23 = vld [vmem:[%s6505_s21 + $0x78] sm:$0xf]  ;;  %v6405_v22 = vld [vmem:[%s6505_s21 + $0x80] sm:$0xf] }
 0x151   : > { %v6982_v2 = vadd.f32 %v1355_v24, %v1332_v42  ;;  %v6984_v5 = vadd.f32 %v1371_v13, %v1333_v56  ;;  %v5962_v42 = vld [vmem:[%s6505_s21 + $0x48] sm:$0xf]  ;;  %v6331_v56 = vld [vmem:[%s6505_s21 + $0x48] sm:$0x10] }
 0x152   : > { %v5963_v21 = vor.u32 %v6331_v56, %v5962_v42  ;;  %v2114_v42 = vshrl.u32 %v5968_v14, 16 }
 0x153   : > { %5952 = vmatmul.msk.bf16.vlgmr.msra.gmra.mxu0 %vm325_vm2, %v6398_v25  ;;  %5953 = vmatmul.msk.bf16.vlgmr.msra.gmra.mxu1 %vm325_vm2, %v6399_v26  ;;  %v2116_v26 = vshll.u32 %v5968_v14, 16 }
 0x154   : > { %5954 = vmatmul.msk.bf16.vlgmr.msra.gmra.mxu2 %vm325_vm2, %v6400_v35  ;;  %5955 = vmatmul.msk.bf16.vlgmr.msra.gmra.mxu3 %vm325_vm2, %v6401_v31  ;;  %v2088_v25 = vshll.u32 %v5963_v21, 16 }
 0x155   : > { %2158 = vmatpush.bf16.msra.mxu2 %v6546_v20  ;;  %2186 = vmatpush.bf16.msra.mxu3 %v6546_v20  ;;  %v2118_v56 = vrot.slane %v2116_v26, 1  ;;  %v6338_v26 = vld [vmem:[%s6505_s21 + $0x80] sm:$0x10] }
 0x156   : > { %2102 = vmatpush.bf16.msra.mxu0 %v6546_v20  ;;  %2130 = vmatpush.bf16.msra.mxu1 %v6546_v20 }
 0x157   : > { %v1387_v7 = vpop.f32.mrf.mxu2  ;;  %v1403_v44 = vpop.f32.mrf.mxu3 }
 0x158   : > { %v6998_v49 = vadd.f32 %v1387_v7, %v1334_v50  ;;  %v7000_v3 = vadd.f32 %v1403_v44, %v1335_v15  ;;  %v1357_v27 = vpop.f32.mrf.mxu0  ;;  %v1373_v0 = vpop.f32.mrf.mxu1  ;;  %v5972_v50 = vld [vmem:[%s6505_s21 + $0x58] sm:$0xf] }
 0x15f   : > { %v1389_v47 = vpop.f32.mrf.mxu2  ;;  %v1405_v11 = vpop.f32.mrf.mxu3 }
 0x160   : > { %v1419_v1 = vpop.f32.mrf.mxu0  ;;  %v1435_v6 = vpop.f32.mrf.mxu1  ;;  %v2086_v47 = vshrl.u32 %v5963_v21, 16  ;;  %v2090_v11 = vrot.slane %v2088_v25, 1  ;;  %v5997_v25 = vld [vmem:[%s6505_s21 + $0x80] sm:$0xf] }
 0x161   : > { %v7007_v58 = vadd.f32 %v1419_v1, %v1336_v29  ;;  %v7009_v15 = vadd.f32 %v1435_v6, %v1337_v55  ;;  %v5973_v29 = vor.u32 %v6333_v59, %v5972_v50  ;;  %v5978_v55 = vor.u32 %v6334_v8, %v5977_v54  ;;  %v5982_v54 = vld [vmem:[%s6505_s21 + $0x68] sm:$0xf]  ;;  %v6335_v8 = vld [vmem:[%s6505_s21 + $0x68] sm:$0x10] }
 0x162   : > { %v2091_v50 = vor.u32 %v2090_v11, %v2086_v47  ;;  %v2119_v59 = vor.u32 %v2118_v56, %v2114_v42 }
 0x163   : > { %5956 = vmatmul.msk.bf16.vlgmr.msrb.gmra.mxu0 %vm325_vm2, %v6402_v18  ;;  %5957 = vmatmul.msk.bf16.vlgmr.msrb.gmra.mxu1 %vm325_vm2, %v6403_v43  ;;  %v2144_v27 = vshll.u32 %v5973_v29, 16  ;;  %v2172_v0 = vshll.u32 %v5978_v55, 16  ;;  %v2142_v1 = vshrl.u32 %v5973_v29, 16  ;;  %v2170_v12 = vshrl.u32 %v5978_v55, 16  ;;  %v5992_v29 = vld [vmem:[%s6505_s21 + $0x78] sm:$0xf] }
 0x164   : > { %5958 = vmatmul.msk.bf16.vlgmr.msrb.gmra.mxu2 %vm325_vm2, %v6404_v23  ;;  %5959 = vmatmul.msk.bf16.vlgmr.msrb.gmra.mxu3 %vm325_vm2, %v6405_v22  ;;  %v5987_v23 = vld [vmem:[%s6505_s21 + $0x70] sm:$0xf]  ;;  %v6336_v22 = vld [vmem:[%s6505_s21 + $0x70] sm:$0x10] }
 0x165   : > { %2270 = vmatpush.bf16.msrb.mxu2 %v6546_v20  ;;  %2298 = vmatpush.bf16.msrb.mxu3 %v6546_v20  ;;  %v2146_v6 = vrot.slane %v2144_v27, 1 }
 0x166   : > { %2214 = vmatpush.bf16.msrb.mxu0 %v6546_v20  ;;  %2242 = vmatpush.bf16.msrb.mxu1 %v6546_v20 }
 0x167   : > { %v1451_v24 = vpop.f32.mrf.mxu2  ;;  %v1467_v13 = vpop.f32.mrf.mxu3  ;;  %v2147_v21 = vor.u32 %v2146_v6, %v2142_v1 }
 0x168   : > { %v7026_v35 = vadd.f32 %v1451_v24, %v1338_v19  ;;  %v7028_v31 = vadd.f32 %v1467_v13, %v1339_v57  ;;  %v1421_v7 = vpop.f32.mrf.mxu0  ;;  %v1437_v44 = vpop.f32.mrf.mxu1  ;;  %v2174_v19 = vrot.slane %v2172_v0, 1  ;;  %v6337_v13 = vld [vmem:[%s6505_s21 + $0x78] sm:$0x10]  ;;  %v5998_v0 = vor.u32 %v6338_v26, %v5997_v25 }
 0x169   : > { %v5983_v7 = vor.u32 %v6335_v8, %v5982_v54  ;;  %v5988_v44 = vor.u32 %v6336_v22, %v5987_v23  ;;  %v5993_v27 = vor.u32 %v6337_v13, %v5992_v29 }
 0x16a   : > { %v2175_v14 = vor.u32 %v2174_v19, %v2170_v12  ;;  %v2284_v19 = vshll.u32 %v5998_v0, 16 }
 0x16b   : > { %v2200_v47 = vshll.u32 %v5983_v7, 16  ;;  %v2228_v11 = vshll.u32 %v5988_v44, 16  ;;  %v2256_v12 = vshll.u32 %v5993_v27, 16  ;;  %v2254_v54 = vshrl.u32 %v5993_v27, 16 }
 0x16d   : > { %v2258_v8 = vrot.slane %v2256_v12, 1  ;;  %v7073_v12 = vld [vmem:[%s6505_s21 + $0xd8] sm:$0xf] }
 0x16f   : > { %v1453_v57 = vpop.f32.mrf.mxu2  ;;  %v1469_v51 = vpop.f32.mrf.mxu3  ;;  %v2259_v13 = vor.u32 %v2258_v8, %v2254_v54 }
 0x170   : > { %v1494_v18 = vpop.f32.mrf.mxu0  ;;  %v1510_v43 = vpop.f32.mrf.mxu1  ;;  %v2198_v57 = vshrl.u32 %v5983_v7, 16  ;;  %v2202_v51 = vrot.slane %v2200_v47, 1 }
 0x171   : > { %v7036_v24 = vadd.f32 %v1494_v18, %v6982_v2  ;;  %v7039_v55 = vadd.f32 %v1510_v43, %v6984_v5  ;;  %v2282_v18 = vshrl.u32 %v5998_v0, 16  ;;  %v2286_v43 = vrot.slane %v2284_v19, 1 }
 0x172   : > { %v2203_v23 = vor.u32 %v2202_v51, %v2198_v57 }
 0x173   : > { %5964 = vmatmul.msk.bf16.vlgmr.msra.gmra.mxu0 %vm325_vm2, %v2091_v50  ;;  %5969 = vmatmul.msk.bf16.vlgmr.msra.gmra.mxu1 %vm325_vm2, %v2119_v59  ;;  %v2226_v50 = vshrl.u32 %v5988_v44, 16  ;;  %v2230_v59 = vrot.slane %v2228_v11, 1 }
 0x174   : > { %5974 = vmatmul.msk.bf16.vlgmr.msra.gmra.mxu2 %vm325_vm2, %v2147_v21  ;;  %5979 = vmatmul.msk.bf16.vlgmr.msra.gmra.mxu3 %vm325_vm2, %v2175_v14 }
 0x175   : > { %2345 = vmatpush.bf16.msra.mxu2 %v6596_v62  ;;  %2358 = vmatpush.bf16.msra.mxu3 %v6596_v62  ;;  %v2231_v22 = vor.u32 %v2230_v59, %v2226_v50 }
 0x176   : > { %2319 = vmatpush.bf16.msra.mxu0 %v6596_v62  ;;  %2332 = vmatpush.bf16.msra.mxu1 %v6596_v62 }
 0x177   : > { %v1526_v2 = vpop.f32.mrf.mxu2  ;;  %v1542_v5 = vpop.f32.mrf.mxu3 }
 0x178   : > { %v1612_v42 = vadd.f32 %v1526_v2, %v6998_v49  ;;  %v1613_v56 = vadd.f32 %v1542_v5, %v7000_v3  ;;  %v1496_v1 = vpop.f32.mrf.mxu0  ;;  %v1512_v6 = vpop.f32.mrf.mxu1  ;;  %v2287_v3 = vor.u32 %v2286_v43, %v2282_v18 }
 0x17f   : > { %v1528_v21 = vpop.f32.mrf.mxu2  ;;  %v1544_v14 = vpop.f32.mrf.mxu3 }
 0x180   : > { %v1558_v29 = vpop.f32.mrf.mxu0  ;;  %v1574_v49 = vpop.f32.mrf.mxu1 }
 0x181   : > { %v1614_v25 = vadd.f32 %v1558_v29, %v7007_v58  ;;  %v1615_v26 = vadd.f32 %v1574_v49, %v7009_v15 }
 0x183   : > { %5984 = vmatmul.msk.bf16.vlgmr.msrb.gmra.mxu0 %vm325_vm2, %v2203_v23  ;;  %5989 = vmatmul.msk.bf16.vlgmr.msrb.gmra.mxu1 %vm325_vm2, %v2231_v22  ;;  %v7105_v23 = vld [vmem:[%s6505_s21 + $0xf8] sm:$0xf]  ;;  %v7120_v22 = vld [vmem:[%s6505_s21 + $0x110] sm:$0xf] }
 0x184   : > { %5994 = vmatmul.msk.bf16.vlgmr.msrb.gmra.mxu2 %vm325_vm2, %v2259_v13  ;;  %5999 = vmatmul.msk.bf16.vlgmr.msrb.gmra.mxu3 %vm325_vm2, %v2287_v3 }
 0x185   : > { %2397 = vmatpush.bf16.msrb.mxu2 %v6596_v62  ;;  %2410 = vmatpush.bf16.msrb.mxu3 %v6596_v62 }
 0x186   : > { %2371 = vmatpush.bf16.msrb.mxu0 %v6596_v62  ;;  %2384 = vmatpush.bf16.msrb.mxu1 %v6596_v62 }
 0x187   : > { %v1590_v58 = vpop.f32.mrf.mxu2  ;;  %v1606_v15 = vpop.f32.mrf.mxu3 }
 0x188   : > { %v1616_v7 = vadd.f32 %v1590_v58, %v7026_v35  ;;  %v1617_v44 = vadd.f32 %v1606_v15, %v7028_v31  ;;  %v1560_v27 = vpop.f32.mrf.mxu0  ;;  %v1576_v0 = vpop.f32.mrf.mxu1  ;;  %v7078_v35 = vld [vmem:[%s6505_s21 + $0xe0] sm:$0xf]  ;;  %v7083_v31 = vld [vmem:[%s6505_s21 + $0xe8] sm:$0xf] }
 0x18f   : > { %v1592_v2 = vpop.f32.mrf.mxu2  ;;  %v1608_v5 = vpop.f32.mrf.mxu3 }
 0x190   : > { %v1645_v47 = vpop.f32.mrf.mxu0  ;;  %v1673_v11 = vpop.f32.mrf.mxu1 }
 0x191   : > { %v7067_v1 = vadd.f32 %v1645_v47, %v7036_v24  ;;  %v7070_v6 = vadd.f32 %v1673_v11, %v7039_v55  ;;  %v7088_v24 = vld [vmem:[%s6505_s21 + $0xf0] sm:$0xf] }
 0x193   : > { %8183 = vst [vmem:[#allocation19_spill] sm:$0xff] %v7067_v1  ;;  %6000 = vmatmul.msk.bf16.vlgmr.msra.gmra.mxu0 %vm325_vm2, %v7073_v12  ;;  %6001 = vmatmul.msk.bf16.vlgmr.msra.gmra.mxu1 %vm325_vm2, %v7078_v35 }
 0x194   : > { %8184 = vst [vmem:[#allocation20_spill] sm:$0xff] %v7070_v6  ;;  %6002 = vmatmul.msk.bf16.vlgmr.msra.gmra.mxu2 %vm325_vm2, %v7083_v31  ;;  %6003 = vmatmul.msk.bf16.vlgmr.msra.gmra.mxu3 %vm325_vm2, %v7088_v24 }
 0x195   : > { %2457 = vmatpush.bf16.msra.mxu2 %v6638_v28  ;;  %2470 = vmatpush.bf16.msra.mxu3 %v6638_v28 }
 0x196   : > { %2431 = vmatpush.bf16.msra.mxu0 %v6638_v28  ;;  %2444 = vmatpush.bf16.msra.mxu1 %v6638_v28 }
 0x197   : > { %v1701_v55 = vpop.f32.mrf.mxu2  ;;  %v1729_v19 = vpop.f32.mrf.mxu3 }
 0x198   : > { %v7096_v57 = vadd.f32 %v1701_v55, %v1612_v42  ;;  %v7098_v51 = vadd.f32 %v1729_v19, %v1613_v56  ;;  %v1647_v50 = vpop.f32.mrf.mxu0  ;;  %v1675_v59 = vpop.f32.mrf.mxu1  ;;  %v7110_v42 = vld [vmem:[%s6505_s21 + $0x100] sm:$0xf]  ;;  %v7115_v56 = vld [vmem:[%s6505_s21 + $0x108] sm:$0xf]  ;;  %v6018_v55 = vld [vmem:[%s6505_s21 + $0xd8] sm:$0xf] }
 0x199   : > { %v6347_v19 = vld [vmem:[%s6505_s21 + $0xd8] sm:$0x10] }
 0x19a   : > { %8185 = vst [vmem:[#allocation21_spill] sm:$0xff] %v7096_v57 }
 0x19b   : > { %8186 = vst [vmem:[#allocation22_spill] sm:$0xff] %v7098_v51 }
 0x19f   : > { %v1703_v54 = vpop.f32.mrf.mxu2  ;;  %v1731_v8 = vpop.f32.mrf.mxu3 }
 0x1a0   : > { %v1757_v18 = vpop.f32.mrf.mxu0  ;;  %v1785_v43 = vpop.f32.mrf.mxu1  ;;  %v6023_v54 = vld [vmem:[%s6505_s21 + $0xe0] sm:$0xf]  ;;  %v6348_v8 = vld [vmem:[%s6505_s21 + $0xe0] sm:$0x10] }
 0x1a1   : > { %v7100_v21 = vadd.f32 %v1757_v18, %v1614_v25  ;;  %v7102_v14 = vadd.f32 %v1785_v43, %v1615_v26  ;;  %v6028_v18 = vld [vmem:[%s6505_s21 + $0xe8] sm:$0xf]  ;;  %v6349_v43 = vld [vmem:[%s6505_s21 + $0xe8] sm:$0x10] }
 0x1a3   : > { %8187 = vst [vmem:[#allocation23_spill] sm:$0xff] %v7100_v21  ;;  %6004 = vmatmul.msk.bf16.vlgmr.msrb.gmra.mxu0 %vm325_vm2, %v7105_v23  ;;  %6005 = vmatmul.msk.bf16.vlgmr.msrb.gmra.mxu1 %vm325_vm2, %v7110_v42 }
 0x1a4   : > { %8188 = vst [vmem:[#allocation24_spill] sm:$0xff] %v7102_v14  ;;  %6006 = vmatmul.msk.bf16.vlgmr.msrb.gmra.mxu2 %vm325_vm2, %v7115_v56  ;;  %6007 = vmatmul.msk.bf16.vlgmr.msrb.gmra.mxu3 %vm325_vm2, %v7120_v22 }
 0x1a5   : > { %2509 = vmatpush.bf16.msrb.mxu2 %v6638_v28  ;;  %2522 = vmatpush.bf16.msrb.mxu3 %v6638_v28 }
 0x1a6   : > { %2483 = vmatpush.bf16.msrb.mxu0 %v6638_v28  ;;  %2496 = vmatpush.bf16.msrb.mxu1 %v6638_v28 }
 0x1a7   : > { %v1813_v29 = vpop.f32.mrf.mxu2  ;;  %v1841_v49 = vpop.f32.mrf.mxu3 }
 0x1a8   : > { %v7128_v13 = vadd.f32 %v1813_v29, %v1616_v7  ;;  %v7130_v3 = vadd.f32 %v1841_v49, %v1617_v44  ;;  %v1759_v25 = vpop.f32.mrf.mxu0  ;;  %v1787_v26 = vpop.f32.mrf.mxu1  ;;  %v6033_v29 = vld [vmem:[%s6505_s21 + $0xf0] sm:$0xf]  ;;  %v6350_v49 = vld [vmem:[%s6505_s21 + $0xf0] sm:$0x10] }
 0x1a9   : > { %v6019_v25 = vor.u32 %v6347_v19, %v6018_v55  ;;  %v6024_v26 = vor.u32 %v6348_v8, %v6023_v54 }
 0x1aa   : > { %8189 = vst [vmem:[#allocation25_spill] sm:$0xff] %v7128_v13 }
 0x1ab   : > { %8190 = vst [vmem:[#allocation26_spill] sm:$0xff] %v7130_v3 }
 0x1af   : > { %v1815_v58 = vpop.f32.mrf.mxu2  ;;  %v1843_v15 = vpop.f32.mrf.mxu3 }
 0x1b0   : > { %v7132_v27 = vpop.f32.mrf.mxu0  ;;  %v7134_v0 = vpop.f32.mrf.mxu1  ;;  %v6029_v58 = vor.u32 %v6349_v43, %v6028_v18  ;;  %v6034_v15 = vor.u32 %v6350_v49, %v6033_v29  ;;  %v2542_v18 = vshrl.u32 %v6019_v25, 16  ;;  %v2570_v29 = vshrl.u32 %v6024_v26, 16 }
 0x1b2   : > { %v2600_v54 = vshll.u32 %v6029_v58, 16  ;;  %v2628_v8 = vshll.u32 %v6034_v15, 16  ;;  %v2598_v3 = vshrl.u32 %v6029_v58, 16  ;;  %v2626_v13 = vshrl.u32 %v6034_v15, 16  ;;  %v6352_v15 = vld [vmem:[%s6505_s21 + $0x100] sm:$0x10] }
 0x1b3   : > { %6008 = vmatmul.msk.bf16.vlgmr.msra.gmra.mxu0 %vm325_vm2, %v6717_v36  ;;  %6009 = vmatmul.msk.bf16.vlgmr.msra.gmra.mxu1 %vm325_vm2, %v6719_v37 }
 0x1b4   : > { %6010 = vmatmul.msk.bf16.vlgmr.msra.gmra.mxu2 %vm325_vm2, %v6723_v45  ;;  %6011 = vmatmul.msk.bf16.vlgmr.msra.gmra.mxu3 %vm325_vm2, %v6725_v46  ;;  %v2630_v14 = vrot.slane %v2628_v8, 1  ;;  %v6048_v8 = vld [vmem:[%s6505_s21 + $0x108] sm:$0xf] }
 0x1b5   : > { %2614 = vmatpush.bf16.msra.mxu2 %v6672_v40  ;;  %2642 = vmatpush.bf16.msra.mxu3 %v6672_v40 }
 0x1b6   : > { %2558 = vmatpush.bf16.msra.mxu0 %v6672_v40  ;;  %2586 = vmatpush.bf16.msra.mxu1 %v6672_v40  ;;  %v7188_v58 = vor.u32 %v2630_v14, %v2626_v13 }
 0x1b7   : > { %v7148_v7 = vpop.f32.mrf.mxu2  ;;  %v7150_v44 = vpop.f32.mrf.mxu3 }
 0x1b8   : > { %v1883_v2 = vpop.f32.mrf.mxu0  ;;  %v1896_v5 = vpop.f32.mrf.mxu1  ;;  %8194 = vst [vmem:[#allocation30_spill] sm:$0xff] %v7188_v58 }
 0x1bf   : > { %v1909_v47 = vpop.f32.mrf.mxu2  ;;  %v1922_v11 = vpop.f32.mrf.mxu3 }
 0x1c0   : > { %v7154_v50 = vpop.f32.mrf.mxu0  ;;  %v7156_v59 = vpop.f32.mrf.mxu1  ;;  %v2544_v47 = vshll.u32 %v6019_v25, 16  ;;  %v2572_v11 = vshll.u32 %v6024_v26, 16  ;;  %v6038_v25 = vld [vmem:[%s6505_s21 + $0xf8] sm:$0xf] }
 0x1c2   : > { %v2546_v43 = vrot.slane %v2544_v47, 1  ;;  %v2574_v49 = vrot.slane %v2572_v11, 1  ;;  %v6351_v47 = vld [vmem:[%s6505_s21 + $0xf8] sm:$0x10] }
 0x1c3   : > { %6012 = vmatmul.msk.bf16.vlgmr.msrb.gmra.mxu0 %vm325_vm2, %v6756_v32  ;;  %6013 = vmatmul.msk.bf16.vlgmr.msrb.gmra.mxu1 %vm325_vm2, %v6758_v33 }
 0x1c4   : > { %6014 = vmatmul.msk.bf16.vlgmr.msrb.gmra.mxu2 %vm325_vm2, %v6760_v38  ;;  %6015 = vmatmul.msk.bf16.vlgmr.msrb.gmra.mxu3 %vm325_vm2, %v6762_v39  ;;  %v7182_v51 = vor.u32 %v2574_v49, %v2570_v29  ;;  %v6354_v29 = vld [vmem:[%s6505_s21 + $0x110] sm:$0x10] }
 0x1c5   : > { %2726 = vmatpush.bf16.msrb.mxu2 %v6672_v40  ;;  %2754 = vmatpush.bf16.msrb.mxu3 %v6672_v40 }
 0x1c6   : > { %2670 = vmatpush.bf16.msrb.mxu0 %v6672_v40  ;;  %2698 = vmatpush.bf16.msrb.mxu1 %v6672_v40  ;;  %v2602_v40 = vrot.slane %v2600_v54, 1  ;;  %8192 = vst [vmem:[#allocation28_spill] sm:$0xff] %v7182_v51  ;;  %v6043_v54 = vld [vmem:[%s6505_s21 + $0x100] sm:$0xf] }
 0x1c7   : > { %v7176_v2 = vpop.f32.mrf.mxu2  ;;  %v7178_v5 = vpop.f32.mrf.mxu3  ;;  %v6044_v14 = vor.u32 %v6352_v15, %v6043_v54 }
 0x1c8   : > { %v1935_v55 = vpop.f32.mrf.mxu0  ;;  %v1948_v19 = vpop.f32.mrf.mxu1  ;;  %v7186_v11 = vor.u32 %v2602_v40, %v2598_v3  ;;  %v6039_v40 = vor.u32 %v6351_v47, %v6038_v25 }
 0x1c9   : > { %v7180_v19 = vor.u32 %v2546_v43, %v2542_v18  ;;  %v6353_v18 = vld [vmem:[%s6505_s21 + $0x108] sm:$0x10]  ;;  %v6053_v43 = vld [vmem:[%s6505_s21 + $0x110] sm:$0xf]  ;;  %v2684_v49 = vshll.u32 %v6044_v14, 16 }
 0x1ca   : > { %8193 = vst [vmem:[#allocation29_spill] sm:$0xff] %v7186_v11  ;;  %v6049_v13 = vor.u32 %v6353_v18, %v6048_v8  ;;  %v2654_v18 = vshrl.u32 %v6039_v40, 16 }
 0x1cb   : > { %8191 = vst [vmem:[#allocation27_spill] sm:$0xff] %v7180_v19 }
 0x1cc   : > { %v2712_v15 = vshll.u32 %v6049_v13, 16 }
 0x1cf   : > { %v1961_v21 = vpop.f32.mrf.mxu2  ;;  %v1974_v55 = vpop.f32.mrf.mxu3 }
 0x1d0   : > { %v1985_v26 = vpop.f32.mrf.mxu0  ;;  %v1998_v57 = vpop.f32.mrf.mxu1 }
 0x1d1   : > { %v7194_v21 = vadd.f32 %v1985_v26, %v7132_v27  ;;  %v7197_v55 = vadd.f32 %v1998_v57, %v7134_v0  ;;  %v6054_v57 = vor.u32 %v6354_v29, %v6053_v43  ;;  %v2656_v0 = vshll.u32 %v6039_v40, 16 }
 0x1d2   : > { %v2682_v29 = vshrl.u32 %v6044_v14, 16 }
 0x1d3   : > { %6020 = vmatmul.msk.bf16.vlgmr.msra.gmra.mxu0 %vm325_vm2, %v7180_v19  ;;  %6025 = vmatmul.msk.bf16.vlgmr.msra.gmra.mxu1 %vm325_vm2, %v7182_v51  ;;  %v2740_v8 = vshll.u32 %v6054_v57, 16  ;;  %v2658_v43 = vrot.slane %v2656_v0, 1  ;;  %v2714_v51 = vrot.slane %v2712_v15, 1  ;;  %v2738_v19 = vshrl.u32 %v6054_v57, 16 }
 0x1d4   : > { %6030 = vmatmul.msk.bf16.vlgmr.msra.gmra.mxu2 %vm325_vm2, %v7186_v11  ;;  %6035 = vmatmul.msk.bf16.vlgmr.msra.gmra.mxu3 %vm325_vm2, %v7188_v58  ;;  %v2686_v58 = vrot.slane %v2684_v49, 1  ;;  %v2710_v11 = vshrl.u32 %v6049_v13, 16 }
 0x1d5   : > { %2801 = vmatpush.bf16.msra.mxu2 %v6740_v61  ;;  %2814 = vmatpush.bf16.msra.mxu3 %v6740_v61  ;;  %v2742_v28 = vrot.slane %v2740_v8, 1  ;;  %v7216_v39 = vor.u32 %v2658_v43, %v2654_v18  ;;  %v8198_v8 = vld [vmem:[#allocation9_spill] sm:$0xff]  ;;  %v8199_v18 = vld [vmem:[#allocation10_spill] sm:$0xff] }
 0x1d6   : > { %2775 = vmatpush.bf16.msra.mxu0 %v6740_v61  ;;  %2788 = vmatpush.bf16.msra.mxu1 %v6740_v61  ;;  %v7218_v38 = vor.u32 %v2686_v58, %v2682_v29 }
 0x1d7   : > { %v2011_v3 = vpop.f32.mrf.mxu2  ;;  %v2024_v27 = vpop.f32.mrf.mxu3 }
 0x1d8   : > { %v2012_v25 = vadd.f32 %v2011_v3, %v7148_v7  ;;  %v2025_v47 = vadd.f32 %v2024_v27, %v7150_v44  ;;  %v1987_v26 = vpop.f32.mrf.mxu0  ;;  %v2000_v54 = vpop.f32.mrf.mxu1  ;;  %8195 = vst [vmem:[#allocation31_spill] sm:$0xff] %v7218_v38  ;;  %v7220_v3 = vor.u32 %v2714_v51, %v2710_v11  ;;  %v7222_v27 = vor.u32 %v2742_v28, %v2738_v19 }
 0x1da   : > { %8196 = vst [vmem:[#allocation32_spill] sm:$0xff] %v7220_v3 }
 0x1db   : > { %8197 = vst [vmem:[#allocation33_spill] sm:$0xff] %v7222_v27 }
 0x1df   : > { %v2013_v6 = vpop.f32.mrf.mxu2  ;;  %v2026_v1 = vpop.f32.mrf.mxu3 }
 0x1e0   : > { %v2037_v7 = vpop.f32.mrf.mxu0  ;;  %v2050_v44 = vpop.f32.mrf.mxu1 }
 0x1e1   : > { %v2038_v40 = vadd.f32 %v2037_v7, %v7154_v50  ;;  %v2051_v14 = vadd.f32 %v2050_v44, %v7156_v59 }
 0x1e3   : > { %6040 = vmatmul.msk.bf16.vlgmr.msrb.gmra.mxu0 %vm325_vm2, %v7216_v39  ;;  %6045 = vmatmul.msk.bf16.vlgmr.msrb.gmra.mxu1 %vm325_vm2, %v7218_v38 }
 0x1e4   : > { %6050 = vmatmul.msk.bf16.vlgmr.msrb.gmra.mxu2 %vm325_vm2, %v7220_v3  ;;  %6055 = vmatmul.msk.bf16.vlgmr.msrb.gmra.mxu3 %vm325_vm2, %v7222_v27 }
 0x1e5   : > { %2853 = vmatpush.bf16.msrb.mxu2 %v6740_v61  ;;  %2866 = vmatpush.bf16.msrb.mxu3 %v6740_v61 }
 0x1e6   : > { %2827 = vmatpush.bf16.msrb.mxu0 %v6740_v61  ;;  %2840 = vmatpush.bf16.msrb.mxu1 %v6740_v61 }
 0x1e7   : > { %v2063_v28 = vpop.f32.mrf.mxu2  ;;  %v2076_v1 = vpop.f32.mrf.mxu3 }
 0x1e8   : > { %v2064_v6 = vadd.f32 %v2063_v28, %v7176_v2  ;;  %v2077_v51 = vadd.f32 %v2076_v1, %v7178_v5  ;;  %v2039_v50 = vpop.f32.mrf.mxu0  ;;  %v2052_v59 = vpop.f32.mrf.mxu1 }
 0x1e9   : > { %v8200_v50 = vld [vmem:[#allocation11_spill] sm:$0xff]  ;;  %v8201_v59 = vld [vmem:[#allocation12_spill] sm:$0xff] }
 0x1ef   : > { %v2065_v19 = vpop.f32.mrf.mxu2  ;;  %v2078_v11 = vpop.f32.mrf.mxu3 }
 0x1f0   : > { %v2104_v58 = vpop.f32.mrf.mxu0  ;;  %v2132_v13 = vpop.f32.mrf.mxu1  ;;  %v8202_v19 = vld [vmem:[#allocation13_spill] sm:$0xff] }
 0x1f1   : > { %v2304_v57 = vadd.f32 %v2104_v58, %v7194_v21  ;;  %v2305_v0 = vadd.f32 %v2132_v13, %v7197_v55 }
 0x1f3   : > { %6056 = vmatmul.msk.bf16.vlgmr.msra.gmra.mxu0 %vm325_vm2, %v6820_v60  ;;  %6057 = vmatmul.msk.bf16.vlgmr.msra.gmra.mxu1 %vm325_vm2, %v6823_v63 }
 0x1f4   : > { %6058 = vmatmul.msk.bf16.vlgmr.msra.gmra.mxu2 %vm325_vm2, %v6830_v48  ;;  %6059 = vmatmul.msk.bf16.vlgmr.msra.gmra.mxu3 %vm325_vm2, %v6833_v34 }
 0x1f5   : > { %2913 = vmatpush.bf16.msra.mxu2 %v6790_v10  ;;  %2926 = vmatpush.bf16.msra.mxu3 %v6790_v10 }
 0x1f6   : > { %2887 = vmatpush.bf16.msra.mxu0 %v6790_v10  ;;  %2900 = vmatpush.bf16.msra.mxu1 %v6790_v10 }
 0x1f7   : > { %v2160_v2 = vpop.f32.mrf.mxu2  ;;  %v2188_v5 = vpop.f32.mrf.mxu3 }
 0x1f8   : > { %v2306_v60 = vadd.f32 %v2160_v2, %v2012_v25  ;;  %v2307_v21 = vadd.f32 %v2188_v5, %v2025_v47  ;;  %v2106_v55 = vpop.f32.mrf.mxu0  ;;  %v2134_v63 = vpop.f32.mrf.mxu1 }
 0x1f9   : > { %v6074_v63 = vld [vmem:[%s6505_s21 + $0x50] sm:$0xf] }
 0x1ff   : > { %v2162_v49 = vpop.f32.mrf.mxu2  ;;  %v2190_v26 = vpop.f32.mrf.mxu3 }
 0x200   : > { %v2216_v48 = vpop.f32.mrf.mxu0  ;;  %v2244_v54 = vpop.f32.mrf.mxu1  ;;  %v6363_v49 = vld [vmem:[%s6505_s21 + $0x50] sm:$0x10] }
 0x201   : > { %v2308_v15 = vadd.f32 %v2216_v48, %v2038_v40  ;;  %v2309_v34 = vadd.f32 %v2244_v54, %v2051_v14  ;;  %v6079_v54 = vld [vmem:[%s6505_s21 + $0x58] sm:$0xf] }
 0x203   : > { %6060 = vmatmul.msk.bf16.vlgmr.msrb.gmra.mxu0 %vm325_vm2, %v6855_v52  ;;  %6061 = vmatmul.msk.bf16.vlgmr.msrb.gmra.mxu1 %vm325_vm2, %v6858_v53 }
 0x204   : > { %6062 = vmatmul.msk.bf16.vlgmr.msrb.gmra.mxu2 %vm325_vm2, %v8198_v8  ;;  %6063 = vmatmul.msk.bf16.vlgmr.msrb.gmra.mxu3 %vm325_vm2, %v8199_v18  ;;  %v6364_v8 = vld [vmem:[%s6505_s21 + $0x58] sm:$0x10]  ;;  %v6084_v18 = vld [vmem:[%s6505_s21 + $0x60] sm:$0xf] }
 0x205   : > { %2965 = vmatpush.bf16.msrb.mxu2 %v6790_v10  ;;  %2978 = vmatpush.bf16.msrb.mxu3 %v6790_v10 }
 0x206   : > { %2939 = vmatpush.bf16.msrb.mxu0 %v6790_v10  ;;  %2952 = vmatpush.bf16.msrb.mxu1 %v6790_v10 }
 0x207   : > { %v2272_v25 = vpop.f32.mrf.mxu2  ;;  %v2300_v47 = vpop.f32.mrf.mxu3 }
 0x208   : > { %v2310_v52 = vadd.f32 %v2272_v25, %v2064_v6  ;;  %v2311_v43 = vadd.f32 %v2300_v47, %v2077_v51  ;;  %v2218_v29 = vpop.f32.mrf.mxu0  ;;  %v2246_v53 = vpop.f32.mrf.mxu1  ;;  %v8203_v6 = vld [vmem:[#allocation14_spill] sm:$0xff]  ;;  %v8204_v51 = vld [vmem:[#allocation8_spill] sm:$0xff] }
 0x209   : > { %v6089_v29 = vld [vmem:[%s6505_s21 + $0x68] sm:$0xf]  ;;  %v6075_v53 = vor.u32 %v6363_v49, %v6074_v63 }
 0x20b   : > { %v2998_v49 = vshrl.u32 %v6075_v53, 16 }
 0x20f   : > { %v2274_v7 = vpop.f32.mrf.mxu2  ;;  %v2302_v44 = vpop.f32.mrf.mxu3 }
 0x210   : > { %v2321_v40 = vpop.f32.mrf.mxu0  ;;  %v2334_v14 = vpop.f32.mrf.mxu1  ;;  %v6080_v7 = vor.u32 %v6364_v8, %v6079_v54 }
 0x211   : > { %v7266_v28 = vadd.f32 %v2321_v40, %v2304_v57  ;;  %v7268_v1 = vadd.f32 %v2334_v14, %v2305_v0  ;;  %v3000_v14 = vshll.u32 %v6075_v53, 16  ;;  %v6094_v53 = vld [vmem:[%s6505_s21 + $0x70] sm:$0xf] }
 0x213   : > { %6064 = vmatmul.msk.bf16.vlgmr.msra.gmra.mxu0 %vm325_vm2, %v8200_v50  ;;  %6065 = vmatmul.msk.bf16.vlgmr.msra.gmra.mxu1 %vm325_vm2, %v8201_v59 }
 0x214   : > { %6066 = vmatmul.msk.bf16.vlgmr.msra.gmra.mxu2 %vm325_vm2, %v8202_v19  ;;  %6067 = vmatmul.msk.bf16.vlgmr.msra.gmra.mxu3 %vm325_vm2, %v8203_v6 }
 0x215   : > { %3070 = vmatpush.bf16.msra.mxu2 %v8204_v51  ;;  %3098 = vmatpush.bf16.msra.mxu3 %v8204_v51 }
 0x216   : > { %3014 = vmatpush.bf16.msra.mxu0 %v8204_v51  ;;  %3042 = vmatpush.bf16.msra.mxu1 %v8204_v51 }
 0x217   : > { %v2347_v11 = vpop.f32.mrf.mxu2  ;;  %v2360_v58 = vpop.f32.mrf.mxu3 }
 0x218   : > { %v7282_v13 = vadd.f32 %v2347_v11, %v2306_v60  ;;  %v7284_v57 = vadd.f32 %v2360_v58, %v2307_v21  ;;  %v2323_v0 = vpop.f32.mrf.mxu0  ;;  %v2336_v2 = vpop.f32.mrf.mxu1  ;;  %v6365_v60 = vld [vmem:[%s6505_s21 + $0x60] sm:$0x10]  ;;  %v6366_v21 = vld [vmem:[%s6505_s21 + $0x68] sm:$0x10]  ;;  %v3028_v11 = vshll.u32 %v6080_v7, 16 }
 0x21a   : > { %v3030_v54 = vrot.slane %v3028_v11, 1 }
 0x21f   : > { %v2349_v5 = vpop.f32.mrf.mxu2  ;;  %v2362_v55 = vpop.f32.mrf.mxu3 }
 0x220   : > { %v2373_v26 = vpop.f32.mrf.mxu0  ;;  %v2386_v48 = vpop.f32.mrf.mxu1 }
 0x221   : > { %v7291_v25 = vadd.f32 %v2373_v26, %v2308_v15  ;;  %v7293_v47 = vadd.f32 %v2386_v48, %v2309_v34  ;;  %v6085_v15 = vor.u32 %v6365_v60, %v6084_v18  ;;  %v6090_v34 = vor.u32 %v6366_v21, %v6089_v29 }
 0x222   : > { %v3002_v26 = vrot.slane %v3000_v14, 1  ;;  %v3026_v48 = vshrl.u32 %v6080_v7, 16 }
 0x223   : > { %6068 = vmatmul.msk.bf16.vlgmr.msrb.gmra.mxu0 %vm325_vm2, %v6932_v17  ;;  %6069 = vmatmul.msk.bf16.vlgmr.msrb.gmra.mxu1 %vm325_vm2, %v6934_v16  ;;  %v3056_v55 = vshll.u32 %v6085_v15, 16  ;;  %v3084_v63 = vshll.u32 %v6090_v34, 16  ;;  %v3054_v8 = vshrl.u32 %v6085_v15, 16  ;;  %v3082_v60 = vshrl.u32 %v6090_v34, 16  ;;  %v6368_v34 = vld [vmem:[%s6505_s21 + $0x78] sm:$0x10] }
 0x224   : > { %6070 = vmatmul.msk.bf16.vlgmr.msrb.gmra.mxu2 %vm325_vm2, %v6936_v30  ;;  %6071 = vmatmul.msk.bf16.vlgmr.msrb.gmra.mxu3 %vm325_vm2, %v6938_v41  ;;  %v7314_v21 = vor.u32 %v3002_v26, %v2998_v49  ;;  %v6369_v49 = vld [vmem:[%s6505_s21 + $0x80] sm:$0x10]  ;;  %v6109_v26 = vld [vmem:[%s6505_s21 + $0x88] sm:$0xf] }
 0x225   : > { %3182 = vmatpush.bf16.msrb.mxu2 %v8204_v51  ;;  %3210 = vmatpush.bf16.msrb.mxu3 %v8204_v51  ;;  %v3058_v18 = vrot.slane %v3056_v55, 1 }
 0x226   : > { %3126 = vmatpush.bf16.msrb.mxu0 %v8204_v51  ;;  %3154 = vmatpush.bf16.msrb.mxu1 %v8204_v51  ;;  %8205 = vst [vmem:[#allocation9_spill] sm:$0xff] %v7314_v21 }
 0x227   : > { %v2399_v44 = vpop.f32.mrf.mxu2  ;;  %v2412_v40 = vpop.f32.mrf.mxu3  ;;  %v7320_v11 = vor.u32 %v3058_v18, %v3054_v8 }
 0x228   : > { %v7310_v58 = vadd.f32 %v2399_v44, %v2310_v52  ;;  %v7312_v0 = vadd.f32 %v2412_v40, %v2311_v43  ;;  %v2375_v2 = vpop.f32.mrf.mxu0  ;;  %v2388_v5 = vpop.f32.mrf.mxu1  ;;  %v3086_v52 = vrot.slane %v3084_v63, 1  ;;  %v7316_v44 = vor.u32 %v3030_v54, %v3026_v48  ;;  %v6367_v40 = vld [vmem:[%s6505_s21 + $0x70] sm:$0x10]  ;;  %v6370_v48 = vld [vmem:[%s6505_s21 + $0x88] sm:$0x10] }
 0x229   : > { %8207 = vst [vmem:[#allocation34_spill] sm:$0xff] %v7320_v11  ;;  %v6099_v2 = vld [vmem:[%s6505_s21 + $0x78] sm:$0xf]  ;;  %v6104_v5 = vld [vmem:[%s6505_s21 + $0x80] sm:$0xf]  ;;  %v6095_v54 = vor.u32 %v6367_v40, %v6094_v53 }
 0x22a   : > { %8206 = vst [vmem:[#allocation10_spill] sm:$0xff] %v7316_v44  ;;  %v7322_v15 = vor.u32 %v3086_v52, %v3082_v60  ;;  %v6100_v8 = vor.u32 %v6368_v34, %v6099_v2 }
 0x22b   : > { %v3112_v52 = vshll.u32 %v6095_v54, 16  ;;  %v3110_v34 = vshrl.u32 %v6095_v54, 16 }
 0x22c   : > { %8208 = vst [vmem:[#allocation35_spill] sm:$0xff] %v7322_v15 }
 0x22f   : > { %v2401_v43 = vpop.f32.mrf.mxu2  ;;  %v2414_v29 = vpop.f32.mrf.mxu3 }
 0x230   : > { %v2433_v7 = vpop.f32.mrf.mxu0  ;;  %v2446_v14 = vpop.f32.mrf.mxu1  ;;  %v3140_v43 = vshll.u32 %v6100_v8, 16 }
 0x231   : > { %v7328_v55 = vadd.f32 %v2433_v7, %v7266_v28  ;;  %v7331_v63 = vadd.f32 %v2446_v14, %v7268_v1  ;;  %v6105_v28 = vor.u32 %v6369_v49, %v6104_v5  ;;  %v6110_v1 = vor.u32 %v6370_v48, %v6109_v26 }
 0x232   : > { %v3114_v5 = vrot.slane %v3112_v52, 1  ;;  %v3138_v49 = vshrl.u32 %v6100_v8, 16  ;;  %v3142_v26 = vrot.slane %v3140_v43, 1 }
 0x233   : > { %6076 = vmatmul.msk.bf16.vlgmr.msra.gmra.mxu0 %vm325_vm2, %v7314_v21  ;;  %6081 = vmatmul.msk.bf16.vlgmr.msra.gmra.mxu1 %vm325_vm2, %v7316_v44  ;;  %v3168_v14 = vshll.u32 %v6105_v28, 16  ;;  %v3196_v2 = vshll.u32 %v6110_v1, 16  ;;  %v3166_v48 = vshrl.u32 %v6105_v28, 16 }
 0x234   : > { %6086 = vmatmul.msk.bf16.vlgmr.msra.gmra.mxu2 %vm325_vm2, %v7320_v11  ;;  %6091 = vmatmul.msk.bf16.vlgmr.msra.gmra.mxu3 %vm325_vm2, %v7322_v15  ;;  %v3194_v11 = vshrl.u32 %v6110_v1, 16  ;;  %v7350_v3 = vor.u32 %v3114_v5, %v3110_v34  ;;  %v7352_v38 = vor.u32 %v3142_v26, %v3138_v49 }
 0x235   : > { %3273 = vmatpush.bf16.msra.mxu2 %v6492_v4  ;;  %3286 = vmatpush.bf16.msra.mxu3 %v6492_v4  ;;  %v3170_v15 = vrot.slane %v3168_v14, 1  ;;  %v3198_v44 = vrot.slane %v3196_v2, 1 }
 0x236   : > { %3247 = vmatpush.bf16.msra.mxu0 %v6492_v4  ;;  %3260 = vmatpush.bf16.msra.mxu1 %v6492_v4  ;;  %8209 = vst [vmem:[#allocation36_spill] sm:$0xff] %v7350_v3 }
 0x237   : > { %v2459_v18 = vpop.f32.mrf.mxu2  ;;  %v2472_v60 = vpop.f32.mrf.mxu3  ;;  %8210 = vst [vmem:[#allocation37_spill] sm:$0xff] %v7352_v38 }
 0x238   : > { %v2530_v29 = vadd.f32 %v2459_v18, %v7282_v13  ;;  %v2531_v53 = vadd.f32 %v2472_v60, %v7284_v57  ;;  %v2435_v40 = vpop.f32.mrf.mxu0  ;;  %v2448_v7 = vpop.f32.mrf.mxu1  ;;  %v7354_v18 = vor.u32 %v3170_v15, %v3166_v48  ;;  %v7356_v60 = vor.u32 %v3198_v44, %v3194_v11 }
 0x23a   : > { %8211 = vst [vmem:[#allocation38_spill] sm:$0xff] %v7354_v18 }
 0x23b   : > { %8212 = vst [vmem:[#allocation39_spill] sm:$0xff] %v7356_v60 }
 0x23f   : > { %v2461_v21 = vpop.f32.mrf.mxu2  ;;  %v2474_v27 = vpop.f32.mrf.mxu3 }
 0x240   : > { %v2485_v13 = vpop.f32.mrf.mxu0  ;;  %v2498_v57 = vpop.f32.mrf.mxu1 }
 0x241   : > { %v2532_v54 = vadd.f32 %v2485_v13, %v7291_v25  ;;  %v2533_v8 = vadd.f32 %v2498_v57, %v7293_v47 }
 0x243   : > { %6096 = vmatmul.msk.bf16.vlgmr.msrb.gmra.mxu0 %vm325_vm2, %v7350_v3  ;;  %6101 = vmatmul.msk.bf16.vlgmr.msrb.gmra.mxu1 %vm325_vm2, %v7352_v38 }
 0x244   : > { %6106 = vmatmul.msk.bf16.vlgmr.msrb.gmra.mxu2 %vm325_vm2, %v7354_v18  ;;  %6111 = vmatmul.msk.bf16.vlgmr.msrb.gmra.mxu3 %vm325_vm2, %v7356_v60 }
 0x245   : > { %3325 = vmatpush.bf16.msrb.mxu2 %v6492_v4  ;;  %3338 = vmatpush.bf16.msrb.mxu3 %v6492_v4 }
 0x246   : > { %3299 = vmatpush.bf16.msrb.mxu0 %v6492_v4  ;;  %3312 = vmatpush.bf16.msrb.mxu1 %v6492_v4 }
 0x247   : > { %v2511_v27 = vpop.f32.mrf.mxu2  ;;  %v2524_v25 = vpop.f32.mrf.mxu3 }
 0x248   : > { %v2534_v47 = vadd.f32 %v2511_v27, %v7310_v58  ;;  %v2535_v21 = vadd.f32 %v2524_v25, %v7312_v0  ;;  %v2487_v44 = vpop.f32.mrf.mxu0  ;;  %v2500_v11 = vpop.f32.mrf.mxu1  ;;  %v6416_v27 = vld [vmem:[%s6505_s21 + $0xa0] sm:$0xf]  ;;  %v6417_v25 = vld [vmem:[%s6505_s21 + $0xa8] sm:$0xf] }
 0x24f   : > { %v2513_v15 = vpop.f32.mrf.mxu2  ;;  %v2526_v28 = vpop.f32.mrf.mxu3 }
 0x250   : > { %v2560_v1 = vpop.f32.mrf.mxu0  ;;  %v2588_v52 = vpop.f32.mrf.mxu1 }
 0x251   : > { %v2760_v43 = vadd.f32 %v2560_v1, %v7328_v55  ;;  %v2761_v40 = vadd.f32 %v2588_v52, %v7331_v63 }
 0x253   : > { %6112 = vmatmul.msk.bf16.vlgmr.msra.gmra.mxu0 %vm325_vm2, %v7073_v12  ;;  %6113 = vmatmul.msk.bf16.vlgmr.msra.gmra.mxu1 %vm325_vm2, %v7078_v35 }
 0x254   : > { %6114 = vmatmul.msk.bf16.vlgmr.msra.gmra.mxu2 %vm325_vm2, %v7083_v31  ;;  %6115 = vmatmul.msk.bf16.vlgmr.msra.gmra.mxu3 %vm325_vm2, %v7088_v24 }
 0x255   : > { %3377 = vmatpush.bf16.msra.mxu2 %v6513_v9  ;;  %3390 = vmatpush.bf16.msra.mxu3 %v6513_v9 }
 0x256   : > { %3351 = vmatpush.bf16.msra.mxu0 %v6513_v9  ;;  %3364 = vmatpush.bf16.msra.mxu1 %v6513_v9 }
 0x257   : > { %v2616_v58 = vpop.f32.mrf.mxu2  ;;  %v2644_v0 = vpop.f32.mrf.mxu3 }
 0x258   : > { %v2762_v12 = vadd.f32 %v2616_v58, %v2530_v29  ;;  %v2763_v55 = vadd.f32 %v2644_v0, %v2531_v53  ;;  %v2562_v63 = vpop.f32.mrf.mxu0  ;;  %v2590_v35 = vpop.f32.mrf.mxu1 }
 0x259   : > { %v6418_v63 = vld [vmem:[%s6505_s21 + $0xb0] sm:$0xf]  ;;  %v6419_v35 = vld [vmem:[%s6505_s21 + $0xb8] sm:$0xf] }
 0x25f   : > { %v2618_v7 = vpop.f32.mrf.mxu2  ;;  %v2646_v14 = vpop.f32.mrf.mxu3 }
 0x260   : > { %v2672_v31 = vpop.f32.mrf.mxu0  ;;  %v2700_v2 = vpop.f32.mrf.mxu1  ;;  %v6420_v7 = vld [vmem:[%s6505_s21 + $0xc0] sm:$0xf] }
 0x261   : > { %v2764_v34 = vadd.f32 %v2672_v31, %v2532_v54  ;;  %v2765_v24 = vadd.f32 %v2700_v2, %v2533_v8  ;;  %v6414_v54 = vld [vmem:[%s6505_s21 + $0x90] sm:$0xf]  ;;  %v6415_v8 = vld [vmem:[%s6505_s21 + $0x98] sm:$0xf] }
 0x263   : > { %6116 = vmatmul.msk.bf16.vlgmr.msrb.gmra.mxu0 %vm325_vm2, %v7105_v23  ;;  %6117 = vmatmul.msk.bf16.vlgmr.msrb.gmra.mxu1 %vm325_vm2, %v7110_v42 }
 0x264   : > { %6118 = vmatmul.msk.bf16.vlgmr.msrb.gmra.mxu2 %vm325_vm2, %v7115_v56  ;;  %6119 = vmatmul.msk.bf16.vlgmr.msrb.gmra.mxu3 %vm325_vm2, %v7120_v22 }
 0x265   : > { %3429 = vmatpush.bf16.msrb.mxu2 %v6513_v9  ;;  %3442 = vmatpush.bf16.msrb.mxu3 %v6513_v9 }
 0x266   : > { %3403 = vmatpush.bf16.msrb.mxu0 %v6513_v9  ;;  %3416 = vmatpush.bf16.msrb.mxu1 %v6513_v9 }
 0x267   : > { %v2728_v23 = vpop.f32.mrf.mxu2  ;;  %v2756_v29 = vpop.f32.mrf.mxu3 }
 0x268   : > { %v2766_v42 = vadd.f32 %v2728_v23, %v2534_v47  ;;  %v2767_v53 = vadd.f32 %v2756_v29, %v2535_v21  ;;  %v2674_v56 = vpop.f32.mrf.mxu0  ;;  %v2702_v5 = vpop.f32.mrf.mxu1 }
 0x26f   : > { %v2730_v49 = vpop.f32.mrf.mxu2  ;;  %v2758_v22 = vpop.f32.mrf.mxu3 }
 0x270   : > { %v2777_v26 = vpop.f32.mrf.mxu0  ;;  %v2790_v48 = vpop.f32.mrf.mxu1 }
 0x271   : > { %v2872_v13 = vadd.f32 %v2777_v26, %v2760_v43  ;;  %v2873_v57 = vadd.f32 %v2790_v48, %v2761_v40 }
 0x273   : > { %6120 = vmatmul.msk.bf16.vlgmr.msra.gmra.mxu0 %vm325_vm2, %v6414_v54  ;;  %6121 = vmatmul.msk.bf16.vlgmr.msra.gmra.mxu1 %vm325_vm2, %v6415_v8 }
 0x274   : > { %6122 = vmatmul.msk.bf16.vlgmr.msra.gmra.mxu2 %vm325_vm2, %v6416_v27  ;;  %6123 = vmatmul.msk.bf16.vlgmr.msra.gmra.mxu3 %vm325_vm2, %v6417_v25 }
 0x275   : > { %3481 = vmatpush.bf16.msra.mxu2 %v6546_v20  ;;  %3494 = vmatpush.bf16.msra.mxu3 %v6546_v20 }
 0x276   : > { %3455 = vmatpush.bf16.msra.mxu0 %v6546_v20  ;;  %3468 = vmatpush.bf16.msra.mxu1 %v6546_v20 }
 0x277   : > { %v2803_v47 = vpop.f32.mrf.mxu2  ;;  %v2816_v21 = vpop.f32.mrf.mxu3 }
 0x278   : > { %v2874_v44 = vadd.f32 %v2803_v47, %v2762_v12  ;;  %v2875_v11 = vadd.f32 %v2816_v21, %v2763_v55  ;;  %v2779_v15 = vpop.f32.mrf.mxu0  ;;  %v2792_v28 = vpop.f32.mrf.mxu1  ;;  %v6421_v12 = vld [vmem:[%s6505_s21 + $0xc8] sm:$0xf] }
 0x279   : > { %v8213_v15 = vld [vmem:[#allocation5_spill] sm:$0xff] }
 0x27f   : > { %v2805_v1 = vpop.f32.mrf.mxu2  ;;  %v2818_v52 = vpop.f32.mrf.mxu3 }
 0x280   : > { %v2829_v43 = vpop.f32.mrf.mxu0  ;;  %v2842_v40 = vpop.f32.mrf.mxu1 }
 0x281   : > { %v2876_v58 = vadd.f32 %v2829_v43, %v2764_v34  ;;  %v2877_v0 = vadd.f32 %v2842_v40, %v2765_v24 }
 0x283   : > { %6124 = vmatmul.msk.bf16.vlgmr.msrb.gmra.mxu0 %vm325_vm2, %v6418_v63  ;;  %6125 = vmatmul.msk.bf16.vlgmr.msrb.gmra.mxu1 %vm325_vm2, %v6419_v35 }
 0x284   : > { %6126 = vmatmul.msk.bf16.vlgmr.msrb.gmra.mxu2 %vm325_vm2, %v6420_v7  ;;  %6127 = vmatmul.msk.bf16.vlgmr.msrb.gmra.mxu3 %vm325_vm2, %v6421_v12  ;;  %v8215_v12 = vld [vmem:[#allocation19_spill] sm:$0xff] }
 0x285   : > { %3533 = vmatpush.bf16.msrb.mxu2 %v6546_v20  ;;  %3546 = vmatpush.bf16.msrb.mxu3 %v6546_v20 }
 0x286   : > { %3507 = vmatpush.bf16.msrb.mxu0 %v6546_v20  ;;  %3520 = vmatpush.bf16.msrb.mxu1 %v6546_v20 }
 0x287   : > { %v2855_v55 = vpop.f32.mrf.mxu2  ;;  %v2868_v14 = vpop.f32.mrf.mxu3 }
 0x288   : > { %v2878_v31 = vadd.f32 %v2855_v55, %v2766_v42  ;;  %v2879_v2 = vadd.f32 %v2868_v14, %v2767_v53  ;;  %v2831_v34 = vpop.f32.mrf.mxu0  ;;  %v2844_v24 = vpop.f32.mrf.mxu1  ;;  %v8216_v14 = vld [vmem:[#allocation20_spill] sm:$0xff] }
 0x28f   : > { %v2857_v23 = vpop.f32.mrf.mxu2  ;;  %v2870_v29 = vpop.f32.mrf.mxu3 }
 0x290   : > { %v2889_v56 = vpop.f32.mrf.mxu0  ;;  %v2902_v5 = vpop.f32.mrf.mxu1  ;;  %v6422_v29 = vld [vmem:[%s6505_s21 + $0x8] sm:$0xf] }
 0x291   : > { %v2984_v49 = vadd.f32 %v2889_v56, %v2872_v13  ;;  %v2985_v22 = vadd.f32 %v2902_v5, %v2873_v57  ;;  %v6423_v56 = vld [vmem:[%s6505_s21 + $0x10] sm:$0xf]  ;;  %v6424_v5 = vld [vmem:[%s6505_s21 + $0x18] sm:$0xf] }
 0x293   : > { %6128 = vmatmul.msk.bf16.vlgmr.msra.gmra.mxu0 %vm325_vm2, %v6717_v36  ;;  %6129 = vmatmul.msk.bf16.vlgmr.msra.gmra.mxu1 %vm325_vm2, %v6719_v37 }
 0x294   : > { %6130 = vmatmul.msk.bf16.vlgmr.msra.gmra.mxu2 %vm325_vm2, %v6723_v45  ;;  %6131 = vmatmul.msk.bf16.vlgmr.msra.gmra.mxu3 %vm325_vm2, %v6725_v46 }
 0x295   : > { %3593 = vmatpush.bf16.msra.mxu2 %v6596_v62  ;;  %3606 = vmatpush.bf16.msra.mxu3 %v6596_v62 }
 0x296   : > { %3567 = vmatpush.bf16.msra.mxu0 %v6596_v62  ;;  %3580 = vmatpush.bf16.msra.mxu1 %v6596_v62 }
 0x297   : > { %v2915_v42 = vpop.f32.mrf.mxu2  ;;  %v2928_v53 = vpop.f32.mrf.mxu3 }
 0x298   : > { %v2986_v26 = vadd.f32 %v2915_v42, %v2874_v44  ;;  %v2987_v48 = vadd.f32 %v2928_v53, %v2875_v11  ;;  %v2891_v13 = vpop.f32.mrf.mxu0  ;;  %v2904_v57 = vpop.f32.mrf.mxu1  ;;  %v8214_v44 = vld [vmem:[#allocation6_spill] sm:$0xff] }
 0x299   : > { %v6425_v42 = vld [vmem:[%s6505_s21 + $0x20] sm:$0xf] }
 0x29a   : > { %v8217_v57 = vld [vmem:[#allocation2_spill] sm:$0xff] }
 0x29f   : > { %v2917_v54 = vpop.f32.mrf.mxu2  ;;  %v2930_v8 = vpop.f32.mrf.mxu3 }
 0x2a0   : > { %v2941_v27 = vpop.f32.mrf.mxu0  ;;  %v2954_v25 = vpop.f32.mrf.mxu1 }
 0x2a1   : > { %v7436_v47 = vadd.f32 %v2941_v27, %v2876_v58  ;;  %v7438_v21 = vadd.f32 %v2954_v25, %v2877_v0  ;;  %v7459_v58 = vld [vmem:[%s8103_s2] ss:$0 sm:$0xff] }
 0x2a2   : > { %v1856_v55 = vadd.f32 %v7459_v58, %v8215_v12 }
 0x2a3   : > { %6132 = vmatmul.msk.bf16.vlgmr.msrb.gmra.mxu0 %vm325_vm2, %v6756_v32  ;;  %6133 = vmatmul.msk.bf16.vlgmr.msrb.gmra.mxu1 %vm325_vm2, %v6758_v33 }
 0x2a4   : > { %6134 = vmatmul.msk.bf16.vlgmr.msrb.gmra.mxu2 %vm325_vm2, %v8213_v15  ;;  %6135 = vmatmul.msk.bf16.vlgmr.msrb.gmra.mxu3 %vm325_vm2, %v8214_v44  ;;  %v1864_v53 = vmax.f32 %v1856_v55, 0.0 }
 0x2a5   : > { %3645 = vmatpush.bf16.msrb.mxu2 %v6596_v62  ;;  %3658 = vmatpush.bf16.msrb.mxu3 %v6596_v62 }
 0x2a6   : > { %3619 = vmatpush.bf16.msrb.mxu0 %v6596_v62  ;;  %3632 = vmatpush.bf16.msrb.mxu1 %v6596_v62 }
 0x2a7   : > { %v2967_v11 = vpop.f32.mrf.mxu2  ;;  %v2980_v28 = vpop.f32.mrf.mxu3 }
 0x2a8   : > { %v7452_v1 = vadd.f32 %v2967_v11, %v2878_v31  ;;  %v7454_v52 = vadd.f32 %v2980_v28, %v2879_v2  ;;  %v2943_v43 = vpop.f32.mrf.mxu0  ;;  %v2956_v40 = vpop.f32.mrf.mxu1  ;;  %v1857_v31 = vadd.f32 %v7459_v58, %v8216_v14  ;;  %v8218_v11 = vld [vmem:[#allocation21_spill] sm:$0xff] }
 0x2a9   : > { %v1858_v28 = vadd.f32 %v7459_v58, %v8218_v11  ;;  %v8219_v43 = vld [vmem:[#allocation22_spill] sm:$0xff]  ;;  %v6426_v11 = vld [vmem:[%s6505_s21 + $0x28] sm:$0xf] }
 0x2aa   : > { %v1865_v13 = vmax.f32 %v1857_v31, 0.0  ;;  %v1859_v40 = vadd.f32 %v7459_v58, %v8219_v43  ;;  %v6428_v43 = vld [vmem:[%s6505_s21 + $0x38] sm:$0xf] }
 0x2ab   : > { %v1866_v14 = vmax.f32 %v1858_v28, 0.0  ;;  %v6427_v28 = vld [vmem:[%s6505_s21 + $0x30] sm:$0xf] }
 0x2ac   : > { %v1867_v31 = vmax.f32 %v1859_v40, 0.0  ;;  %v6429_v40 = vld [vmem:[%s6505_s21 + $0x40] sm:$0xf] }
 0x2af   : > { %v2969_v0 = vpop.f32.mrf.mxu2  ;;  %v2982_v63 = vpop.f32.mrf.mxu3 }
 0x2b0   : > { %v3016_v35 = vpop.f32.mrf.mxu0  ;;  %v3044_v7 = vpop.f32.mrf.mxu1 }
 0x2b1   : > { %v3216_v2 = vadd.f32 %v3016_v35, %v2984_v49  ;;  %v3217_v34 = vadd.f32 %v3044_v7, %v2985_v22 }
 0x2b3   : > { %v3224_v24 = vadd.f32 %v7459_v58, %v3216_v2  ;;  %v3225_v23 = vadd.f32 %v7459_v58, %v3217_v34  ;;  %6136 = vmatmul.msk.bf16.vlgmr.msra.gmra.mxu0 %vm325_vm2, %v6422_v29  ;;  %6137 = vmatmul.msk.bf16.vlgmr.msra.gmra.mxu1 %vm325_vm2, %v6423_v56 }
 0x2b4   : > { %6138 = vmatmul.msk.bf16.vlgmr.msra.gmra.mxu2 %vm325_vm2, %v6424_v5  ;;  %6139 = vmatmul.msk.bf16.vlgmr.msra.gmra.mxu3 %vm325_vm2, %v6425_v42  ;;  %v8220_v5 = vld [vmem:[#allocation23_spill] sm:$0xff] }
 0x2b5   : > { %v3232_v49 = vmax.f32 %v3224_v24, 0.0  ;;  %v3233_v22 = vmax.f32 %v3225_v23, 0.0  ;;  %3705 = vmatpush.bf16.msra.mxu2 %v8217_v57  ;;  %3718 = vmatpush.bf16.msra.mxu3 %v8217_v57  ;;  %v1860_v42 = vadd.f32 %v7459_v58, %v8220_v5 }
 0x2b6   : > { %3679 = vmatpush.bf16.msra.mxu0 %v8217_v57  ;;  %3692 = vmatpush.bf16.msra.mxu1 %v8217_v57 }
 0x2b7   : > { %v7479_v54 = vadd.f32 %v3232_v49, %v1864_v53  ;;  %v7481_v8 = vadd.f32 %v3233_v22, %v1865_v13  ;;  %v3072_v27 = vpop.f32.mrf.mxu2  ;;  %v3100_v25 = vpop.f32.mrf.mxu3  ;;  %v8221_v53 = vld [vmem:[#allocation24_spill] sm:$0xff] }
 0x2b8   : > { %v3218_v0 = vadd.f32 %v3072_v27, %v2986_v26  ;;  %v3219_v63 = vadd.f32 %v3100_v25, %v2987_v48  ;;  %v3018_v35 = vpop.f32.mrf.mxu0  ;;  %v3046_v7 = vpop.f32.mrf.mxu1  ;;  %v1861_v13 = vadd.f32 %v7459_v58, %v8221_v53 }
 0x2ba   : > { %v3226_v12 = vadd.f32 %v7459_v58, %v3218_v0  ;;  %v3227_v55 = vadd.f32 %v7459_v58, %v3219_v63  ;;  %v1868_v0 = vmax.f32 %v1860_v42, 0.0 }
 0x2bc   : > { %v3234_v2 = vmax.f32 %v3226_v12, 0.0  ;;  %v3235_v34 = vmax.f32 %v3227_v55, 0.0 }
 0x2be   : > { %v7489_v24 = vadd.f32 %v3234_v2, %v1866_v14  ;;  %v7491_v23 = vadd.f32 %v3235_v34, %v1867_v31  ;;  %v8222_v14 = vld [vmem:[#allocation25_spill] sm:$0xff]  ;;  %v8223_v2 = vld [vmem:[#allocation26_spill] sm:$0xff] }
 0x2bf   : > { %v3074_v29 = vpop.f32.mrf.mxu2  ;;  %v3102_v26 = vpop.f32.mrf.mxu3  ;;  %v1862_v31 = vadd.f32 %v7459_v58, %v8222_v14  ;;  %v1863_v34 = vadd.f32 %v7459_v58, %v8223_v2 }
 0x2c0   : > { %v3128_v48 = vpop.f32.mrf.mxu0  ;;  %v3156_v56 = vpop.f32.mrf.mxu1 }
 0x2c1   : > { %v3220_v49 = vadd.f32 %v3128_v48, %v7436_v47  ;;  %v3221_v22 = vadd.f32 %v3156_v56, %v7438_v21  ;;  %v1869_v47 = vmax.f32 %v1861_v13, 0.0  ;;  %v1870_v53 = vmax.f32 %v1862_v31, 0.0 }
 0x2c2   : > { %v1871_v13 = vmax.f32 %v1863_v34, 0.0 }
 0x2c3   : > { %v3228_v27 = vadd.f32 %v7459_v58, %v3220_v49  ;;  %v3229_v25 = vadd.f32 %v7459_v58, %v3221_v22  ;;  %6140 = vmatmul.msk.bf16.vlgmr.msrb.gmra.mxu0 %vm325_vm2, %v6426_v11  ;;  %6141 = vmatmul.msk.bf16.vlgmr.msrb.gmra.mxu1 %vm325_vm2, %v6427_v28 }
 0x2c4   : > { %6142 = vmatmul.msk.bf16.vlgmr.msrb.gmra.mxu2 %vm325_vm2, %v6428_v43  ;;  %6143 = vmatmul.msk.bf16.vlgmr.msrb.gmra.mxu3 %vm325_vm2, %v6429_v40  ;;  %v7530_v43 = vld [vmem:[%s6505_s21 + $0x50] sm:$0xf]  ;;  %v7535_v40 = vld [vmem:[%s6505_s21 + $0x58] sm:$0xf] }
 0x2c5   : > { %v3236_v63 = vmax.f32 %v3228_v27, 0.0  ;;  %v3237_v21 = vmax.f32 %v3229_v25, 0.0  ;;  %3757 = vmatpush.bf16.msrb.mxu2 %v8217_v57  ;;  %3770 = vmatpush.bf16.msrb.mxu3 %v8217_v57 }
 0x2c6   : > { %3731 = vmatpush.bf16.msrb.mxu0 %v8217_v57  ;;  %3744 = vmatpush.bf16.msrb.mxu1 %v8217_v57 }
 0x2c7   : > { %v7513_v35 = vadd.f32 %v3236_v63, %v1868_v0  ;;  %v7515_v7 = vadd.f32 %v3237_v21, %v1869_v47  ;;  %v3184_v12 = vpop.f32.mrf.mxu2  ;;  %v3212_v55 = vpop.f32.mrf.mxu3  ;;  %v7540_v0 = vld [vmem:[%s6505_s21 + $0x60] sm:$0xf]  ;;  %v7545_v47 = vld [vmem:[%s6505_s21 + $0x68] sm:$0xf] }
 0x2c8   : > { %v3222_v29 = vadd.f32 %v3184_v12, %v7452_v1  ;;  %v3223_v26 = vadd.f32 %v3212_v55, %v7454_v52  ;;  %v3130_v48 = vpop.f32.mrf.mxu0  ;;  %v3158_v56 = vpop.f32.mrf.mxu1  ;;  %v8225_v63 = vld [vmem:[#allocation3_spill] sm:$0xff] }
 0x2c9   : > { %v7559_v48 = vld [vmem:[%s6505_s21 + $0x78] sm:$0xf]  ;;  %v7564_v56 = vld [vmem:[%s6505_s21 + $0x80] sm:$0xf] }
 0x2ca   : > { %v3230_v5 = vadd.f32 %v7459_v58, %v3222_v29  ;;  %v3231_v42 = vadd.f32 %v7459_v58, %v3223_v26  ;;  %v7554_v26 = vld [vmem:[%s6505_s21 + $0x70] sm:$0xf] }
 0x2cc   : > { %v3238_v49 = vmax.f32 %v3230_v5, 0.0  ;;  %v3239_v22 = vmax.f32 %v3231_v42, 0.0  ;;  %v7569_v5 = vld [vmem:[%s6505_s21 + $0x88] sm:$0xf] }
 0x2ce   : > { %v7525_v27 = vadd.f32 %v3238_v49, %v1870_v53  ;;  %v7527_v25 = vadd.f32 %v3239_v22, %v1871_v13 }
 0x2cf   : > { %v3186_v1 = vpop.f32.mrf.mxu2  ;;  %v3214_v11 = vpop.f32.mrf.mxu3 }
 0x2d0   : > { %8224 = vst [vmem:[#allocation5_spill] sm:$0xff] %v7527_v25  ;;  %v3249_v52 = vpop.f32.mrf.mxu0  ;;  %v3262_v28 = vpop.f32.mrf.mxu1 }
 0x2d3   : > { %6144 = vmatmul.msk.bf16.vlgmr.msra.gmra.mxu0 %vm325_vm2, %v7530_v43  ;;  %6145 = vmatmul.msk.bf16.vlgmr.msra.gmra.mxu1 %vm325_vm2, %v7535_v40 }
 0x2d4   : > { %6146 = vmatmul.msk.bf16.vlgmr.msra.gmra.mxu2 %vm325_vm2, %v7540_v0  ;;  %6147 = vmatmul.msk.bf16.vlgmr.msra.gmra.mxu3 %vm325_vm2, %v7545_v47 }
 0x2d5   : > { %3817 = vmatpush.bf16.msra.mxu2 %v8225_v63  ;;  %3830 = vmatpush.bf16.msra.mxu3 %v8225_v63 }
 0x2d6   : > { %3791 = vmatpush.bf16.msra.mxu0 %v8225_v63  ;;  %3804 = vmatpush.bf16.msra.mxu1 %v8225_v63 }
 0x2d7   : > { %v3275_v21 = vpop.f32.mrf.mxu2  ;;  %v3288_v12 = vpop.f32.mrf.mxu3 }
 0x2d8   : > { %v3251_v55 = vpop.f32.mrf.mxu0  ;;  %v3264_v14 = vpop.f32.mrf.mxu1 }
 0x2df   : > { %v3277_v31 = vpop.f32.mrf.mxu2  ;;  %v3290_v2 = vpop.f32.mrf.mxu3 }
 0x2e0   : > { %v3301_v34 = vpop.f32.mrf.mxu0  ;;  %v3314_v29 = vpop.f32.mrf.mxu1 }
 0x2e3   : > { %6148 = vmatmul.msk.bf16.vlgmr.msrb.gmra.mxu0 %vm325_vm2, %v7554_v26  ;;  %6149 = vmatmul.msk.bf16.vlgmr.msrb.gmra.mxu1 %vm325_vm2, %v7559_v48 }
 0x2e4   : > { %6150 = vmatmul.msk.bf16.vlgmr.msrb.gmra.mxu2 %vm325_vm2, %v7564_v56  ;;  %6151 = vmatmul.msk.bf16.vlgmr.msrb.gmra.mxu3 %vm325_vm2, %v7569_v5 }
 0x2e5   : > { %3869 = vmatpush.bf16.msrb.mxu2 %v8225_v63  ;;  %3882 = vmatpush.bf16.msrb.mxu3 %v8225_v63 }
 0x2e6   : > { %3843 = vmatpush.bf16.msrb.mxu0 %v8225_v63  ;;  %3856 = vmatpush.bf16.msrb.mxu1 %v8225_v63 }
 0x2e7   : > { %v3327_v42 = vpop.f32.mrf.mxu2  ;;  %v3340_v53 = vpop.f32.mrf.mxu3 }
 0x2e8   : > { %v3303_v13 = vpop.f32.mrf.mxu0  ;;  %v3316_v49 = vpop.f32.mrf.mxu1 }
 0x2ef   : > { %v3329_v22 = vpop.f32.mrf.mxu2  ;;  %v3342_v1 = vpop.f32.mrf.mxu3 }
 0x2f0   : > { %v3353_v11 = vpop.f32.mrf.mxu0  ;;  %v3366_v55 = vpop.f32.mrf.mxu1 }
 0x2f1   : > { %v3354_v14 = vadd.f32 %v3353_v11, %v3249_v52  ;;  %v3367_v31 = vadd.f32 %v3366_v55, %v3262_v28 }
 0x2f3   : > { %6152 = vmatmul.msk.bf16.vlgmr.msra.gmra.mxu0 %vm325_vm2, %v8200_v50  ;;  %6153 = vmatmul.msk.bf16.vlgmr.msra.gmra.mxu1 %vm325_vm2, %v8201_v59 }
 0x2f4   : > { %6154 = vmatmul.msk.bf16.vlgmr.msra.gmra.mxu2 %vm325_vm2, %v8202_v19  ;;  %6155 = vmatmul.msk.bf16.vlgmr.msra.gmra.mxu3 %vm325_vm2, %v8203_v6 }
 0x2f5   : > { %3938 = vmatpush.bf16.msra.mxu2 %v6740_v61  ;;  %3954 = vmatpush.bf16.msra.mxu3 %v6740_v61 }
 0x2f6   : > { %3906 = vmatpush.bf16.msra.mxu0 %v6740_v61  ;;  %3922 = vmatpush.bf16.msra.mxu1 %v6740_v61 }
 0x2f7   : > { %v3379_v52 = vpop.f32.mrf.mxu2  ;;  %v3392_v28 = vpop.f32.mrf.mxu3 }
 0x2f8   : > { %v3380_v2 = vadd.f32 %v3379_v52, %v3275_v21  ;;  %v3393_v13 = vadd.f32 %v3392_v28, %v3288_v12  ;;  %v3355_v49 = vpop.f32.mrf.mxu0  ;;  %v3368_v22 = vpop.f32.mrf.mxu1 }
 0x2ff   : > { %v3381_v1 = vpop.f32.mrf.mxu2  ;;  %v3394_v11 = vpop.f32.mrf.mxu3 }
 0x300   : > { %v3405_v55 = vpop.f32.mrf.mxu0  ;;  %v3418_v60 = vpop.f32.mrf.mxu1  ;;  %v5744_v11 = vld [vmem:[%s6505_s21 + $0x98] sm:$0xf] }
 0x301   : > { %v3406_v18 = vadd.f32 %v3405_v55, %v3301_v34  ;;  %v3419_v38 = vadd.f32 %v3418_v60, %v3314_v29  ;;  %v5745_v55 = vld [vmem:[%s6505_s21 + $0xa0] sm:$0xf] }
 0x303   : > { %6156 = vmatmul.msk.bf16.vlgmr.msrb.gmra.mxu0 %vm325_vm2, %v6932_v17  ;;  %6157 = vmatmul.msk.bf16.vlgmr.msrb.gmra.mxu1 %vm325_vm2, %v6934_v16  ;;  %v5747_v16 = vld [vmem:[%s6505_s21 + $0xb0] sm:$0xf] }
 0x304   : > { %6158 = vmatmul.msk.bf16.vlgmr.msrb.gmra.mxu2 %vm325_vm2, %v6936_v30  ;;  %6159 = vmatmul.msk.bf16.vlgmr.msrb.gmra.mxu3 %vm325_vm2, %v6938_v41  ;;  %v5746_v30 = vld [vmem:[%s6505_s21 + $0xa8] sm:$0xf] }
 0x305   : > { %4002 = vmatpush.bf16.msrb.mxu2 %v6740_v61  ;;  %4018 = vmatpush.bf16.msrb.mxu3 %v6740_v61 }
 0x306   : > { %3970 = vmatpush.bf16.msrb.mxu0 %v6740_v61  ;;  %3986 = vmatpush.bf16.msrb.mxu1 %v6740_v61  ;;  %v6374_v61 = vld [vmem:[%s6505_s21 + $0xb0] sm:$0x10] }
 0x307   : > { %v3431_v60 = vpop.f32.mrf.mxu2  ;;  %v3444_v21 = vpop.f32.mrf.mxu3 }
 0x308   : > { %v3432_v12 = vadd.f32 %v3431_v60, %v3327_v42  ;;  %v3445_v34 = vadd.f32 %v3444_v21, %v3340_v53  ;;  %v3407_v29 = vpop.f32.mrf.mxu0  ;;  %v3420_v52 = vpop.f32.mrf.mxu1 }
 0x30f   : > { %v3433_v28 = vpop.f32.mrf.mxu2  ;;  %v3446_v49 = vpop.f32.mrf.mxu3 }
 0x310   : > { %v3457_v22 = vpop.f32.mrf.mxu0  ;;  %v3470_v1 = vpop.f32.mrf.mxu1  ;;  %v5748_v28 = vld [vmem:[%s6505_s21 + $0xb8] sm:$0xf]  ;;  %v5749_v49 = vld [vmem:[%s6505_s21 + $0xc0] sm:$0xf] }
 0x311   : > { %v3552_v3 = vadd.f32 %v3457_v22, %v3354_v14  ;;  %v3553_v41 = vadd.f32 %v3470_v1, %v3367_v31 }
 0x313   : > { %6160 = vmatmul.msk.bf16.vlgmr.msra.gmra.mxu0 %vm325_vm2, %v5744_v11  ;;  %6161 = vmatmul.msk.bf16.vlgmr.msra.gmra.mxu1 %vm325_vm2, %v5745_v55  ;;  %v5750_v11 = vld [vmem:[%s6505_s21 + $0xc8] sm:$0xf]  ;;  %v5751_v55 = vld [vmem:[%s6505_s21 + $0xd0] sm:$0xf] }
 0x314   : > { %6162 = vmatmul.msk.bf16.vlgmr.msra.gmra.mxu2 %vm325_vm2, %v5746_v30  ;;  %6163 = vmatmul.msk.bf16.vlgmr.msra.gmra.mxu3 %vm325_vm2, %v5747_v16 }
 0x315   : > { %4074 = vmatpush.bf16.msra.mxu2 %v6790_v10  ;;  %4090 = vmatpush.bf16.msra.mxu3 %v6790_v10 }
 0x316   : > { %4042 = vmatpush.bf16.msra.mxu0 %v6790_v10  ;;  %4058 = vmatpush.bf16.msra.mxu1 %v6790_v10 }
 0x317   : > { %v3483_v42 = vpop.f32.mrf.mxu2  ;;  %v3496_v53 = vpop.f32.mrf.mxu3 }
 0x318   : > { %v3554_v14 = vadd.f32 %v3483_v42, %v3380_v2  ;;  %v3555_v31 = vadd.f32 %v3496_v53, %v3393_v13  ;;  %v3459_v60 = vpop.f32.mrf.mxu0  ;;  %v3472_v30 = vpop.f32.mrf.mxu1 }
 0x31f   : > { %v3485_v21 = vpop.f32.mrf.mxu2  ;;  %v3498_v29 = vpop.f32.mrf.mxu3 }
 0x320   : > { %v3509_v16 = vpop.f32.mrf.mxu0  ;;  %v3522_v52 = vpop.f32.mrf.mxu1 }
 0x321   : > { %v3556_v22 = vadd.f32 %v3509_v16, %v3406_v18  ;;  %v3557_v1 = vadd.f32 %v3522_v52, %v3419_v38  ;;  %v7626_v16 = vld [vmem:[%s6505_s21 + $0xe0] sm:$0xf]  ;;  %v7629_v52 = vld [vmem:[%s6505_s21 + $0xe8] sm:$0xf] }
 0x322   : > { %8226 = vst [vmem:[#allocation6_spill] sm:$0xff] %v7626_v16 }
 0x323   : > { %6164 = vmatmul.msk.bf16.vlgmr.msrb.gmra.mxu0 %vm325_vm2, %v5748_v28  ;;  %6165 = vmatmul.msk.bf16.vlgmr.msrb.gmra.mxu1 %vm325_vm2, %v5749_v49  ;;  %8227 = vst [vmem:[#allocation19_spill] sm:$0xff] %v7629_v52 }
 0x324   : > { %6166 = vmatmul.msk.bf16.vlgmr.msrb.gmra.mxu2 %vm325_vm2, %v5750_v11  ;;  %6167 = vmatmul.msk.bf16.vlgmr.msrb.gmra.mxu3 %vm325_vm2, %v5751_v55  ;;  %v7636_v11 = vld [vmem:[%s6505_s21 + $0xf0] sm:$0xf]  ;;  %v7639_v55 = vld [vmem:[%s6505_s21 + $0xf8] sm:$0xf] }
 0x325   : > { %4138 = vmatpush.bf16.msrb.mxu2 %v6790_v10  ;;  %4154 = vmatpush.bf16.msrb.mxu3 %v6790_v10  ;;  %8228 = vst [vmem:[#allocation20_spill] sm:$0xff] %v7636_v11 }
 0x326   : > { %4106 = vmatpush.bf16.msrb.mxu0 %v6790_v10  ;;  %4122 = vmatpush.bf16.msrb.mxu1 %v6790_v10  ;;  %8229 = vst [vmem:[#allocation2_spill] sm:$0xff] %v7639_v55 }
 0x327   : > { %v3535_v38 = vpop.f32.mrf.mxu2  ;;  %v3548_v18 = vpop.f32.mrf.mxu3 }
 0x328   : > { %v3558_v2 = vadd.f32 %v3535_v38, %v3432_v12  ;;  %v3559_v13 = vadd.f32 %v3548_v18, %v3445_v34  ;;  %v3511_v42 = vpop.f32.mrf.mxu0  ;;  %v3524_v53 = vpop.f32.mrf.mxu1 }
 0x329   : > { %v7658_v42 = vld [vmem:[%s6505_s21 + $0x100] sm:$0xf]  ;;  %v7661_v53 = vld [vmem:[%s6505_s21 + $0x108] sm:$0xf] }
 0x32a   : > { %8230 = vst [vmem:[#allocation21_spill] sm:$0xff] %v7658_v42 }
 0x32b   : > { %8231 = vst [vmem:[#allocation22_spill] sm:$0xff] %v7661_v53 }
 0x32f   : > { %v3537_v60 = vpop.f32.mrf.mxu2  ;;  %v3550_v30 = vpop.f32.mrf.mxu3 }
 0x330   : > { %v3569_v21 = vpop.f32.mrf.mxu0  ;;  %v3582_v29 = vpop.f32.mrf.mxu1 }
 0x331   : > { %v7631_v28 = vadd.f32 %v3569_v21, %v3552_v3  ;;  %v7633_v49 = vadd.f32 %v3582_v29, %v3553_v41  ;;  %v7664_v21 = vld [vmem:[%s6505_s21 + $0x110] sm:$0xf]  ;;  %v7667_v29 = vld [vmem:[%s6505_s21 + $0x118] sm:$0xf] }
 0x332   : > { %8232 = vst [vmem:[#allocation23_spill] sm:$0xff] %v7664_v21 }
 0x333   : > { %6168 = vmatmul.msk.bf16.vlgmr.msra.gmra.mxu0 %vm325_vm2, %v7626_v16  ;;  %6169 = vmatmul.msk.bf16.vlgmr.msra.gmra.mxu1 %vm325_vm2, %v7629_v52  ;;  %8233 = vst [vmem:[#allocation24_spill] sm:$0xff] %v7667_v29  ;;  %v6373_v52 = vld [vmem:[%s6505_s21 + $0xa8] sm:$0x10]  ;;  %v6193_v16 = vld [vmem:[%s6505_s21 + $0xb0] sm:$0xf] }
 0x334   : > { %6170 = vmatmul.msk.bf16.vlgmr.msra.gmra.mxu2 %vm325_vm2, %v7636_v11  ;;  %6171 = vmatmul.msk.bf16.vlgmr.msra.gmra.mxu3 %vm325_vm2, %v7639_v55 }
 0x335   : > { %4246 = vmatpush.bf16.msra.mxu2 %v8204_v51  ;;  %4274 = vmatpush.bf16.msra.mxu3 %v8204_v51 }
 0x336   : > { %4190 = vmatpush.bf16.msra.mxu0 %v8204_v51  ;;  %4218 = vmatpush.bf16.msra.mxu1 %v8204_v51 }
 0x337   : > { %v3595_v41 = vpop.f32.mrf.mxu2  ;;  %v3608_v3 = vpop.f32.mrf.mxu3 }
 0x338   : > { %v7653_v12 = vadd.f32 %v3595_v41, %v3554_v14  ;;  %v7655_v34 = vadd.f32 %v3608_v3, %v3555_v31  ;;  %v3571_v38 = vpop.f32.mrf.mxu0  ;;  %v3584_v18 = vpop.f32.mrf.mxu1  ;;  %v6178_v14 = vld [vmem:[%s6505_s21 + $0x98] sm:$0xf]  ;;  %v6371_v41 = vld [vmem:[%s6505_s21 + $0x98] sm:$0x10]  ;;  %v6183_v3 = vld [vmem:[%s6505_s21 + $0xa0] sm:$0xf] }
 0x339   : > { %v6372_v38 = vld [vmem:[%s6505_s21 + $0xa0] sm:$0x10]  ;;  %v6188_v18 = vld [vmem:[%s6505_s21 + $0xa8] sm:$0xf] }
 0x33f   : > { %v3597_v60 = vpop.f32.mrf.mxu2  ;;  %v3610_v30 = vpop.f32.mrf.mxu3 }
 0x340   : > { %v3621_v10 = vpop.f32.mrf.mxu0  ;;  %v3634_v31 = vpop.f32.mrf.mxu1  ;;  %v6179_v60 = vor.u32 %v6371_v41, %v6178_v14  ;;  %v6184_v30 = vor.u32 %v6372_v38, %v6183_v3 }
 0x341   : > { %v7674_v55 = vadd.f32 %v3621_v10, %v3556_v22  ;;  %v7676_v11 = vadd.f32 %v3634_v31, %v3557_v1  ;;  %v6189_v10 = vor.u32 %v6373_v52, %v6188_v18  ;;  %v6194_v22 = vor.u32 %v6374_v61, %v6193_v16 }
 0x342   : > { %v4176_v14 = vshll.u32 %v6179_v60, 16  ;;  %v4204_v41 = vshll.u32 %v6184_v30, 16  ;;  %v4174_v18 = vshrl.u32 %v6179_v60, 16  ;;  %v6198_v60 = vld [vmem:[%s6505_s21 + $0xb8] sm:$0xf] }
 0x343   : > { %6172 = vmatmul.msk.bf16.vlgmr.msrb.gmra.mxu0 %vm325_vm2, %v7658_v42  ;;  %6173 = vmatmul.msk.bf16.vlgmr.msrb.gmra.mxu1 %vm325_vm2, %v7661_v53  ;;  %v4232_v61 = vshll.u32 %v6189_v10, 16  ;;  %v4260_v16 = vshll.u32 %v6194_v22, 16  ;;  %v4202_v53 = vshrl.u32 %v6184_v30, 16  ;;  %v4258_v63 = vshrl.u32 %v6194_v22, 16  ;;  %v6376_v22 = vld [vmem:[%s6505_s21 + $0xc0] sm:$0x10] }
 0x344   : > { %6174 = vmatmul.msk.bf16.vlgmr.msrb.gmra.mxu2 %vm325_vm2, %v7664_v21  ;;  %6175 = vmatmul.msk.bf16.vlgmr.msrb.gmra.mxu3 %vm325_vm2, %v7667_v29  ;;  %v4178_v29 = vrot.slane %v4176_v14, 1  ;;  %v4206_v42 = vrot.slane %v4204_v41, 1  ;;  %v6375_v14 = vld [vmem:[%s6505_s21 + $0xb8] sm:$0x10] }
 0x345   : > { %4358 = vmatpush.bf16.msrb.mxu2 %v8204_v51  ;;  %4386 = vmatpush.bf16.msrb.mxu3 %v8204_v51  ;;  %v4234_v17 = vrot.slane %v4232_v61, 1  ;;  %v6203_v61 = vld [vmem:[%s6505_s21 + $0xc0] sm:$0xf] }
 0x346   : > { %4302 = vmatpush.bf16.msrb.mxu0 %v8204_v51  ;;  %4330 = vmatpush.bf16.msrb.mxu1 %v8204_v51  ;;  %v4230_v51 = vshrl.u32 %v6189_v10, 16 }
 0x347   : > { %v3647_v1 = vpop.f32.mrf.mxu2  ;;  %v3660_v31 = vpop.f32.mrf.mxu3 }
 0x348   : > { %v7693_v3 = vadd.f32 %v3647_v1, %v3558_v2  ;;  %v7695_v38 = vadd.f32 %v3660_v31, %v3559_v13  ;;  %v3623_v21 = vpop.f32.mrf.mxu0  ;;  %v3636_v52 = vpop.f32.mrf.mxu1  ;;  %v4262_v2 = vrot.slane %v4260_v16, 1  ;;  %v7697_v1 = vor.u32 %v4178_v29, %v4174_v18  ;;  %v6208_v16 = vld [vmem:[%s6505_s21 + $0xc8] sm:$0xf]  ;;  %v6377_v29 = vld [vmem:[%s6505_s21 + $0xc8] sm:$0x10] }
 0x349   : > { %v7699_v31 = vor.u32 %v4206_v42, %v4202_v53  ;;  %v7703_v41 = vor.u32 %v4234_v17, %v4230_v51  ;;  %v6213_v42 = vld [vmem:[%s6505_s21 + $0xd0] sm:$0xf]  ;;  %v6378_v53 = vld [vmem:[%s6505_s21 + $0xd0] sm:$0x10]  ;;  %v6199_v17 = vor.u32 %v6375_v14, %v6198_v60  ;;  %v6204_v51 = vor.u32 %v6376_v22, %v6203_v61 }
 0x34a   : > { %8234 = vst [vmem:[#allocation25_spill] sm:$0xff] %v7697_v1  ;;  %v7705_v10 = vor.u32 %v4262_v2, %v4258_v63  ;;  %v6209_v63 = vor.u32 %v6377_v29, %v6208_v16 }
 0x34b   : > { %8235 = vst [vmem:[#allocation26_spill] sm:$0xff] %v7699_v31  ;;  %v4288_v2 = vshll.u32 %v6199_v17, 16  ;;  %v4316_v60 = vshll.u32 %v6204_v51, 16  ;;  %v4286_v29 = vshrl.u32 %v6199_v17, 16 }
 0x34c   : > { %8236 = vst [vmem:[#allocation40_spill] sm:$0xff] %v7703_v41  ;;  %v4344_v22 = vshll.u32 %v6209_v63, 16 }
 0x34d   : > { %8237 = vst [vmem:[#allocation41_spill] sm:$0xff] %v7705_v10 }
 0x34f   : > { %v3649_v13 = vpop.f32.mrf.mxu2  ;;  %v3662_v21 = vpop.f32.mrf.mxu3 }
 0x350   : > { %v3681_v30 = vpop.f32.mrf.mxu0  ;;  %v3694_v52 = vpop.f32.mrf.mxu1 }
 0x351   : > { %v7711_v13 = vadd.f32 %v3681_v30, %v7631_v28  ;;  %v7714_v21 = vadd.f32 %v3694_v52, %v7633_v49  ;;  %v6214_v28 = vor.u32 %v6378_v53, %v6213_v42  ;;  %v4290_v42 = vrot.slane %v4288_v2, 1 }
 0x352   : > { %v4314_v53 = vshrl.u32 %v6204_v51, 16 }
 0x353   : > { %6180 = vmatmul.msk.bf16.vlgmr.msra.gmra.mxu0 %vm325_vm2, %v7697_v1  ;;  %6185 = vmatmul.msk.bf16.vlgmr.msra.gmra.mxu1 %vm325_vm2, %v7699_v31  ;;  %v4372_v16 = vshll.u32 %v6214_v28, 16  ;;  %v4346_v31 = vrot.slane %v4344_v22, 1  ;;  %v4370_v1 = vshrl.u32 %v6214_v28, 16  ;;  %v7733_v50 = vor.u32 %v4290_v42, %v4286_v29 }
 0x354   : > { %6190 = vmatmul.msk.bf16.vlgmr.msra.gmra.mxu2 %vm325_vm2, %v7703_v41  ;;  %6195 = vmatmul.msk.bf16.vlgmr.msra.gmra.mxu3 %vm325_vm2, %v7705_v10  ;;  %v4318_v10 = vrot.slane %v4316_v60, 1  ;;  %v4342_v41 = vshrl.u32 %v6209_v63, 16 }
 0x355   : > { %4449 = vmatpush.bf16.msra.mxu2 %v6492_v4  ;;  %4462 = vmatpush.bf16.msra.mxu3 %v6492_v4  ;;  %v4374_v6 = vrot.slane %v4372_v16, 1 }
 0x356   : > { %4423 = vmatpush.bf16.msra.mxu0 %v6492_v4  ;;  %4436 = vmatpush.bf16.msra.mxu1 %v6492_v4  ;;  %v7735_v25 = vor.u32 %v4318_v10, %v4314_v53 }
 0x357   : > { %v3707_v49 = vpop.f32.mrf.mxu2  ;;  %v3720_v18 = vpop.f32.mrf.mxu3 }
 0x358   : > { %v3778_v14 = vadd.f32 %v3707_v49, %v7653_v12  ;;  %v3779_v30 = vadd.f32 %v3720_v18, %v7655_v34  ;;  %v3683_v52 = vpop.f32.mrf.mxu0  ;;  %v3696_v61 = vpop.f32.mrf.mxu1  ;;  %v7737_v49 = vor.u32 %v4346_v31, %v4342_v41  ;;  %v7739_v18 = vor.u32 %v4374_v6, %v4370_v1 }
 0x35f   : > { %v3709_v19 = vpop.f32.mrf.mxu2  ;;  %v3722_v59 = vpop.f32.mrf.mxu3 }
 0x360   : > { %v3733_v12 = vpop.f32.mrf.mxu0  ;;  %v3746_v34 = vpop.f32.mrf.mxu1 }
 0x361   : > { %v3780_v17 = vadd.f32 %v3733_v12, %v7674_v55  ;;  %v3781_v51 = vadd.f32 %v3746_v34, %v7676_v11  ;;  %v6438_v34 = vld [vmem:[%s6505_s21 + $0xd8] sm:$0xf] }
 0x363   : > { %6200 = vmatmul.msk.bf16.vlgmr.msrb.gmra.mxu0 %vm325_vm2, %v7733_v50  ;;  %6205 = vmatmul.msk.bf16.vlgmr.msrb.gmra.mxu1 %vm325_vm2, %v7735_v25 }
 0x364   : > { %6210 = vmatmul.msk.bf16.vlgmr.msrb.gmra.mxu2 %vm325_vm2, %v7737_v49  ;;  %6215 = vmatmul.msk.bf16.vlgmr.msrb.gmra.mxu3 %vm325_vm2, %v7739_v18 }
 0x365   : > { %4501 = vmatpush.bf16.msrb.mxu2 %v6492_v4  ;;  %4514 = vmatpush.bf16.msrb.mxu3 %v6492_v4 }
 0x366   : > { %4475 = vmatpush.bf16.msrb.mxu0 %v6492_v4  ;;  %4488 = vmatpush.bf16.msrb.mxu1 %v6492_v4 }
 0x367   : > { %v3759_v59 = vpop.f32.mrf.mxu2  ;;  %v3772_v19 = vpop.f32.mrf.mxu3 }
 0x368   : > { %v3782_v6 = vadd.f32 %v3759_v59, %v7693_v3  ;;  %v3783_v11 = vadd.f32 %v3772_v19, %v7695_v38  ;;  %v3735_v55 = vpop.f32.mrf.mxu0  ;;  %v3748_v1 = vpop.f32.mrf.mxu1 }
 0x36f   : > { %v3761_v31 = vpop.f32.mrf.mxu2  ;;  %v3774_v41 = vpop.f32.mrf.mxu3 }
 0x370   : > { %v3793_v10 = vpop.f32.mrf.mxu0  ;;  %v3806_v63 = vpop.f32.mrf.mxu1 }
 0x371   : > { %v3888_v28 = vadd.f32 %v3793_v10, %v7711_v13  ;;  %v3889_v2 = vadd.f32 %v3806_v63, %v7714_v21 }
 0x373   : > { %6216 = vmatmul.msk.bf16.vlgmr.msra.gmra.mxu0 %vm325_vm2, %v6717_v36  ;;  %6217 = vmatmul.msk.bf16.vlgmr.msra.gmra.mxu1 %vm325_vm2, %v6719_v37 }
 0x374   : > { %6218 = vmatmul.msk.bf16.vlgmr.msra.gmra.mxu2 %vm325_vm2, %v6723_v45  ;;  %6219 = vmatmul.msk.bf16.vlgmr.msra.gmra.mxu3 %vm325_vm2, %v6725_v46 }
 0x375   : > { %4553 = vmatpush.bf16.msra.mxu2 %v6513_v9  ;;  %4566 = vmatpush.bf16.msra.mxu3 %v6513_v9 }
 0x376   : > { %4527 = vmatpush.bf16.msra.mxu0 %v6513_v9  ;;  %4540 = vmatpush.bf16.msra.mxu1 %v6513_v9 }
 0x377   : > { %v3819_v4 = vpop.f32.mrf.mxu2  ;;  %v3832_v3 = vpop.f32.mrf.mxu3 }
 0x378   : > { %v3890_v36 = vadd.f32 %v3819_v4, %v3778_v14  ;;  %v3891_v38 = vadd.f32 %v3832_v3, %v3779_v30  ;;  %v3795_v13 = vpop.f32.mrf.mxu0  ;;  %v3808_v37 = vpop.f32.mrf.mxu1  ;;  %v6442_v4 = vld [vmem:[%s6505_s21 + $0xf8] sm:$0xf]  ;;  %v6443_v3 = vld [vmem:[%s6505_s21 + $0x100] sm:$0xf] }
 0x379   : > { %v6444_v13 = vld [vmem:[%s6505_s21 + $0x108] sm:$0xf] }
 0x37f   : > { %v3821_v21 = vpop.f32.mrf.mxu2  ;;  %v3834_v60 = vpop.f32.mrf.mxu3 }
 0x380   : > { %v3845_v45 = vpop.f32.mrf.mxu0  ;;  %v3858_v52 = vpop.f32.mrf.mxu1 }
 0x381   : > { %v3892_v61 = vadd.f32 %v3845_v45, %v3780_v17  ;;  %v3893_v46 = vadd.f32 %v3858_v52, %v3781_v51  ;;  %v6439_v17 = vld [vmem:[%s6505_s21 + $0xe0] sm:$0xf]  ;;  %v6441_v51 = vld [vmem:[%s6505_s21 + $0xf0] sm:$0xf] }
 0x383   : > { %6220 = vmatmul.msk.bf16.vlgmr.msrb.gmra.mxu0 %vm325_vm2, %v6756_v32  ;;  %6221 = vmatmul.msk.bf16.vlgmr.msrb.gmra.mxu1 %vm325_vm2, %v6758_v33 }
 0x384   : > { %6222 = vmatmul.msk.bf16.vlgmr.msrb.gmra.mxu2 %vm325_vm2, %v8213_v15  ;;  %6223 = vmatmul.msk.bf16.vlgmr.msrb.gmra.mxu3 %vm325_vm2, %v8214_v44 }
 0x385   : > { %4605 = vmatpush.bf16.msrb.mxu2 %v6513_v9  ;;  %4618 = vmatpush.bf16.msrb.mxu3 %v6513_v9 }
 0x386   : > { %4579 = vmatpush.bf16.msrb.mxu0 %v6513_v9  ;;  %4592 = vmatpush.bf16.msrb.mxu1 %v6513_v9  ;;  %v6440_v9 = vld [vmem:[%s6505_s21 + $0xe8] sm:$0xf] }
 0x387   : > { %v3871_v32 = vpop.f32.mrf.mxu2  ;;  %v3884_v14 = vpop.f32.mrf.mxu3 }
 0x388   : > { %v3894_v33 = vadd.f32 %v3871_v32, %v3782_v6  ;;  %v3895_v30 = vadd.f32 %v3884_v14, %v3783_v11  ;;  %v3847_v15 = vpop.f32.mrf.mxu0  ;;  %v3860_v22 = vpop.f32.mrf.mxu1 }
 0x38f   : > { %v3873_v16 = vpop.f32.mrf.mxu2  ;;  %v3886_v44 = vpop.f32.mrf.mxu3 }
 0x390   : > { %v3908_v29 = vpop.f32.mrf.mxu0  ;;  %v3924_v42 = vpop.f32.mrf.mxu1  ;;  %v8238_v16 = vld [vmem:[#allocation27_spill] sm:$0xff]  ;;  %v8239_v44 = vld [vmem:[#allocation28_spill] sm:$0xff] }
 0x391   : > { %v4024_v53 = vadd.f32 %v3908_v29, %v3888_v28  ;;  %v4025_v12 = vadd.f32 %v3924_v42, %v3889_v2  ;;  %v8240_v29 = vld [vmem:[#allocation29_spill] sm:$0xff] }
 0x393   : > { %6224 = vmatmul.msk.bf16.vlgmr.msra.gmra.mxu0 %vm325_vm2, %v6438_v34  ;;  %6225 = vmatmul.msk.bf16.vlgmr.msra.gmra.mxu1 %vm325_vm2, %v6439_v17 }
 0x394   : > { %6226 = vmatmul.msk.bf16.vlgmr.msra.gmra.mxu2 %vm325_vm2, %v6440_v9  ;;  %6227 = vmatmul.msk.bf16.vlgmr.msra.gmra.mxu3 %vm325_vm2, %v6441_v51 }
 0x395   : > { %4657 = vmatpush.bf16.msra.mxu2 %v6546_v20  ;;  %4670 = vmatpush.bf16.msra.mxu3 %v6546_v20 }
 0x396   : > { %4631 = vmatpush.bf16.msra.mxu0 %v6546_v20  ;;  %4644 = vmatpush.bf16.msra.mxu1 %v6546_v20 }
 0x397   : > { %v3940_v59 = vpop.f32.mrf.mxu2  ;;  %v3956_v19 = vpop.f32.mrf.mxu3 }
 0x398   : > { %v4026_v6 = vadd.f32 %v3940_v59, %v3890_v36  ;;  %v4027_v11 = vadd.f32 %v3956_v19, %v3891_v38  ;;  %v3910_v55 = vpop.f32.mrf.mxu0  ;;  %v3926_v1 = vpop.f32.mrf.mxu1  ;;  %v6445_v36 = vld [vmem:[%s6505_s21 + $0x110] sm:$0xf] }
 0x399   : > { %v8242_v1 = vld [vmem:[#allocation31_spill] sm:$0xff] }
 0x39f   : > { %v3942_v31 = vpop.f32.mrf.mxu2  ;;  %v3958_v41 = vpop.f32.mrf.mxu3 }
 0x3a0   : > { %v3972_v10 = vpop.f32.mrf.mxu0  ;;  %v3988_v63 = vpop.f32.mrf.mxu1  ;;  %v8243_v31 = vld [vmem:[#allocation32_spill] sm:$0xff]  ;;  %v8244_v41 = vld [vmem:[#allocation33_spill] sm:$0xff] }
 0x3a1   : > { %v4028_v28 = vadd.f32 %v3972_v10, %v3892_v61  ;;  %v4029_v2 = vadd.f32 %v3988_v63, %v3893_v46 }
 0x3a3   : > { %6228 = vmatmul.msk.bf16.vlgmr.msrb.gmra.mxu0 %vm325_vm2, %v6442_v4  ;;  %6229 = vmatmul.msk.bf16.vlgmr.msrb.gmra.mxu1 %vm325_vm2, %v6443_v3 }
 0x3a4   : > { %6230 = vmatmul.msk.bf16.vlgmr.msrb.gmra.mxu2 %vm325_vm2, %v6444_v13  ;;  %6231 = vmatmul.msk.bf16.vlgmr.msrb.gmra.mxu3 %vm325_vm2, %v6445_v36 }
 0x3a5   : > { %4709 = vmatpush.bf16.msrb.mxu2 %v6546_v20  ;;  %4722 = vmatpush.bf16.msrb.mxu3 %v6546_v20 }
 0x3a6   : > { %4683 = vmatpush.bf16.msrb.mxu0 %v6546_v20  ;;  %4696 = vmatpush.bf16.msrb.mxu1 %v6546_v20  ;;  %v8241_v20 = vld [vmem:[#allocation30_spill] sm:$0xff] }
 0x3a7   : > { %v4004_v38 = vpop.f32.mrf.mxu2  ;;  %v4020_v37 = vpop.f32.mrf.mxu3 }
 0x3a8   : > { %v4030_v21 = vadd.f32 %v4004_v38, %v3894_v33  ;;  %v4031_v60 = vadd.f32 %v4020_v37, %v3895_v30  ;;  %v3974_v45 = vpop.f32.mrf.mxu0  ;;  %v3990_v52 = vpop.f32.mrf.mxu1 }
 0x3af   : > { %v4006_v61 = vpop.f32.mrf.mxu2  ;;  %v4022_v46 = vpop.f32.mrf.mxu3 }
 0x3b0   : > { %v4044_v32 = vpop.f32.mrf.mxu0  ;;  %v4060_v14 = vpop.f32.mrf.mxu1 }
 0x3b1   : > { %v4160_v15 = vadd.f32 %v4044_v32, %v4024_v53  ;;  %v4161_v22 = vadd.f32 %v4060_v14, %v4025_v12 }
 0x3b3   : > { %6232 = vmatmul.msk.bf16.vlgmr.msra.gmra.mxu0 %vm325_vm2, %v8238_v16  ;;  %6233 = vmatmul.msk.bf16.vlgmr.msra.gmra.mxu1 %vm325_vm2, %v8239_v44 }
 0x3b4   : > { %6234 = vmatmul.msk.bf16.vlgmr.msra.gmra.mxu2 %vm325_vm2, %v8240_v29  ;;  %6235 = vmatmul.msk.bf16.vlgmr.msra.gmra.mxu3 %vm325_vm2, %v8241_v20 }
 0x3b5   : > { %4769 = vmatpush.bf16.msra.mxu2 %v6596_v62  ;;  %4782 = vmatpush.bf16.msra.mxu3 %v6596_v62 }
 0x3b6   : > { %4743 = vmatpush.bf16.msra.mxu0 %v6596_v62  ;;  %4756 = vmatpush.bf16.msra.mxu1 %v6596_v62 }
 0x3b7   : > { %v4076_v33 = vpop.f32.mrf.mxu2  ;;  %v4092_v30 = vpop.f32.mrf.mxu3 }
 0x3b8   : > { %v4162_v42 = vadd.f32 %v4076_v33, %v4026_v6  ;;  %v4163_v53 = vadd.f32 %v4092_v30, %v4027_v11  ;;  %v4046_v12 = vpop.f32.mrf.mxu0  ;;  %v4062_v34 = vpop.f32.mrf.mxu1 }
 0x3bf   : > { %v4078_v17 = vpop.f32.mrf.mxu2  ;;  %v4094_v9 = vpop.f32.mrf.mxu3 }
 0x3c0   : > { %v4108_v51 = vpop.f32.mrf.mxu0  ;;  %v4124_v59 = vpop.f32.mrf.mxu1  ;;  %v7882_v9 = vld [vmem:[%s8103_s2] ss:$0 sm:$0xff] }
 0x3c1   : > { %v4164_v19 = vadd.f32 %v4108_v51, %v4028_v28  ;;  %v4165_v55 = vadd.f32 %v4124_v59, %v4029_v2 }
 0x3c3   : > { %6236 = vmatmul.msk.bf16.vlgmr.msrb.gmra.mxu0 %vm325_vm2, %v7216_v39  ;;  %6237 = vmatmul.msk.bf16.vlgmr.msrb.gmra.mxu1 %vm325_vm2, %v8242_v1 }
 0x3c4   : > { %6238 = vmatmul.msk.bf16.vlgmr.msrb.gmra.mxu2 %vm325_vm2, %v8243_v31  ;;  %6239 = vmatmul.msk.bf16.vlgmr.msrb.gmra.mxu3 %vm325_vm2, %v8244_v41 }
 0x3c5   : > { %4821 = vmatpush.bf16.msrb.mxu2 %v6596_v62  ;;  %4834 = vmatpush.bf16.msrb.mxu3 %v6596_v62 }
 0x3c6   : > { %4795 = vmatpush.bf16.msrb.mxu0 %v6596_v62  ;;  %4808 = vmatpush.bf16.msrb.mxu1 %v6596_v62 }
 0x3c7   : > { %v4140_v6 = vpop.f32.mrf.mxu2  ;;  %v4156_v11 = vpop.f32.mrf.mxu3 }
 0x3c8   : > { %v4166_v39 = vadd.f32 %v4140_v6, %v4030_v21  ;;  %v4167_v10 = vadd.f32 %v4156_v11, %v4031_v60  ;;  %v4110_v63 = vpop.f32.mrf.mxu0  ;;  %v4126_v28 = vpop.f32.mrf.mxu1  ;;  %v8246_v11 = vld [vmem:[#allocation11_spill] sm:$0xff] }
 0x3c9   : > { %v8249_v63 = vld [vmem:[#allocation14_spill] sm:$0xff] }
 0x3cf   : > { %v4142_v2 = vpop.f32.mrf.mxu2  ;;  %v4158_v4 = vpop.f32.mrf.mxu3 }
 0x3d0   : > { %v4192_v3 = vpop.f32.mrf.mxu0  ;;  %v4220_v13 = vpop.f32.mrf.mxu1 }
 0x3d1   : > { %v4392_v36 = vadd.f32 %v4192_v3, %v4160_v15  ;;  %v4393_v38 = vadd.f32 %v4220_v13, %v4161_v22 }
 0x3d3   : > { %v4400_v37 = vadd.f32 %v7459_v58, %v4392_v36  ;;  %v4401_v45 = vadd.f32 %v7459_v58, %v4393_v38  ;;  %6240 = vmatmul.msk.bf16.vlgmr.msra.gmra.mxu0 %vm325_vm2, %v7530_v43  ;;  %6241 = vmatmul.msk.bf16.vlgmr.msra.gmra.mxu1 %vm325_vm2, %v7535_v40 }
 0x3d4   : > { %6242 = vmatmul.msk.bf16.vlgmr.msra.gmra.mxu2 %vm325_vm2, %v7540_v0  ;;  %6243 = vmatmul.msk.bf16.vlgmr.msra.gmra.mxu3 %vm325_vm2, %v7545_v47 }
 0x3d5   : > { %v4408_v62 = vmax.f32 %v4400_v37, 0.0  ;;  %v4409_v21 = vmax.f32 %v4401_v45, 0.0  ;;  %4881 = vmatpush.bf16.msra.mxu2 %v8217_v57  ;;  %4894 = vmatpush.bf16.msra.mxu3 %v8217_v57  ;;  %v8251_v45 = vld [vmem:[#allocation15_spill] sm:$0xff] }
 0x3d6   : > { %4855 = vmatpush.bf16.msra.mxu0 %v8217_v57  ;;  %4868 = vmatpush.bf16.msra.mxu1 %v8217_v57 }
 0x3d7   : > { %v7846_v43 = vadd.f32 %v7479_v54, %v4408_v62  ;;  %v7849_v40 = vadd.f32 %v7481_v8, %v4409_v21  ;;  %v4248_v0 = vpop.f32.mrf.mxu2  ;;  %v4276_v60 = vpop.f32.mrf.mxu3  ;;  %v8252_v62 = vld [vmem:[#allocation16_spill] sm:$0xff]  ;;  %v8253_v21 = vld [vmem:[#allocation17_spill] sm:$0xff] }
 0x3d8   : > { %v4394_v52 = vadd.f32 %v4248_v0, %v4162_v42  ;;  %v4395_v47 = vadd.f32 %v4276_v60, %v4163_v53  ;;  %v4194_v61 = vpop.f32.mrf.mxu0  ;;  %v4222_v46 = vpop.f32.mrf.mxu1  ;;  %v8254_v0 = vld [vmem:[#allocation18_spill] sm:$0xff] }
 0x3da   : > { %v4402_v32 = vadd.f32 %v7459_v58, %v4394_v52  ;;  %v4403_v14 = vadd.f32 %v7459_v58, %v4395_v47 }
 0x3dc   : > { %v4410_v15 = vmax.f32 %v4402_v32, 0.0  ;;  %v4411_v22 = vmax.f32 %v4403_v14, 0.0 }
 0x3de   : > { %v7854_v16 = vadd.f32 %v7489_v24, %v4410_v15  ;;  %v7857_v54 = vadd.f32 %v7491_v23, %v4411_v22 }
 0x3df   : > { %v4250_v8 = vpop.f32.mrf.mxu2  ;;  %v4278_v44 = vpop.f32.mrf.mxu3 }
 0x3e0   : > { %v4304_v29 = vpop.f32.mrf.mxu0  ;;  %v4332_v20 = vpop.f32.mrf.mxu1  ;;  %v8255_v44 = vld [vmem:[#allocation9_spill] sm:$0xff] }
 0x3e1   : > { %v4396_v33 = vadd.f32 %v4304_v29, %v4164_v19  ;;  %v4397_v30 = vadd.f32 %v4332_v20, %v4165_v55  ;;  %v8245_v19 = vld [vmem:[#allocation5_spill] sm:$0xff]  ;;  %v8256_v29 = vld [vmem:[#allocation10_spill] sm:$0xff] }
 0x3e2   : > { %v8257_v20 = vld [vmem:[#allocation34_spill] sm:$0xff] }
 0x3e3   : > { %v4404_v42 = vadd.f32 %v7459_v58, %v4396_v33  ;;  %v4405_v53 = vadd.f32 %v7459_v58, %v4397_v30  ;;  %6244 = vmatmul.msk.bf16.vlgmr.msrb.gmra.mxu0 %vm325_vm2, %v7554_v26  ;;  %6245 = vmatmul.msk.bf16.vlgmr.msrb.gmra.mxu1 %vm325_vm2, %v7559_v48  ;;  %v8258_v33 = vld [vmem:[#allocation35_spill] sm:$0xff]  ;;  %v8259_v30 = vld [vmem:[#allocation4_spill] sm:$0xff] }
 0x3e4   : > { %6246 = vmatmul.msk.bf16.vlgmr.msrb.gmra.mxu2 %vm325_vm2, %v7564_v56  ;;  %6247 = vmatmul.msk.bf16.vlgmr.msrb.gmra.mxu3 %vm325_vm2, %v7569_v5 }
 0x3e5   : > { %v4412_v24 = vmax.f32 %v4404_v42, 0.0  ;;  %v4413_v23 = vmax.f32 %v4405_v53, 0.0  ;;  %4933 = vmatpush.bf16.msrb.mxu2 %v8217_v57  ;;  %4946 = vmatpush.bf16.msrb.mxu3 %v8217_v57 }
 0x3e6   : > { %4907 = vmatpush.bf16.msrb.mxu0 %v8217_v57  ;;  %4920 = vmatpush.bf16.msrb.mxu1 %v8217_v57 }
 0x3e7   : > { %v7874_v58 = vadd.f32 %v7513_v35, %v4412_v24  ;;  %v7877_v26 = vadd.f32 %v7515_v7, %v4413_v23  ;;  %v4360_v48 = vpop.f32.mrf.mxu2  ;;  %v4388_v56 = vpop.f32.mrf.mxu3 }
 0x3e8   : > { %v4398_v12 = vadd.f32 %v4360_v48, %v4166_v39  ;;  %v4399_v5 = vadd.f32 %v4388_v56, %v4167_v10  ;;  %v4306_v34 = vpop.f32.mrf.mxu0  ;;  %v4334_v17 = vpop.f32.mrf.mxu1  ;;  %v8247_v39 = vld [vmem:[#allocation12_spill] sm:$0xff]  ;;  %v8248_v10 = vld [vmem:[#allocation13_spill] sm:$0xff] }
 0x3ea   : > { %v4406_v51 = vadd.f32 %v7882_v9, %v4398_v12  ;;  %v4407_v57 = vadd.f32 %v7882_v9, %v4399_v5 }
 0x3ec   : > { %v4414_v35 = vmax.f32 %v4406_v51, 0.0  ;;  %v4415_v59 = vmax.f32 %v4407_v57, 0.0 }
 0x3ee   : > { %v7887_v7 = vadd.f32 %v7525_v27, %v4414_v35  ;;  %v7890_v55 = vadd.f32 %v8245_v19, %v4415_v59  ;;  %v8250_v27 = vld [vmem:[#allocation3_spill] sm:$0xff]  ;;  %v8260_v35 = vld [vmem:[#allocation36_spill] sm:$0xff]  ;;  %v8261_v59 = vld [vmem:[#allocation37_spill] sm:$0xff] }
 0x3ef   : > { %v4362_v1 = vpop.f32.mrf.mxu2  ;;  %v4390_v31 = vpop.f32.mrf.mxu3  ;;  %v8262_v19 = vld [vmem:[#allocation38_spill] sm:$0xff] }
 0x3f0   : > { %v4425_v41 = vpop.f32.mrf.mxu0  ;;  %v4438_v6 = vpop.f32.mrf.mxu1  ;;  %v8263_v1 = vld [vmem:[#allocation39_spill] sm:$0xff] }
 0x3f3   : > { %6248 = vmatmul.msk.bf16.vlgmr.msra.gmra.mxu0 %vm325_vm2, %v8246_v11  ;;  %6249 = vmatmul.msk.bf16.vlgmr.msra.gmra.mxu1 %vm325_vm2, %v8247_v39 }
 0x3f4   : > { %6250 = vmatmul.msk.bf16.vlgmr.msra.gmra.mxu2 %vm325_vm2, %v8248_v10  ;;  %6251 = vmatmul.msk.bf16.vlgmr.msra.gmra.mxu3 %vm325_vm2, %v8249_v63 }
 0x3f5   : > { %4993 = vmatpush.bf16.msra.mxu2 %v8250_v27  ;;  %5006 = vmatpush.bf16.msra.mxu3 %v8250_v27 }
 0x3f6   : > { %4967 = vmatpush.bf16.msra.mxu0 %v8250_v27  ;;  %4980 = vmatpush.bf16.msra.mxu1 %v8250_v27 }
 0x3f7   : > { %v4451_v28 = vpop.f32.mrf.mxu2  ;;  %v4464_v2 = vpop.f32.mrf.mxu3 }
 0x3f8   : > { %v4427_v4 = vpop.f32.mrf.mxu0  ;;  %v4440_v3 = vpop.f32.mrf.mxu1 }
 0x3ff   : > { %v4453_v13 = vpop.f32.mrf.mxu2  ;;  %v4466_v36 = vpop.f32.mrf.mxu3 }
 0x400   : > { %v4477_v38 = vpop.f32.mrf.mxu0  ;;  %v4490_v37 = vpop.f32.mrf.mxu1  ;;  %v8264_v13 = vld [vmem:[#allocation6_spill] sm:$0xff]  ;;  %v8265_v36 = vld [vmem:[#allocation19_spill] sm:$0xff] }
 0x403   : > { %6252 = vmatmul.msk.bf16.vlgmr.msrb.gmra.mxu0 %vm325_vm2, %v8251_v45  ;;  %6253 = vmatmul.msk.bf16.vlgmr.msrb.gmra.mxu1 %vm325_vm2, %v8252_v62  ;;  %v8268_v45 = vld [vmem:[#allocation7_spill] sm:$0xff] }
 0x404   : > { %6254 = vmatmul.msk.bf16.vlgmr.msrb.gmra.mxu2 %vm325_vm2, %v8253_v21  ;;  %6255 = vmatmul.msk.bf16.vlgmr.msrb.gmra.mxu3 %vm325_vm2, %v8254_v0 }
 0x405   : > { %5045 = vmatpush.bf16.msrb.mxu2 %v8250_v27  ;;  %5058 = vmatpush.bf16.msrb.mxu3 %v8250_v27 }
 0x406   : > { %5019 = vmatpush.bf16.msrb.mxu0 %v8250_v27  ;;  %5032 = vmatpush.bf16.msrb.mxu1 %v8250_v27 }
 0x407   : > { %v4503_v60 = vpop.f32.mrf.mxu2  ;;  %v4516_v52 = vpop.f32.mrf.mxu3 }
 0x408   : > { %v4479_v47 = vpop.f32.mrf.mxu0  ;;  %v4492_v61 = vpop.f32.mrf.mxu1 }
 0x40f   : > { %v4505_v46 = vpop.f32.mrf.mxu2  ;;  %v4518_v32 = vpop.f32.mrf.mxu3 }
 0x410   : > { %v4529_v14 = vpop.f32.mrf.mxu0  ;;  %v4542_v15 = vpop.f32.mrf.mxu1 }
 0x411   : > { %v4530_v22 = vadd.f32 %v4529_v14, %v4425_v41  ;;  %v4543_v8 = vadd.f32 %v4542_v15, %v4438_v6 }
 0x413   : > { %6256 = vmatmul.msk.bf16.vlgmr.msra.gmra.mxu0 %vm325_vm2, %v8255_v44  ;;  %6257 = vmatmul.msk.bf16.vlgmr.msra.gmra.mxu1 %vm325_vm2, %v8256_v29  ;;  %v8270_v44 = vld [vmem:[#allocation22_spill] sm:$0xff]  ;;  %v8271_v29 = vld [vmem:[#allocation23_spill] sm:$0xff] }
 0x414   : > { %6258 = vmatmul.msk.bf16.vlgmr.msra.gmra.mxu2 %vm325_vm2, %v8257_v20  ;;  %6259 = vmatmul.msk.bf16.vlgmr.msra.gmra.mxu3 %vm325_vm2, %v8258_v33  ;;  %v8272_v20 = vld [vmem:[#allocation24_spill] sm:$0xff] }
 0x415   : > { %5105 = vmatpush.bf16.msra.mxu2 %v8259_v30  ;;  %5118 = vmatpush.bf16.msra.mxu3 %v8259_v30 }
 0x416   : > { %5079 = vmatpush.bf16.msra.mxu0 %v8259_v30  ;;  %5092 = vmatpush.bf16.msra.mxu1 %v8259_v30 }
 0x417   : > { %v4555_v42 = vpop.f32.mrf.mxu2  ;;  %v4568_v53 = vpop.f32.mrf.mxu3 }
 0x418   : > { %v4556_v24 = vadd.f32 %v4555_v42, %v4451_v28  ;;  %v4569_v23 = vadd.f32 %v4568_v53, %v4464_v2  ;;  %v4531_v48 = vpop.f32.mrf.mxu0  ;;  %v4544_v56 = vpop.f32.mrf.mxu1 }
 0x41f   : > { %v4557_v12 = vpop.f32.mrf.mxu2  ;;  %v4570_v5 = vpop.f32.mrf.mxu3 }
 0x420   : > { %v4581_v34 = vpop.f32.mrf.mxu0  ;;  %v4594_v17 = vpop.f32.mrf.mxu1 }
 0x421   : > { %v4582_v51 = vadd.f32 %v4581_v34, %v4477_v38  ;;  %v4595_v57 = vadd.f32 %v4594_v17, %v4490_v37  ;;  %v8266_v38 = vld [vmem:[#allocation20_spill] sm:$0xff]  ;;  %v8267_v37 = vld [vmem:[#allocation2_spill] sm:$0xff] }
 0x423   : > { %6260 = vmatmul.msk.bf16.vlgmr.msrb.gmra.mxu0 %vm325_vm2, %v8260_v35  ;;  %6261 = vmatmul.msk.bf16.vlgmr.msrb.gmra.mxu1 %vm325_vm2, %v8261_v59  ;;  %v8275_v35 = vld [vmem:[#allocation40_spill] sm:$0xff]  ;;  %v8276_v59 = vld [vmem:[#allocation41_spill] sm:$0xff] }
 0x424   : > { %6262 = vmatmul.msk.bf16.vlgmr.msrb.gmra.mxu2 %vm325_vm2, %v8262_v19  ;;  %6263 = vmatmul.msk.bf16.vlgmr.msrb.gmra.mxu3 %vm325_vm2, %v8263_v1  ;;  %v8277_v19 = vld [vmem:[#allocation8_spill] sm:$0xff] }
 0x425   : > { %5157 = vmatpush.bf16.msrb.mxu2 %v8259_v30  ;;  %5170 = vmatpush.bf16.msrb.mxu3 %v8259_v30 }
 0x426   : > { %5131 = vmatpush.bf16.msrb.mxu0 %v8259_v30  ;;  %5144 = vmatpush.bf16.msrb.mxu1 %v8259_v30 }
 0x427   : > { %v4607_v31 = vpop.f32.mrf.mxu2  ;;  %v4620_v41 = vpop.f32.mrf.mxu3 }
 0x428   : > { %v4608_v6 = vadd.f32 %v4607_v31, %v4503_v60  ;;  %v4621_v11 = vadd.f32 %v4620_v41, %v4516_v52  ;;  %v4583_v39 = vpop.f32.mrf.mxu0  ;;  %v4596_v10 = vpop.f32.mrf.mxu1 }
 0x42f   : > { %v4609_v63 = vpop.f32.mrf.mxu2  ;;  %v4622_v27 = vpop.f32.mrf.mxu3 }
 0x430   : > { %v4633_v28 = vpop.f32.mrf.mxu0  ;;  %v4646_v2 = vpop.f32.mrf.mxu1  ;;  %v6282_v27 = vld [vmem:[%s6505_s21 + $0xe0] sm:$0xf] }
 0x431   : > { %v4728_v4 = vadd.f32 %v4633_v28, %v4530_v22  ;;  %v4729_v3 = vadd.f32 %v4646_v2, %v4543_v8  ;;  %v8269_v8 = vld [vmem:[#allocation21_spill] sm:$0xff]  ;;  %v6379_v28 = vld [vmem:[%s6505_s21 + $0xe0] sm:$0x10] }
 0x433   : > { %6264 = vmatmul.msk.bf16.vlgmr.msra.gmra.mxu0 %vm325_vm2, %v8264_v13  ;;  %6265 = vmatmul.msk.bf16.vlgmr.msra.gmra.mxu1 %vm325_vm2, %v8265_v36  ;;  %v6380_v13 = vld [vmem:[%s6505_s21 + $0xe8] sm:$0x10]  ;;  %v6292_v36 = vld [vmem:[%s6505_s21 + $0xf0] sm:$0xf] }
 0x434   : > { %6266 = vmatmul.msk.bf16.vlgmr.msra.gmra.mxu2 %vm325_vm2, %v8266_v38  ;;  %6267 = vmatmul.msk.bf16.vlgmr.msra.gmra.mxu3 %vm325_vm2, %v8267_v37 }
 0x435   : > { %5217 = vmatpush.bf16.msra.mxu2 %v8268_v45  ;;  %5230 = vmatpush.bf16.msra.mxu3 %v8268_v45 }
 0x436   : > { %5191 = vmatpush.bf16.msra.mxu0 %v8268_v45  ;;  %5204 = vmatpush.bf16.msra.mxu1 %v8268_v45 }
 0x437   : > { %v4659_v62 = vpop.f32.mrf.mxu2  ;;  %v4672_v21 = vpop.f32.mrf.mxu3 }
 0x438   : > { %v4730_v0 = vadd.f32 %v4659_v62, %v4556_v24  ;;  %v4731_v60 = vadd.f32 %v4672_v21, %v4569_v23  ;;  %v4635_v52 = vpop.f32.mrf.mxu0  ;;  %v4648_v47 = vpop.f32.mrf.mxu1  ;;  %v6297_v62 = vld [vmem:[%s6505_s21 + $0xf8] sm:$0xf]  ;;  %v6382_v21 = vld [vmem:[%s6505_s21 + $0xf8] sm:$0x10] }
 0x439   : > { %v6298_v47 = vor.u32 %v6382_v21, %v6297_v62 }
 0x43f   : > { %v4661_v61 = vpop.f32.mrf.mxu2  ;;  %v4674_v46 = vpop.f32.mrf.mxu3 }
 0x440   : > { %v4685_v32 = vpop.f32.mrf.mxu0  ;;  %v4698_v14 = vpop.f32.mrf.mxu1 }
 0x441   : > { %v4732_v15 = vadd.f32 %v4685_v32, %v4582_v51  ;;  %v4733_v22 = vadd.f32 %v4698_v14, %v4595_v57  ;;  %v8273_v51 = vld [vmem:[#allocation25_spill] sm:$0xff]  ;;  %v8274_v57 = vld [vmem:[#allocation26_spill] sm:$0xff] }
 0x443   : > { %6268 = vmatmul.msk.bf16.vlgmr.msrb.gmra.mxu0 %vm325_vm2, %v8269_v8  ;;  %6269 = vmatmul.msk.bf16.vlgmr.msrb.gmra.mxu1 %vm325_vm2, %v8270_v44 }
 0x444   : > { %6270 = vmatmul.msk.bf16.vlgmr.msrb.gmra.mxu2 %vm325_vm2, %v8271_v29  ;;  %6271 = vmatmul.msk.bf16.vlgmr.msrb.gmra.mxu3 %vm325_vm2, %v8272_v20 }
 0x445   : > { %5269 = vmatpush.bf16.msrb.mxu2 %v8268_v45  ;;  %5282 = vmatpush.bf16.msrb.mxu3 %v8268_v45 }
 0x446   : > { %5243 = vmatpush.bf16.msrb.mxu0 %v8268_v45  ;;  %5256 = vmatpush.bf16.msrb.mxu1 %v8268_v45  ;;  %v6381_v45 = vld [vmem:[%s6505_s21 + $0xf0] sm:$0x10] }
 0x447   : > { %v4711_v33 = vpop.f32.mrf.mxu2  ;;  %v4724_v30 = vpop.f32.mrf.mxu3  ;;  %v6293_v52 = vor.u32 %v6381_v45, %v6292_v36 }
 0x448   : > { %v4734_v42 = vadd.f32 %v4711_v33, %v4608_v6  ;;  %v4735_v53 = vadd.f32 %v4724_v30, %v4621_v11  ;;  %v4687_v24 = vpop.f32.mrf.mxu0  ;;  %v4700_v23 = vpop.f32.mrf.mxu1 }
 0x449   : > { %v5358_v33 = vshrl.u32 %v6293_v52, 16  ;;  %v5386_v24 = vshrl.u32 %v6298_v47, 16 }
 0x44f   : > { %v4713_v48 = vpop.f32.mrf.mxu2  ;;  %v4726_v56 = vpop.f32.mrf.mxu3 }
 0x450   : > { %v4745_v12 = vpop.f32.mrf.mxu0  ;;  %v4758_v5 = vpop.f32.mrf.mxu1 }
 0x451   : > { %v7964_v34 = vadd.f32 %v4745_v12, %v4728_v4  ;;  %v7966_v17 = vadd.f32 %v4758_v5, %v4729_v3  ;;  %v6287_v3 = vld [vmem:[%s6505_s21 + $0xe8] sm:$0xf]  ;;  %v6302_v12 = vld [vmem:[%s6505_s21 + $0x100] sm:$0xf]  ;;  %v6383_v5 = vld [vmem:[%s6505_s21 + $0x100] sm:$0x10] }
 0x453   : > { %6272 = vmatmul.msk.bf16.vlgmr.msra.gmra.mxu0 %vm325_vm2, %v8273_v51  ;;  %6273 = vmatmul.msk.bf16.vlgmr.msra.gmra.mxu1 %vm325_vm2, %v8274_v57 }
 0x454   : > { %6274 = vmatmul.msk.bf16.vlgmr.msra.gmra.mxu2 %vm325_vm2, %v8275_v35  ;;  %6275 = vmatmul.msk.bf16.vlgmr.msra.gmra.mxu3 %vm325_vm2, %v8276_v59 }
 0x455   : > { %5374 = vmatpush.bf16.msra.mxu2 %v8277_v19  ;;  %5402 = vmatpush.bf16.msra.mxu3 %v8277_v19 }
 0x456   : > { %5318 = vmatpush.bf16.msra.mxu0 %v8277_v19  ;;  %5346 = vmatpush.bf16.msra.mxu1 %v8277_v19 }
 0x457   : > { %v4771_v1 = vpop.f32.mrf.mxu2  ;;  %v4784_v31 = vpop.f32.mrf.mxu3 }
 0x458   : > { %v7980_v41 = vadd.f32 %v4771_v1, %v4730_v0  ;;  %v7982_v6 = vadd.f32 %v4784_v31, %v4731_v60  ;;  %v4747_v11 = vpop.f32.mrf.mxu0  ;;  %v4760_v39 = vpop.f32.mrf.mxu1  ;;  %v6283_v0 = vor.u32 %v6379_v28, %v6282_v27  ;;  %v6288_v60 = vor.u32 %v6380_v13, %v6287_v3  ;;  %v6384_v1 = vld [vmem:[%s6505_s21 + $0x108] sm:$0x10]  ;;  %v6312_v31 = vld [vmem:[%s6505_s21 + $0x110] sm:$0xf]  ;;  %v6386_v27 = vld [vmem:[%s6505_s21 + $0x118] sm:$0x10] }
 0x459   : > { %v6303_v28 = vor.u32 %v6383_v5, %v6302_v12 }
 0x45a   : > { %v5304_v61 = vshll.u32 %v6283_v0, 16  ;;  %v5332_v46 = vshll.u32 %v6288_v60, 16  ;;  %v5302_v8 = vshrl.u32 %v6283_v0, 16  ;;  %v5330_v29 = vshrl.u32 %v6288_v60, 16 }
 0x45c   : > { %v5306_v44 = vrot.slane %v5304_v61, 1  ;;  %v5334_v20 = vrot.slane %v5332_v46, 1 }
 0x45e   : > { %v5307_v48 = vor.u32 %v5306_v44, %v5302_v8  ;;  %v5335_v56 = vor.u32 %v5334_v20, %v5330_v29 }
 0x45f   : > { %v4773_v10 = vpop.f32.mrf.mxu2  ;;  %v4786_v63 = vpop.f32.mrf.mxu3 }
 0x460   : > { %v4797_v2 = vpop.f32.mrf.mxu0  ;;  %v4810_v4 = vpop.f32.mrf.mxu1  ;;  %v6385_v10 = vld [vmem:[%s6505_s21 + $0x110] sm:$0x10]  ;;  %v6317_v63 = vld [vmem:[%s6505_s21 + $0x118] sm:$0xf] }
 0x461   : > { %v7989_v38 = vadd.f32 %v4797_v2, %v4732_v15  ;;  %v7991_v37 = vadd.f32 %v4810_v4, %v4733_v22  ;;  %v5360_v15 = vshll.u32 %v6293_v52, 16  ;;  %v5388_v22 = vshll.u32 %v6298_v47, 16 }
 0x462   : > { %v6313_v4 = vor.u32 %v6385_v10, %v6312_v31  ;;  %v6318_v3 = vor.u32 %v6386_v27, %v6317_v63  ;;  %v5414_v47 = vshrl.u32 %v6303_v28, 16 }
 0x463   : > { %6276 = vmatmul.msk.bf16.vlgmr.msrb.gmra.mxu0 %vm325_vm2, %v7733_v50  ;;  %6277 = vmatmul.msk.bf16.vlgmr.msrb.gmra.mxu1 %vm325_vm2, %v7735_v25  ;;  %v5362_v30 = vrot.slane %v5360_v15, 1 }
 0x464   : > { %6278 = vmatmul.msk.bf16.vlgmr.msrb.gmra.mxu2 %vm325_vm2, %v7737_v49  ;;  %6279 = vmatmul.msk.bf16.vlgmr.msrb.gmra.mxu3 %vm325_vm2, %v7739_v18  ;;  %v5472_v60 = vshll.u32 %v6313_v4, 16  ;;  %v5500_v52 = vshll.u32 %v6318_v3, 16  ;;  %v5470_v46 = vshrl.u32 %v6313_v4, 16 }
 0x465   : > { %5486 = vmatpush.bf16.msrb.mxu2 %v8277_v19  ;;  %5514 = vmatpush.bf16.msrb.mxu3 %v8277_v19  ;;  %v5363_v35 = vor.u32 %v5362_v30, %v5358_v33 }
 0x466   : > { %5430 = vmatpush.bf16.msrb.mxu0 %v8277_v19  ;;  %5458 = vmatpush.bf16.msrb.mxu1 %v8277_v19  ;;  %v6307_v19 = vld [vmem:[%s6505_s21 + $0x108] sm:$0xf]  ;;  %v5502_v15 = vrot.slane %v5500_v52, 1 }
 0x467   : > { %v4823_v50 = vpop.f32.mrf.mxu2  ;;  %v4836_v25 = vpop.f32.mrf.mxu3  ;;  %v6308_v2 = vor.u32 %v6384_v1, %v6307_v19 }
 0x468   : > { %v8008_v32 = vadd.f32 %v4823_v50, %v4734_v42  ;;  %v8010_v49 = vadd.f32 %v4836_v25, %v4735_v53  ;;  %v4799_v14 = vpop.f32.mrf.mxu0  ;;  %v4812_v18 = vpop.f32.mrf.mxu1  ;;  %v5390_v42 = vrot.slane %v5388_v22, 1 }
 0x469   : > { %v5444_v45 = vshll.u32 %v6308_v2, 16  ;;  %v5442_v25 = vshrl.u32 %v6308_v2, 16  ;;  %v5474_v14 = vrot.slane %v5472_v60, 1  ;;  %v5498_v18 = vshrl.u32 %v6318_v3, 16 }
 0x46a   : > { %v5391_v59 = vor.u32 %v5390_v42, %v5386_v24 }
 0x46b   : > { %v5446_v61 = vrot.slane %v5444_v45, 1  ;;  %v5475_v33 = vor.u32 %v5474_v14, %v5470_v46 }
 0x46d   : > { %v5447_v29 = vor.u32 %v5446_v61, %v5442_v25 }
 0x46f   : > { %v4825_v53 = vpop.f32.mrf.mxu2  ;;  %v4838_v23 = vpop.f32.mrf.mxu3 }
 0x470   : > { %v4857_v51 = vpop.f32.mrf.mxu0  ;;  %v4870_v57 = vpop.f32.mrf.mxu1 }
 0x471   : > { %v4952_v11 = vadd.f32 %v4857_v51, %v7964_v34  ;;  %v4953_v39 = vadd.f32 %v4870_v57, %v7966_v17  ;;  %v5416_v34 = vshll.u32 %v6303_v28, 16 }
 0x473   : > { %6284 = vmatmul.msk.bf16.vlgmr.msra.gmra.mxu0 %vm325_vm2, %v5307_v48  ;;  %6289 = vmatmul.msk.bf16.vlgmr.msra.gmra.mxu1 %vm325_vm2, %v5335_v56  ;;  %v5418_v50 = vrot.slane %v5416_v34, 1 }
 0x474   : > { %6294 = vmatmul.msk.bf16.vlgmr.msra.gmra.mxu2 %vm325_vm2, %v5363_v35  ;;  %6299 = vmatmul.msk.bf16.vlgmr.msra.gmra.mxu3 %vm325_vm2, %v5391_v59 }
 0x475   : > { %v5419_v44 = vor.u32 %v5418_v50, %v5414_v47 }
 0x477   : > { %v4883_v13 = vpop.f32.mrf.mxu2  ;;  %v4896_v36 = vpop.f32.mrf.mxu3 }
 0x478   : > { %v4954_v17 = vadd.f32 %v4883_v13, %v7980_v41  ;;  %v4955_v62 = vadd.f32 %v4896_v36, %v7982_v6  ;;  %v4859_v21 = vpop.f32.mrf.mxu0  ;;  %v4872_v0 = vpop.f32.mrf.mxu1  ;;  %v5503_v6 = vor.u32 %v5502_v15, %v5498_v18 }
 0x47f   : > { %v4885_v22 = vpop.f32.mrf.mxu2  ;;  %v4898_v8 = vpop.f32.mrf.mxu3 }
 0x480   : > { %v4909_v20 = vpop.f32.mrf.mxu0  ;;  %v4922_v41 = vpop.f32.mrf.mxu1 }
 0x481   : > { %v4956_v30 = vadd.f32 %v4909_v20, %v7989_v38  ;;  %v4957_v24 = vadd.f32 %v4922_v41, %v7991_v37 }
 0x483   : > { %6304 = vmatmul.msk.bf16.vlgmr.msrb.gmra.mxu0 %vm325_vm2, %v5419_v44  ;;  %6309 = vmatmul.msk.bf16.vlgmr.msrb.gmra.mxu1 %vm325_vm2, %v5447_v29 }
 0x484   : > { %6314 = vmatmul.msk.bf16.vlgmr.msrb.gmra.mxu2 %vm325_vm2, %v5475_v33  ;;  %6319 = vmatmul.msk.bf16.vlgmr.msrb.gmra.mxu3 %vm325_vm2, %v5503_v6 }
 0x487   : > { %v4935_v42 = vpop.f32.mrf.mxu2  ;;  %v4948_v53 = vpop.f32.mrf.mxu3 }
 0x488   : > { %v4958_v23 = vadd.f32 %v4935_v42, %v8008_v32  ;;  %v4959_v48 = vadd.f32 %v4948_v53, %v8010_v49  ;;  %v4911_v56 = vpop.f32.mrf.mxu0  ;;  %v4924_v12 = vpop.f32.mrf.mxu1 }
 0x48f   : > { %v4937_v5 = vpop.f32.mrf.mxu2  ;;  %v4950_v38 = vpop.f32.mrf.mxu3 }
 0x490   : > { %v4969_v51 = vpop.f32.mrf.mxu0  ;;  %v4982_v37 = vpop.f32.mrf.mxu1 }
 0x491   : > { %v5064_v57 = vadd.f32 %v4969_v51, %v4952_v11  ;;  %v5065_v35 = vadd.f32 %v4982_v37, %v4953_v39 }
 0x497   : > { %v4995_v59 = vpop.f32.mrf.mxu2  ;;  %v5008_v19 = vpop.f32.mrf.mxu3 }
 0x498   : > { %v5066_v1 = vadd.f32 %v4995_v59, %v4954_v17  ;;  %v5067_v31 = vadd.f32 %v5008_v19, %v4955_v62  ;;  %v4971_v10 = vpop.f32.mrf.mxu0  ;;  %v4984_v63 = vpop.f32.mrf.mxu1 }
 0x49f   : > { %v4997_v27 = vpop.f32.mrf.mxu2  ;;  %v5010_v28 = vpop.f32.mrf.mxu3 }
 0x4a0   : > { %v5021_v2 = vpop.f32.mrf.mxu0  ;;  %v5034_v32 = vpop.f32.mrf.mxu1 }
 0x4a1   : > { %v8036_v4 = vadd.f32 %v5021_v2, %v4956_v30  ;;  %v8038_v49 = vadd.f32 %v5034_v32, %v4957_v24 }
 0x4a7   : > { %v5047_v3 = vpop.f32.mrf.mxu2  ;;  %v5060_v13 = vpop.f32.mrf.mxu3 }
 0x4a8   : > { %v8040_v36 = vadd.f32 %v5047_v3, %v4958_v23  ;;  %v8042_v11 = vadd.f32 %v5060_v13, %v4959_v48  ;;  %v5023_v39 = vpop.f32.mrf.mxu0  ;;  %v5036_v34 = vpop.f32.mrf.mxu1 }
 0x4af   : > { %v5049_v45 = vpop.f32.mrf.mxu2  ;;  %v5062_v17 = vpop.f32.mrf.mxu3 }
 0x4b0   : > { %v5081_v62 = vpop.f32.mrf.mxu0  ;;  %v5094_v21 = vpop.f32.mrf.mxu1 }
 0x4b1   : > { %v5176_v38 = vadd.f32 %v5081_v62, %v5064_v57  ;;  %v5177_v51 = vadd.f32 %v5094_v21, %v5065_v35 }
 0x4b7   : > { %v5107_v0 = vpop.f32.mrf.mxu2  ;;  %v5120_v60 = vpop.f32.mrf.mxu3 }
 0x4b8   : > { %v5083_v52 = vpop.f32.mrf.mxu0  ;;  %v5096_v47 = vpop.f32.mrf.mxu1  ;;  %v5178_v13 = vadd.f32 %v5107_v0, %v5066_v1  ;;  %v5179_v39 = vadd.f32 %v5120_v60, %v5067_v31 }
 0x4bf   : > { %v5109_v50 = vpop.f32.mrf.mxu2  ;;  %v5122_v25 = vpop.f32.mrf.mxu3 }
 0x4c0   : > { %v5133_v61 = vpop.f32.mrf.mxu0  ;;  %v5146_v46 = vpop.f32.mrf.mxu1 }
 0x4c7   : > { %v8044_v14 = vpop.f32.mrf.mxu2  ;;  %v8046_v18 = vpop.f32.mrf.mxu3 }
 0x4c8   : > { %v5135_v15 = vpop.f32.mrf.mxu0  ;;  %v5148_v22 = vpop.f32.mrf.mxu1 }
 0x4cf   : > { %v5161_v8 = vpop.f32.mrf.mxu2  ;;  %v5174_v44 = vpop.f32.mrf.mxu3 }
 0x4d0   : > { %v5193_v29 = vpop.f32.mrf.mxu0  ;;  %v5206_v20 = vpop.f32.mrf.mxu1  ;;  %v5180_v44 = vadd.f32 %v5133_v61, %v8036_v4 }
 0x4d1   : > { %v5288_v37 = vadd.f32 %v5193_v29, %v5176_v38  ;;  %v5289_v59 = vadd.f32 %v5206_v20, %v5177_v51  ;;  %v5181_v29 = vadd.f32 %v5146_v46, %v8038_v49 }
 0x4d7   : > { %v5219_v41 = vpop.f32.mrf.mxu2  ;;  %v5232_v33 = vpop.f32.mrf.mxu3 }
 0x4d8   : > { %v5195_v6 = vpop.f32.mrf.mxu0  ;;  %v5208_v30 = vpop.f32.mrf.mxu1  ;;  %v5290_v17 = vadd.f32 %v5219_v41, %v5178_v13  ;;  %v5291_v57 = vadd.f32 %v5232_v33, %v5179_v39 }
 0x4df   : > { %v5221_v24 = vpop.f32.mrf.mxu2  ;;  %v5234_v42 = vpop.f32.mrf.mxu3 }
 0x4e0   : > { %v5245_v53 = vpop.f32.mrf.mxu0  ;;  %v5258_v23 = vpop.f32.mrf.mxu1 }
 0x4e1   : > { %v5292_v33 = vadd.f32 %v5245_v53, %v5180_v44  ;;  %v5293_v6 = vadd.f32 %v5258_v23, %v5181_v29  ;;  %v5183_v53 = vadd.f32 %v8046_v18, %v8042_v11 }
 0x4e7   : > { %v8048_v48 = vpop.f32.mrf.mxu2  ;;  %v8050_v56 = vpop.f32.mrf.mxu3 }
 0x4e8   : > { %v5247_v12 = vpop.f32.mrf.mxu0  ;;  %v5260_v5 = vpop.f32.mrf.mxu1 }
 0x4ef   : > { %v5273_v19 = vpop.f32.mrf.mxu2  ;;  %v5286_v10 = vpop.f32.mrf.mxu3 }
 0x4f0   : > { %v5320_v63 = vpop.f32.mrf.mxu0  ;;  %v5348_v27 = vpop.f32.mrf.mxu1  ;;  %v5295_v19 = vadd.f32 %v8050_v56, %v5183_v53 }
 0x4f1   : > { %v5520_v28 = vadd.f32 %v5320_v63, %v5288_v37  ;;  %v5521_v2 = vadd.f32 %v5348_v27, %v5289_v59 }
 0x4f3   : > { %v5528_v32 = vadd.f32 %v7882_v9, %v5520_v28  ;;  %v5529_v3 = vadd.f32 %v7882_v9, %v5521_v2 }
 0x4f5   : > { %v5536_v34 = vmax.f32 %v5528_v32, 0.0  ;;  %v5537_v45 = vmax.f32 %v5529_v3, 0.0 }
 0x4f7   : > { %v5560_v35 = vadd.f32 %v7846_v43, %v5536_v34  ;;  %v5561_v62 = vadd.f32 %v7849_v40, %v5537_v45  ;;  %v5376_v21 = vpop.f32.mrf.mxu2  ;;  %v5404_v52 = vpop.f32.mrf.mxu3 }
 0x4f8   : > { %v5522_v47 = vadd.f32 %v5376_v21, %v5290_v17  ;;  %v5523_v50 = vadd.f32 %v5404_v52, %v5291_v57  ;;  %v5322_v25 = vpop.f32.mrf.mxu0  ;;  %v5350_v15 = vpop.f32.mrf.mxu1 }
 0x4f9   : > { %v5568_v22 = vmul.f32 0.25, %v5560_v35  ;;  %v5569_v8 = vmul.f32 0.25, %v5561_v62 }
 0x4fa   : > { %v5530_v43 = vadd.f32 %v7882_v9, %v5522_v47  ;;  %v5531_v40 = vadd.f32 %v7882_v9, %v5523_v50 }
 0x4fb   : > { %v5576_v1 = vpack.c.bf16 %v5568_v22, %v5568_v22  ;;  %v5577_v31 = vpack.c.bf16 %v5569_v8, %v5569_v8 }
 0x4fc   : > { %v5538_v0 = vmax.f32 %v5530_v43, 0.0  ;;  %v5539_v60 = vmax.f32 %v5531_v40, 0.0 }
 0x4fd   : > { %5585 = vst.msk [vmem:[%s8060_s18] sm:$0xf] %vm5584_vm3, %v5576_v1 }
 0x4fe   : > { %5586 = vst.msk [vmem:[%s8060_s18 + $0x4] sm:$0xf] %vm5584_vm3, %v5577_v31  ;;  %v5562_v20 = vadd.f32 %v7854_v16, %v5538_v0  ;;  %v5563_v41 = vadd.f32 %v7857_v54, %v5539_v60  ;;  %v5182_v54 = vadd.f32 %v8044_v14, %v8040_v36 }
 0x4ff   : > { %v5378_v30 = vpop.f32.mrf.mxu2  ;;  %v5406_v24 = vpop.f32.mrf.mxu3 }
 0x500   : > { %v5570_v42 = vmul.f32 0.25, %v5562_v20  ;;  %v5571_v12 = vmul.f32 0.25, %v5563_v41  ;;  %v5432_v5 = vpop.f32.mrf.mxu0  ;;  %v5460_v4 = vpop.f32.mrf.mxu1  ;;  %v5294_v59 = vadd.f32 %v8048_v48, %v5182_v54 }
 0x501   : > { %v5524_v61 = vadd.f32 %v5432_v5, %v5292_v33  ;;  %v5525_v49 = vadd.f32 %v5460_v4, %v5293_v6 }
 0x502   : > { %v5578_v46 = vpack.c.bf16 %v5570_v42, %v5570_v42  ;;  %v5579_v38 = vpack.c.bf16 %v5571_v12, %v5571_v12 }
 0x503   : > { %v5532_v51 = vadd.f32 %v7882_v9, %v5524_v61  ;;  %v5533_v16 = vadd.f32 %v7882_v9, %v5525_v49 }
 0x504   : > { %5587 = vst.msk [vmem:[%s8060_s18 + $0x8] sm:$0xf] %vm5584_vm3, %v5578_v46 }
 0x505   : > { %5588 = vst.msk [vmem:[%s8060_s18 + $0xc] sm:$0xf] %vm5584_vm3, %v5579_v38  ;;  %v5540_v23 = vmax.f32 %v5532_v51, 0.0  ;;  %v5541_v37 = vmax.f32 %v5533_v16, 0.0 }
 0x507   : > { %v5564_v10 = vadd.f32 %v7874_v58, %v5540_v23  ;;  %v5565_v63 = vadd.f32 %v7877_v26, %v5541_v37  ;;  %v5488_v36 = vpop.f32.mrf.mxu2  ;;  %v5516_v14 = vpop.f32.mrf.mxu3 }
 0x508   : > { %v5526_v27 = vadd.f32 %v5488_v36, %v5294_v59  ;;  %v5527_v11 = vadd.f32 %v5516_v14, %v5295_v19  ;;  %v5434_v18 = vpop.f32.mrf.mxu0  ;;  %v5462_v28 = vpop.f32.mrf.mxu1 }
 0x509   : > { %v5572_v2 = vmul.f32 0.25, %v5564_v10  ;;  %v5573_v32 = vmul.f32 0.25, %v5565_v63 }
 0x50a   : > { %v5534_v3 = vadd.f32 %v7882_v9, %v5526_v27  ;;  %v5535_v48 = vadd.f32 %v7882_v9, %v5527_v11 }
 0x50b   : > { %v5580_v56 = vpack.c.bf16 %v5572_v2, %v5572_v2  ;;  %v5581_v58 = vpack.c.bf16 %v5573_v32, %v5573_v32 }
 0x50c   : > { %v5542_v13 = vmax.f32 %v5534_v3, 0.0  ;;  %v5543_v39 = vmax.f32 %v5535_v48, 0.0 }
 0x50d   : > { %5589 = vst.msk [vmem:[%s8060_s18 + $0x10] sm:$0xf] %vm5584_vm3, %v5580_v56 }
 0x50e   : > { %5590 = vst.msk [vmem:[%s8060_s18 + $0x14] sm:$0xf] %vm5584_vm3, %v5581_v58  ;;  %v5566_v26 = vadd.f32 %v7887_v7, %v5542_v13  ;;  %v5567_v34 = vadd.f32 %v7890_v55, %v5543_v39 }
 0x50f   : > { %v5490_v45 = vpop.f32.mrf.mxu2  ;;  %v5518_v17 = vpop.f32.mrf.mxu3 }
 0x510   : > { %v5574_v57 = vmul.f32 0.25, %v5566_v26  ;;  %v5575_v35 = vmul.f32 0.25, %v5567_v34 }
 0x512   : > { %v5582_v62 = vpack.c.bf16 %v5574_v57, %v5574_v57  ;;  %v5583_v21 = vpack.c.bf16 %v5575_v35, %v5575_v35 }
 0x514   : > { %5591 = vst.msk [vmem:[%s8060_s18 + $0x18] sm:$0xf] %vm5584_vm3, %v5582_v62 }
 0x515   : > { %5592 = vst.msk [vmem:[%s8060_s18 + $0x1c] sm:$0xf] %vm5584_vm3, %v5583_v21 }
 0x516 PF: > { %s13_s12 = sadd.s32 1, %s6453_s12  }
 0x517   : > { %p10_p4 = scmp.ge.s32.totalorder %s13_s12, 4  }
 0x519   :  { %12 = sbr.rel (!%p10_p4) target bundleno = 1 (0x1), region = 77 }

</bundles_post_ra>
